<compile_context>
chip_gen: v7x
topology: tpu7x:2x2x1
jax: 0.10.0
libtpu: 0.0.40
codegen_flags: <defaults>
</compile_context>

<pallas_src>
import jax
import jax.numpy as jnp
from jax.experimental import pallas as pl
from jax.experimental.pallas import tpu as pltpu


# ----------------------------------------------------------------------------
# Pallas kernel
# ----------------------------------------------------------------------------
def xconv_kernel(pts_ref, ff_ref,
                 wl_ref, bl_ref,
                 w1_ref, b1_ref,
                 w2_ref, b2_ref,
                 w3_ref, b3_ref,
                 wc_ref, bc_ref,
                 out_ref):
    Co = out_ref.shape[1]              # out_feature

    plocal = pts_ref[...]              # (tm, K*D)  bf16  (points - representative)

    # ---- lifting SharedMLP (folded BN): block-diag matmul that lands directly
    #      in the [lifted | features] concat layout; feature slots are zero and
    #      then filled by adding the zero-padded raw-feature slab ---------------
    lift = jnp.maximum(
        jnp.dot(plocal, wl_ref[...], preferred_element_type=jnp.float32)
        + bl_ref[...], 0.0)                                    # (tm, K*F) f32
    featc = (lift + ff_ref[...].astype(jnp.float32)).astype(jnp.bfloat16)

    # ---- transformation network (folded BN) ----------------------------------
    t1 = jnp.maximum(
        jnp.dot(plocal, w1_ref[...], preferred_element_type=jnp.float32)
        + b1_ref[...], 0.0).astype(jnp.bfloat16)               # (tm, K*K)
    t2 = jnp.maximum(
        jnp.dot(t1, w2_ref[...], preferred_element_type=jnp.float32)
        + b2_ref[...], 0.0).astype(jnp.bfloat16)               # (tm, K*K)

    # ---- fused bmm(T, featc) + Conv1d, two wide MXU matmuls -------------------
    #   t_big[m, j*K*Co + kk*Co + o] = T[m, kk, j]
    #   p_big[m, j*K*Co + kk*Co + o] = sum_c featc[m, j, c] * Wc[o, c, kk]
    #   out[m, o] = sum_{j, kk} t_big * p_big  + bc[o]
    t_big = (jnp.dot(t2, w3_ref[...], preferred_element_type=jnp.float32)
             + b3_ref[...])                                     # (tm, K*K*Co) f32
    p_big = jnp.dot(featc, wc_ref[...], preferred_element_type=jnp.float32)
    acc = t_big * p_big

    # ---- binary fold of all K*K groups of Co lanes into lanes [0, Co) --------
    w = acc.shape[1]
    while w > Co:
        h = w // 2
        if h >= 128 and h % 128 == 0:
            acc = acc[:, :h] + acc[:, h:w]          # aligned lane-slice add (VPU)
        else:
            acc = acc + pltpu.roll(acc, h, axis=1)  # small lane roll (XLU)
        w = h

    out_ref[...] = acc[:, :Co] + bc_ref[...]


# ----------------------------------------------------------------------------
# Wrapper (layout repacking, BN-folded weight repacking, pallas_call)
# ----------------------------------------------------------------------------
def _round_up(x, m):
    return (x + m - 1) // m * m


def x_conv_forward(points, features, reps, params, tm=512):
    B, N, K, D = points.shape
    C = features.shape[-1]
    LF = params["Wl"].shape[1]
    Q = params["W1"].shape[1]
    Co = params["bc_raw"].shape[-1]
    assert Q == K * K and (K & (K - 1)) == 0, "num_neighbours must be a power of 2"
    M = B * N
    F = LF + C
    KD, KF, KCo = K * D, K * F, K * Co
    Wfull = K * K * Co

    # ---- activations: lane-dense bf16 slabs -----------------------------------
    plocal = (points - reps[:, :, None, :]).reshape(M, KD)
    # zero-pad LF lifted slots in front of each neighbour's C features
    featpad = jnp.pad(features, ((0, 0), (0, 0), (0, 0), (LF, 0))).reshape(M, KF)

    tm = min(_round_up(tm, 16), _round_up(M, 16))
    Mpad = _round_up(M, tm)
    if Mpad != M:
        plocal = jnp.pad(plocal, ((0, Mpad - M), (0, 0)))
        featpad = jnp.pad(featpad, ((0, Mpad - M), (0, 0)))
    plocal = plocal.astype(jnp.bfloat16)
    featpad = featpad.astype(jnp.bfloat16)

    # ---- weight repacking (tiny, host-side) -----------------------------------
    bf = lambda x: x.astype(jnp.bfloat16)

    # lifting block-diag landing in the concat layout (zero feature columns)
    wl_bd = jnp.zeros((KD, KF), jnp.float32)
    bl_bd = jnp.zeros((1, KF), jnp.float32)
    for j in range(K):
        wl_bd = wl_bd.at[j * D:(j + 1) * D, j * F:j * F + LF].set(params["Wl"])
        bl_bd = bl_bd.at[0, j * F:j * F + LF].set(params["bl"][0])
    wl_bd = bf(wl_bd)

    w1, w2 = bf(params["W1"]), bf(params["W2"])

    # lane-expanded final transform: w3big[q, j*K*Co + kk*Co + o] = W3[q, kk*K + j]
    w3big = bf(jnp.broadcast_to(
        jnp.transpose(params["W3"].reshape(Q, K, K), (0, 2, 1))[:, :, :, None],
        (Q, K, K, Co)).reshape(Q, Wfull))
    b3big = jnp.broadcast_to(
        jnp.transpose(params["b3"].reshape(1, K, K), (0, 2, 1))[:, :, :, None],
        (1, K, K, Co)).reshape(1, Wfull)

    # block-diag conv weights: wcbig[j*F + c, j*K*Co + kk*Co + o] = Wc[o, c, kk]
    wc_flat = jnp.transpose(params["Wc"], (1, 2, 0)).reshape(F, KCo)
    wcbig = jnp.zeros((KF, Wfull), jnp.float32)
    for j in range(K):
        wcbig = wcbig.at[j * F:(j + 1) * F, j * KCo:(j + 1) * KCo].set(wc_flat)
    wcbig = bf(wcbig)

    bc = params["bc_raw"].reshape(1, Co)

    full = lambda shape: pl.BlockSpec(shape, lambda i, _n=len(shape): (0,) * _n)

    out = pl.pallas_call(
        xconv_kernel,
        out_shape=jax.ShapeDtypeStruct((Mpad, Co), jnp.float32),
        grid_spec=pltpu.PrefetchScalarGridSpec(
            num_scalar_prefetch=0,
            grid=(Mpad // tm,),
            in_specs=[
                pl.BlockSpec((tm, KD), lambda i: (i, 0)),
                pl.BlockSpec((tm, KF), lambda i: (i, 0)),
                full((KD, KF)), full((1, KF)),
                full((KD, Q)), full((1, Q)),
                full((Q, Q)), full((1, Q)),
                full((Q, Wfull)), full((1, Wfull)),
                full((KF, Wfull)),
                full((1, Co)),
            ],
            out_specs=pl.BlockSpec((tm, Co), lambda i: (i, 0)),
        ),
        compiler_params=pltpu.CompilerParams(
            dimension_semantics=("parallel",),
            vmem_limit_bytes=32 * 1024 * 1024),
    )(plocal, featpad,
      wl_bd, bl_bd,
      w1, params["b1"],
      w2, params["b2"],
      w3big, b3big,
      wcbig, bc)

    return reps.reshape(B, N, D), out[:M].reshape(B, N, Co)


# ----------------------------------------------------------------------------
# Deterministic parameter init (BN folded into preceding linear/conv)
# ----------------------------------------------------------------------------
def init_params(key, K, D, C, LF, Co):
    Q = K * K
    eps = 1e-5
    keys = iter(jax.random.split(key, 40))

    def nrm(shape, scale=0.1):
        return scale * jax.random.normal(next(keys), shape, jnp.float32)

    def bn(n):
        g = jax.random.uniform(next(keys), (n,), jnp.float32, 0.5, 1.5)
        b = nrm((n,))
        m = nrm((n,))
        v = jax.random.uniform(next(keys), (n,), jnp.float32, 0.5, 1.5)
        s = g / jnp.sqrt(v + eps)
        return s, b - m * s                      # y = x*s + shift

    # lifting SharedMLP: Conv1d(D, LF, 1) + BN(LF) + ReLU
    Wlc, blc = nrm((LF, D)), nrm((LF,))
    sL, tL = bn(LF)
    Wl = (Wlc * sL[:, None]).T                   # (D, LF)
    bl = (blc * sL + tL)[None, :]

    # MLP1: Linear(K*D, Q) + BN + ReLU
    W1t, b1t = nrm((Q, K * D)), nrm((Q,))
    s1, t1 = bn(Q)
    W1 = (W1t * s1[:, None]).T                   # (K*D, Q)
    b1 = (b1t * s1 + t1)[None, :]

    # MLP2: Linear(Q, Q) + BN + ReLU
    W2t, b2t = nrm((Q, Q)), nrm((Q,))
    s2, t2 = bn(Q)
    W2 = (W2t * s2[:, None]).T
    b2 = (b2t * s2 + t2)[None, :]

    # Linear(Q, Q) + final BatchNorm1d(Q)
    W3t, b3t = nrm((Q, Q)), nrm((Q,))
    s3, t3 = bn(Q)
    W3 = (W3t * s3[:, None]).T
    b3 = (b3t * s3 + t3)[None, :]

    # Conv1d(LF + C, Co, K)
    Wc, bc = nrm((Co, LF + C, K)), nrm((Co,))

    return dict(Wl=Wl, bl=bl, W1=W1, b1=b1, W2=W2, b2=b2, W3=W3, b3=b3,
                Wc=Wc, bc_raw=bc)


# ----------------------------------------------------------------------------
# Pure-JAX reference.  Inputs / weights are rounded to bf16 (and intermediate
# activations re-rounded where the kernel does) so it mirrors the kernel's
# bf16-in / f32-accumulate arithmetic; matmuls run at full f32 precision.
# ----------------------------------------------------------------------------
def x_conv_ref(points, features, reps, p):
    r = lambda x: x.astype(jnp.bfloat16).astype(jnp.float32)
    B, N, K, D = points.shape
    C = features.shape[-1]
    M = B * N
    with jax.default_matmul_precision("highest"):
        plocal = r((points - reps[:, :, None, :]).reshape(M, K, D))
        feats = r(features.reshape(M, K, C))

        lifted = r(jnp.maximum(
            jnp.einsum("mkd,df->mkf", plocal, r(p["Wl"])) + p["bl"], 0.0))
        featc = jnp.concatenate([lifted, feats], axis=-1)

        x = plocal.reshape(M, K * D)
        t1 = r(jnp.maximum(x @ r(p["W1"]) + p["b1"], 0.0))
        t2 = r(jnp.maximum(t1 @ r(p["W2"]) + p["b2"], 0.0))
        T = (t2 @ r(p["W3"]) + p["b3"]).reshape(M, K, K)

        fm = jnp.einsum("mkj,mjc->mkc", T, featc)
        out = jnp.einsum("mkc,ock->mo", fm, r(p["Wc"])) + p["bc_raw"]
    Co = out.shape[-1]
    return reps.reshape(M, D).reshape(B, N, D), out.reshape(B, N, Co)


if __name__ == "__main__":
    key = jax.random.PRNGKey(0)
    K, D, C, Co = 8, 3, 8, 16                     # num_neighbours=8, in=8, out=16
    LF = C // 4                                   # lifting_feature
    params = init_params(jax.random.split(key, 2)[1], K, D, C, LF, Co)

    def run_case(seed, B, N):
        kp, kf, kr = jax.random.split(jax.random.PRNGKey(seed), 3)
        points = jax.random.normal(kp, (B, N, K, D), jnp.float32)
        features = jax.random.normal(kf, (B, N, K, C), jnp.float32)
        reps = jax.random.normal(kr, (B, N, D), jnp.float32)

        rep_out, feat_out = x_conv_forward(points, features, reps, params, tm=512)
        jax.block_until_ready(feat_out)

        rep_ref, feat_ref = x_conv_ref(points, features, reps, params)
        assert rep_out.shape == (B, N, D) and feat_out.shape == (B, N, Co)
        assert bool(jnp.allclose(rep_out, rep_ref, rtol=1e-3, atol=1e-3))
        assert bool(jnp.allclose(feat_out, feat_ref, rtol=2e-3, atol=2e-3))

    # main case: M = 2048 rows -> tm=512, 4 grid steps (split across v7x TCs)
    run_case(0, B=2, N=1024)
    # ragged case: M = 300 rows -> exercises the row-padding / single-step path
    run_case(1, B=3, N=100)

    print("KERNEL_OK")
</pallas_src>

<mosaic_0001>
module attributes {stable_mosaic.version = 11 : i64} {
  func.func @xconv_kernel(%arg0: i32, %arg1: memref<512x24xbf16, #tpu.memory_space<vmem>>, %arg2: memref<512x80xbf16, #tpu.memory_space<vmem>>, %arg3: memref<24x80xbf16, #tpu.memory_space<vmem>>, %arg4: memref<1x80xf32, #tpu.memory_space<vmem>>, %arg5: memref<24x64xbf16, #tpu.memory_space<vmem>>, %arg6: memref<1x64xf32, #tpu.memory_space<vmem>>, %arg7: memref<64x64xbf16, #tpu.memory_space<vmem>>, %arg8: memref<1x64xf32, #tpu.memory_space<vmem>>, %arg9: memref<64x1024xbf16, #tpu.memory_space<vmem>>, %arg10: memref<1x1024xf32, #tpu.memory_space<vmem>>, %arg11: memref<80x1024xbf16, #tpu.memory_space<vmem>>, %arg12: memref<1x16xf32, #tpu.memory_space<vmem>>, %arg13: memref<512x16xf32, #tpu.memory_space<vmem>>) attributes {dimension_semantics = [#tpu.dimension_semantics<parallel>], iteration_bounds = array<i64: 4>, scalar_prefetch = 0 : i64, scratch_operands = 0 : i64, tpu.core_type = #tpu.core_type<tc>, window_params = [{transform_indices = @transform_0, window_bounds = array<i64: 512, 24>}, {transform_indices = @transform_1, window_bounds = array<i64: 512, 80>}, {pipeline_mode = #tpu.pipeline_mode<synchronous>, transform_indices = @transform_2, window_bounds = array<i64: 24, 80>}, {pipeline_mode = #tpu.pipeline_mode<synchronous>, transform_indices = @transform_3, window_bounds = array<i64: 1, 80>}, {pipeline_mode = #tpu.pipeline_mode<synchronous>, transform_indices = @transform_4, window_bounds = array<i64: 24, 64>}, {pipeline_mode = #tpu.pipeline_mode<synchronous>, transform_indices = @transform_5, window_bounds = array<i64: 1, 64>}, {pipeline_mode = #tpu.pipeline_mode<synchronous>, transform_indices = @transform_6, window_bounds = array<i64: 64, 64>}, {pipeline_mode = #tpu.pipeline_mode<synchronous>, transform_indices = @transform_7, window_bounds = array<i64: 1, 64>}, {pipeline_mode = #tpu.pipeline_mode<synchronous>, transform_indices = @transform_8, window_bounds = array<i64: 64, 1024>}, {pipeline_mode = #tpu.pipeline_mode<synchronous>, transform_indices = @transform_9, window_bounds = array<i64: 1, 1024>}, {pipeline_mode = #tpu.pipeline_mode<synchronous>, transform_indices = @transform_10, window_bounds = array<i64: 80, 1024>}, {pipeline_mode = #tpu.pipeline_mode<synchronous>, transform_indices = @transform_11, window_bounds = array<i64: 1, 16>}, {transform_indices = @transform_12, window_bounds = array<i64: 512, 16>}]} {
    %c0 = arith.constant 0 : index
    %c0_0 = arith.constant 0 : index
    %0 = vector.load %arg1[%c0, %c0_0] : memref<512x24xbf16, #tpu.memory_space<vmem>>, vector<512x24xbf16>
    %c0_1 = arith.constant 0 : index
    %c0_2 = arith.constant 0 : index
    %1 = vector.load %arg3[%c0_1, %c0_2] : memref<24x80xbf16, #tpu.memory_space<vmem>>, vector<24x80xbf16>
    %cst = arith.constant dense<0.000000e+00> : vector<512x80xf32>
    %2 = tpu.matmul %0, %1, %cst {dimension_numbers = #tpu.dot_dimension_numbers<[1], [0], [0], [1], [0, 0, 1, 1], [], []>} : vector<512x24xbf16>, vector<24x80xbf16>, vector<512x80xf32> -> vector<512x80xf32>
    %c0_3 = arith.constant 0 : index
    %c0_4 = arith.constant 0 : index
    %3 = vector.load %arg4[%c0_3, %c0_4] : memref<1x80xf32, #tpu.memory_space<vmem>>, vector<1x80xf32>
    %4 = vector.broadcast %3 : vector<1x80xf32> to vector<512x80xf32>
    %5 = arith.addf %2, %4 : vector<512x80xf32>
    %cst_5 = arith.constant 0.000000e+00 : f32
    %6 = vector.broadcast %cst_5 : f32 to vector<512x80xf32>
    %7 = arith.maximumf %5, %6 : vector<512x80xf32>
    %c0_6 = arith.constant 0 : index
    %c0_7 = arith.constant 0 : index
    %8 = vector.load %arg2[%c0_6, %c0_7] : memref<512x80xbf16, #tpu.memory_space<vmem>>, vector<512x80xbf16>
    %9 = arith.extf %8 : vector<512x80xbf16> to vector<512x80xf32>
    %10 = arith.addf %7, %9 : vector<512x80xf32>
    %11 = arith.truncf %10 : vector<512x80xf32> to vector<512x80xbf16>
    %c0_8 = arith.constant 0 : index
    %c0_9 = arith.constant 0 : index
    %12 = vector.load %arg5[%c0_8, %c0_9] : memref<24x64xbf16, #tpu.memory_space<vmem>>, vector<24x64xbf16>
    %cst_10 = arith.constant dense<0.000000e+00> : vector<512x64xf32>
    %13 = tpu.matmul %0, %12, %cst_10 {dimension_numbers = #tpu.dot_dimension_numbers<[1], [0], [0], [1], [0, 0, 1, 1], [], []>} : vector<512x24xbf16>, vector<24x64xbf16>, vector<512x64xf32> -> vector<512x64xf32>
    %c0_11 = arith.constant 0 : index
    %c0_12 = arith.constant 0 : index
    %14 = vector.load %arg6[%c0_11, %c0_12] : memref<1x64xf32, #tpu.memory_space<vmem>>, vector<1x64xf32>
    %15 = vector.broadcast %14 : vector<1x64xf32> to vector<512x64xf32>
    %16 = arith.addf %13, %15 : vector<512x64xf32>
    %cst_13 = arith.constant 0.000000e+00 : f32
    %17 = vector.broadcast %cst_13 : f32 to vector<512x64xf32>
    %18 = arith.maximumf %16, %17 : vector<512x64xf32>
    %19 = arith.truncf %18 : vector<512x64xf32> to vector<512x64xbf16>
    %c0_14 = arith.constant 0 : index
    %c0_15 = arith.constant 0 : index
    %20 = vector.load %arg7[%c0_14, %c0_15] : memref<64x64xbf16, #tpu.memory_space<vmem>>, vector<64x64xbf16>
    %cst_16 = arith.constant dense<0.000000e+00> : vector<512x64xf32>
    %21 = tpu.matmul %19, %20, %cst_16 {dimension_numbers = #tpu.dot_dimension_numbers<[1], [0], [0], [1], [0, 0, 1, 1], [], []>} : vector<512x64xbf16>, vector<64x64xbf16>, vector<512x64xf32> -> vector<512x64xf32>
    %c0_17 = arith.constant 0 : index
    %c0_18 = arith.constant 0 : index
    %22 = vector.load %arg8[%c0_17, %c0_18] : memref<1x64xf32, #tpu.memory_space<vmem>>, vector<1x64xf32>
    %23 = vector.broadcast %22 : vector<1x64xf32> to vector<512x64xf32>
    %24 = arith.addf %21, %23 : vector<512x64xf32>
    %cst_19 = arith.constant 0.000000e+00 : f32
    %25 = vector.broadcast %cst_19 : f32 to vector<512x64xf32>
    %26 = arith.maximumf %24, %25 : vector<512x64xf32>
    %27 = arith.truncf %26 : vector<512x64xf32> to vector<512x64xbf16>
    %c0_20 = arith.constant 0 : index
    %c0_21 = arith.constant 0 : index
    %28 = vector.load %arg9[%c0_20, %c0_21] : memref<64x1024xbf16, #tpu.memory_space<vmem>>, vector<64x1024xbf16>
    %cst_22 = arith.constant dense<0.000000e+00> : vector<512x1024xf32>
    %29 = tpu.matmul %27, %28, %cst_22 {dimension_numbers = #tpu.dot_dimension_numbers<[1], [0], [0], [1], [0, 0, 1, 1], [], []>} : vector<512x64xbf16>, vector<64x1024xbf16>, vector<512x1024xf32> -> vector<512x1024xf32>
    %c0_23 = arith.constant 0 : index
    %c0_24 = arith.constant 0 : index
    %30 = vector.load %arg10[%c0_23, %c0_24] : memref<1x1024xf32, #tpu.memory_space<vmem>>, vector<1x1024xf32>
    %31 = vector.broadcast %30 : vector<1x1024xf32> to vector<512x1024xf32>
    %32 = arith.addf %29, %31 : vector<512x1024xf32>
    %c0_25 = arith.constant 0 : index
    %c0_26 = arith.constant 0 : index
    %33 = vector.load %arg11[%c0_25, %c0_26] : memref<80x1024xbf16, #tpu.memory_space<vmem>>, vector<80x1024xbf16>
    %cst_27 = arith.constant dense<0.000000e+00> : vector<512x1024xf32>
    %34 = tpu.matmul %11, %33, %cst_27 {dimension_numbers = #tpu.dot_dimension_numbers<[1], [0], [0], [1], [0, 0, 1, 1], [], []>} : vector<512x80xbf16>, vector<80x1024xbf16>, vector<512x1024xf32> -> vector<512x1024xf32>
    %35 = arith.mulf %32, %34 : vector<512x1024xf32>
    %36 = vector.extract_strided_slice %35 {offsets = [0, 0], sizes = [512, 512], strides = [1, 1]} : vector<512x1024xf32> to vector<512x512xf32>
    %37 = vector.extract_strided_slice %35 {offsets = [0, 512], sizes = [512, 512], strides = [1, 1]} : vector<512x1024xf32> to vector<512x512xf32>
    %38 = arith.addf %36, %37 : vector<512x512xf32>
    %39 = vector.extract_strided_slice %38 {offsets = [0, 0], sizes = [512, 256], strides = [1, 1]} : vector<512x512xf32> to vector<512x256xf32>
    %40 = vector.extract_strided_slice %38 {offsets = [0, 256], sizes = [512, 256], strides = [1, 1]} : vector<512x512xf32> to vector<512x256xf32>
    %41 = arith.addf %39, %40 : vector<512x256xf32>
    %42 = vector.extract_strided_slice %41 {offsets = [0, 0], sizes = [512, 128], strides = [1, 1]} : vector<512x256xf32> to vector<512x128xf32>
    %43 = vector.extract_strided_slice %41 {offsets = [0, 128], sizes = [512, 128], strides = [1, 1]} : vector<512x256xf32> to vector<512x128xf32>
    %44 = arith.addf %42, %43 : vector<512x128xf32>
    %c64_i32 = arith.constant 64 : i32
    %45 = tpu.dynamic_rotate %44 by %c64_i32 dim 1 : vector<512x128xf32>, i32 -> vector<512x128xf32>
    %46 = arith.addf %44, %45 : vector<512x128xf32>
    %c32_i32 = arith.constant 32 : i32
    %47 = tpu.dynamic_rotate %46 by %c32_i32 dim 1 : vector<512x128xf32>, i32 -> vector<512x128xf32>
    %48 = arith.addf %46, %47 : vector<512x128xf32>
    %c16_i32 = arith.constant 16 : i32
    %49 = tpu.dynamic_rotate %48 by %c16_i32 dim 1 : vector<512x128xf32>, i32 -> vector<512x128xf32>
    %50 = arith.addf %48, %49 : vector<512x128xf32>
    %51 = vector.extract_strided_slice %50 {offsets = [0, 0], sizes = [512, 16], strides = [1, 1]} : vector<512x128xf32> to vector<512x16xf32>
    %c0_28 = arith.constant 0 : index
    %c0_29 = arith.constant 0 : index
    %52 = vector.load %arg12[%c0_28, %c0_29] : memref<1x16xf32, #tpu.memory_space<vmem>>, vector<1x16xf32>
    %53 = vector.broadcast %52 : vector<1x16xf32> to vector<512x16xf32>
    %54 = arith.addf %51, %53 : vector<512x16xf32>
    %c0_30 = arith.constant 0 : index
    %c0_31 = arith.constant 0 : index
    %55 = vector.load %arg13[%c0_30, %c0_31] : memref<512x16xf32, #tpu.memory_space<vmem>>, vector<512x16xf32>
    tpu.vector_store %arg13[%c0_30, %c0_31], %54 {strides = array<i32>} : memref<512x16xf32, #tpu.memory_space<vmem>>, vector<512x16xf32>,
    return
  }
  func.func @transform_0(%arg0: i32) -> (i32, i32) {
    %c0_i32 = arith.constant 0 : i32
    %c0_i32_0 = arith.constant 0 : i32
    return %arg0, %c0_i32 : i32, i32
  }
  func.func @transform_1(%arg0: i32) -> (i32, i32) {
    %c0_i32 = arith.constant 0 : i32
    %c0_i32_0 = arith.constant 0 : i32
    return %arg0, %c0_i32 : i32, i32
  }
  func.func @transform_2(%arg0: i32) -> (i32, i32) {
    %c0_i32 = arith.constant 0 : i32
    %c0_i32_0 = arith.constant 0 : i32
    %c0_i32_1 = arith.constant 0 : i32
    return %c0_i32, %c0_i32_0 : i32, i32
  }
  func.func @transform_3(%arg0: i32) -> (i32, i32) {
    %c0_i32 = arith.constant 0 : i32
    %c0_i32_0 = arith.constant 0 : i32
    %c0_i32_1 = arith.constant 0 : i32
    return %c0_i32, %c0_i32_0 : i32, i32
  }
  func.func @transform_4(%arg0: i32) -> (i32, i32) {
    %c0_i32 = arith.constant 0 : i32
    %c0_i32_0 = arith.constant 0 : i32
    %c0_i32_1 = arith.constant 0 : i32
    return %c0_i32, %c0_i32_0 : i32, i32
  }
  func.func @transform_5(%arg0: i32) -> (i32, i32) {
    %c0_i32 = arith.constant 0 : i32
    %c0_i32_0 = arith.constant 0 : i32
    %c0_i32_1 = arith.constant 0 : i32
    return %c0_i32, %c0_i32_0 : i32, i32
  }
  func.func @transform_6(%arg0: i32) -> (i32, i32) {
    %c0_i32 = arith.constant 0 : i32
    %c0_i32_0 = arith.constant 0 : i32
    %c0_i32_1 = arith.constant 0 : i32
    return %c0_i32, %c0_i32_0 : i32, i32
  }
  func.func @transform_7(%arg0: i32) -> (i32, i32) {
    %c0_i32 = arith.constant 0 : i32
    %c0_i32_0 = arith.constant 0 : i32
    %c0_i32_1 = arith.constant 0 : i32
    return %c0_i32, %c0_i32_0 : i32, i32
  }
  func.func @transform_8(%arg0: i32) -> (i32, i32) {
    %c0_i32 = arith.constant 0 : i32
    %c0_i32_0 = arith.constant 0 : i32
    %c0_i32_1 = arith.constant 0 : i32
    return %c0_i32, %c0_i32_0 : i32, i32
  }
  func.func @transform_9(%arg0: i32) -> (i32, i32) {
    %c0_i32 = arith.constant 0 : i32
    %c0_i32_0 = arith.constant 0 : i32
    %c0_i32_1 = arith.constant 0 : i32
    return %c0_i32, %c0_i32_0 : i32, i32
  }
  func.func @transform_10(%arg0: i32) -> (i32, i32) {
    %c0_i32 = arith.constant 0 : i32
    %c0_i32_0 = arith.constant 0 : i32
    %c0_i32_1 = arith.constant 0 : i32
    return %c0_i32, %c0_i32_0 : i32, i32
  }
  func.func @transform_11(%arg0: i32) -> (i32, i32) {
    %c0_i32 = arith.constant 0 : i32
    %c0_i32_0 = arith.constant 0 : i32
    %c0_i32_1 = arith.constant 0 : i32
    return %c0_i32, %c0_i32_0 : i32, i32
  }
  func.func @transform_12(%arg0: i32) -> (i32, i32) {
    %c0_i32 = arith.constant 0 : i32
    %c0_i32_0 = arith.constant 0 : i32
    return %arg0, %c0_i32 : i32, i32
  }
}

</mosaic_0001>

<bundles_post_ra>
// kernel: tpu_custom_call.1
= control target key start
LH: loop header
LB: loop body
LE: loop exit
PB: predicated region body
PF: predicated region fallthrough
CT: control target
= control target key end

     0   :  { %s8609_s21 = smov 0   ;;  %s14426_s0 = inlined_call_operand.vmem [shape: bf16[2048,24], index: 0, kind: input, shape index: {}]   ;;  %s14427_s1 = inlined_call_operand.vmem [shape: bf16[2048,80], index: 1, kind: input, shape index: {}]   ;;  %s14428_s2 = inlined_call_operand.vmem [shape: bf16[24,80], index: 2, kind: input, shape index: {}]   ;;  %s14429_s3 = inlined_call_operand.vmem [shape: f32[1,80], index: 3, kind: input, shape index: {}]   ;;  %s14430_s4 = inlined_call_operand.vmem [shape: bf16[24,64], index: 4, kind: input, shape index: {}]   ;;  %s14431_s5 = inlined_call_operand.vmem [shape: f32[1,64], index: 5, kind: input, shape index: {}]   ;;  %s14432_s6 = inlined_call_operand.vmem [shape: bf16[64,64], index: 6, kind: input, shape index: {}]   ;;  %s14433_s7 = inlined_call_operand.vmem [shape: f32[1,64], index: 7, kind: input, shape index: {}]   ;;  %s14434_s8 = inlined_call_operand.vmem [shape: bf16[64,1024], index: 8, kind: input, shape index: {}]   ;;  %s14435_s9 = inlined_call_operand.vmem [shape: f32[1,1024], index: 9, kind: input, shape index: {}]   ;;  %s14436_s10 = inlined_call_operand.vmem [shape: bf16[80,1024], index: 10, kind: input, shape index: {}]   ;;  %s14437_s11 = inlined_call_operand.vmem [shape: f32[1,16], index: 11, kind: input, shape index: {}]   ;;  %s14438_s12 = inlined_call_operand.vmem [shape: f32[2048,16], index: 12, kind: output, shape index: {}]  }
   0x1 LB: > { %s7520_s22 = sadd.s32 4294967295, %s8538_s21   ;;  %p7524_p0 = scmp.ge.s32.totalorder %s8538_s21, 1  ;;  %s8538_s21 = sphi %s8609_s21, %s22_s21  }
   0x2   : > { %p374_p1 = scmp.lt.s32.totalorder %s8538_s21, 5 }
   0x4   : > { %p375_p2 = pnand %p7524_p0, %p374_p1 }
   0x6   : > { %378 = sbr.rel (%p375_p2) target bundleno = 2143 (0x85f), region = 68 }
   0xd   : > { %v8491_v0 = vld [vmem:[%s14428_s2] sm:$0xff]   ;;  %v8492_v1 = vld [vmem:[%s14428_s2 + $0x8] ss:$0 sps:$4 sm:$0xff]   ;;  %vm780_vm0 = vcmask 1043456   ;;  %s7525_s27 = sshll.u32 %s7520_s22, 6  ;;  %vm683_vm1 = vcmask 195584  }
   0xe   : > { %8472 = vmatprep.subr.bf16.mxu1 %v8491_v0  ;;  %p422_p3 = scmp.lt.s32.totalorder %s7525_s27, 255  ;;  %8264 = vmatprep.subr.bf16.mxu0 %v8491_v0  ;;  %v8495_v2 = vld [vmem:[%s14430_s4] sm:$0xff]   ;;  %v782_v3 = vsel %vm780_vm0, %v8492_v1, 0  ;;  %v8504_v4 = vld [vmem:[%s14430_s4 + $0x8] ss:$0 sps:$4 sm:$0xff]   ;;  %v8529_v40 = vld [vmem:[%s14432_s6 + $0x10] sm:$0xff]  }
   0xf   : > { %8474 = vmatpush3.bf16.msra.mxu1 %v8491_v0  ;;  %8265 = vmatpush3.bf16.msra.mxu0 %v8491_v0  ;;  %v1381_v8 = vsel %vm780_vm0, %v8504_v4, 0  ;;  %v8527_v38 = vld [vmem:[%s14432_s6] sm:$0xff]   ;;  %v8528_v39 = vld [vmem:[%s14432_s6 + $0x8] sm:$0xff]   ;;  %v8530_v41 = vld [vmem:[%s14432_s6 + $0x18] sm:$0xff]   ;;  %vm1807_vm2 = vcmask 523264   ;;  %vm4271_vm3 = vcmask 654336  }
  0x10   : > { %8477 = vmatprep.subr.msk.bf16.mxu1 %vm780_vm0, %v8492_v1  ;;  %s16138_s27 = smov (!%p422_p3, %s7525_s27), 255  ;;  %8476 = vmatprep.subr.msk.bf16.mxu0 %vm780_vm0, %v8492_v1  ;;  %v2289_v42 = vld [vmem:[%s14434_s8] sm:$0xff]  ;;  %v8813_v44 = vld [vmem:[%s14434_s8 + $0x8] sm:$0xff]  ;;  %s8541_s25 = smov 64   ;;  %vm7387_vm4 = vcmask 130048  }
  0x11   : > { %s7526_s30 = sshll.u32 %s16138_s27, 2  ;;  %v2293_v43 = vld [vmem:[%s14434_s8 + $0x20] sm:$0xff]  ;;  %v8818_v47 = vld [vmem:[%s14434_s8 + $0x28] sm:$0xff]  ;;  %s8542_s26 = smov 32  }
  0x12   : > { %s8637_s15 = scalar_lea.vmem %s14426_s0, %s7526_s30  ;;  %v7670_v45 = vcombine.low %v2289_v42, %v2293_v43  ;;  %v7671_v46 = vcombine.high %v2289_v42, %v2293_v43  ;;  %s8825_s22 = scalar_lea.vmem %s14427_s1, %s7526_s30  ;;  %v7673_v49 = vcombine.high %v8813_v44, %v8818_v47  ;;  %v8834_v50 = vld [vmem:[%s14429_s3] ss:$0 sm:$0xff] }
  0x13   : > { %8475 = vmatpush3.bf16.msra.mxu1 %v782_v3  ;;  %8267 = vmatpush3.bf16.msra.mxu0 %v782_v3  ;;  %v8643_v5 = vld [vmem:[%s8637_s15 + $0x80] sm:$0xff]   ;;  %v8646_v6 = vld [vmem:[%s8637_s15 + $0x88] sm:$0xff]   ;;  %v8651_v7 = vld [vmem:[%s8637_s15 + $0x90] sm:$0xff]   ;;  %s8543_s28 = smov 16   ;;  %s7530_s29 = sshll.u32 %s16138_s27, 3 }
  0x14   : > { %8332 = vmatprep.subr.bf16.mxu1 %v8495_v2  ;;  %8300 = vmatprep.mubr.msk.bf16.mxu1 %vm683_vm1, %v8643_v5  ;;  %v8660_v9 = vld [vmem:[%s8637_s15 + $0x98] sm:$0xff]   ;;  %v8663_v10 = vld [vmem:[%s8637_s15 + $0xa0] sm:$0xff]   ;;  %v8670_v11 = vld [vmem:[%s8637_s15 + $0xa8] sm:$0xff]   ;;  %s13947_s17 = scalar_lea.vmem %s14438_s12, %s7530_s29 }
  0x15   : > { %v8673_v12 = vld [vmem:[%s8637_s15 + $0xb0] sm:$0xff]   ;;  %v8511_v13 = vld [vmem:[%s8637_s15] sm:$0xff]   ;;  %v8512_v14 = vld [vmem:[%s8637_s15 + $0x8] sm:$0xff]   ;;  %8400 = vmatprep.subr.bf16.mxu0 %v8527_v38 }
  0x16   : > { %8301 = vmatmul.mubr.msk.bf16.vlgmr.msra.gmra.mrb[0].mxu1 %vm683_vm1, %v8646_v6  ;;  %v8513_v15 = vld [vmem:[%s8637_s15 + $0x10] sm:$0xff]   ;;  %8268 = vmatprep.mubr.msk.bf16.mxu0 %vm683_vm1, %v8511_v13  ;;  %v8686_v16 = vld [vmem:[%s8637_s15 + $0xb8] sm:$0xff]   ;;  %v8689_v17 = vld [vmem:[%s8637_s15 + $0xc0] sm:$0xff]  }
  0x17   : > { %8333 = vmatpush3.bf16.msra.mxu1 %v8495_v2  ;;  %8304 = vmatprep.mubr.msk.bf16.mxu1 %vm683_vm1, %v8651_v7  ;;  %v8514_v18 = vld [vmem:[%s8637_s15 + $0x18] sm:$0xff]   ;;  %v8515_v19 = vld [vmem:[%s8637_s15 + $0x20] sm:$0xff]   ;;  %v8700_v20 = vld [vmem:[%s8637_s15 + $0xc8] sm:$0xff]  }
  0x18   : > { %8478 = vmatprep.subr.msk.bf16.mxu1 %vm780_vm0, %v8504_v4  ;;  %8269 = vmatmul.mubr.msk.bf16.vlgmr.msra.gmra.mrb[0].mxu0 %vm683_vm1, %v8512_v14  ;;  %v8703_v21 = vld [vmem:[%s8637_s15 + $0xd0] sm:$0xff]   ;;  %v8516_v22 = vld [vmem:[%s8637_s15 + $0x28] sm:$0xff]   ;;  %v8714_v24 = vld [vmem:[%s8637_s15 + $0xd8] sm:$0xff]  }
  0x19   : > { %8272 = vmatprep.mubr.msk.bf16.mxu0 %vm683_vm1, %v8513_v15  ;;  %v8517_v23 = vld [vmem:[%s8637_s15 + $0x30] sm:$0xff]   ;;  %v8717_v25 = vld [vmem:[%s8637_s15 + $0xe0] sm:$0xff]   ;;  %v8518_v26 = vld [vmem:[%s8637_s15 + $0x38] sm:$0xff]   ;;  %8401 = vmatpush3.bf16.msra.mxu0 %v8527_v38 }
  0x1a   : > { %v8519_v27 = vld [vmem:[%s8637_s15 + $0x40] sm:$0xff]   ;;  %v8508_v28 = vld [vmem:[%s8637_s15 + $0xe8] sm:$0xff]   ;;  %v8509_v29 = vld [vmem:[%s8637_s15 + $0xf0] sm:$0xff]   ;;  %8402 = vmatprep.subr.bf16.mxu0 %v8528_v39 }
  0x1b   : > { %8335 = vmatpush3.bf16.msra.mxu1 %v1381_v8  ;;  %v8520_v30 = vld [vmem:[%s8637_s15 + $0x48] sm:$0xff]   ;;  %v8521_v31 = vld [vmem:[%s8637_s15 + $0x50] sm:$0xff]   ;;  %v8510_v32 = vld [vmem:[%s8637_s15 + $0xf8] sm:$0xff]  }
  0x1c   : > { %v8522_v33 = vld [vmem:[%s8637_s15 + $0x58] sm:$0xff]   ;;  %v8523_v34 = vld [vmem:[%s8637_s15 + $0x60] sm:$0xff]   ;;  %v8524_v35 = vld [vmem:[%s8637_s15 + $0x68] sm:$0xff]   ;;  %2619 = vmatprep.subr.bf16.mxu1 %v7671_v46 }
  0x1d   : > { %v8525_v36 = vld [vmem:[%s8637_s15 + $0x70] sm:$0xff]   ;;  %v8526_v37 = vld [vmem:[%s8637_s15 + $0x78] sm:$0xff]   ;;  %8403 = vmatpush3.bf16.msra.mxu0 %v8528_v39  ;;  %v8145_v52 = vld [vmem:[%s8825_s22 + $0x88] sm:$0xff]  }
  0x1e   : > { %8305 = vmatmul.mubr.msk.bf16.gmra.mrb[4].mxu1 %vm683_vm1, %v8660_v9  ;;  %8404 = vmatprep.subr.bf16.mxu0 %v8529_v40  ;;  %v8144_v55 = vld [vmem:[%s8825_s22 + $0x80] sm:$0xff]   ;;  %v8071_v59 = vunpack.c.l.bf16 %v8145_v52  ;;  %v8072_v61 = vunpack.c.h.bf16 %v8145_v52  ;;  %v8147_v4 = vld [vmem:[%s8825_s22 + $0x98] sm:$0xff]  }
  0x1f   : > { %8308 = vmatprep.mubr.msk.bf16.mxu1 %vm683_vm1, %v8663_v10  ;;  %v8067_v0 = vunpack.c.l.bf16 %v8144_v55  ;;  %v8068_v2 = vunpack.c.h.bf16 %v8144_v55 }
  0x20   : > { %8273 = vmatmul.mubr.msk.bf16.gmra.mrb[4].mxu0 %vm683_vm1, %v8514_v18 }
  0x21   : > { %8276 = vmatprep.mubr.msk.bf16.mxu0 %vm683_vm1, %v8515_v19  ;;  %8405 = vmatpush3.bf16.msra.mxu0 %v8529_v40 }
  0x22   : > { %8406 = vmatprep.subr.bf16.mxu0 %v8530_v41 }
  0x25   : > { %8407 = vmatpush3.bf16.msra.mxu0 %v8530_v41 }
  0x26   : > { %8309 = vmatmul.mubr.msk.bf16.gmra.mrb[8].mxu1 %vm683_vm1, %v8670_v11  ;;  %2972 = vmatprep.subr.bf16.mxu0 %v7673_v49 }
  0x27   : > { %8312 = vmatprep.mubr.msk.bf16.mxu1 %vm683_vm1, %v8673_v12 }
  0x28   : > { %8277 = vmatmul.mubr.msk.bf16.gmra.mrb[8].mxu0 %vm683_vm1, %v8516_v22 }
  0x29   : > { %8280 = vmatprep.mubr.msk.bf16.mxu0 %vm683_vm1, %v8517_v23 }
  0x2e   : > { %8313 = vmatmul.mubr.msk.bf16.gmra.mrb[12].mxu1 %vm683_vm1, %v8686_v16 }
  0x2f   : > { %8316 = vmatprep.mubr.msk.bf16.mxu1 %vm683_vm1, %v8689_v17 }
  0x30   : > { %8281 = vmatmul.mubr.msk.bf16.gmra.mrb[12].mxu0 %vm683_vm1, %v8518_v26 }
  0x31   : > { %8284 = vmatprep.mubr.msk.bf16.mxu0 %vm683_vm1, %v8519_v27 }
  0x36   : > { %8317 = vmatmul.mubr.msk.bf16.gmra.mrb[16].mxu1 %vm683_vm1, %v8700_v20 }
  0x37   : > { %8320 = vmatprep.mubr.msk.bf16.mxu1 %vm683_vm1, %v8703_v21 }
  0x38   : > { %8285 = vmatmul.mubr.msk.bf16.gmra.mrb[16].mxu0 %vm683_vm1, %v8520_v30 }
  0x39   : > { %8288 = vmatprep.mubr.msk.bf16.mxu0 %vm683_vm1, %v8521_v31 }
  0x3e   : > { %8321 = vmatmul.mubr.msk.bf16.gmra.mrb[20].mxu1 %vm683_vm1, %v8714_v24 }
  0x3f   : > { %8324 = vmatprep.mubr.msk.bf16.mxu1 %vm683_vm1, %v8717_v25 }
  0x40   : > { %8289 = vmatmul.mubr.msk.bf16.gmra.mrb[20].mxu0 %vm683_vm1, %v8522_v33 }
  0x41   : > { %8292 = vmatprep.mubr.msk.bf16.mxu0 %vm683_vm1, %v8523_v34 }
  0x46   : > { %8325 = vmatmul.mubr.msk.bf16.gmra.mrb[24].mxu1 %vm683_vm1, %v8508_v28 }
  0x47   : > { %8328 = vmatprep.mubr.msk.bf16.mxu1 %vm683_vm1, %v8509_v29 }
  0x48   : > { %8293 = vmatmul.mubr.msk.bf16.gmra.mrb[24].mxu0 %vm683_vm1, %v8524_v35 }
  0x49   : > { %8296 = vmatprep.mubr.msk.bf16.mxu0 %vm683_vm1, %v8525_v36 }
  0x4e   : > { %8329 = vmatmul.mubr.msk.bf16.gmra.mrb[28].mxu1 %vm683_vm1, %v8510_v32 }
  0x4f   : > { %8336 = vmatprep.mubr.msk.bf16.mxu1 %vm683_vm1, %v8511_v13  ;;  %v8079_v13 = vunpack.c.l.bf16 %v8147_v4 }
  0x50   : > { %8297 = vmatmul.mubr.msk.bf16.gmra.mrb[28].mxu0 %vm683_vm1, %v8526_v37 }
  0x56   : > { %8337 = vmatmul.mubr.msk.bf16.vlgmr.msra.gmra.mrb[32].mxu1 %vm683_vm1, %v8512_v14  ;;  %v8848_v14 = vld [vmem:[%s8825_s22 + $0xa0] sm:$0xff]  }
  0x57   : > { %8340 = vmatprep.mubr.msk.bf16.mxu1 %vm683_vm1, %v8513_v15  ;;  %2620 = vmatpush1.bf16.msra.mxu1 %v7670_v45  ;;  %v8084_v41 = vunpack.c.h.bf16 %v8848_v14  ;;  %v8883_v45 = vld [vmem:[%s8825_s22 + $0xd8] sm:$0xff]  }
  0x5e   : > { %8341 = vmatmul.mubr.msk.bf16.gmra.mrb[36].mxu1 %vm683_vm1, %v8514_v18 }
  0x5f   : > { %8344 = vmatprep.mubr.msk.bf16.mxu1 %vm683_vm1, %v8515_v19  ;;  %v8080_v19 = vunpack.c.h.bf16 %v8147_v4 }
  0x66   : > { %8345 = vmatmul.mubr.msk.bf16.gmra.mrb[40].mxu1 %vm683_vm1, %v8516_v22 }
  0x67   : > { %8348 = vmatprep.mubr.msk.bf16.mxu1 %vm683_vm1, %v8517_v23 }
  0x6e   : > { %8349 = vmatmul.mubr.msk.bf16.gmra.mrb[44].mxu1 %vm683_vm1, %v8518_v26  ;;  %v8861_v26 = vld [vmem:[%s8825_s22 + $0xb0] sm:$0xff]  }
  0x6f   : > { %8352 = vmatprep.mubr.msk.bf16.mxu1 %vm683_vm1, %v8519_v27  ;;  %v8091_v43 = vunpack.c.l.bf16 %v8861_v26 }
  0x76   : > { %8353 = vmatmul.mubr.msk.bf16.gmra.mrb[48].mxu1 %vm683_vm1, %v8520_v30  ;;  %v8083_v30 = vunpack.c.l.bf16 %v8848_v14 }
  0x77   : > { %8356 = vmatprep.mubr.msk.bf16.mxu1 %vm683_vm1, %v8521_v31 }
  0x7e   : > { %8357 = vmatmul.mubr.msk.bf16.gmra.mrb[52].mxu1 %vm683_vm1, %v8522_v33  ;;  %v2297_v33 = vld [vmem:[%s14434_s8 + $0x40] sm:$0xff] }
  0x7f   : > { %8360 = vmatprep.mubr.msk.bf16.mxu1 %vm683_vm1, %v8523_v34  ;;  %v2301_v34 = vld [vmem:[%s14434_s8 + $0x60] sm:$0xff] }
  0x80   : > { %v7678_v38 = vcombine.low %v2297_v33, %v2301_v34  ;;  %v7679_v39 = vcombine.high %v2297_v33, %v2301_v34  ;;  %v8130_v33 = vld [vmem:[%s8825_s22 + $0x10] sm:$0xff]  }
  0x82   : > { %2621 = vmatprep.subr.bf16.mxu1 %v7679_v39 }
  0x83   : > { %2622 = vmatpush1.bf16.msra.mxu1 %v7678_v38 }
  0x86   : > { %8361 = vmatmul.mubr.msk.bf16.gmra.mrb[56].mxu1 %vm683_vm1, %v8524_v35 }
  0x87   : > { %8364 = vmatprep.mubr.msk.bf16.mxu1 %vm683_vm1, %v8525_v36 }
  0x8e   : > { %8365 = vmatmul.mubr.msk.bf16.gmra.mrb[60].mxu1 %vm683_vm1, %v8526_v37  ;;  %v8877_v37 = vld [vmem:[%s8825_s22 + $0xc0] sm:$0xff]  }
  0x8f   : > { %8368 = vmatprep.mubr.msk.bf16.mxu1 %vm683_vm1, %v8643_v5 }
  0x96   : > { %8369 = vmatmul.mubr.msk.bf16.gmra.mrb[64].mxu1 %vm683_vm1, %v8646_v6  ;;  %v8146_v6 = vld [vmem:[%s8825_s22 + $0x90] sm:$0xff]  }
  0x97   : > { %8372 = vmatprep.mubr.msk.bf16.mxu1 %vm683_vm1, %v8651_v7  ;;  %v8075_v18 = vunpack.c.l.bf16 %v8146_v6  ;;  %v8076_v23 = vunpack.c.h.bf16 %v8146_v6  ;;  %v8907_v6 = vld [vmem:[%s8825_s22 + $0xf8] sm:$0xff]  }
  0x9e   : > { %8373 = vmatmul.mubr.msk.bf16.gmra.mrb[68].mxu1 %vm683_vm1, %v8660_v9  ;;  %v8845_v9 = vld [vmem:[%s8825_s22 + $0xa8] sm:$0xff]  }
  0x9f   : > { %8376 = vmatprep.mubr.msk.bf16.mxu1 %vm683_vm1, %v8663_v10  ;;  %v8088_v31 = vunpack.c.h.bf16 %v8845_v9 }
  0xa6   : > { %8377 = vmatmul.mubr.msk.bf16.gmra.mrb[72].mxu1 %vm683_vm1, %v8670_v11 }
  0xa7   : > { %8380 = vmatprep.mubr.msk.bf16.mxu1 %vm683_vm1, %v8673_v12 }
  0xae   : > { %8381 = vmatmul.mubr.msk.bf16.gmra.mrb[76].mxu1 %vm683_vm1, %v8686_v16 }
  0xaf   : > { %8384 = vmatprep.mubr.msk.bf16.mxu1 %vm683_vm1, %v8689_v17 }
  0xb6   : > { %8385 = vmatmul.mubr.msk.bf16.gmra.mrb[80].mxu1 %vm683_vm1, %v8700_v20 }
  0xb7   : > { %8388 = vmatprep.mubr.msk.bf16.mxu1 %vm683_vm1, %v8703_v21 }
  0xbe   : > { %8389 = vmatmul.mubr.msk.bf16.gmra.mrb[84].mxu1 %vm683_vm1, %v8714_v24  ;;  %v8087_v24 = vunpack.c.l.bf16 %v8845_v9 }
  0xbf   : > { %8392 = vmatprep.mubr.msk.bf16.mxu1 %vm683_vm1, %v8717_v25  ;;  %v8858_v25 = vld [vmem:[%s8825_s22 + $0xb8] sm:$0xff]  }
  0xc0   : > { %v8095_v42 = vunpack.c.l.bf16 %v8858_v25  ;;  %v8096_v49 = vunpack.c.h.bf16 %v8858_v25 }
  0xc6   : > { %8393 = vmatmul.mubr.msk.bf16.gmra.mrb[88].mxu1 %vm683_vm1, %v8508_v28 }
  0xc7   : > { %8396 = vmatprep.mubr.msk.bf16.mxu1 %vm683_vm1, %v8509_v29 }
  0xce   : > { %8397 = vmatmul.mubr.msk.bf16.gmra.mrb[92].mxu1 %vm683_vm1, %v8510_v32  ;;  %v8867_v32 = vld [vmem:[%s8825_s22 + $0xc8] sm:$0xff]  }
  0xcf   : > { %v8103_v52 = vunpack.c.l.bf16 %v8867_v32 }
  0xe9   : > { %v8302_v51 = vpop.f32.mrb[0].mxu1 }
  0xea   : > { %v955_v53 = vadd.f32 %v8302_v51, %v8834_v50  ;;  %v946_v54 = vpop.f32.mrb[1].mxu1  ;;  %v8092_v51 = vunpack.c.h.bf16 %v8861_v26 }
  0xeb   : > { %v947_v56 = vadd.f32 %v8834_v50, %v946_v54  ;;  %v8303_v57 = vpop.f32.mrb[2].mxu1  ;;  %v8270_v34 = vpop.f32.mrb[0].mxu0 }
  0xec   : > { %v1107_v58 = vmax.f32 %v955_v53, 0.0  ;;  %v958_v60 = vadd.f32 %v8303_v57, %v8834_v50  ;;  %v949_v62 = vpop.f32.mrb[3].mxu1  ;;  %v8889_v53 = vld [vmem:[%s8825_s22 + $0xd0] sm:$0xff]   ;;  %v8104_v57 = vunpack.c.h.bf16 %v8867_v32  ;;  %v827_v39 = vadd.f32 %v8270_v34, %v8834_v50 }
  0xed   : > { %v1105_v63 = vmax.f32 %v947_v56, 0.0  ;;  %v950_v1 = vadd.f32 %v8834_v50, %v949_v62  ;;  %v8099_v56 = vunpack.c.l.bf16 %v8877_v37  ;;  %v8100_v62 = vunpack.c.h.bf16 %v8877_v37 }
  0xee   : > { %v1108_v3 = vmax.f32 %v958_v60, 0.0  ;;  %v1299_v7 = vadd.f32 %v8071_v59, %v1107_v58  ;;  %v8894_v58 = vld [vmem:[%s8825_s22 + $0xe8] sm:$0xff]   ;;  %v8107_v4 = vunpack.c.l.bf16 %v8889_v53 }
  0xef   : > { %v1106_v5 = vmax.f32 %v950_v1, 0.0  ;;  %v1297_v10 = vadd.f32 %v8067_v0, %v1105_v63  ;;  %v8111_v63 = vunpack.c.l.bf16 %v8883_v45  ;;  %v8899_v0 = vld [vmem:[%s8825_s22 + $0xe0] sm:$0xff]  }
  0xf0   : > { %v1300_v8 = vadd.f32 %v8072_v61, %v1108_v3 }
  0xf1   : > { %v1298_v11 = vadd.f32 %v8068_v2, %v1106_v5  ;;  %v8306_v12 = vpop.f32.mrb[4].mxu1  ;;  %v8112_v5 = vunpack.c.h.bf16 %v8883_v45 }
  0xf2   : > { %v8850_v15 = vpack.c.bf16 %v1300_v8, %v1299_v7  ;;  %v971_v16 = vadd.f32 %v8306_v12, %v8834_v50  ;;  %v962_v17 = vpop.f32.mrb[5].mxu1  ;;  %v8119_v12 = vunpack.c.l.bf16 %v8894_v58 }
  0xf3   : > { %v8853_v20 = vpack.c.bf16 %v1298_v11, %v1297_v10  ;;  %v963_v21 = vadd.f32 %v8834_v50, %v962_v17  ;;  %v8307_v22 = vpop.f32.mrb[6].mxu1  ;;  %v8108_v11 = vunpack.c.h.bf16 %v8889_v53 }
  0xf4   : > { %14531 = vst [vmem:[#allocation2_spill] sm:$0xff] %v8850_v15  ;;  %v1111_v27 = vmax.f32 %v971_v16, 0.0  ;;  %v974_v28 = vadd.f32 %v8307_v22, %v8834_v50  ;;  %v965_v29 = vpop.f32.mrb[7].mxu1  ;;  %v8923_v22 = vld [vmem:[%s14434_s8 + $0x48] sm:$0xff] }
  0xf5   : > { %14532 = vst [vmem:[#allocation3_spill] sm:$0xff] %v8853_v20  ;;  %v1109_v35 = vmax.f32 %v963_v21, 0.0  ;;  %v966_v36 = vadd.f32 %v8834_v50, %v965_v29 }
  0xf6   : > { %v1112_v40 = vmax.f32 %v974_v28, 0.0  ;;  %v1303_v54 = vadd.f32 %v8079_v13, %v1111_v27  ;;  %v8915_v13 = vld [vmem:[%s8825_s22 + $0xf0] sm:$0xff]  }
  0xf7   : > { %v1110_v46 = vmax.f32 %v966_v36, 0.0  ;;  %v1301_v59 = vadd.f32 %v8075_v18, %v1109_v35  ;;  %v8129_v35 = vld [vmem:[%s8825_s22 + $0x8] sm:$0xff]  }
  0xf8   : > { %v1304_v55 = vadd.f32 %v8080_v19, %v1112_v40  ;;  %v8115_v19 = vunpack.c.l.bf16 %v8899_v0  ;;  %v8007_v40 = vunpack.c.l.bf16 %v8129_v35 }
  0xf9   : > { %v1302_v60 = vadd.f32 %v8076_v23, %v1110_v46  ;;  %v8310_v61 = vpop.f32.mrb[8].mxu1  ;;  %v8928_v23 = vld [vmem:[%s14434_s8 + $0x68] sm:$0xff] }
  0xfa   : > { %v8901_v1 = vpack.c.bf16 %v1304_v55, %v1303_v54  ;;  %v987_v2 = vadd.f32 %v8310_v61, %v8834_v50  ;;  %v978_v3 = vpop.f32.mrb[9].mxu1  ;;  %v8008_v55 = vunpack.c.h.bf16 %v8129_v35 }
  0xfb   : > { %v8909_v7 = vpack.c.bf16 %v1302_v60, %v1301_v59  ;;  %v979_v8 = vadd.f32 %v8834_v50, %v978_v3  ;;  %v8311_v10 = vpop.f32.mrb[10].mxu1  ;;  %v1075_v3 = vmax.f32 %v827_v39, 0.0 }
  0xfc   : > { %14533 = vst [vmem:[#allocation4_spill] sm:$0xff] %v8901_v1  ;;  %v1115_v16 = vmax.f32 %v987_v2, 0.0  ;;  %v990_v17 = vadd.f32 %v8311_v10, %v8834_v50  ;;  %v981_v18 = vpop.f32.mrb[11].mxu1  ;;  %v8002_v10 = vld [vmem:[%s8825_s22] sm:$0xff]  }
  0xfd   : > { %14534 = vst [vmem:[#allocation5_spill] sm:$0xff] %v8909_v7  ;;  %v1113_v27 = vmax.f32 %v979_v8, 0.0  ;;  %v982_v28 = vadd.f32 %v8834_v50, %v981_v18  ;;  %v818_v8 = vpop.f32.mrb[1].mxu0  ;;  %v8003_v34 = vunpack.c.l.bf16 %v8002_v10 }
  0xfe   : > { %v1116_v36 = vmax.f32 %v990_v17, 0.0  ;;  %v1307_v60 = vadd.f32 %v8087_v24, %v1115_v16  ;;  %v8271_v48 = vpop.f32.mrb[2].mxu0 }
  0xff   : > { %v1114_v46 = vmax.f32 %v982_v28, 0.0  ;;  %v1305_v61 = vadd.f32 %v8083_v30, %v1113_v27  ;;  %v819_v28 = vadd.f32 %v8834_v50, %v818_v8  ;;  %v1267_v30 = vadd.f32 %v8007_v40, %v1075_v3  ;;  %v8131_v40 = vld [vmem:[%s8825_s22 + $0x18] sm:$0xff]  }
 0x100   : > { %v1308_v2 = vadd.f32 %v8088_v31, %v1116_v36  ;;  %v830_v9 = vadd.f32 %v8271_v48, %v8834_v50  ;;  %v821_v31 = vpop.f32.mrb[3].mxu0 }
 0x101   : > { %v1306_v17 = vadd.f32 %v8084_v41, %v1114_v46  ;;  %v8314_v18 = vpop.f32.mrb[12].mxu1  ;;  %v1073_v36 = vmax.f32 %v819_v28, 0.0  ;;  %v822_v39 = vadd.f32 %v8834_v50, %v821_v31  ;;  %v8274_v46 = vpop.f32.mrb[4].mxu0 }
 0x102   : > { %v8948_v59 = vpack.c.bf16 %v1308_v2, %v1307_v60  ;;  %v1003_v24 = vadd.f32 %v8314_v18, %v8834_v50  ;;  %v994_v14 = vpop.f32.mrb[13].mxu1  ;;  %v1076_v8 = vmax.f32 %v830_v9, 0.0  ;;  %v8004_v18 = vunpack.c.h.bf16 %v8002_v10  ;;  %v834_v3 = vpop.f32.mrb[5].mxu0 }
 0x103   : > { %v8952_v16 = vpack.c.bf16 %v1306_v17, %v1305_v61  ;;  %v995_v41 = vadd.f32 %v8834_v50, %v994_v14  ;;  %v8315_v27 = vpop.f32.mrb[14].mxu1  ;;  %v1265_v17 = vadd.f32 %v8003_v34, %v1073_v36  ;;  %v1074_v38 = vmax.f32 %v822_v39, 0.0  ;;  %v8275_v14 = vpop.f32.mrb[6].mxu0 }
 0x104   : > { %14535 = vst [vmem:[#allocation6_spill] sm:$0xff] %v8948_v59  ;;  %v1119_v35 = vmax.f32 %v1003_v24, 0.0  ;;  %v1006_v60 = vadd.f32 %v8315_v27, %v8834_v50  ;;  %v997_v2 = vpop.f32.mrb[15].mxu1  ;;  %v1268_v54 = vadd.f32 %v8008_v55, %v1076_v8  ;;  %v843_v24 = vadd.f32 %v8274_v46, %v8834_v50  ;;  %v837_v27 = vpop.f32.mrb[7].mxu0 }
 0x105   : > { %14536 = vst [vmem:[#allocation7_spill] sm:$0xff] %v8952_v16  ;;  %v1117_v48 = vmax.f32 %v995_v41, 0.0  ;;  %v998_v61 = vadd.f32 %v8834_v50, %v997_v2  ;;  %v1266_v29 = vadd.f32 %v8004_v18, %v1074_v38  ;;  %v8015_v41 = vunpack.c.l.bf16 %v8131_v40  ;;  %v8278_v2 = vpop.f32.mrb[8].mxu0 }
 0x106   : > { %v1311_v28 = vadd.f32 %v8095_v42, %v1119_v35  ;;  %v1120_v31 = vmax.f32 %v1006_v60, 0.0  ;;  %v8967_v36 = vpack.c.bf16 %v1268_v54, %v1267_v30  ;;  %v1079_v39 = vmax.f32 %v843_v24, 0.0  ;;  %v850_v8 = vpop.f32.mrb[9].mxu0 }
 0x107   : > { %v1309_v10 = vadd.f32 %v8091_v43, %v1117_v48  ;;  %v1118_v9 = vmax.f32 %v998_v61, 0.0  ;;  %v835_v42 = vadd.f32 %v8834_v50, %v834_v3  ;;  %v8972_v35 = vpack.c.bf16 %v1266_v29, %v1265_v17  ;;  %v2305_v48 = vld [vmem:[%s14434_s8 + $0x80] sm:$0xff]  ;;  %v8279_v17 = vpop.f32.mrb[10].mxu0 }
 0x108   : > { %v1312_v34 = vadd.f32 %v8096_v49, %v1120_v31  ;;  %v8011_v60 = vunpack.c.l.bf16 %v8130_v33  ;;  %v846_v43 = vadd.f32 %v8275_v14, %v8834_v50  ;;  %v1271_v54 = vadd.f32 %v8015_v41, %v1079_v39  ;;  %v2309_v61 = vld [vmem:[%s14434_s8 + $0xa0] sm:$0xff] }
 0x109   : > { %v1310_v55 = vadd.f32 %v8092_v51, %v1118_v9  ;;  %v8318_v46 = vpop.f32.mrb[16].mxu1  ;;  %v1077_v30 = vmax.f32 %v835_v42, 0.0  ;;  %v8016_v29 = vunpack.c.h.bf16 %v8131_v40  ;;  %v853_v40 = vpop.f32.mrb[11].mxu0  ;;  %v8012_v39 = vunpack.c.h.bf16 %v8130_v33  ;;  %v8995_v42 = vld [vmem:[%s14434_s8 + $0x88] sm:$0xff] }
 0x10a   : > { %v8975_v38 = vpack.c.bf16 %v1312_v34, %v1311_v28  ;;  %v1019_v25 = vadd.f32 %v8318_v46, %v8834_v50  ;;  %v1010_v49 = vpop.f32.mrb[17].mxu1  ;;  %v1080_v3 = vmax.f32 %v846_v43, 0.0 }
 0x10b   : > { %v8978_v18 = vpack.c.bf16 %v1310_v55, %v1309_v10  ;;  %v1011_v26 = vadd.f32 %v8834_v50, %v1010_v49  ;;  %v8319_v51 = vpop.f32.mrb[18].mxu1  ;;  %v838_v10 = vadd.f32 %v8834_v50, %v837_v27  ;;  %v9000_v55 = vld [vmem:[%s14434_s8 + $0xa8] sm:$0xff]  ;;  %v1269_v43 = vadd.f32 %v8011_v60, %v1077_v30  ;;  %v9137_v60 = vld [vmem:[%s8825_s22 + $0x60] sm:$0xff]  }
 0x10c   : > { %14537 = vst [vmem:[#allocation8_spill] sm:$0xff] %v8975_v38  ;;  %v1123_v14 = vmax.f32 %v1019_v25, 0.0  ;;  %v1022_v28 = vadd.f32 %v8319_v51, %v8834_v50  ;;  %v1013_v31 = vpop.f32.mrb[19].mxu1  ;;  %v1272_v34 = vadd.f32 %v8016_v29, %v1080_v3  ;;  %v7686_v25 = vcombine.low %v2305_v48, %v2309_v61  ;;  %v8133_v49 = vld [vmem:[%s8825_s22 + $0x28] sm:$0xff]   ;;  %v8132_v29 = vld [vmem:[%s8825_s22 + $0x20] sm:$0xff]  }
 0x10d   : > { %14538 = vst [vmem:[#allocation9_spill] sm:$0xff] %v8978_v18  ;;  %v1121_v9 = vmax.f32 %v1011_v26, 0.0  ;;  %v1014_v41 = vadd.f32 %v8834_v50, %v1013_v31  ;;  %v1078_v27 = vmax.f32 %v838_v10, 0.0  ;;  %v7687_v3 = vcombine.high %v2305_v48, %v2309_v61  ;;  %v8282_v61 = vpop.f32.mrb[12].mxu0 }
 0x10e   : > { %v1124_v46 = vmax.f32 %v1022_v28, 0.0  ;;  %v1315_v26 = vadd.f32 %v8103_v52, %v1123_v14  ;;  %v9005_v33 = vpack.c.bf16 %v1272_v34, %v1271_v54  ;;  %v859_v52 = vadd.f32 %v8278_v2, %v8834_v50 }
 0x10f   : > { %v1122_v51 = vmax.f32 %v1014_v41, 0.0  ;;  %v1313_v31 = vadd.f32 %v8099_v56, %v1121_v9  ;;  %v1270_v21 = vadd.f32 %v8012_v39, %v1078_v27  ;;  %2623 = vmatprep.subr.bf16.mxu1 %v7687_v3  ;;  %v8023_v54 = vunpack.c.l.bf16 %v8133_v49  ;;  %v866_v9 = vpop.f32.mrb[13].mxu0 }
 0x110   : > { %v1316_v24 = vadd.f32 %v8104_v57, %v1124_v46  ;;  %v851_v48 = vadd.f32 %v8834_v50, %v850_v8  ;;  %2624 = vmatpush1.bf16.msra.mxu1 %v7686_v25  ;;  %v8019_v10 = vunpack.c.l.bf16 %v8132_v29  ;;  %v1083_v41 = vmax.f32 %v859_v52, 0.0  ;;  %v8283_v8 = vpop.f32.mrb[14].mxu0 }
 0x111   : > { %v1314_v30 = vadd.f32 %v8100_v62, %v1122_v51  ;;  %v8322_v28 = vpop.f32.mrb[20].mxu1  ;;  %v9021_v57 = vpack.c.bf16 %v1270_v21, %v1269_v43  ;;  %v862_v21 = vadd.f32 %v8279_v17, %v8834_v50  ;;  %v8024_v43 = vunpack.c.h.bf16 %v8133_v49  ;;  %v869_v27 = vpop.f32.mrb[15].mxu0 }
 0x112   : > { %v9018_v14 = vpack.c.bf16 %v1316_v24, %v1315_v26  ;;  %v1035_v32 = vadd.f32 %v8322_v28, %v8834_v50  ;;  %v1026_v56 = vpop.f32.mrb[21].mxu1  ;;  %v1081_v34 = vmax.f32 %v851_v48, 0.0  ;;  %v1275_v51 = vadd.f32 %v8023_v54, %v1083_v41 }
 0x113   : > { %v9023_v37 = vpack.c.bf16 %v1314_v30, %v1313_v31  ;;  %v1027_v62 = vadd.f32 %v8834_v50, %v1026_v56  ;;  %v8323_v2 = vpop.f32.mrb[22].mxu1  ;;  %v8135_v31 = vld [vmem:[%s8825_s22 + $0x38] sm:$0xff]   ;;  %v1084_v52 = vmax.f32 %v862_v21, 0.0  ;;  %v854_v48 = vadd.f32 %v8834_v50, %v853_v40 }
 0x114   : > { %14539 = vst [vmem:[#allocation10_spill] sm:$0xff] %v9018_v14  ;;  %v1127_v24 = vmax.f32 %v1035_v32, 0.0  ;;  %v1038_v39 = vadd.f32 %v8323_v2, %v8834_v50  ;;  %v1029_v46 = vpop.f32.mrb[23].mxu1  ;;  %v1273_v3 = vadd.f32 %v8019_v10, %v1081_v34  ;;  %v8134_v32 = vld [vmem:[%s8825_s22 + $0x30] sm:$0xff]   ;;  %v8020_v49 = vunpack.c.h.bf16 %v8132_v29 }
 0x115   : > { %14540 = vst [vmem:[#allocation11_spill] sm:$0xff] %v9023_v37  ;;  %v1125_v25 = vmax.f32 %v1027_v62, 0.0  ;;  %v1030_v26 = vadd.f32 %v8834_v50, %v1029_v46  ;;  %v875_v62 = vadd.f32 %v8282_v61, %v8834_v50  ;;  %v1276_v10 = vadd.f32 %v8024_v43, %v1084_v52  ;;  %v8286_v46 = vpop.f32.mrb[16].mxu0 }
 0x116   : > { %v1319_v30 = vadd.f32 %v8111_v63, %v1127_v24  ;;  %v1128_v28 = vmax.f32 %v1038_v39, 0.0  ;;  %v1082_v2 = vmax.f32 %v854_v48, 0.0  ;;  %v8031_v41 = vunpack.c.l.bf16 %v8135_v31 }
 0x117   : > { %v1317_v56 = vadd.f32 %v8107_v4, %v1125_v25  ;;  %v1126_v17 = vmax.f32 %v1030_v26, 0.0  ;;  %v1087_v24 = vmax.f32 %v875_v62, 0.0  ;;  %v867_v40 = vadd.f32 %v8834_v50, %v866_v9 }
 0x118   : > { %v1320_v54 = vadd.f32 %v8112_v5, %v1128_v28  ;;  %v8027_v39 = vunpack.c.l.bf16 %v8134_v32  ;;  %v9045_v21 = vpack.c.bf16 %v1276_v10, %v1275_v51  ;;  %v1274_v45 = vadd.f32 %v8020_v49, %v1082_v2  ;;  %v882_v5 = vpop.f32.mrb[17].mxu0  ;;  %v8137_v10 = vld [vmem:[%s8825_s22 + $0x48] sm:$0xff]  }
 0x119   : > { %v1318_v63 = vadd.f32 %v8108_v11, %v1126_v17  ;;  %v8326_v34 = vpop.f32.mrb[24].mxu1  ;;  %v1279_v25 = vadd.f32 %v8031_v41, %v1087_v24  ;;  %v1085_v26 = vmax.f32 %v867_v40, 0.0  ;;  %v8287_v9 = vpop.f32.mrb[18].mxu0  ;;  %v878_v51 = vadd.f32 %v8283_v8, %v8834_v50  ;;  %v9060_v24 = vld [vmem:[%s8825_s22 + $0x40] sm:$0xff]  }
 0x11a   : > { %v9042_v4 = vpack.c.bf16 %v1320_v54, %v1319_v30  ;;  %v1051_v29 = vadd.f32 %v8326_v34, %v8834_v50  ;;  %v1042_v61 = vpop.f32.mrb[25].mxu1  ;;  %v9051_v48 = vpack.c.bf16 %v1274_v45, %v1273_v3  ;;  %v885_v17 = vpop.f32.mrb[19].mxu0  ;;  %v8032_v54 = vunpack.c.h.bf16 %v8135_v31 }
 0x11b   : > { %v9047_v43 = vpack.c.bf16 %v1318_v63, %v1317_v56  ;;  %v1043_v53 = vadd.f32 %v8834_v50, %v1042_v61  ;;  %v8327_v11 = vpop.f32.mrb[26].mxu1  ;;  %v1277_v62 = vadd.f32 %v8027_v39, %v1085_v26  ;;  %v1088_v63 = vmax.f32 %v878_v51, 0.0 }
 0x11c   : > { %14541 = vst [vmem:[#allocation12_spill] sm:$0xff] %v9042_v4  ;;  %v1131_v28 = vmax.f32 %v1051_v29, 0.0  ;;  %v1054_v30 = vadd.f32 %v8327_v11, %v8834_v50  ;;  %v1045_v52 = vpop.f32.mrb[27].mxu1  ;;  %v870_v34 = vadd.f32 %v8834_v50, %v869_v27  ;;  %v8028_v40 = vunpack.c.h.bf16 %v8134_v32 }
 0x11d   : > { %14542 = vst [vmem:[#allocation13_spill] sm:$0xff] %v9047_v43  ;;  %v1129_v49 = vmax.f32 %v1043_v53, 0.0  ;;  %v1046_v56 = vadd.f32 %v8834_v50, %v1045_v52  ;;  %v891_v29 = vadd.f32 %v8286_v46, %v8834_v50  ;;  %v14543_v39 = vunpack.c.h.bf16 %v8894_v58 }
 0x11e   : > { %v1323_v2 = vadd.f32 %v8119_v12, %v1131_v28  ;;  %v1132_v41 = vmax.f32 %v1054_v30, 0.0  ;;  %v1280_v61 = vadd.f32 %v8032_v54, %v1088_v63  ;;  %v1086_v45 = vmax.f32 %v870_v34, 0.0 }
 0x11f   : > { %v1321_v3 = vadd.f32 %v8115_v19, %v1129_v49  ;;  %v1130_v8 = vmax.f32 %v1046_v56, 0.0  ;;  %v8039_v53 = vunpack.c.l.bf16 %v8137_v10  ;;  %v14544_v12 = vunpack.c.h.bf16 %v8899_v0  ;;  %v8290_v19 = vpop.f32.mrb[20].mxu0 }
 0x120   : > { %v1324_v31 = vadd.f32 %v14543_v39, %v1132_v41  ;;  %v1091_v27 = vmax.f32 %v891_v29, 0.0  ;;  %v883_v28 = vadd.f32 %v8834_v50, %v882_v5  ;;  %v8035_v30 = vunpack.c.l.bf16 %v9060_v24  ;;  %v898_v49 = vpop.f32.mrb[21].mxu0 }
 0x121   : > { %v1322_v11 = vadd.f32 %v14544_v12, %v1130_v8  ;;  %v8330_v26 = vpop.f32.mrb[28].mxu1  ;;  %v9074_v58 = vpack.c.bf16 %v1280_v61, %v1279_v25  ;;  %v1278_v51 = vadd.f32 %v8028_v40, %v1086_v45  ;;  %v8291_v63 = vpop.f32.mrb[22].mxu0  ;;  %v894_v25 = vadd.f32 %v8287_v9, %v8834_v50  ;;  %v8139_v45 = vld [vmem:[%s8825_s22 + $0x58] sm:$0xff]   ;;  %v9093_v9 = vld [vmem:[%s14431_s5] ss:$0 sm:$0xff] }
 0x122   : > { %v9071_v52 = vpack.c.bf16 %v1324_v31, %v1323_v2  ;;  %v1067_v32 = vadd.f32 %v8330_v26, %v8834_v50  ;;  %v1058_v46 = vpop.f32.mrb[29].mxu1  ;;  %v1089_v41 = vmax.f32 %v883_v28, 0.0  ;;  %v901_v40 = vpop.f32.mrb[23].mxu0  ;;  %v1283_v31 = vadd.f32 %v8039_v53, %v1091_v27 }
 0x123   : > { %v9076_v56 = vpack.c.bf16 %v1322_v11, %v1321_v3  ;;  %v1059_v0 = vadd.f32 %v8834_v50, %v1058_v46  ;;  %v8331_v54 = vpop.f32.mrb[30].mxu1  ;;  %v9082_v29 = vpack.c.bf16 %v1278_v51, %v1277_v62  ;;  %v8040_v61 = vunpack.c.h.bf16 %v8137_v10 }
 0x124   : > { %14545 = vst [vmem:[#allocation14_spill] sm:$0xff] %v9071_v52  ;;  %v1135_v2 = vmax.f32 %v1067_v32, 0.0  ;;  %v1070_v34 = vadd.f32 %v8331_v54, %v8834_v50  ;;  %v1061_v8 = vpop.f32.mrb[31].mxu1  ;;  %v1281_v11 = vadd.f32 %v8035_v30, %v1089_v41  ;;  %v1092_v26 = vmax.f32 %v894_v25, 0.0  ;;  %v8138_v54 = vld [vmem:[%s8825_s22 + $0x50] sm:$0xff]  }
 0x125   : > { %14546 = vst [vmem:[#allocation15_spill] sm:$0xff] %v9076_v56  ;;  %v1133_v3 = vmax.f32 %v1059_v0, 0.0  ;;  %v1062_v39 = vadd.f32 %v8834_v50, %v1061_v8  ;;  %v886_v28 = vadd.f32 %v8834_v50, %v885_v17  ;;  %v14547_v32 = vunpack.c.l.bf16 %v8907_v6 }
 0x126   : > { %v1136_v12 = vmax.f32 %v1070_v34, 0.0  ;;  %v8036_v51 = vunpack.c.h.bf16 %v9060_v24  ;;  %v907_v10 = vadd.f32 %v8290_v19, %v8834_v50  ;;  %v14548_v53 = vunpack.c.h.bf16 %v8907_v6 }
 0x127   : > { %v1327_v46 = vadd.f32 %v14547_v32, %v1135_v2  ;;  %v1134_v62 = vmax.f32 %v1062_v39, 0.0  ;;  %v1284_v30 = vadd.f32 %v8040_v61, %v1092_v26  ;;  %v1090_v0 = vmax.f32 %v886_v28, 0.0  ;;  %v8294_v32 = vpop.f32.mrb[24].mxu0 }
 0x128   : > { %v1328_v27 = vadd.f32 %v14548_v53, %v1136_v12  ;;  %v8047_v17 = vunpack.c.l.bf16 %v8139_v45  ;;  %v14549_v41 = vunpack.c.l.bf16 %v8915_v13  ;;  %v14550_v34 = vunpack.c.h.bf16 %v8915_v13  ;;  %v914_v28 = vpop.f32.mrb[25].mxu0 }
 0x129   : > { %v8338_v25 = vpop.f32.mrb[32].mxu1  ;;  %v1095_v39 = vmax.f32 %v907_v10, 0.0  ;;  %v899_v24 = vadd.f32 %v8834_v50, %v898_v49  ;;  %v9108_v61 = vpack.c.bf16 %v1284_v30, %v1283_v31  ;;  %v1282_v26 = vadd.f32 %v8036_v51, %v1090_v0  ;;  %v8295_v10 = vpop.f32.mrb[26].mxu0  ;;  %v2313_v51 = vld [vmem:[%s14434_s8 + $0xc0] sm:$0xff] }
 0x12a   : > { %v1325_v2 = vadd.f32 %v14549_v41, %v1133_v3  ;;  %v1326_v8 = vadd.f32 %v14550_v34, %v1134_v62  ;;  %v9105_v19 = vpack.c.bf16 %v1328_v27, %v1327_v46  ;;  %v1426_v6 = vadd.f32 %v8338_v25, %v9093_v9  ;;  %v1417_v12 = vpop.f32.mrb[33].mxu1  ;;  %v2317_v30 = vld [vmem:[%s14434_s8 + $0xe0] sm:$0xff]  ;;  %v917_v0 = vpop.f32.mrb[27].mxu0 }
 0x12b   : > { %14552 = vst [vmem:[#allocation17_spill] sm:$0xff] %v9108_v61  ;;  %v1418_v3 = vadd.f32 %v9093_v9, %v1417_v12  ;;  %v8339_v13 = vpop.f32.mrb[34].mxu1  ;;  %v1093_v62 = vmax.f32 %v899_v24, 0.0  ;;  %v8043_v41 = vunpack.c.l.bf16 %v8138_v54  ;;  %v9114_v46 = vpack.c.bf16 %v1282_v26, %v1281_v11 }
 0x12c   : > { %14551 = vst [vmem:[#allocation16_spill] sm:$0xff] %v9105_v19  ;;  %v9110_v53 = vpack.c.bf16 %v1326_v8, %v1325_v2  ;;  %v1429_v49 = vadd.f32 %v8339_v13, %v9093_v9  ;;  %v1420_v34 = vpop.f32.mrb[35].mxu1  ;;  %v1287_v27 = vadd.f32 %v8047_v17, %v1095_v39  ;;  %v910_v31 = vadd.f32 %v8291_v63, %v8834_v50  ;;  %v9127_v17 = vld [vmem:[%s14434_s8 + $0xc8] sm:$0xff] }
 0x12d   : > { %v1674_v2 = vmax.f32 %v1426_v6, 0.0  ;;  %v1672_v8 = vmax.f32 %v1418_v3, 0.0  ;;  %v1421_v25 = vadd.f32 %v9093_v9, %v1420_v34  ;;  %v8048_v11 = vunpack.c.h.bf16 %v8139_v45  ;;  %v9132_v63 = vld [vmem:[%s14434_s8 + $0xe8] sm:$0xff] }
 0x12e   : > { %14553 = vst [vmem:[#allocation18_spill] sm:$0xff] %v9110_v53  ;;  %v1675_v39 = vmax.f32 %v1429_v49, 0.0  ;;  %v1096_v24 = vmax.f32 %v910_v31, 0.0  ;;  %v902_v12 = vadd.f32 %v8834_v50, %v901_v40  ;;  %v8044_v26 = vunpack.c.h.bf16 %v8138_v54  ;;  %v8141_v6 = vld [vmem:[%s8825_s22 + $0x68] sm:$0xff]   ;;  %v8298_v31 = vpop.f32.mrb[28].mxu0 }
 0x12f   : > { %v1673_v3 = vmax.f32 %v1421_v25, 0.0  ;;  %v1285_v13 = vadd.f32 %v8043_v41, %v1093_v62  ;;  %v7694_v34 = vcombine.low %v2313_v51, %v2317_v30  ;;  %v7695_v45 = vcombine.high %v2313_v51, %v2317_v30  ;;  %v930_v25 = vpop.f32.mrb[29].mxu0 }
 0x130   : > { %v1737_v5 = vpack.c.bf16 %v1675_v39, %v1674_v2  ;;  %v1288_v19 = vadd.f32 %v8048_v11, %v1096_v24  ;;  %v1094_v53 = vmax.f32 %v902_v12, 0.0  ;;  %v7697_v52 = vcombine.high %v9127_v17, %v9132_v63 }
 0x131   : > { %v1736_v56 = vpack.c.bf16 %v1673_v3, %v1672_v8  ;;  %v8342_v4 = vpop.f32.mrb[36].mxu1  ;;  %2625 = vmatprep.subr.bf16.mxu1 %v7695_v45  ;;  %v923_v49 = vadd.f32 %v8294_v32, %v8834_v50  ;;  %v8055_v40 = vunpack.c.l.bf16 %v8141_v6  ;;  %v915_v54 = vadd.f32 %v8834_v50, %v914_v28 }
 0x132   : > { %v1442_v62 = vadd.f32 %v8342_v4, %v9093_v9  ;;  %v1433_v41 = vpop.f32.mrb[37].mxu1  ;;  %v9144_v51 = vpack.c.bf16 %v1288_v19, %v1287_v27  ;;  %v1286_v30 = vadd.f32 %v8044_v26, %v1094_v53  ;;  %2626 = vmatpush1.bf16.msra.mxu1 %v7694_v34  ;;  %v8051_v2 = vunpack.c.l.bf16 %v9137_v60  ;;  %v8299_v4 = vpop.f32.mrb[30].mxu0  ;;  %v8143_v26 = vld [vmem:[%s8825_s22 + $0x78] sm:$0xff]  }
 0x133   : > { %8408 = vmatprep.mubr.msk.bf16.mxu0 %vm1807_vm2, %v1736_v56  ;;  %v1434_v8 = vadd.f32 %v9093_v9, %v1433_v41  ;;  %v8343_v32 = vpop.f32.mrb[38].mxu1  ;;  %v1099_v11 = vmax.f32 %v923_v49, 0.0  ;;  %v1097_v39 = vmax.f32 %v915_v54, 0.0  ;;  %v926_v28 = vadd.f32 %v8295_v10, %v8834_v50  ;;  %v933_v56 = vpop.f32.mrb[31].mxu0  ;;  %v8142_v54 = vld [vmem:[%s8825_s22 + $0x70] sm:$0xff]  }
 0x134   : > { %14554 = vst [vmem:[#allocation19_spill] sm:$0xff] %v9144_v51  ;;  %v1678_v24 = vmax.f32 %v1442_v62, 0.0  ;;  %8409 = vmatmul.mubr.msk.bf16.vlgmr.msra.gmra.mrb[32].mxu0 %vm1807_vm2, %v1737_v5  ;;  %v1445_v19 = vadd.f32 %v8343_v32, %v9093_v9  ;;  %v1436_v53 = vpop.f32.mrb[39].mxu1  ;;  %v9152_v27 = vpack.c.bf16 %v1286_v30, %v1285_v13  ;;  %v8056_v12 = vunpack.c.h.bf16 %v8141_v6 }
 0x135   : > { %v1676_v3 = vmax.f32 %v1434_v8, 0.0  ;;  %v1437_v34 = vadd.f32 %v9093_v9, %v1436_v53  ;;  %v14556_v45 = vcombine.low %v8813_v44, %v8818_v47  ;;  %v1291_v10 = vadd.f32 %v8055_v40, %v1099_v11 }
 0x136   : > { %14555 = vst [vmem:[#allocation20_spill] sm:$0xff] %v9152_v27  ;;  %v1289_v49 = vadd.f32 %v8051_v2, %v1097_v39  ;;  %v1679_v62 = vmax.f32 %v1445_v19, 0.0  ;;  %v14557_v5 = vcombine.high %v8923_v22, %v8928_v23  ;;  %v1100_v13 = vmax.f32 %v926_v28, 0.0 }
 0x137   : > { %2973 = vmatpush1.bf16.msra.mxu0 %v14556_v45  ;;  %v918_v6 = vadd.f32 %v8834_v50, %v917_v0  ;;  %v8052_v41 = vunpack.c.h.bf16 %v9137_v60  ;;  %v1677_v30 = vmax.f32 %v1437_v34, 0.0  ;;  %v939_v8 = vadd.f32 %v8298_v31, %v8834_v50 }
 0x138   : > { %2974 = vmatprep.subr.bf16.mxu0 %v14557_v5  ;;  %v8063_v32 = vunpack.c.l.bf16 %v8143_v26  ;;  %v931_v44 = vadd.f32 %v8834_v50, %v930_v25  ;;  %v1739_v47 = vpack.c.bf16 %v1679_v62, %v1678_v24  ;;  %v1292_v40 = vadd.f32 %v8056_v12, %v1100_v13 }
 0x139   : > { %v1098_v2 = vmax.f32 %v918_v6, 0.0  ;;  %v8059_v11 = vunpack.c.l.bf16 %v8142_v54  ;;  %v1738_v39 = vpack.c.bf16 %v1677_v30, %v1676_v3  ;;  %v8346_v19 = vpop.f32.mrb[40].mxu1  ;;  %v14558_v53 = vcombine.low %v8923_v22, %v8928_v23 }
 0x13a   : > { %v1103_v28 = vmax.f32 %v939_v8, 0.0  ;;  %v1101_v0 = vmax.f32 %v931_v44, 0.0  ;;  %v942_v60 = vadd.f32 %v8299_v4, %v8834_v50  ;;  %v1458_v34 = vadd.f32 %v8346_v19, %v9093_v9  ;;  %v1449_v31 = vpop.f32.mrb[41].mxu1 }
 0x13b   : > { %2975 = vmatpush1.bf16.msra.mxu0 %v14558_v53  ;;  %v14559_v25 = vcombine.high %v8995_v42, %v9000_v55  ;;  %v9175_v24 = vpack.c.bf16 %v1292_v40, %v1291_v10  ;;  %v1290_v12 = vadd.f32 %v8052_v41, %v1098_v2  ;;  %v8064_v3 = vunpack.c.h.bf16 %v8143_v26  ;;  %8412 = vmatprep.mubr.msk.bf16.mxu0 %vm1807_vm2, %v1738_v39  ;;  %v8347_v23 = vpop.f32.mrb[42].mxu1 }
 0x13c   : > { %v1450_v22 = vadd.f32 %v9093_v9, %v1449_v31  ;;  %v7696_v45 = vcombine.low %v9127_v17, %v9132_v63  ;;  %v1295_v4 = vadd.f32 %v8063_v32, %v1103_v28  ;;  %v1104_v62 = vmax.f32 %v942_v60, 0.0  ;;  %8413 = vmatmul.mubr.msk.bf16.gmra.mrb[36].mxu0 %vm1807_vm2, %v1739_v47  ;;  %v1452_v6 = vpop.f32.mrb[43].mxu1 }
 0x13d   : > { %2976 = vmatprep.subr.bf16.mxu0 %v14559_v25  ;;  %14560 = vst [vmem:[#allocation21_spill] sm:$0xff] %v9175_v24  ;;  %v1682_v5 = vmax.f32 %v1458_v34, 0.0  ;;  %v1461_v13 = vadd.f32 %v8347_v23, %v9093_v9  ;;  %v9183_v10 = vpack.c.bf16 %v1290_v12, %v1289_v49  ;;  %v934_v26 = vadd.f32 %v8834_v50, %v933_v56 }
 0x13e   : > { %v1680_v41 = vmax.f32 %v1450_v22, 0.0  ;;  %v1453_v30 = vadd.f32 %v9093_v9, %v1452_v6  ;;  %v14562_v8 = vcombine.low %v8995_v42, %v9000_v55  ;;  %v1296_v44 = vadd.f32 %v8064_v3, %v1104_v62 }
 0x13f   : > { %14561 = vst [vmem:[#allocation22_spill] sm:$0xff] %v9183_v10  ;;  %v8060_v32 = vunpack.c.h.bf16 %v8142_v54  ;;  %v1683_v40 = vmax.f32 %v1461_v13, 0.0  ;;  %v1293_v47 = vadd.f32 %v8059_v11, %v1101_v0  ;;  %v1102_v2 = vmax.f32 %v934_v26, 0.0 }
 0x140   : > { %2977 = vmatpush1.bf16.msra.mxu0 %v14562_v8  ;;  %v1681_v49 = vmax.f32 %v1453_v30, 0.0  ;;  %v9193_v39 = vpack.c.bf16 %v1296_v44, %v1295_v4 }
 0x141   : > { %2978 = vmatprep.subr.bf16.mxu0 %v7697_v52  ;;  %v1741_v50 = vpack.c.bf16 %v1683_v40, %v1682_v5  ;;  %v1294_v56 = vadd.f32 %v8060_v32, %v1102_v2  ;;  %v8350_v53 = vpop.f32.mrb[44].mxu1 }
 0x142   : > { %14563 = vst [vmem:[#allocation23_spill] sm:$0xff] %v9193_v39  ;;  %v1740_v19 = vpack.c.bf16 %v1681_v49, %v1680_v41  ;;  %v1474_v42 = vadd.f32 %v8350_v53, %v9093_v9  ;;  %v1465_v55 = vpop.f32.mrb[45].mxu1  ;;  %v4051_v39 = vld [vmem:[%s14436_s10 + $0xa0] sm:$0xff] }
 0x143   : > { %v9196_v28 = vpack.c.bf16 %v1294_v56, %v1293_v47  ;;  %v1466_v17 = vadd.f32 %v9093_v9, %v1465_v55  ;;  %v8351_v52 = vpop.f32.mrb[46].mxu1 }
 0x144   : > { %2979 = vmatpush1.bf16.msra.mxu0 %v7696_v45  ;;  %8416 = vmatprep.mubr.msk.bf16.mxu0 %vm1807_vm2, %v1740_v19  ;;  %v1686_v63 = vmax.f32 %v1474_v42, 0.0  ;;  %v1477_v54 = vadd.f32 %v8351_v52, %v9093_v9  ;;  %v1468_v11 = vpop.f32.mrb[47].mxu1 }
 0x145   : > { %14564 = vst [vmem:[#allocation24_spill] sm:$0xff] %v9196_v28  ;;  %8417 = vmatmul.mubr.msk.bf16.gmra.mrb[40].mxu0 %vm1807_vm2, %v1741_v50  ;;  %v1684_v0 = vmax.f32 %v1466_v17, 0.0  ;;  %v1469_v60 = vadd.f32 %v9093_v9, %v1468_v11 }
 0x146   : > { %v1687_v34 = vmax.f32 %v1477_v54, 0.0 }
 0x147   : > { %v1685_v31 = vmax.f32 %v1469_v60, 0.0 }
 0x148   : > { %v1743_v25 = vpack.c.bf16 %v1687_v34, %v1686_v63 }
 0x149   : > { %v1742_v12 = vpack.c.bf16 %v1685_v31, %v1684_v0  ;;  %v8354_v3 = vpop.f32.mrb[48].mxu1 }
 0x14a   : > { %v1490_v22 = vadd.f32 %v8354_v3, %v9093_v9  ;;  %v1481_v23 = vpop.f32.mrb[49].mxu1 }
 0x14b   : > { %8420 = vmatprep.mubr.msk.bf16.mxu0 %vm1807_vm2, %v1742_v12  ;;  %v1482_v45 = vadd.f32 %v9093_v9, %v1481_v23  ;;  %v8355_v4 = vpop.f32.mrb[50].mxu1 }
 0x14c   : > { %v1690_v62 = vmax.f32 %v1490_v22, 0.0  ;;  %v1493_v5 = vadd.f32 %v8355_v4, %v9093_v9  ;;  %v1484_v13 = vpop.f32.mrb[51].mxu1 }
 0x14d   : > { %8421 = vmatmul.mubr.msk.bf16.gmra.mrb[44].mxu0 %vm1807_vm2, %v1743_v25  ;;  %v1688_v6 = vmax.f32 %v1482_v45, 0.0  ;;  %v1485_v26 = vadd.f32 %v9093_v9, %v1484_v13 }
 0x14e   : > { %v1691_v41 = vmax.f32 %v1493_v5, 0.0 }
 0x14f   : > { %v1689_v30 = vmax.f32 %v1485_v26, 0.0 }
 0x150   : > { %v1745_v8 = vpack.c.bf16 %v1691_v41, %v1690_v62 }
 0x151   : > { %v1744_v44 = vpack.c.bf16 %v1689_v30, %v1688_v6  ;;  %v8358_v32 = vpop.f32.mrb[52].mxu1 }
 0x152   : > { %v1506_v40 = vadd.f32 %v8358_v32, %v9093_v9  ;;  %v1497_v47 = vpop.f32.mrb[53].mxu1 }
 0x153   : > { %8424 = vmatprep.mubr.msk.bf16.mxu0 %vm1807_vm2, %v1744_v44  ;;  %v1498_v2 = vadd.f32 %v9093_v9, %v1497_v47  ;;  %v8359_v49 = vpop.f32.mrb[54].mxu1 }
 0x154   : > { %v1694_v50 = vmax.f32 %v1506_v40, 0.0  ;;  %v1509_v56 = vadd.f32 %v8359_v49, %v9093_v9  ;;  %v1500_v19 = vpop.f32.mrb[55].mxu1 }
 0x155   : > { %8425 = vmatmul.mubr.msk.bf16.gmra.mrb[48].mxu0 %vm1807_vm2, %v1745_v8  ;;  %v1692_v53 = vmax.f32 %v1498_v2, 0.0  ;;  %v1501_v42 = vadd.f32 %v9093_v9, %v1500_v19 }
 0x156   : > { %v1695_v55 = vmax.f32 %v1509_v56, 0.0 }
 0x157   : > { %v1693_v17 = vmax.f32 %v1501_v42, 0.0 }
 0x158   : > { %v1747_v52 = vpack.c.bf16 %v1695_v55, %v1694_v50 }
 0x159   : > { %v1746_v63 = vpack.c.bf16 %v1693_v17, %v1692_v53  ;;  %v8362_v54 = vpop.f32.mrb[56].mxu1 }
 0x15a   : > { %v1522_v11 = vadd.f32 %v8362_v54, %v9093_v9  ;;  %v1513_v0 = vpop.f32.mrb[57].mxu1 }
 0x15b   : > { %8428 = vmatprep.mubr.msk.bf16.mxu0 %vm1807_vm2, %v1746_v63  ;;  %v1514_v60 = vadd.f32 %v9093_v9, %v1513_v0  ;;  %v8363_v34 = vpop.f32.mrb[58].mxu1 }
 0x15c   : > { %v1698_v31 = vmax.f32 %v1522_v11, 0.0  ;;  %v1525_v25 = vadd.f32 %v8363_v34, %v9093_v9  ;;  %v1516_v12 = vpop.f32.mrb[59].mxu1 }
 0x15d   : > { %8429 = vmatmul.mubr.msk.bf16.gmra.mrb[52].mxu0 %vm1807_vm2, %v1747_v52  ;;  %v1696_v3 = vmax.f32 %v1514_v60, 0.0  ;;  %v1517_v22 = vadd.f32 %v9093_v9, %v1516_v12 }
 0x15e   : > { %v1699_v23 = vmax.f32 %v1525_v25, 0.0 }
 0x15f   : > { %v1697_v45 = vmax.f32 %v1517_v22, 0.0 }
 0x160   : > { %v1749_v4 = vpack.c.bf16 %v1699_v23, %v1698_v31 }
 0x161   : > { %v1748_v62 = vpack.c.bf16 %v1697_v45, %v1696_v3  ;;  %v8366_v5 = vpop.f32.mrb[60].mxu1 }
 0x162   : > { %v1538_v13 = vadd.f32 %v8366_v5, %v9093_v9  ;;  %v1529_v6 = vpop.f32.mrb[61].mxu1 }
 0x163   : > { %8432 = vmatprep.mubr.msk.bf16.mxu0 %vm1807_vm2, %v1748_v62  ;;  %v1530_v26 = vadd.f32 %v9093_v9, %v1529_v6  ;;  %v8367_v41 = vpop.f32.mrb[62].mxu1 }
 0x164   : > { %v1702_v30 = vmax.f32 %v1538_v13, 0.0  ;;  %v1541_v8 = vadd.f32 %v8367_v41, %v9093_v9  ;;  %v1532_v44 = vpop.f32.mrb[63].mxu1 }
 0x165   : > { %8433 = vmatmul.mubr.msk.bf16.gmra.mrb[56].mxu0 %vm1807_vm2, %v1749_v4  ;;  %v1700_v32 = vmax.f32 %v1530_v26, 0.0  ;;  %v1533_v40 = vadd.f32 %v9093_v9, %v1532_v44 }
 0x166   : > { %v1703_v47 = vmax.f32 %v1541_v8, 0.0 }
 0x167   : > { %v1701_v2 = vmax.f32 %v1533_v40, 0.0 }
 0x168   : > { %v1751_v49 = vpack.c.bf16 %v1703_v47, %v1702_v30 }
 0x169   : > { %v1750_v50 = vpack.c.bf16 %v1701_v2, %v1700_v32  ;;  %v8370_v56 = vpop.f32.mrb[64].mxu1 }
 0x16a   : > { %v1554_v19 = vadd.f32 %v8370_v56, %v9093_v9  ;;  %v1545_v53 = vpop.f32.mrb[65].mxu1 }
 0x16b   : > { %8436 = vmatprep.mubr.msk.bf16.mxu0 %vm1807_vm2, %v1750_v50  ;;  %v1546_v42 = vadd.f32 %v9093_v9, %v1545_v53  ;;  %v8371_v55 = vpop.f32.mrb[66].mxu1 }
 0x16c   : > { %v1706_v17 = vmax.f32 %v1554_v19, 0.0  ;;  %v1557_v52 = vadd.f32 %v8371_v55, %v9093_v9  ;;  %v1548_v63 = vpop.f32.mrb[67].mxu1 }
 0x16d   : > { %8437 = vmatmul.mubr.msk.bf16.gmra.mrb[60].mxu0 %vm1807_vm2, %v1751_v49  ;;  %v1704_v54 = vmax.f32 %v1546_v42, 0.0  ;;  %v1549_v11 = vadd.f32 %v9093_v9, %v1548_v63 }
 0x16e   : > { %v1707_v0 = vmax.f32 %v1557_v52, 0.0 }
 0x16f   : > { %v1705_v60 = vmax.f32 %v1549_v11, 0.0 }
 0x170   : > { %v1753_v34 = vpack.c.bf16 %v1707_v0, %v1706_v17 }
 0x171   : > { %v1752_v31 = vpack.c.bf16 %v1705_v60, %v1704_v54  ;;  %v8374_v25 = vpop.f32.mrb[68].mxu1 }
 0x172   : > { %v1570_v12 = vadd.f32 %v8374_v25, %v9093_v9  ;;  %v1561_v3 = vpop.f32.mrb[69].mxu1 }
 0x173   : > { %8440 = vmatprep.mubr.msk.bf16.mxu0 %vm1807_vm2, %v1752_v31  ;;  %v1562_v22 = vadd.f32 %v9093_v9, %v1561_v3  ;;  %v8375_v23 = vpop.f32.mrb[70].mxu1 }
 0x174   : > { %v1710_v45 = vmax.f32 %v1570_v12, 0.0  ;;  %v1573_v4 = vadd.f32 %v8375_v23, %v9093_v9  ;;  %v1564_v62 = vpop.f32.mrb[71].mxu1 }
 0x175   : > { %8441 = vmatmul.mubr.msk.bf16.gmra.mrb[64].mxu0 %vm1807_vm2, %v1753_v34  ;;  %v1708_v5 = vmax.f32 %v1562_v22, 0.0  ;;  %v1565_v13 = vadd.f32 %v9093_v9, %v1564_v62 }
 0x176   : > { %v1711_v6 = vmax.f32 %v1573_v4, 0.0 }
 0x177   : > { %v1709_v26 = vmax.f32 %v1565_v13, 0.0 }
 0x178   : > { %v1755_v41 = vpack.c.bf16 %v1711_v6, %v1710_v45 }
 0x179   : > { %v1754_v30 = vpack.c.bf16 %v1709_v26, %v1708_v5  ;;  %v8378_v8 = vpop.f32.mrb[72].mxu1 }
 0x17a   : > { %v1586_v44 = vadd.f32 %v8378_v8, %v9093_v9  ;;  %v1577_v32 = vpop.f32.mrb[73].mxu1 }
 0x17b   : > { %8444 = vmatprep.mubr.msk.bf16.mxu0 %vm1807_vm2, %v1754_v30  ;;  %v1578_v40 = vadd.f32 %v9093_v9, %v1577_v32  ;;  %v8379_v47 = vpop.f32.mrb[74].mxu1 }
 0x17c   : > { %v1714_v2 = vmax.f32 %v1586_v44, 0.0  ;;  %v1589_v49 = vadd.f32 %v8379_v47, %v9093_v9  ;;  %v1580_v50 = vpop.f32.mrb[75].mxu1 }
 0x17d   : > { %8445 = vmatmul.mubr.msk.bf16.gmra.mrb[68].mxu0 %vm1807_vm2, %v1755_v41  ;;  %v1712_v56 = vmax.f32 %v1578_v40, 0.0  ;;  %v1581_v19 = vadd.f32 %v9093_v9, %v1580_v50 }
 0x17e   : > { %v1715_v53 = vmax.f32 %v1589_v49, 0.0 }
 0x17f   : > { %v1713_v42 = vmax.f32 %v1581_v19, 0.0 }
 0x180   : > { %v1757_v55 = vpack.c.bf16 %v1715_v53, %v1714_v2  ;;  %v14445_v2 = vmov 0   ;;  %v9262_v53 = vld [vmem:[%s14434_s8 + $0x10] sm:$0xff] }
 0x181   : > { %v1756_v17 = vpack.c.bf16 %v1713_v42, %v1712_v56  ;;  %v8382_v52 = vpop.f32.mrb[76].mxu1  ;;  %2651 = vmatprep.mubr.bf16.mxu1 %v14445_v2  ;;  %v9267_v42 = vld [vmem:[%s14434_s8 + $0x30] sm:$0xff] }
 0x182   : > { %v1602_v63 = vadd.f32 %v8382_v52, %v9093_v9  ;;  %v1593_v54 = vpop.f32.mrb[77].mxu1 }
 0x183   : > { %8448 = vmatprep.mubr.msk.bf16.mxu0 %vm1807_vm2, %v1756_v17  ;;  %v1594_v11 = vadd.f32 %v9093_v9, %v1593_v54  ;;  %v8383_v0 = vpop.f32.mrb[78].mxu1  ;;  %v7675_v54 = vcombine.high %v9262_v53, %v9267_v42 }
 0x184   : > { %v1718_v60 = vmax.f32 %v1602_v63, 0.0  ;;  %v1605_v34 = vadd.f32 %v8383_v0, %v9093_v9  ;;  %v1596_v31 = vpop.f32.mrb[79].mxu1  ;;  %v7674_v63 = vcombine.low %v9262_v53, %v9267_v42 }
 0x185   : > { %8449 = vmatmul.mubr.msk.bf16.gmra.mrb[72].mxu0 %vm1807_vm2, %v1757_v55  ;;  %v1716_v25 = vmax.f32 %v1594_v11, 0.0  ;;  %v1597_v12 = vadd.f32 %v9093_v9, %v1596_v31  ;;  %v9272_v55 = vld [vmem:[%s14434_s8 + $0x18] sm:$0xff]  ;;  %3325 = vmatprep.subr.bf16.mxu1 %v7675_v54 }
 0x186   : > { %v1719_v3 = vmax.f32 %v1605_v34, 0.0  ;;  %v9283_v11 = vld [vmem:[%s14434_s8 + $0x38] sm:$0xff] }
 0x187   : > { %v1717_v22 = vmax.f32 %v1597_v12, 0.0  ;;  %v7676_v31 = vcombine.low %v9272_v55, %v9283_v11 }
 0x188   : > { %v1759_v23 = vpack.c.bf16 %v1719_v3, %v1718_v60 }
 0x189   : > { %v1758_v45 = vpack.c.bf16 %v1717_v22, %v1716_v25  ;;  %v8386_v4 = vpop.f32.mrb[80].mxu1  ;;  %v7677_v25 = vcombine.high %v9272_v55, %v9283_v11 }
 0x18a   : > { %v1618_v62 = vadd.f32 %v8386_v4, %v9093_v9  ;;  %v1609_v5 = vpop.f32.mrb[81].mxu1 }
 0x18b   : > { %8452 = vmatprep.mubr.msk.bf16.mxu0 %vm1807_vm2, %v1758_v45  ;;  %v1610_v13 = vadd.f32 %v9093_v9, %v1609_v5  ;;  %v8387_v6 = vpop.f32.mrb[82].mxu1  ;;  %3678 = vmatprep.subr.bf16.mxu0 %v7677_v25 }
 0x18c   : > { %v1722_v26 = vmax.f32 %v1618_v62, 0.0  ;;  %v1621_v41 = vadd.f32 %v8387_v6, %v9093_v9  ;;  %v1612_v30 = vpop.f32.mrb[83].mxu1 }
 0x18d   : > { %8453 = vmatmul.mubr.msk.bf16.gmra.mrb[76].mxu0 %vm1807_vm2, %v1759_v23  ;;  %v1720_v8 = vmax.f32 %v1610_v13, 0.0  ;;  %v1613_v44 = vadd.f32 %v9093_v9, %v1612_v30 }
 0x18e   : > { %v1723_v32 = vmax.f32 %v1621_v41, 0.0 }
 0x18f   : > { %v1721_v40 = vmax.f32 %v1613_v44, 0.0 }
 0x190   : > { %v1761_v47 = vpack.c.bf16 %v1723_v32, %v1722_v26 }
 0x191   : > { %v1760_v49 = vpack.c.bf16 %v1721_v40, %v1720_v8  ;;  %v8390_v50 = vpop.f32.mrb[84].mxu1 }
 0x192   : > { %v1634_v56 = vadd.f32 %v8390_v50, %v9093_v9  ;;  %v1625_v19 = vpop.f32.mrb[85].mxu1 }
 0x193   : > { %v1626_v17 = vadd.f32 %v9093_v9, %v1625_v19  ;;  %v8391_v52 = vpop.f32.mrb[86].mxu1  ;;  %8456 = vmatprep.mubr.msk.bf16.mxu0 %vm1807_vm2, %v1760_v49 }
 0x194   : > { %v1726_v0 = vmax.f32 %v1634_v56, 0.0  ;;  %v1637_v60 = vadd.f32 %v8391_v52, %v9093_v9  ;;  %v1628_v34 = vpop.f32.mrb[87].mxu1 }
 0x195   : > { %8457 = vmatmul.mubr.msk.bf16.gmra.mrb[80].mxu0 %vm1807_vm2, %v1761_v47  ;;  %v1724_v12 = vmax.f32 %v1626_v17, 0.0  ;;  %v1629_v3 = vadd.f32 %v9093_v9, %v1628_v34 }
 0x196   : > { %v1727_v22 = vmax.f32 %v1637_v60, 0.0 }
 0x197   : > { %v1725_v23 = vmax.f32 %v1629_v3, 0.0 }
 0x198   : > { %v1763_v45 = vpack.c.bf16 %v1727_v22, %v1726_v0 }
 0x199   : > { %v1762_v4 = vpack.c.bf16 %v1725_v23, %v1724_v12  ;;  %v8394_v62 = vpop.f32.mrb[88].mxu1 }
 0x19a   : > { %v1650_v5 = vadd.f32 %v8394_v62, %v9093_v9  ;;  %v1641_v13 = vpop.f32.mrb[89].mxu1 }
 0x19b   : > { %v1642_v6 = vadd.f32 %v9093_v9, %v1641_v13  ;;  %v8395_v26 = vpop.f32.mrb[90].mxu1  ;;  %8460 = vmatprep.mubr.msk.bf16.mxu0 %vm1807_vm2, %v1762_v4  ;;  %v9310_v4 = vld [vmem:[%s14433_s7] ss:$0 sm:$0xff] }
 0x19c   : > { %v1730_v41 = vmax.f32 %v1650_v5, 0.0  ;;  %v1653_v30 = vadd.f32 %v8395_v26, %v9093_v9  ;;  %v1644_v8 = vpop.f32.mrb[91].mxu1 }
 0x19d   : > { %8461 = vmatmul.mubr.msk.bf16.gmra.mrb[84].mxu0 %vm1807_vm2, %v1763_v45  ;;  %v1728_v44 = vmax.f32 %v1642_v6, 0.0  ;;  %v1645_v32 = vadd.f32 %v9093_v9, %v1644_v8 }
 0x19e   : > { %v1731_v40 = vmax.f32 %v1653_v30, 0.0 }
 0x19f   : > { %v1729_v47 = vmax.f32 %v1645_v32, 0.0  ;;  %v2299_v32 = vld [vmem:[%s14434_s8 + $0x50] sm:$0xff] }
 0x1a0   : > { %v1765_v49 = vpack.c.bf16 %v1731_v40, %v1730_v41 }
 0x1a1   : > { %v1764_v50 = vpack.c.bf16 %v1729_v47, %v1728_v44  ;;  %v8398_v56 = vpop.f32.mrb[92].mxu1 }
 0x1a2   : > { %v1666_v19 = vadd.f32 %v8398_v56, %v9093_v9  ;;  %v1657_v17 = vpop.f32.mrb[93].mxu1  ;;  %v2304_v56 = vld [vmem:[%s14434_s8 + $0x78] sm:$0xff] }
 0x1a3   : > { %v1658_v52 = vadd.f32 %v9093_v9, %v1657_v17  ;;  %v8399_v54 = vpop.f32.mrb[94].mxu1  ;;  %8464 = vmatprep.mubr.msk.bf16.mxu0 %vm1807_vm2, %v1764_v50  ;;  %v2300_v50 = vld [vmem:[%s14434_s8 + $0x58] sm:$0xff] }
 0x1a4   : > { %v1734_v0 = vmax.f32 %v1666_v19, 0.0  ;;  %v1669_v60 = vadd.f32 %v8399_v54, %v9093_v9  ;;  %v1660_v34 = vpop.f32.mrb[95].mxu1 }
 0x1a5   : > { %8465 = vmatmul.mubr.msk.bf16.gmra.mrb[88].mxu0 %vm1807_vm2, %v1765_v49  ;;  %v1732_v25 = vmax.f32 %v1658_v52, 0.0  ;;  %v1661_v12 = vadd.f32 %v9093_v9, %v1660_v34  ;;  %v2303_v49 = vld [vmem:[%s14434_s8 + $0x70] sm:$0xff]  ;;  %v7685_v34 = vcombine.high %v2300_v50, %v2304_v56 }
 0x1a6   : > { %v1735_v3 = vmax.f32 %v1669_v60, 0.0  ;;  %v7683_v60 = vcombine.high %v2299_v32, %v2303_v49 }
 0x1a7   : > { %v1733_v22 = vmax.f32 %v1661_v12, 0.0 }
 0x1a8   : > { %v1767_v23 = vpack.c.bf16 %v1735_v3, %v1734_v0  ;;  %v2307_v3 = vld [vmem:[%s14434_s8 + $0x90] sm:$0xff] }
 0x1a9   : > { %v1766_v45 = vpack.c.bf16 %v1733_v22, %v1732_v25  ;;  %v2311_v22 = vld [vmem:[%s14434_s8 + $0xb0] sm:$0xff] }
 0x1aa   : > { %v7691_v53 = vcombine.high %v2307_v3, %v2311_v22 }
 0x1ab   : > { %8468 = vmatprep.mubr.msk.bf16.mxu0 %vm1807_vm2, %v1766_v45 }
 0x1ad   : > { %8469 = vmatmul.mubr.msk.bf16.gmra.mrb[92].mxu0 %vm1807_vm2, %v1767_v23  ;;  %v2308_v23 = vld [vmem:[%s14434_s8 + $0x98] sm:$0xff] }
 0x1ae   : > { %3004 = vmatprep.mubr.bf16.mxu0 %v14445_v2 }
 0x207   : > { %v8410_v62 = vpop.f32.mrb[32].mxu0 }
 0x208   : > { %v1947_v5 = vadd.f32 %v8410_v62, %v9310_v4  ;;  %v1938_v13 = vpop.f32.mrb[33].mxu0 }
 0x209   : > { %v1939_v9 = vadd.f32 %v9310_v4, %v1938_v13  ;;  %v8411_v6 = vpop.f32.mrb[34].mxu0  ;;  %v7682_v13 = vcombine.low %v2299_v32, %v2303_v49 }
 0x20a   : > { %v1950_v26 = vadd.f32 %v8411_v6, %v9310_v4  ;;  %v1941_v41 = vpop.f32.mrb[35].mxu0  ;;  %v2195_v8 = vmax.f32 %v1947_v5, 0.0  ;;  %v2312_v6 = vld [vmem:[%s14434_s8 + $0xb8] sm:$0xff] }
 0x20b   : > { %v1942_v30 = vadd.f32 %v9310_v4, %v1941_v41  ;;  %v2193_v40 = vmax.f32 %v1939_v9, 0.0  ;;  %v7684_v9 = vcombine.low %v2300_v50, %v2304_v56  ;;  %v7693_v42 = vcombine.high %v2308_v23, %v2312_v6 }
 0x20c   : > { %v2196_v44 = vmax.f32 %v1950_v26, 0.0 }
 0x20d   : > { %v2194_v47 = vmax.f32 %v1942_v30, 0.0 }
 0x20e   : > { %v9328_v19 = vpack.c.bf16 %v2196_v44, %v2195_v8  ;;  %v7690_v8 = vcombine.low %v2307_v3, %v2311_v22  ;;  %v7692_v44 = vcombine.low %v2308_v23, %v2312_v6 }
 0x20f   : > { %v9330_v17 = vpack.c.bf16 %v2194_v47, %v2193_v40  ;;  %v8414_v52 = vpop.f32.mrb[36].mxu0 }
 0x210   : > { %v1963_v54 = vadd.f32 %v8414_v52, %v9310_v4  ;;  %v1954_v0 = vpop.f32.mrb[37].mxu0 }
 0x211   : > { %7702 = vmatmul.mubr.msk.bf16.vlgmr.msra.gmra.mrb[96].mxu1 %vm1807_vm2, %v9330_v17  ;;  %7734 = vmatmul.mubr.msk.bf16.vlgmr.msra.gmra.mrb[96].mxu0 %vm1807_vm2, %v9330_v17  ;;  %v1955_v25 = vadd.f32 %v9310_v4, %v1954_v0  ;;  %v8415_v12 = vpop.f32.mrb[38].mxu0 }
 0x212   : > { %v2199_v45 = vmax.f32 %v1963_v54, 0.0  ;;  %3326 = vmatpush1.bf16.msra.mxu1 %v7674_v63  ;;  %3679 = vmatpush1.bf16.msra.mxu0 %v7676_v31  ;;  %v1966_v62 = vadd.f32 %v8415_v12, %v9310_v4  ;;  %v1957_v5 = vpop.f32.mrb[39].mxu0 }
 0x213   : > { %v2197_v26 = vmax.f32 %v1955_v25, 0.0  ;;  %v1958_v41 = vadd.f32 %v9310_v4, %v1957_v5  ;;  %2661 = vmatprep.mubr.bf16.mxu1 %v14445_v2  ;;  %3014 = vmatprep.mubr.bf16.mxu0 %v14445_v2 }
 0x214   : > { %v2200_v55 = vmax.f32 %v1966_v62, 0.0  ;;  %3327 = vmatprep.subr.bf16.mxu1 %v7683_v60  ;;  %3680 = vmatprep.subr.bf16.mxu0 %v7685_v34 }
 0x215   : > { %v2198_v63 = vmax.f32 %v1958_v41, 0.0 }
 0x216   : > { %v9360_v11 = vpack.c.bf16 %v2200_v55, %v2199_v45  ;;  %3328 = vmatpush1.bf16.msra.mxu1 %v7682_v13  ;;  %3681 = vmatpush1.bf16.msra.mxu0 %v7684_v9 }
 0x217   : > { %v9362_v31 = vpack.c.bf16 %v2198_v63, %v2197_v26  ;;  %3329 = vmatprep.subr.bf16.mxu1 %v7691_v53  ;;  %3682 = vmatprep.subr.bf16.mxu0 %v7693_v42 }
 0x218   : > { %v8418_v30 = vpop.f32.mrb[40].mxu0 }
 0x219   : > { %v1979_v32 = vadd.f32 %v8418_v30, %v9310_v4  ;;  %v1970_v40 = vpop.f32.mrb[41].mxu0  ;;  %7703 = vmatmul.mubr.msk.bf16.gmra.mrb[100].mxu1 %vm1807_vm2, %v9328_v19  ;;  %7735 = vmatmul.mubr.msk.bf16.gmra.mrb[100].mxu0 %vm1807_vm2, %v9328_v19 }
 0x21a   : > { %v1971_v47 = vadd.f32 %v9310_v4, %v1970_v40  ;;  %v8419_v49 = vpop.f32.mrb[42].mxu0  ;;  %2671 = vmatprep.mubr.bf16.mxu1 %v14445_v2  ;;  %3024 = vmatprep.mubr.bf16.mxu0 %v14445_v2 }
 0x21b   : > { %v2203_v50 = vmax.f32 %v1979_v32, 0.0  ;;  %v1982_v56 = vadd.f32 %v8419_v49, %v9310_v4  ;;  %v1973_v52 = vpop.f32.mrb[43].mxu0  ;;  %3330 = vmatpush1.bf16.msra.mxu1 %v7690_v8  ;;  %3683 = vmatpush1.bf16.msra.mxu0 %v7692_v44 }
 0x21c   : > { %v2201_v54 = vmax.f32 %v1971_v47, 0.0  ;;  %v1974_v0 = vadd.f32 %v9310_v4, %v1973_v52 }
 0x21d   : > { %v2204_v60 = vmax.f32 %v1982_v56, 0.0 }
 0x21e   : > { %v2202_v34 = vmax.f32 %v1974_v0, 0.0 }
 0x21f   : > { %v9374_v25 = vpack.c.bf16 %v2204_v60, %v2203_v50 }
 0x220   : > { %v9376_v12 = vpack.c.bf16 %v2202_v34, %v2201_v54  ;;  %v8422_v3 = vpop.f32.mrb[44].mxu0 }
 0x221   : > { %v1995_v22 = vadd.f32 %v8422_v3, %v9310_v4  ;;  %v1986_v23 = vpop.f32.mrb[45].mxu0  ;;  %7704 = vmatmul.mubr.msk.bf16.gmra.mrb[104].mxu1 %vm1807_vm2, %v9362_v31  ;;  %7736 = vmatmul.mubr.msk.bf16.gmra.mrb[104].mxu0 %vm1807_vm2, %v9362_v31 }
 0x222   : > { %v1987_v45 = vadd.f32 %v9310_v4, %v1986_v23  ;;  %v8423_v62 = vpop.f32.mrb[46].mxu0  ;;  %2681 = vmatprep.mubr.bf16.mxu1 %v14445_v2  ;;  %3034 = vmatprep.mubr.bf16.mxu0 %v14445_v2 }
 0x223   : > { %v2207_v5 = vmax.f32 %v1995_v22, 0.0  ;;  %v1998_v13 = vadd.f32 %v8423_v62, %v9310_v4  ;;  %v1989_v9 = vpop.f32.mrb[47].mxu0 }
 0x224   : > { %v2205_v6 = vmax.f32 %v1987_v45, 0.0  ;;  %v1990_v26 = vadd.f32 %v9310_v4, %v1989_v9 }
 0x225   : > { %v2208_v41 = vmax.f32 %v1998_v13, 0.0 }
 0x226   : > { %v2206_v53 = vmax.f32 %v1990_v26, 0.0 }
 0x227   : > { %v9388_v42 = vpack.c.bf16 %v2208_v41, %v2207_v5 }
 0x228   : > { %v9390_v55 = vpack.c.bf16 %v2206_v53, %v2205_v6  ;;  %v8426_v63 = vpop.f32.mrb[48].mxu0 }
 0x229   : > { %v2011_v30 = vadd.f32 %v8426_v63, %v9310_v4  ;;  %v2002_v8 = vpop.f32.mrb[49].mxu0  ;;  %7705 = vmatmul.mubr.msk.bf16.gmra.mrb[108].mxu1 %vm1807_vm2, %v9360_v11  ;;  %7737 = vmatmul.mubr.msk.bf16.gmra.mrb[108].mxu0 %vm1807_vm2, %v9360_v11 }
 0x22a   : > { %v2003_v44 = vadd.f32 %v9310_v4, %v2002_v8  ;;  %v8427_v32 = vpop.f32.mrb[50].mxu0  ;;  %2691 = vmatprep.mubr.bf16.mxu1 %v14445_v2  ;;  %3044 = vmatprep.mubr.bf16.mxu0 %v14445_v2 }
 0x22b   : > { %v2211_v40 = vmax.f32 %v2011_v30, 0.0  ;;  %v2014_v47 = vadd.f32 %v8427_v32, %v9310_v4  ;;  %v2005_v49 = vpop.f32.mrb[51].mxu0 }
 0x22c   : > { %v2209_v50 = vmax.f32 %v2003_v44, 0.0  ;;  %v2006_v56 = vadd.f32 %v9310_v4, %v2005_v49 }
 0x22d   : > { %v2212_v52 = vmax.f32 %v2014_v47, 0.0 }
 0x22e   : > { %v2210_v54 = vmax.f32 %v2006_v56, 0.0 }
 0x22f   : > { %v9402_v0 = vpack.c.bf16 %v2212_v52, %v2211_v40 }
 0x230   : > { %v9404_v60 = vpack.c.bf16 %v2210_v54, %v2209_v50  ;;  %v8430_v34 = vpop.f32.mrb[52].mxu0 }
 0x231   : > { %v2027_v3 = vadd.f32 %v8430_v34, %v9310_v4  ;;  %v2018_v22 = vpop.f32.mrb[53].mxu0  ;;  %7706 = vmatmul.mubr.msk.bf16.gmra.mrb[112].mxu1 %vm1807_vm2, %v9376_v12  ;;  %7738 = vmatmul.mubr.msk.bf16.gmra.mrb[112].mxu0 %vm1807_vm2, %v9376_v12 }
 0x232   : > { %v2019_v23 = vadd.f32 %v9310_v4, %v2018_v22  ;;  %v8431_v45 = vpop.f32.mrb[54].mxu0  ;;  %2701 = vmatprep.mubr.bf16.mxu1 %v14445_v2  ;;  %3054 = vmatprep.mubr.bf16.mxu0 %v14445_v2 }
 0x233   : > { %v2215_v62 = vmax.f32 %v2027_v3, 0.0  ;;  %v2030_v5 = vadd.f32 %v8431_v45, %v9310_v4  ;;  %v2021_v13 = vpop.f32.mrb[55].mxu0 }
 0x234   : > { %v2213_v9 = vmax.f32 %v2019_v23, 0.0  ;;  %v2022_v6 = vadd.f32 %v9310_v4, %v2021_v13 }
 0x235   : > { %v2216_v26 = vmax.f32 %v2030_v5, 0.0 }
 0x236   : > { %v2214_v41 = vmax.f32 %v2022_v6, 0.0 }
 0x237   : > { %v9416_v53 = vpack.c.bf16 %v2216_v26, %v2215_v62 }
 0x238   : > { %v9418_v63 = vpack.c.bf16 %v2214_v41, %v2213_v9  ;;  %v8434_v30 = vpop.f32.mrb[56].mxu0 }
 0x239   : > { %v2043_v8 = vadd.f32 %v8434_v30, %v9310_v4  ;;  %v2034_v44 = vpop.f32.mrb[57].mxu0  ;;  %7707 = vmatmul.mubr.msk.bf16.gmra.mrb[116].mxu1 %vm1807_vm2, %v9374_v25  ;;  %7739 = vmatmul.mubr.msk.bf16.gmra.mrb[116].mxu0 %vm1807_vm2, %v9374_v25 }
 0x23a   : > { %v2035_v32 = vadd.f32 %v9310_v4, %v2034_v44  ;;  %v8435_v40 = vpop.f32.mrb[58].mxu0  ;;  %2711 = vmatprep.mubr.bf16.mxu1 %v14445_v2  ;;  %3064 = vmatprep.mubr.bf16.mxu0 %v14445_v2 }
 0x23b   : > { %v2219_v47 = vmax.f32 %v2043_v8, 0.0  ;;  %v2046_v49 = vadd.f32 %v8435_v40, %v9310_v4  ;;  %v2037_v50 = vpop.f32.mrb[59].mxu0 }
 0x23c   : > { %v2217_v56 = vmax.f32 %v2035_v32, 0.0  ;;  %v2038_v52 = vadd.f32 %v9310_v4, %v2037_v50 }
 0x23d   : > { %v2220_v54 = vmax.f32 %v2046_v49, 0.0 }
 0x23e   : > { %v2218_v34 = vmax.f32 %v2038_v52, 0.0 }
 0x23f   : > { %v9430_v3 = vpack.c.bf16 %v2220_v54, %v2219_v47 }
 0x240   : > { %v9432_v22 = vpack.c.bf16 %v2218_v34, %v2217_v56  ;;  %v8438_v23 = vpop.f32.mrb[60].mxu0 }
 0x241   : > { %v2059_v45 = vadd.f32 %v8438_v23, %v9310_v4  ;;  %v2050_v62 = vpop.f32.mrb[61].mxu0  ;;  %7708 = vmatmul.mubr.msk.bf16.gmra.mrb[120].mxu1 %vm1807_vm2, %v9390_v55  ;;  %7740 = vmatmul.mubr.msk.bf16.gmra.mrb[120].mxu0 %vm1807_vm2, %v9390_v55 }
 0x242   : > { %v2051_v5 = vadd.f32 %v9310_v4, %v2050_v62  ;;  %v8439_v13 = vpop.f32.mrb[62].mxu0  ;;  %2721 = vmatprep.mubr.bf16.mxu1 %v14445_v2  ;;  %3074 = vmatprep.mubr.bf16.mxu0 %v14445_v2 }
 0x243   : > { %v2223_v9 = vmax.f32 %v2059_v45, 0.0  ;;  %v2062_v6 = vadd.f32 %v8439_v13, %v9310_v4  ;;  %v2053_v26 = vpop.f32.mrb[63].mxu0 }
 0x244   : > { %v2221_v41 = vmax.f32 %v2051_v5, 0.0  ;;  %v2054_v30 = vadd.f32 %v9310_v4, %v2053_v26 }
 0x245   : > { %v2224_v8 = vmax.f32 %v2062_v6, 0.0 }
 0x246   : > { %v2222_v44 = vmax.f32 %v2054_v30, 0.0 }
 0x247   : > { %v9444_v32 = vpack.c.bf16 %v2224_v8, %v2223_v9 }
 0x248   : > { %v9446_v40 = vpack.c.bf16 %v2222_v44, %v2221_v41  ;;  %v8442_v47 = vpop.f32.mrb[64].mxu0 }
 0x249   : > { %v2075_v49 = vadd.f32 %v8442_v47, %v9310_v4  ;;  %v2066_v50 = vpop.f32.mrb[65].mxu0  ;;  %7709 = vmatmul.mubr.msk.bf16.gmra.mrb[124].mxu1 %vm1807_vm2, %v9388_v42  ;;  %7741 = vmatmul.mubr.msk.bf16.gmra.mrb[124].mxu0 %vm1807_vm2, %v9388_v42  ;;  %v2315_v47 = vld [vmem:[%s14434_s8 + $0xd0] sm:$0xff] }
 0x24a   : > { %v2067_v56 = vadd.f32 %v9310_v4, %v2066_v50  ;;  %v8443_v52 = vpop.f32.mrb[66].mxu0  ;;  %2731 = vmatprep.mubr.bf16.mxu1 %v14445_v2  ;;  %3084 = vmatprep.mubr.bf16.mxu0 %v14445_v2  ;;  %v2316_v50 = vld [vmem:[%s14434_s8 + $0xd8] sm:$0xff] }
 0x24b   : > { %v2227_v54 = vmax.f32 %v2075_v49, 0.0  ;;  %v2078_v34 = vadd.f32 %v8443_v52, %v9310_v4  ;;  %v2069_v23 = vpop.f32.mrb[67].mxu0  ;;  %v2319_v49 = vld [vmem:[%s14434_s8 + $0xf0] sm:$0xff] }
 0x24c   : > { %v2225_v45 = vmax.f32 %v2067_v56, 0.0  ;;  %v2070_v62 = vadd.f32 %v9310_v4, %v2069_v23  ;;  %v7699_v23 = vcombine.high %v2315_v47, %v2319_v49 }
 0x24d   : > { %v2228_v5 = vmax.f32 %v2078_v34, 0.0  ;;  %v7698_v34 = vcombine.low %v2315_v47, %v2319_v49 }
 0x24e   : > { %v2226_v13 = vmax.f32 %v2070_v62, 0.0  ;;  %3331 = vmatprep.subr.bf16.mxu1 %v7699_v23 }
 0x24f   : > { %v9458_v9 = vpack.c.bf16 %v2228_v5, %v2227_v54  ;;  %3332 = vmatpush1.bf16.msra.mxu1 %v7698_v34 }
 0x250   : > { %v9460_v6 = vpack.c.bf16 %v2226_v13, %v2225_v45  ;;  %v8446_v26 = vpop.f32.mrb[68].mxu0  ;;  %v2320_v45 = vld [vmem:[%s14434_s8 + $0xf8] sm:$0xff] }
 0x251   : > { %v2091_v41 = vadd.f32 %v8446_v26, %v9310_v4  ;;  %v2082_v30 = vpop.f32.mrb[69].mxu0  ;;  %7710 = vmatmul.mubr.msk.bf16.gmra.mrb[128].mxu1 %vm1807_vm2, %v9404_v60  ;;  %7742 = vmatmul.mubr.msk.bf16.gmra.mrb[128].mxu0 %vm1807_vm2, %v9404_v60  ;;  %v7700_v13 = vcombine.low %v2316_v50, %v2320_v45  ;;  %v7701_v26 = vcombine.high %v2316_v50, %v2320_v45 }
 0x252   : > { %v2083_v8 = vadd.f32 %v9310_v4, %v2082_v30  ;;  %v8447_v44 = vpop.f32.mrb[70].mxu0  ;;  %2741 = vmatprep.mubr.bf16.mxu1 %v14445_v2  ;;  %3094 = vmatprep.mubr.bf16.mxu0 %v14445_v2 }
 0x253   : > { %v2231_v56 = vmax.f32 %v2091_v41, 0.0  ;;  %v2094_v52 = vadd.f32 %v8447_v44, %v9310_v4  ;;  %v2085_v54 = vpop.f32.mrb[71].mxu0  ;;  %3684 = vmatprep.subr.bf16.mxu0 %v7701_v26 }
 0x254   : > { %v2229_v62 = vmax.f32 %v2083_v8, 0.0  ;;  %v2086_v5 = vadd.f32 %v9310_v4, %v2085_v54  ;;  %3685 = vmatpush1.bf16.msra.mxu0 %v7700_v13 }
 0x255   : > { %v2232_v30 = vmax.f32 %v2094_v52, 0.0  ;;  %v14565_v52 = vmov 0  }
 0x256   : > { %v2230_v43 = vmax.f32 %v2086_v5, 0.0 }
 0x257   : > { %v9484_v41 = vpack.c.bf16 %v2232_v30, %v2231_v56 }
 0x258   : > { %v9486_v44 = vpack.c.bf16 %v2230_v43, %v2229_v62  ;;  %v8450_v47 = vpop.f32.mrb[72].mxu0 }
 0x259   : > { %v2107_v49 = vadd.f32 %v8450_v47, %v9310_v4  ;;  %v2098_v2 = vpop.f32.mrb[73].mxu0  ;;  %7711 = vmatmul.mubr.msk.bf16.gmra.mrb[132].mxu1 %vm1807_vm2, %v9402_v0  ;;  %7743 = vmatmul.mubr.msk.bf16.gmra.mrb[132].mxu0 %vm1807_vm2, %v9402_v0 }
 0x25a   : > { %v2099_v8 = vadd.f32 %v9310_v4, %v2098_v2  ;;  %v8451_v50 = vpop.f32.mrb[74].mxu0  ;;  %2751 = vmatprep.mubr.bf16.mxu1 %v14565_v52  ;;  %3104 = vmatprep.mubr.bf16.mxu0 %v14565_v52 }
 0x25b   : > { %v2235_v56 = vmax.f32 %v2107_v49, 0.0  ;;  %v2110_v43 = vadd.f32 %v8451_v50, %v9310_v4  ;;  %v2101_v54 = vpop.f32.mrb[75].mxu0 }
 0x25c   : > { %v2233_v34 = vmax.f32 %v2099_v8, 0.0  ;;  %v2102_v23 = vadd.f32 %v9310_v4, %v2101_v54 }
 0x25d   : > { %v2236_v45 = vmax.f32 %v2110_v43, 0.0 }
 0x25e   : > { %v2234_v62 = vmax.f32 %v2102_v23, 0.0 }
 0x25f   : > { %v9498_v5 = vpack.c.bf16 %v2236_v45, %v2235_v56 }
 0x260   : > { %v9500_v13 = vpack.c.bf16 %v2234_v62, %v2233_v34  ;;  %v8454_v26 = vpop.f32.mrb[76].mxu0 }
 0x261   : > { %v2123_v2 = vadd.f32 %v8454_v26, %v9310_v4  ;;  %v2114_v30 = vpop.f32.mrb[77].mxu0  ;;  %7712 = vmatmul.mubr.msk.bf16.gmra.mrb[136].mxu1 %vm1807_vm2, %v9418_v63  ;;  %7744 = vmatmul.mubr.msk.bf16.gmra.mrb[136].mxu0 %vm1807_vm2, %v9418_v63 }
 0x262   : > { %v2115_v47 = vadd.f32 %v9310_v4, %v2114_v30  ;;  %v8455_v49 = vpop.f32.mrb[78].mxu0  ;;  %2761 = vmatprep.mubr.bf16.mxu1 %v14565_v52  ;;  %3114 = vmatprep.mubr.bf16.mxu0 %v14565_v52 }
 0x263   : > { %v2239_v8 = vmax.f32 %v2123_v2, 0.0  ;;  %v2126_v50 = vadd.f32 %v8455_v49, %v9310_v4  ;;  %v2117_v56 = vpop.f32.mrb[79].mxu0 }
 0x264   : > { %v2237_v43 = vmax.f32 %v2115_v47, 0.0  ;;  %v2118_v54 = vadd.f32 %v9310_v4, %v2117_v56 }
 0x265   : > { %v2240_v34 = vmax.f32 %v2126_v50, 0.0 }
 0x266   : > { %v2238_v23 = vmax.f32 %v2118_v54, 0.0 }
 0x267   : > { %v9512_v45 = vpack.c.bf16 %v2240_v34, %v2239_v8 }
 0x268   : > { %v9514_v62 = vpack.c.bf16 %v2238_v23, %v2237_v43  ;;  %v8458_v26 = vpop.f32.mrb[80].mxu0 }
 0x269   : > { %v2139_v30 = vadd.f32 %v8458_v26, %v9310_v4  ;;  %v2130_v14 = vpop.f32.mrb[81].mxu0  ;;  %7713 = vmatmul.mubr.msk.bf16.gmra.mrb[140].mxu1 %vm1807_vm2, %v9416_v53  ;;  %7745 = vmatmul.mubr.msk.bf16.gmra.mrb[140].mxu0 %vm1807_vm2, %v9416_v53 }
 0x26a   : > { %v2131_v2 = vadd.f32 %v9310_v4, %v2130_v14  ;;  %v8459_v47 = vpop.f32.mrb[82].mxu0  ;;  %2771 = vmatprep.mubr.bf16.mxu1 %v14565_v52  ;;  %3124 = vmatprep.mubr.bf16.mxu0 %v14565_v52 }
 0x26b   : > { %v2243_v49 = vmax.f32 %v2139_v30, 0.0  ;;  %v2142_v8 = vadd.f32 %v8459_v47, %v9310_v4  ;;  %v2133_v50 = vpop.f32.mrb[83].mxu0 }
 0x26c   : > { %v2241_v56 = vmax.f32 %v2131_v2, 0.0  ;;  %v2134_v43 = vadd.f32 %v9310_v4, %v2133_v50 }
 0x26d   : > { %v2244_v54 = vmax.f32 %v2142_v8, 0.0 }
 0x26e   : > { %v2242_v34 = vmax.f32 %v2134_v43, 0.0 }
 0x26f   : > { %v9526_v23 = vpack.c.bf16 %v2244_v54, %v2243_v49 }
 0x270   : > { %v9528_v26 = vpack.c.bf16 %v2242_v34, %v2241_v56  ;;  %v8462_v37 = vpop.f32.mrb[84].mxu0 }
 0x271   : > { %v2155_v14 = vadd.f32 %v8462_v37, %v9310_v4  ;;  %v2146_v38 = vpop.f32.mrb[85].mxu0  ;;  %7714 = vmatmul.mubr.msk.bf16.gmra.mrb[144].mxu1 %vm1807_vm2, %v9432_v22  ;;  %7746 = vmatmul.mubr.msk.bf16.gmra.mrb[144].mxu0 %vm1807_vm2, %v9432_v22 }
 0x272   : > { %v2147_v30 = vadd.f32 %v9310_v4, %v2146_v38  ;;  %v8463_v2 = vpop.f32.mrb[86].mxu0  ;;  %2781 = vmatprep.mubr.bf16.mxu1 %v14565_v52  ;;  %3134 = vmatprep.mubr.bf16.mxu0 %v14565_v52 }
 0x273   : > { %v2247_v47 = vmax.f32 %v2155_v14, 0.0  ;;  %v2158_v49 = vadd.f32 %v8463_v2, %v9310_v4  ;;  %v2149_v8 = vpop.f32.mrb[87].mxu0 }
 0x274   : > { %v2245_v50 = vmax.f32 %v2147_v30, 0.0  ;;  %v2150_v37 = vadd.f32 %v9310_v4, %v2149_v8 }
 0x275   : > { %v2248_v56 = vmax.f32 %v2158_v49, 0.0 }
 0x276   : > { %v2246_v43 = vmax.f32 %v2150_v37, 0.0 }
 0x277   : > { %v9540_v54 = vpack.c.bf16 %v2248_v56, %v2247_v47 }
 0x278   : > { %v9542_v34 = vpack.c.bf16 %v2246_v43, %v2245_v50  ;;  %v8466_v18 = vpop.f32.mrb[88].mxu0 }
 0x279   : > { %v2171_v38 = vadd.f32 %v8466_v18, %v9310_v4  ;;  %v2162_v59 = vpop.f32.mrb[89].mxu0  ;;  %7715 = vmatmul.mubr.msk.bf16.gmra.mrb[148].mxu1 %vm1807_vm2, %v9430_v3  ;;  %7747 = vmatmul.mubr.msk.bf16.gmra.mrb[148].mxu0 %vm1807_vm2, %v9430_v3 }
 0x27a   : > { %v2163_v14 = vadd.f32 %v9310_v4, %v2162_v59  ;;  %v8467_v30 = vpop.f32.mrb[90].mxu0  ;;  %2791 = vmatprep.mubr.bf16.mxu1 %v14565_v52  ;;  %3144 = vmatprep.mubr.bf16.mxu0 %v14565_v52 }
 0x27b   : > { %v2251_v2 = vmax.f32 %v2171_v38, 0.0  ;;  %v2174_v47 = vadd.f32 %v8467_v30, %v9310_v4  ;;  %v2165_v49 = vpop.f32.mrb[91].mxu0 }
 0x27c   : > { %v2249_v8 = vmax.f32 %v2163_v14, 0.0  ;;  %v2166_v18 = vadd.f32 %v9310_v4, %v2165_v49 }
 0x27d   : > { %v2252_v50 = vmax.f32 %v2174_v47, 0.0 }
 0x27e   : > { %v2250_v37 = vmax.f32 %v2166_v18, 0.0 }
 0x27f   : > { %v9554_v56 = vpack.c.bf16 %v2252_v50, %v2251_v2 }
 0x280   : > { %v9556_v43 = vpack.c.bf16 %v2250_v37, %v2249_v8  ;;  %v8470_v16 = vpop.f32.mrb[92].mxu0 }
 0x281   : > { %v2187_v59 = vadd.f32 %v8470_v16, %v9310_v4  ;;  %v2178_v1 = vpop.f32.mrb[93].mxu0  ;;  %7716 = vmatmul.mubr.msk.bf16.gmra.mrb[152].mxu1 %vm1807_vm2, %v9446_v40  ;;  %7748 = vmatmul.mubr.msk.bf16.gmra.mrb[152].mxu0 %vm1807_vm2, %v9446_v40 }
 0x282   : > { %v2179_v38 = vadd.f32 %v9310_v4, %v2178_v1  ;;  %v8471_v14 = vpop.f32.mrb[94].mxu0  ;;  %2801 = vmatprep.mubr.bf16.mxu1 %v14565_v52  ;;  %3154 = vmatprep.mubr.bf16.mxu0 %v14565_v52  ;;  %v9585_v1 = vld [vmem:[%s14436_s10] sm:$0xff] }
 0x283   : > { %v2255_v30 = vmax.f32 %v2187_v59, 0.0  ;;  %v2190_v2 = vadd.f32 %v8471_v14, %v9310_v4  ;;  %v2181_v47 = vpop.f32.mrb[95].mxu0  ;;  %v9595_v59 = vld [vmem:[%s14436_s10 + $0x8] sm:$0xff] }
 0x284   : > { %v2253_v49 = vmax.f32 %v2179_v38, 0.0  ;;  %v2182_v16 = vadd.f32 %v9310_v4, %v2181_v47  ;;  %v9590_v4 = vld [vmem:[%s14436_s10 + $0x20] sm:$0xff] }
 0x285   : > { %v2256_v8 = vmax.f32 %v2190_v2, 0.0  ;;  %v7831_v14 = vcombine.high %v9585_v1, %v9590_v4 }
 0x286   : > { %v2254_v18 = vmax.f32 %v2182_v16, 0.0 }
 0x287   : > { %v9568_v50 = vpack.c.bf16 %v2256_v8, %v2255_v30  ;;  %v9606_v30 = vld [vmem:[%s14436_s10 + $0x28] sm:$0xff]  ;;  %4368 = vmatprep.subr.bf16.mxu1 %v7831_v14 }
 0x288   : > { %v9570_v37 = vpack.c.bf16 %v2254_v18, %v2253_v49  ;;  %v7833_v47 = vcombine.high %v9595_v59, %v9606_v30 }
 0x289   : > { %7717 = vmatmul.mubr.msk.bf16.gmra.mrb[156].mxu1 %vm1807_vm2, %v9444_v32  ;;  %7749 = vmatmul.mubr.msk.bf16.gmra.mrb[156].mxu0 %vm1807_vm2, %v9444_v32 }
 0x28a   : > { %2811 = vmatprep.mubr.bf16.mxu1 %v14565_v52  ;;  %3164 = vmatprep.mubr.bf16.mxu0 %v14565_v52 }
 0x28b   : > { %4721 = vmatprep.subr.bf16.mxu0 %v7833_v47 }
 0x291   : > { %7718 = vmatmul.mubr.msk.bf16.gmra.mrb[160].mxu1 %vm1807_vm2, %v9460_v6  ;;  %7750 = vmatmul.mubr.msk.bf16.gmra.mrb[160].mxu0 %vm1807_vm2, %v9460_v6 }
 0x292   : > { %2821 = vmatprep.mubr.bf16.mxu1 %v14565_v52  ;;  %3174 = vmatprep.mubr.bf16.mxu0 %v14565_v52 }
 0x299   : > { %7719 = vmatmul.mubr.msk.bf16.gmra.mrb[164].mxu1 %vm1807_vm2, %v9458_v9  ;;  %7751 = vmatmul.mubr.msk.bf16.gmra.mrb[164].mxu0 %vm1807_vm2, %v9458_v9 }
 0x29a   : > { %2831 = vmatprep.mubr.bf16.mxu1 %v14565_v52  ;;  %3184 = vmatprep.mubr.bf16.mxu0 %v14565_v52 }
 0x2a1   : > { %7720 = vmatmul.mubr.msk.bf16.gmra.mrb[168].mxu1 %vm1807_vm2, %v9486_v44  ;;  %7752 = vmatmul.mubr.msk.bf16.gmra.mrb[168].mxu0 %vm1807_vm2, %v9486_v44 }
 0x2a2   : > { %2841 = vmatprep.mubr.bf16.mxu1 %v14565_v52  ;;  %3194 = vmatprep.mubr.bf16.mxu0 %v14565_v52 }
 0x2a9   : > { %7721 = vmatmul.mubr.msk.bf16.gmra.mrb[172].mxu1 %vm1807_vm2, %v9484_v41  ;;  %7753 = vmatmul.mubr.msk.bf16.gmra.mrb[172].mxu0 %vm1807_vm2, %v9484_v41 }
 0x2aa   : > { %2851 = vmatprep.mubr.bf16.mxu1 %v14565_v52  ;;  %3204 = vmatprep.mubr.bf16.mxu0 %v14565_v52 }
 0x2b1   : > { %7722 = vmatmul.mubr.msk.bf16.gmra.mrb[176].mxu1 %vm1807_vm2, %v9500_v13  ;;  %7754 = vmatmul.mubr.msk.bf16.gmra.mrb[176].mxu0 %vm1807_vm2, %v9500_v13 }
 0x2b2   : > { %2861 = vmatprep.mubr.bf16.mxu1 %v14565_v52  ;;  %3214 = vmatprep.mubr.bf16.mxu0 %v14565_v52 }
 0x2b9   : > { %7723 = vmatmul.mubr.msk.bf16.gmra.mrb[180].mxu1 %vm1807_vm2, %v9498_v5  ;;  %7755 = vmatmul.mubr.msk.bf16.gmra.mrb[180].mxu0 %vm1807_vm2, %v9498_v5 }
 0x2ba   : > { %2871 = vmatprep.mubr.bf16.mxu1 %v14565_v52  ;;  %3224 = vmatprep.mubr.bf16.mxu0 %v14565_v52 }
 0x2c1   : > { %7724 = vmatmul.mubr.msk.bf16.gmra.mrb[184].mxu1 %vm1807_vm2, %v9514_v62  ;;  %7756 = vmatmul.mubr.msk.bf16.gmra.mrb[184].mxu0 %vm1807_vm2, %v9514_v62 }
 0x2c2   : > { %2881 = vmatprep.mubr.bf16.mxu1 %v14565_v52  ;;  %3234 = vmatprep.mubr.bf16.mxu0 %v14565_v52 }
 0x2c9   : > { %7725 = vmatmul.mubr.msk.bf16.gmra.mrb[188].mxu1 %vm1807_vm2, %v9512_v45  ;;  %7757 = vmatmul.mubr.msk.bf16.gmra.mrb[188].mxu0 %vm1807_vm2, %v9512_v45 }
 0x2ca   : > { %2891 = vmatprep.mubr.bf16.mxu1 %v14565_v52  ;;  %3244 = vmatprep.mubr.bf16.mxu0 %v14565_v52 }
 0x2d1   : > { %7726 = vmatmul.mubr.msk.bf16.gmra.mrb[192].mxu1 %vm1807_vm2, %v9528_v26  ;;  %7758 = vmatmul.mubr.msk.bf16.gmra.mrb[192].mxu0 %vm1807_vm2, %v9528_v26 }
 0x2d2   : > { %2901 = vmatprep.mubr.bf16.mxu1 %v14565_v52  ;;  %3254 = vmatprep.mubr.bf16.mxu0 %v14565_v52 }
 0x2d9   : > { %7727 = vmatmul.mubr.msk.bf16.gmra.mrb[196].mxu1 %vm1807_vm2, %v9526_v23  ;;  %7759 = vmatmul.mubr.msk.bf16.gmra.mrb[196].mxu0 %vm1807_vm2, %v9526_v23 }
 0x2da   : > { %2911 = vmatprep.mubr.bf16.mxu1 %v14565_v52  ;;  %3264 = vmatprep.mubr.bf16.mxu0 %v14565_v52 }
 0x2e1   : > { %7728 = vmatmul.mubr.msk.bf16.gmra.mrb[200].mxu1 %vm1807_vm2, %v9542_v34  ;;  %7760 = vmatmul.mubr.msk.bf16.gmra.mrb[200].mxu0 %vm1807_vm2, %v9542_v34 }
 0x2e2   : > { %2921 = vmatprep.mubr.bf16.mxu1 %v14565_v52  ;;  %3274 = vmatprep.mubr.bf16.mxu0 %v14565_v52 }
 0x2e4   : > { %v9672_v49 = vpop.f32.mrb[96].mxu1  ;;  %v9674_v16 = vpop.f32.mrb[96].mxu0 }
 0x2e5   : > { %14566 = vst [vmem:[#allocation25_spill] sm:$0xff] %v9672_v49  ;;  %14567 = vst [vmem:[#allocation26_spill] sm:$0xff] %v9674_v16  ;;  %v9676_v8 = vpop.f32.mrb[97].mxu1  ;;  %v9678_v18 = vpop.f32.mrb[97].mxu0 }
 0x2e6   : > { %14568 = vst [vmem:[#allocation27_spill] sm:$0xff] %v9676_v8  ;;  %14569 = vst [vmem:[#allocation28_spill] sm:$0xff] %v9678_v18  ;;  %v9680_v14 = vpop.f32.mrb[98].mxu1  ;;  %v9682_v47 = vpop.f32.mrb[98].mxu0 }
 0x2e7   : > { %14570 = vst [vmem:[#allocation29_spill] sm:$0xff] %v9680_v14  ;;  %14571 = vst [vmem:[#allocation30_spill] sm:$0xff] %v9682_v47  ;;  %v9684_v2 = vpop.f32.mrb[99].mxu1  ;;  %v9686_v38 = vpop.f32.mrb[99].mxu0 }
 0x2e8   : > { %14572 = vst [vmem:[#allocation31_spill] sm:$0xff] %v9684_v2  ;;  %14573 = vst [vmem:[#allocation32_spill] sm:$0xff] %v9686_v38 }
 0x2e9   : > { %7729 = vmatmul.mubr.msk.bf16.gmra.mrb[204].mxu1 %vm1807_vm2, %v9540_v54  ;;  %7761 = vmatmul.mubr.msk.bf16.gmra.mrb[204].mxu0 %vm1807_vm2, %v9540_v54 }
 0x2ea   : > { %2931 = vmatprep.mubr.bf16.mxu1 %v14565_v52  ;;  %3284 = vmatprep.mubr.bf16.mxu0 %v14565_v52 }
 0x2ec   : > { %v9694_v8 = vpop.f32.mrb[100].mxu1  ;;  %v9696_v18 = vpop.f32.mrb[100].mxu0 }
 0x2ed   : > { %14574 = vst [vmem:[#allocation33_spill] sm:$0xff] %v9694_v8  ;;  %14575 = vst [vmem:[#allocation34_spill] sm:$0xff] %v9696_v18  ;;  %v9698_v14 = vpop.f32.mrb[101].mxu1  ;;  %v9700_v47 = vpop.f32.mrb[101].mxu0 }
 0x2ee   : > { %14576 = vst [vmem:[#allocation35_spill] sm:$0xff] %v9698_v14  ;;  %14577 = vst [vmem:[#allocation36_spill] sm:$0xff] %v9700_v47  ;;  %v9702_v2 = vpop.f32.mrb[102].mxu1  ;;  %v9704_v38 = vpop.f32.mrb[102].mxu0 }
 0x2ef   : > { %14578 = vst [vmem:[#allocation37_spill] sm:$0xff] %v9702_v2  ;;  %14579 = vst [vmem:[#allocation38_spill] sm:$0xff] %v9704_v38  ;;  %v9706_v16 = vpop.f32.mrb[103].mxu1  ;;  %v9708_v49 = vpop.f32.mrb[103].mxu0 }
 0x2f0   : > { %14580 = vst [vmem:[#allocation39_spill] sm:$0xff] %v9706_v16  ;;  %14581 = vst [vmem:[#allocation40_spill] sm:$0xff] %v9708_v49 }
 0x2f1   : > { %7730 = vmatmul.mubr.msk.bf16.gmra.mrb[208].mxu1 %vm1807_vm2, %v9556_v43  ;;  %7762 = vmatmul.mubr.msk.bf16.gmra.mrb[208].mxu0 %vm1807_vm2, %v9556_v43 }
 0x2f2   : > { %2941 = vmatprep.mubr.bf16.mxu1 %v14565_v52  ;;  %3294 = vmatprep.mubr.bf16.mxu0 %v14565_v52 }
 0x2f4   : > { %v9716_v14 = vpop.f32.mrb[104].mxu1  ;;  %v9718_v47 = vpop.f32.mrb[104].mxu0 }
 0x2f5   : > { %14582 = vst [vmem:[#allocation41_spill] sm:$0xff] %v9716_v14  ;;  %14583 = vst [vmem:[#allocation42_spill] sm:$0xff] %v9718_v47  ;;  %v9720_v2 = vpop.f32.mrb[105].mxu1  ;;  %v9722_v38 = vpop.f32.mrb[105].mxu0 }
 0x2f6   : > { %14584 = vst [vmem:[#allocation43_spill] sm:$0xff] %v9720_v2  ;;  %14585 = vst [vmem:[#allocation44_spill] sm:$0xff] %v9722_v38  ;;  %v9724_v16 = vpop.f32.mrb[106].mxu1  ;;  %v9726_v49 = vpop.f32.mrb[106].mxu0 }
 0x2f7   : > { %14586 = vst [vmem:[#allocation45_spill] sm:$0xff] %v9724_v16  ;;  %14587 = vst [vmem:[#allocation46_spill] sm:$0xff] %v9726_v49  ;;  %v9728_v18 = vpop.f32.mrb[107].mxu1  ;;  %v9730_v8 = vpop.f32.mrb[107].mxu0 }
 0x2f8   : > { %14588 = vst [vmem:[#allocation47_spill] sm:$0xff] %v9728_v18  ;;  %14589 = vst [vmem:[#allocation48_spill] sm:$0xff] %v9730_v8 }
 0x2f9   : > { %7731 = vmatmul.mubr.msk.bf16.gmra.mrb[212].mxu1 %vm1807_vm2, %v9554_v56  ;;  %7763 = vmatmul.mubr.msk.bf16.gmra.mrb[212].mxu0 %vm1807_vm2, %v9554_v56 }
 0x2fa   : > { %2951 = vmatprep.mubr.bf16.mxu1 %v14565_v52  ;;  %3304 = vmatprep.mubr.bf16.mxu0 %v14565_v52 }
 0x2fc   : > { %v9738_v2 = vpop.f32.mrb[108].mxu1  ;;  %v9740_v38 = vpop.f32.mrb[108].mxu0 }
 0x2fd   : > { %14590 = vst [vmem:[#allocation49_spill] sm:$0xff] %v9738_v2  ;;  %14591 = vst [vmem:[#allocation50_spill] sm:$0xff] %v9740_v38  ;;  %v9742_v16 = vpop.f32.mrb[109].mxu1  ;;  %v9744_v49 = vpop.f32.mrb[109].mxu0 }
 0x2fe   : > { %14592 = vst [vmem:[#allocation51_spill] sm:$0xff] %v9742_v16  ;;  %14593 = vst [vmem:[#allocation52_spill] sm:$0xff] %v9744_v49  ;;  %v9746_v18 = vpop.f32.mrb[110].mxu1  ;;  %v9748_v8 = vpop.f32.mrb[110].mxu0 }
 0x2ff   : > { %14594 = vst [vmem:[#allocation53_spill] sm:$0xff] %v9746_v18  ;;  %14595 = vst [vmem:[#allocation54_spill] sm:$0xff] %v9748_v8  ;;  %v9750_v47 = vpop.f32.mrb[111].mxu1  ;;  %v9752_v14 = vpop.f32.mrb[111].mxu0 }
 0x300   : > { %14596 = vst [vmem:[#allocation55_spill] sm:$0xff] %v9750_v47  ;;  %14597 = vst [vmem:[#allocation56_spill] sm:$0xff] %v9752_v14 }
 0x301   : > { %7732 = vmatmul.mubr.msk.bf16.gmra.mrb[216].mxu1 %vm1807_vm2, %v9570_v37  ;;  %7764 = vmatmul.mubr.msk.bf16.gmra.mrb[216].mxu0 %vm1807_vm2, %v9570_v37 }
 0x302   : > { %2961 = vmatprep.mubr.bf16.mxu1 %v14565_v52  ;;  %3314 = vmatprep.mubr.bf16.mxu0 %v14565_v52 }
 0x304   : > { %v9760_v16 = vpop.f32.mrb[112].mxu1  ;;  %v9762_v49 = vpop.f32.mrb[112].mxu0 }
 0x305   : > { %14598 = vst [vmem:[#allocation57_spill] sm:$0xff] %v9760_v16  ;;  %14599 = vst [vmem:[#allocation58_spill] sm:$0xff] %v9762_v49  ;;  %v9764_v18 = vpop.f32.mrb[113].mxu1  ;;  %v9766_v8 = vpop.f32.mrb[113].mxu0  ;;  %v4040_v49 = vld [vmem:[%s14436_s10 + $0x48] sm:$0xff] }
 0x306   : > { %14600 = vst [vmem:[#allocation59_spill] sm:$0xff] %v9764_v18  ;;  %14601 = vst [vmem:[#allocation60_spill] sm:$0xff] %v9766_v8  ;;  %v9768_v47 = vpop.f32.mrb[114].mxu1  ;;  %v9770_v14 = vpop.f32.mrb[114].mxu0 }
 0x307   : > { %14602 = vst [vmem:[#allocation61_spill] sm:$0xff] %v9768_v47  ;;  %14603 = vst [vmem:[#allocation62_spill] sm:$0xff] %v9770_v14  ;;  %v9772_v38 = vpop.f32.mrb[115].mxu1  ;;  %v9774_v2 = vpop.f32.mrb[115].mxu0  ;;  %v4043_v47 = vld [vmem:[%s14436_s10 + $0x60] sm:$0xff] }
 0x308   : > { %14604 = vst [vmem:[#allocation63_spill] sm:$0xff] %v9772_v38  ;;  %14605 = vst [vmem:[#allocation64_spill] sm:$0xff] %v9774_v2  ;;  %v4039_v38 = vld [vmem:[%s14436_s10 + $0x40] sm:$0xff] }
 0x309   : > { %7733 = vmatmul.mubr.msk.bf16.gmra.mrb[220].mxu1 %vm1807_vm2, %v9568_v50  ;;  %7765 = vmatmul.mubr.msk.bf16.gmra.mrb[220].mxu0 %vm1807_vm2, %v9568_v50  ;;  %v7839_v15 = vcombine.high %v4039_v38, %v4043_v47  ;;  %v7838_v28 = vcombine.low %v4039_v38, %v4043_v47 }
 0x30a   : > { %3357 = vmatprep.mubr.bf16.mxu1 %v14565_v52  ;;  %3710 = vmatprep.mubr.bf16.mxu0 %v14565_v52 }
 0x30c   : > { %v9782_v18 = vpop.f32.mrb[116].mxu1  ;;  %v9784_v8 = vpop.f32.mrb[116].mxu0 }
 0x30d   : > { %14606 = vst [vmem:[#allocation65_spill] sm:$0xff] %v9782_v18  ;;  %14607 = vst [vmem:[#allocation66_spill] sm:$0xff] %v9784_v8  ;;  %v9789_v14 = vpop.f32.mrb[117].mxu1  ;;  %v9791_v2 = vpop.f32.mrb[117].mxu0  ;;  %v4044_v8 = vld [vmem:[%s14436_s10 + $0x68] sm:$0xff] }
 0x30e   : > { %14608 = vst [vmem:[#allocation67_spill] sm:$0xff] %v9789_v14  ;;  %14609 = vst [vmem:[#allocation68_spill] sm:$0xff] %v9791_v2  ;;  %v9802_v18 = vpop.f32.mrb[118].mxu1  ;;  %v9804_v16 = vpop.f32.mrb[118].mxu0  ;;  %v4047_v2 = vld [vmem:[%s14436_s10 + $0x80] sm:$0xff]  ;;  %v7841_v20 = vcombine.high %v4040_v49, %v4044_v8  ;;  %v7840_v24 = vcombine.low %v4040_v49, %v4044_v8 }
 0x30f   : > { %14610 = vst [vmem:[#allocation69_spill] sm:$0xff] %v9802_v18  ;;  %14611 = vst [vmem:[#allocation70_spill] sm:$0xff] %v9804_v16  ;;  %v9806_v7 = vpop.f32.mrb[119].mxu1  ;;  %v9808_v14 = vpop.f32.mrb[119].mxu0  ;;  %v4048_v18 = vld [vmem:[%s14436_s10 + $0x88] sm:$0xff]  ;;  %v14615_v16 = vcombine.low %v9595_v59, %v9606_v30  ;;  %v7847_v10 = vcombine.high %v4047_v2, %v4051_v39  ;;  %v7846_v49 = vcombine.low %v4047_v2, %v4051_v39 }
 0x310   : > { %14612 = vst [vmem:[#allocation71_spill] sm:$0xff] %v9806_v7  ;;  %14613 = vst [vmem:[#allocation72_spill] sm:$0xff] %v9808_v14  ;;  %v4052_v7 = vld [vmem:[%s14436_s10 + $0xa8] sm:$0xff]  ;;  %v14614_v14 = vcombine.low %v9585_v1, %v9590_v4 }
 0x311   : > { %7766 = vmatmul.mubr.msk.bf16.vlgmr.msra.gmra.mrb[224].mxu1 %vm1807_vm2, %v9330_v17  ;;  %7798 = vmatmul.mubr.msk.bf16.vlgmr.msra.gmra.mrb[224].mxu0 %vm1807_vm2, %v9330_v17  ;;  %v7849_v51 = vcombine.high %v4048_v18, %v4052_v7 }
 0x312   : > { %4369 = vmatpush1.bf16.msra.mxu1 %v14614_v14  ;;  %4722 = vmatpush1.bf16.msra.mxu0 %v14615_v16  ;;  %v7848_v16 = vcombine.low %v4048_v18, %v4052_v7 }
 0x313   : > { %3367 = vmatprep.mubr.bf16.mxu1 %v14565_v52  ;;  %3720 = vmatprep.mubr.bf16.mxu0 %v14565_v52 }
 0x314   : > { %v9834_v27 = vpop.f32.mrb[120].mxu1  ;;  %v9836_v61 = vpop.f32.mrb[120].mxu0  ;;  %4370 = vmatprep.subr.bf16.mxu1 %v7839_v15  ;;  %4723 = vmatprep.subr.bf16.mxu0 %v7841_v20 }
 0x315   : > { %v9838_v17 = vpop.f32.mrb[121].mxu1  ;;  %v9840_v1 = vpop.f32.mrb[121].mxu0 }
 0x316   : > { %v9842_v4 = vpop.f32.mrb[122].mxu1  ;;  %v9844_v59 = vpop.f32.mrb[122].mxu0  ;;  %4371 = vmatpush1.bf16.msra.mxu1 %v7838_v28  ;;  %4724 = vmatpush1.bf16.msra.mxu0 %v7840_v24 }
 0x317   : > { %v9846_v38 = vpop.f32.mrb[123].mxu1  ;;  %v9848_v30 = vpop.f32.mrb[123].mxu0  ;;  %4372 = vmatprep.subr.bf16.mxu1 %v7847_v10  ;;  %4725 = vmatprep.subr.bf16.mxu0 %v7849_v51 }
 0x319   : > { %7767 = vmatmul.mubr.msk.bf16.gmra.mrb[228].mxu1 %vm1807_vm2, %v9328_v19  ;;  %7799 = vmatmul.mubr.msk.bf16.gmra.mrb[228].mxu0 %vm1807_vm2, %v9328_v19 }
 0x31a   : > { %3377 = vmatprep.mubr.bf16.mxu1 %v14565_v52  ;;  %3730 = vmatprep.mubr.bf16.mxu0 %v14565_v52 }
 0x31b   : > { %4373 = vmatpush1.bf16.msra.mxu1 %v7846_v49  ;;  %4726 = vmatpush1.bf16.msra.mxu0 %v7848_v16 }
 0x31c   : > { %v9856_v15 = vpop.f32.mrb[124].mxu1  ;;  %v9858_v20 = vpop.f32.mrb[124].mxu0 }
 0x31d   : > { %v9860_v24 = vpop.f32.mrb[125].mxu1  ;;  %v9862_v7 = vpop.f32.mrb[125].mxu0 }
 0x31e   : > { %v9864_v51 = vpop.f32.mrb[126].mxu1  ;;  %v9866_v10 = vpop.f32.mrb[126].mxu0 }
 0x31f   : > { %14616 = vst [vmem:[#allocation73_spill] sm:$0xff] %v9864_v51  ;;  %14617 = vst [vmem:[#allocation74_spill] sm:$0xff] %v9866_v10  ;;  %v9868_v39 = vpop.f32.mrb[127].mxu1  ;;  %v9870_v28 = vpop.f32.mrb[127].mxu0 }
 0x320   : > { %14618 = vst [vmem:[#allocation75_spill] sm:$0xff] %v9868_v39  ;;  %14619 = vst [vmem:[#allocation76_spill] sm:$0xff] %v9870_v28 }
 0x321   : > { %7768 = vmatmul.mubr.msk.bf16.gmra.mrb[232].mxu1 %vm1807_vm2, %v9362_v31  ;;  %7800 = vmatmul.mubr.msk.bf16.gmra.mrb[232].mxu0 %vm1807_vm2, %v9362_v31  ;;  %v4055_v31 = vld [vmem:[%s14436_s10 + $0xc0] sm:$0xff] }
 0x322   : > { %3387 = vmatprep.mubr.bf16.mxu1 %v14565_v52  ;;  %3740 = vmatprep.mubr.bf16.mxu0 %v14565_v52 }
 0x324   : > { %v9878_v19 = vpop.f32.mrb[128].mxu1  ;;  %v9880_v2 = vpop.f32.mrb[128].mxu0 }
 0x325   : > { %14620 = vst [vmem:[#allocation77_spill] sm:$0xff] %v9878_v19  ;;  %14621 = vst [vmem:[#allocation78_spill] sm:$0xff] %v9880_v2  ;;  %v9882_v8 = vpop.f32.mrb[129].mxu1  ;;  %v9884_v18 = vpop.f32.mrb[129].mxu0 }
 0x326   : > { %14622 = vst [vmem:[#allocation79_spill] sm:$0xff] %v9882_v8  ;;  %14623 = vst [vmem:[#allocation80_spill] sm:$0xff] %v9884_v18  ;;  %v9886_v14 = vpop.f32.mrb[130].mxu1  ;;  %v9888_v47 = vpop.f32.mrb[130].mxu0 }
 0x327   : > { %14624 = vst [vmem:[#allocation81_spill] sm:$0xff] %v9886_v14  ;;  %14625 = vst [vmem:[#allocation82_spill] sm:$0xff] %v9888_v47  ;;  %v9890_v49 = vpop.f32.mrb[131].mxu1  ;;  %v9892_v16 = vpop.f32.mrb[131].mxu0  ;;  %v4059_v14 = vld [vmem:[%s14436_s10 + $0xe0] sm:$0xff] }
 0x328   : > { %14626 = vst [vmem:[#allocation83_spill] sm:$0xff] %v9890_v49  ;;  %14627 = vst [vmem:[#allocation84_spill] sm:$0xff] %v9892_v16  ;;  %v4056_v49 = vld [vmem:[%s14436_s10 + $0xc8] sm:$0xff]  ;;  %v7854_v16 = vcombine.low %v4055_v31, %v4059_v14  ;;  %v7855_v47 = vcombine.high %v4055_v31, %v4059_v14 }
 0x329   : > { %7769 = vmatmul.mubr.msk.bf16.gmra.mrb[236].mxu1 %vm1807_vm2, %v9360_v11  ;;  %7801 = vmatmul.mubr.msk.bf16.gmra.mrb[236].mxu0 %vm1807_vm2, %v9360_v11  ;;  %v4060_v11 = vld [vmem:[%s14436_s10 + $0xe8] sm:$0xff] }
 0x32a   : > { %3397 = vmatprep.mubr.bf16.mxu1 %v14565_v52  ;;  %3750 = vmatprep.mubr.bf16.mxu0 %v14565_v52  ;;  %v7856_v18 = vcombine.low %v4056_v49, %v4060_v11  ;;  %v7857_v8 = vcombine.high %v4056_v49, %v4060_v11 }
 0x32b   : > { %4374 = vmatprep.subr.bf16.mxu1 %v7855_v47 }
 0x32c   : > { %v9912_v2 = vpop.f32.mrb[132].mxu1  ;;  %v9914_v19 = vpop.f32.mrb[132].mxu0  ;;  %4727 = vmatprep.subr.bf16.mxu0 %v7857_v8  ;;  %4375 = vmatpush1.bf16.msra.mxu1 %v7854_v16 }
 0x32d   : > { %v9916_v28 = vpop.f32.mrb[133].mxu1  ;;  %v9918_v39 = vpop.f32.mrb[133].mxu0  ;;  %4728 = vmatpush1.bf16.msra.mxu0 %v7856_v18 }
 0x32e   : > { %v9920_v10 = vpop.f32.mrb[134].mxu1  ;;  %v9922_v14 = vpop.f32.mrb[134].mxu0 }
 0x32f   : > { %v9924_v31 = vpop.f32.mrb[135].mxu1  ;;  %v9926_v51 = vpop.f32.mrb[135].mxu0 }
 0x330   : > { %14628 = vst [vmem:[#allocation85_spill] sm:$0xff] %v9924_v31  ;;  %14629 = vst [vmem:[#allocation86_spill] sm:$0xff] %v9926_v51 }
 0x331   : > { %7770 = vmatmul.mubr.msk.bf16.gmra.mrb[240].mxu1 %vm1807_vm2, %v9376_v12  ;;  %7802 = vmatmul.mubr.msk.bf16.gmra.mrb[240].mxu0 %vm1807_vm2, %v9376_v12 }
 0x332   : > { %3407 = vmatprep.mubr.bf16.mxu1 %v14565_v52  ;;  %3760 = vmatprep.mubr.bf16.mxu0 %v14565_v52 }
 0x334   : > { %v9934_v8 = vpop.f32.mrb[136].mxu1  ;;  %v9936_v47 = vpop.f32.mrb[136].mxu0 }
 0x335   : > { %14630 = vst [vmem:[#allocation87_spill] sm:$0xff] %v9936_v47  ;;  %v9938_v49 = vpop.f32.mrb[137].mxu1  ;;  %v9940_v18 = vpop.f32.mrb[137].mxu0 }
 0x336   : > { %14631 = vst [vmem:[#allocation88_spill] sm:$0xff] %v9938_v49  ;;  %14632 = vst [vmem:[#allocation89_spill] sm:$0xff] %v9940_v18  ;;  %v9942_v16 = vpop.f32.mrb[138].mxu1  ;;  %v9944_v11 = vpop.f32.mrb[138].mxu0 }
 0x337   : > { %14633 = vst [vmem:[#allocation90_spill] sm:$0xff] %v9942_v16  ;;  %14634 = vst [vmem:[#allocation91_spill] sm:$0xff] %v9944_v11  ;;  %v9946_v51 = vpop.f32.mrb[139].mxu1  ;;  %v9948_v31 = vpop.f32.mrb[139].mxu0 }
 0x338   : > { %14635 = vst [vmem:[#allocation92_spill] sm:$0xff] %v9946_v51  ;;  %14636 = vst [vmem:[#allocation93_spill] sm:$0xff] %v9948_v31 }
 0x339   : > { %7771 = vmatmul.mubr.msk.bf16.gmra.mrb[244].mxu1 %vm1807_vm2, %v9374_v25  ;;  %7803 = vmatmul.mubr.msk.bf16.gmra.mrb[244].mxu0 %vm1807_vm2, %v9374_v25 }
 0x33a   : > { %3417 = vmatprep.mubr.bf16.mxu1 %v14565_v52  ;;  %3770 = vmatprep.mubr.bf16.mxu0 %v14565_v52 }
 0x33c   : > { %v9956_v12 = vpop.f32.mrb[140].mxu1  ;;  %v9958_v18 = vpop.f32.mrb[140].mxu0 }
 0x33d   : > { %14637 = vst [vmem:[#allocation94_spill] sm:$0xff] %v9958_v18  ;;  %v9960_v16 = vpop.f32.mrb[141].mxu1  ;;  %v9962_v11 = vpop.f32.mrb[141].mxu0 }
 0x33e   : > { %14638 = vst [vmem:[#allocation95_spill] sm:$0xff] %v9960_v16  ;;  %14639 = vst [vmem:[#allocation96_spill] sm:$0xff] %v9962_v11  ;;  %v9964_v51 = vpop.f32.mrb[142].mxu1  ;;  %v9966_v31 = vpop.f32.mrb[142].mxu0 }
 0x33f   : > { %14640 = vst [vmem:[#allocation97_spill] sm:$0xff] %v9964_v51  ;;  %14641 = vst [vmem:[#allocation98_spill] sm:$0xff] %v9966_v31  ;;  %v9968_v49 = vpop.f32.mrb[143].mxu1  ;;  %v9970_v47 = vpop.f32.mrb[143].mxu0 }
 0x340   : > { %14642 = vst [vmem:[#allocation99_spill] sm:$0xff] %v9968_v49  ;;  %14643 = vst [vmem:[#allocation100_spill] sm:$0xff] %v9970_v47 }
 0x341   : > { %7772 = vmatmul.mubr.msk.bf16.gmra.mrb[248].mxu1 %vm1807_vm2, %v9390_v55  ;;  %7804 = vmatmul.mubr.msk.bf16.gmra.mrb[248].mxu0 %vm1807_vm2, %v9390_v55 }
 0x342   : > { %3427 = vmatprep.mubr.bf16.mxu1 %v14565_v52  ;;  %3780 = vmatprep.mubr.bf16.mxu0 %v14565_v52 }
 0x344   : > { %v9978_v25 = vpop.f32.mrb[144].mxu1  ;;  %v9980_v11 = vpop.f32.mrb[144].mxu0 }
 0x345   : > { %14644 = vst [vmem:[#allocation101_spill] sm:$0xff] %v9980_v11  ;;  %v9982_v51 = vpop.f32.mrb[145].mxu1  ;;  %v9984_v31 = vpop.f32.mrb[145].mxu0 }
 0x346   : > { %14645 = vst [vmem:[#allocation102_spill] sm:$0xff] %v9982_v51  ;;  %14646 = vst [vmem:[#allocation103_spill] sm:$0xff] %v9984_v31  ;;  %v9986_v49 = vpop.f32.mrb[146].mxu1  ;;  %v9988_v47 = vpop.f32.mrb[146].mxu0 }
 0x347   : > { %14647 = vst [vmem:[#allocation104_spill] sm:$0xff] %v9986_v49  ;;  %14648 = vst [vmem:[#allocation105_spill] sm:$0xff] %v9988_v47  ;;  %v9990_v16 = vpop.f32.mrb[147].mxu1  ;;  %v9992_v18 = vpop.f32.mrb[147].mxu0 }
 0x348   : > { %14649 = vst [vmem:[#allocation106_spill] sm:$0xff] %v9990_v16  ;;  %14650 = vst [vmem:[#allocation107_spill] sm:$0xff] %v9992_v18 }
 0x349   : > { %7773 = vmatmul.mubr.msk.bf16.gmra.mrb[252].mxu1 %vm1807_vm2, %v9388_v42  ;;  %7805 = vmatmul.mubr.msk.bf16.gmra.mrb[252].mxu0 %vm1807_vm2, %v9388_v42 }
 0x34a   : > { %3437 = vmatprep.mubr.bf16.mxu1 %v14565_v52  ;;  %3790 = vmatprep.mubr.bf16.mxu0 %v14565_v52 }
 0x34c   : > { %v10000_v55 = vpop.f32.mrb[148].mxu1  ;;  %v10002_v31 = vpop.f32.mrb[148].mxu0 }
 0x34d   : > { %14651 = vst [vmem:[#allocation108_spill] sm:$0xff] %v10000_v55  ;;  %14652 = vst [vmem:[#allocation109_spill] sm:$0xff] %v10002_v31  ;;  %v10004_v49 = vpop.f32.mrb[149].mxu1  ;;  %v10006_v47 = vpop.f32.mrb[149].mxu0 }
 0x34e   : > { %14653 = vst [vmem:[#allocation110_spill] sm:$0xff] %v10004_v49  ;;  %14654 = vst [vmem:[#allocation111_spill] sm:$0xff] %v10006_v47  ;;  %v10008_v16 = vpop.f32.mrb[150].mxu1  ;;  %v10010_v18 = vpop.f32.mrb[150].mxu0 }
 0x34f   : > { %14655 = vst [vmem:[#allocation112_spill] sm:$0xff] %v10008_v16  ;;  %14656 = vst [vmem:[#allocation113_spill] sm:$0xff] %v10010_v18  ;;  %v10012_v51 = vpop.f32.mrb[151].mxu1  ;;  %v10014_v11 = vpop.f32.mrb[151].mxu0 }
 0x350   : > { %14657 = vst [vmem:[#allocation114_spill] sm:$0xff] %v10012_v51  ;;  %14658 = vst [vmem:[#allocation115_spill] sm:$0xff] %v10014_v11 }
 0x351   : > { %7774 = vmatmul.mubr.msk.bf16.gmra.mrb[0].mxu1 %vm1807_vm2, %v9404_v60  ;;  %7806 = vmatmul.mubr.msk.bf16.gmra.mrb[0].mxu0 %vm1807_vm2, %v9404_v60 }
 0x352   : > { %3447 = vmatprep.mubr.bf16.mxu1 %v14565_v52  ;;  %3800 = vmatprep.mubr.bf16.mxu0 %v14565_v52 }
 0x354   : > { %v10022_v42 = vpop.f32.mrb[152].mxu1  ;;  %v10024_v47 = vpop.f32.mrb[152].mxu0 }
 0x355   : > { %14659 = vst [vmem:[#allocation116_spill] sm:$0xff] %v10022_v42  ;;  %14660 = vst [vmem:[#allocation117_spill] sm:$0xff] %v10024_v47  ;;  %v10026_v16 = vpop.f32.mrb[153].mxu1  ;;  %v10028_v18 = vpop.f32.mrb[153].mxu0 }
 0x356   : > { %14661 = vst [vmem:[#allocation118_spill] sm:$0xff] %v10026_v16  ;;  %14662 = vst [vmem:[#allocation119_spill] sm:$0xff] %v10028_v18  ;;  %v10030_v51 = vpop.f32.mrb[154].mxu1  ;;  %v10032_v11 = vpop.f32.mrb[154].mxu0  ;;  %v4067_v16 = vld [vmem:[%s14436_s10 + $0x120] sm:$0xff] }
 0x357   : > { %14663 = vst [vmem:[#allocation120_spill] sm:$0xff] %v10030_v51  ;;  %14664 = vst [vmem:[#allocation121_spill] sm:$0xff] %v10032_v11  ;;  %v10034_v49 = vpop.f32.mrb[155].mxu1  ;;  %v10036_v31 = vpop.f32.mrb[155].mxu0 }
 0x358   : > { %14665 = vst [vmem:[#allocation122_spill] sm:$0xff] %v10034_v49  ;;  %14666 = vst [vmem:[#allocation123_spill] sm:$0xff] %v10036_v31 }
 0x359   : > { %7775 = vmatmul.mubr.msk.bf16.gmra.mrb[4].mxu1 %vm1807_vm2, %v9402_v0  ;;  %7807 = vmatmul.mubr.msk.bf16.gmra.mrb[4].mxu0 %vm1807_vm2, %v9402_v0  ;;  %v4063_v0 = vld [vmem:[%s14436_s10 + $0x100] sm:$0xff] }
 0x35a   : > { %3457 = vmatprep.mubr.bf16.mxu1 %v14565_v52  ;;  %3810 = vmatprep.mubr.bf16.mxu0 %v14565_v52 }
 0x35c   : > { %v10044_v60 = vpop.f32.mrb[156].mxu1  ;;  %v10046_v18 = vpop.f32.mrb[156].mxu0 }
 0x35d   : > { %14667 = vst [vmem:[#allocation124_spill] sm:$0xff] %v10044_v60  ;;  %14668 = vst [vmem:[#allocation125_spill] sm:$0xff] %v10046_v18  ;;  %v10048_v51 = vpop.f32.mrb[157].mxu1  ;;  %v10050_v11 = vpop.f32.mrb[157].mxu0  ;;  %v4064_v18 = vld [vmem:[%s14436_s10 + $0x108] sm:$0xff] }
 0x35e   : > { %14669 = vst [vmem:[#allocation126_spill] sm:$0xff] %v10048_v51  ;;  %14670 = vst [vmem:[#allocation127_spill] sm:$0xff] %v10050_v11  ;;  %v10052_v49 = vpop.f32.mrb[158].mxu1  ;;  %v10054_v31 = vpop.f32.mrb[158].mxu0  ;;  %v7863_v11 = vcombine.high %v4063_v0, %v4067_v16 }
 0x35f   : > { %14671 = vst [vmem:[#allocation128_spill] sm:$0xff] %v10052_v49  ;;  %14672 = vst [vmem:[#allocation129_spill] sm:$0xff] %v10054_v31  ;;  %v10065_v60 = vpop.f32.mrb[159].mxu1  ;;  %v10067_v51 = vpop.f32.mrb[159].mxu0  ;;  %v4068_v31 = vld [vmem:[%s14436_s10 + $0x128] sm:$0xff]  ;;  %v7862_v49 = vcombine.low %v4063_v0, %v4067_v16 }
 0x360   : > { %14673 = vst [vmem:[#allocation130_spill] sm:$0xff] %v10065_v60  ;;  %14674 = vst [vmem:[#allocation131_spill] sm:$0xff] %v10067_v51  ;;  %v7864_v47 = vcombine.low %v4064_v18, %v4068_v31  ;;  %v7865_v42 = vcombine.high %v4064_v18, %v4068_v31  ;;  %4376 = vmatprep.subr.bf16.mxu1 %v7863_v11 }
 0x361   : > { %7776 = vmatmul.mubr.msk.bf16.gmra.mrb[8].mxu1 %vm1807_vm2, %v9418_v63  ;;  %7808 = vmatmul.mubr.msk.bf16.gmra.mrb[8].mxu0 %vm1807_vm2, %v9418_v63 }
 0x362   : > { %3467 = vmatprep.mubr.bf16.mxu1 %v14565_v52  ;;  %3820 = vmatprep.mubr.bf16.mxu0 %v14565_v52 }
 0x363   : > { %4729 = vmatprep.subr.bf16.mxu0 %v7865_v42  ;;  %4377 = vmatpush1.bf16.msra.mxu1 %v7862_v49 }
 0x364   : > { %v10078_v51 = vpop.f32.mrb[160].mxu1  ;;  %v10080_v60 = vpop.f32.mrb[160].mxu0  ;;  %4730 = vmatpush1.bf16.msra.mxu0 %v7864_v47 }
 0x365   : > { %v10082_v16 = vpop.f32.mrb[161].mxu1  ;;  %v10084_v31 = vpop.f32.mrb[161].mxu0 }
 0x366   : > { %v10086_v18 = vpop.f32.mrb[162].mxu1  ;;  %v10088_v0 = vpop.f32.mrb[162].mxu0 }
 0x367   : > { %14675 = vst [vmem:[#allocation132_spill] sm:$0xff] %v10086_v18  ;;  %14676 = vst [vmem:[#allocation133_spill] sm:$0xff] %v10088_v0  ;;  %v10090_v63 = vpop.f32.mrb[163].mxu1  ;;  %v10092_v55 = vpop.f32.mrb[163].mxu0 }
 0x368   : > { %14677 = vst [vmem:[#allocation134_spill] sm:$0xff] %v10090_v63  ;;  %14678 = vst [vmem:[#allocation135_spill] sm:$0xff] %v10092_v55 }
 0x369   : > { %7777 = vmatmul.mubr.msk.bf16.gmra.mrb[12].mxu1 %vm1807_vm2, %v9416_v53  ;;  %7809 = vmatmul.mubr.msk.bf16.gmra.mrb[12].mxu0 %vm1807_vm2, %v9416_v53 }
 0x36a   : > { %3477 = vmatprep.mubr.bf16.mxu1 %v14565_v52  ;;  %3830 = vmatprep.mubr.bf16.mxu0 %v14565_v52 }
 0x36c   : > { %v10100_v47 = vpop.f32.mrb[164].mxu1  ;;  %v10102_v49 = vpop.f32.mrb[164].mxu0 }
 0x36d   : > { %14679 = vst [vmem:[#allocation136_spill] sm:$0xff] %v10100_v47  ;;  %14680 = vst [vmem:[#allocation137_spill] sm:$0xff] %v10102_v49  ;;  %v10104_v11 = vpop.f32.mrb[165].mxu1  ;;  %v10106_v42 = vpop.f32.mrb[165].mxu0 }
 0x36e   : > { %14681 = vst [vmem:[#allocation138_spill] sm:$0xff] %v10104_v11  ;;  %14682 = vst [vmem:[#allocation139_spill] sm:$0xff] %v10106_v42  ;;  %v10108_v63 = vpop.f32.mrb[166].mxu1  ;;  %v10110_v55 = vpop.f32.mrb[166].mxu0 }
 0x36f   : > { %14683 = vst [vmem:[#allocation140_spill] sm:$0xff] %v10108_v63  ;;  %14684 = vst [vmem:[#allocation141_spill] sm:$0xff] %v10110_v55  ;;  %v10112_v0 = vpop.f32.mrb[167].mxu1  ;;  %v10114_v18 = vpop.f32.mrb[167].mxu0 }
 0x370   : > { %14685 = vst [vmem:[#allocation142_spill] sm:$0xff] %v10112_v0  ;;  %14686 = vst [vmem:[#allocation143_spill] sm:$0xff] %v10114_v18 }
 0x371   : > { %7778 = vmatmul.mubr.msk.bf16.gmra.mrb[16].mxu1 %vm1807_vm2, %v9432_v22  ;;  %7810 = vmatmul.mubr.msk.bf16.gmra.mrb[16].mxu0 %vm1807_vm2, %v9432_v22 }
 0x372   : > { %3487 = vmatprep.mubr.bf16.mxu1 %v14565_v52  ;;  %3840 = vmatprep.mubr.bf16.mxu0 %v14565_v52 }
 0x374   : > { %v10122_v53 = vpop.f32.mrb[168].mxu1  ;;  %v10124_v42 = vpop.f32.mrb[168].mxu0 }
 0x375   : > { %14687 = vst [vmem:[#allocation144_spill] sm:$0xff] %v10122_v53  ;;  %14688 = vst [vmem:[#allocation145_spill] sm:$0xff] %v10124_v42  ;;  %v10126_v63 = vpop.f32.mrb[169].mxu1  ;;  %v10128_v55 = vpop.f32.mrb[169].mxu0 }
 0x376   : > { %14689 = vst [vmem:[#allocation146_spill] sm:$0xff] %v10126_v63  ;;  %14690 = vst [vmem:[#allocation147_spill] sm:$0xff] %v10128_v55  ;;  %v10130_v0 = vpop.f32.mrb[170].mxu1  ;;  %v10132_v18 = vpop.f32.mrb[170].mxu0 }
 0x377   : > { %14691 = vst [vmem:[#allocation148_spill] sm:$0xff] %v10130_v0  ;;  %14692 = vst [vmem:[#allocation149_spill] sm:$0xff] %v10132_v18  ;;  %v10134_v11 = vpop.f32.mrb[171].mxu1  ;;  %v10136_v49 = vpop.f32.mrb[171].mxu0 }
 0x378   : > { %14693 = vst [vmem:[#allocation150_spill] sm:$0xff] %v10134_v11  ;;  %14694 = vst [vmem:[#allocation151_spill] sm:$0xff] %v10136_v49 }
 0x379   : > { %7779 = vmatmul.mubr.msk.bf16.gmra.mrb[20].mxu1 %vm1807_vm2, %v9430_v3  ;;  %7811 = vmatmul.mubr.msk.bf16.gmra.mrb[20].mxu0 %vm1807_vm2, %v9430_v3 }
 0x37a   : > { %3497 = vmatprep.mubr.bf16.mxu1 %v14565_v52  ;;  %3850 = vmatprep.mubr.bf16.mxu0 %v14565_v52 }
 0x37c   : > { %v10144_v22 = vpop.f32.mrb[172].mxu1  ;;  %v10146_v55 = vpop.f32.mrb[172].mxu0 }
 0x37d   : > { %14695 = vst [vmem:[#allocation152_spill] sm:$0xff] %v10144_v22  ;;  %14696 = vst [vmem:[#allocation153_spill] sm:$0xff] %v10146_v55  ;;  %v10148_v0 = vpop.f32.mrb[173].mxu1  ;;  %v10150_v18 = vpop.f32.mrb[173].mxu0 }
 0x37e   : > { %14697 = vst [vmem:[#allocation154_spill] sm:$0xff] %v10148_v0  ;;  %14698 = vst [vmem:[#allocation155_spill] sm:$0xff] %v10150_v18  ;;  %v10152_v11 = vpop.f32.mrb[174].mxu1  ;;  %v10154_v49 = vpop.f32.mrb[174].mxu0 }
 0x37f   : > { %14699 = vst [vmem:[#allocation156_spill] sm:$0xff] %v10152_v11  ;;  %14700 = vst [vmem:[#allocation157_spill] sm:$0xff] %v10154_v49  ;;  %v10156_v63 = vpop.f32.mrb[175].mxu1  ;;  %v10158_v42 = vpop.f32.mrb[175].mxu0 }
 0x380   : > { %14701 = vst [vmem:[#allocation158_spill] sm:$0xff] %v10156_v63  ;;  %14702 = vst [vmem:[#allocation159_spill] sm:$0xff] %v10158_v42 }
 0x381   : > { %7780 = vmatmul.mubr.msk.bf16.gmra.mrb[24].mxu1 %vm1807_vm2, %v9446_v40  ;;  %7812 = vmatmul.mubr.msk.bf16.gmra.mrb[24].mxu0 %vm1807_vm2, %v9446_v40 }
 0x382   : > { %3507 = vmatprep.mubr.bf16.mxu1 %v14565_v52  ;;  %3860 = vmatprep.mubr.bf16.mxu0 %v14565_v52 }
 0x384   : > { %v10166_v3 = vpop.f32.mrb[176].mxu1  ;;  %v10168_v18 = vpop.f32.mrb[176].mxu0 }
 0x385   : > { %14703 = vst [vmem:[#allocation160_spill] sm:$0xff] %v10166_v3  ;;  %14704 = vst [vmem:[#allocation161_spill] sm:$0xff] %v10168_v18  ;;  %v10170_v11 = vpop.f32.mrb[177].mxu1  ;;  %v10172_v49 = vpop.f32.mrb[177].mxu0 }
 0x386   : > { %14705 = vst [vmem:[#allocation162_spill] sm:$0xff] %v10170_v11  ;;  %14706 = vst [vmem:[#allocation163_spill] sm:$0xff] %v10172_v49  ;;  %v10174_v63 = vpop.f32.mrb[178].mxu1  ;;  %v10176_v42 = vpop.f32.mrb[178].mxu0 }
 0x387   : > { %14707 = vst [vmem:[#allocation164_spill] sm:$0xff] %v10174_v63  ;;  %14708 = vst [vmem:[#allocation165_spill] sm:$0xff] %v10176_v42  ;;  %v10178_v0 = vpop.f32.mrb[179].mxu1  ;;  %v10180_v55 = vpop.f32.mrb[179].mxu0 }
 0x388   : > { %14709 = vst [vmem:[#allocation166_spill] sm:$0xff] %v10178_v0  ;;  %14710 = vst [vmem:[#allocation167_spill] sm:$0xff] %v10180_v55 }
 0x389   : > { %7781 = vmatmul.mubr.msk.bf16.gmra.mrb[28].mxu1 %vm1807_vm2, %v9444_v32  ;;  %7813 = vmatmul.mubr.msk.bf16.gmra.mrb[28].mxu0 %vm1807_vm2, %v9444_v32  ;;  %v10211_v32 = vld [vmem:[%s14436_s10 + $0x10] sm:$0xff] }
 0x38a   : > { %3517 = vmatprep.mubr.bf16.mxu1 %v14565_v52  ;;  %3870 = vmatprep.mubr.bf16.mxu0 %v14565_v52 }
 0x38c   : > { %v10188_v40 = vpop.f32.mrb[180].mxu1  ;;  %v10190_v49 = vpop.f32.mrb[180].mxu0 }
 0x38d   : > { %14711 = vst [vmem:[#allocation168_spill] sm:$0xff] %v10188_v40  ;;  %14712 = vst [vmem:[#allocation169_spill] sm:$0xff] %v10190_v49  ;;  %v10192_v63 = vpop.f32.mrb[181].mxu1  ;;  %v10194_v42 = vpop.f32.mrb[181].mxu0 }
 0x38e   : > { %14713 = vst [vmem:[#allocation170_spill] sm:$0xff] %v10192_v63  ;;  %14714 = vst [vmem:[#allocation171_spill] sm:$0xff] %v10194_v42  ;;  %v10196_v0 = vpop.f32.mrb[182].mxu1  ;;  %v10198_v55 = vpop.f32.mrb[182].mxu0 }
 0x38f   : > { %14715 = vst [vmem:[#allocation172_spill] sm:$0xff] %v10196_v0  ;;  %14716 = vst [vmem:[#allocation173_spill] sm:$0xff] %v10198_v55  ;;  %v10200_v11 = vpop.f32.mrb[183].mxu1  ;;  %v10202_v18 = vpop.f32.mrb[183].mxu0  ;;  %v10216_v0 = vld [vmem:[%s14436_s10 + $0x30] sm:$0xff]  ;;  %v10232_v55 = vld [vmem:[%s14436_s10 + $0x38] sm:$0xff] }
 0x390   : > { %14717 = vst [vmem:[#allocation174_spill] sm:$0xff] %v10200_v11  ;;  %14718 = vst [vmem:[#allocation175_spill] sm:$0xff] %v10202_v18  ;;  %v10221_v18 = vld [vmem:[%s14436_s10 + $0x18] sm:$0xff]  ;;  %v7835_v11 = vcombine.high %v10211_v32, %v10216_v0 }
 0x391   : > { %7782 = vmatmul.mubr.msk.bf16.gmra.mrb[32].mxu1 %vm1807_vm2, %v9460_v6  ;;  %7814 = vmatmul.mubr.msk.bf16.gmra.mrb[32].mxu0 %vm1807_vm2, %v9460_v6  ;;  %v7837_v63 = vcombine.high %v10221_v18, %v10232_v55 }
 0x392   : > { %3527 = vmatprep.mubr.bf16.mxu1 %v14565_v52  ;;  %3880 = vmatprep.mubr.bf16.mxu0 %v14565_v52 }
 0x393   : > { %5074 = vmatprep.subr.bf16.mxu1 %v7835_v11  ;;  %5427 = vmatprep.subr.bf16.mxu0 %v7837_v63 }
 0x394   : > { %v10238_v49 = vpop.f32.mrb[184].mxu1  ;;  %v10240_v40 = vpop.f32.mrb[184].mxu0 }
 0x395   : > { %14719 = vst [vmem:[#allocation176_spill] sm:$0xff] %v10238_v49  ;;  %14720 = vst [vmem:[#allocation177_spill] sm:$0xff] %v10240_v40  ;;  %v10242_v6 = vpop.f32.mrb[185].mxu1  ;;  %v10244_v3 = vpop.f32.mrb[185].mxu0  ;;  %v15083_v40 = vld [vmem:[#allocation30_spill] sm:$0xff] }
 0x396   : > { %14721 = vst [vmem:[#allocation178_spill] sm:$0xff] %v10242_v6  ;;  %14722 = vst [vmem:[#allocation179_spill] sm:$0xff] %v10244_v3  ;;  %v10246_v22 = vpop.f32.mrb[186].mxu1  ;;  %v10248_v53 = vpop.f32.mrb[186].mxu0 }
 0x397   : > { %14723 = vst [vmem:[#allocation180_spill] sm:$0xff] %v10246_v22  ;;  %14724 = vst [vmem:[#allocation181_spill] sm:$0xff] %v10248_v53  ;;  %v10250_v47 = vpop.f32.mrb[187].mxu1  ;;  %v10252_v42 = vpop.f32.mrb[187].mxu0 }
 0x398   : > { %14725 = vst [vmem:[#allocation182_spill] sm:$0xff] %v10250_v47  ;;  %14726 = vst [vmem:[#allocation183_spill] sm:$0xff] %v10252_v42 }
 0x399   : > { %7783 = vmatmul.mubr.msk.bf16.gmra.mrb[36].mxu1 %vm1807_vm2, %v9458_v9  ;;  %7815 = vmatmul.mubr.msk.bf16.gmra.mrb[36].mxu0 %vm1807_vm2, %v9458_v9 }
 0x39a   : > { %3537 = vmatprep.mubr.bf16.mxu1 %v14565_v52  ;;  %3890 = vmatprep.mubr.bf16.mxu0 %v14565_v52 }
 0x39c   : > { %v10260_v11 = vpop.f32.mrb[188].mxu1  ;;  %v10262_v63 = vpop.f32.mrb[188].mxu0 }
 0x39d   : > { %14727 = vst [vmem:[#allocation184_spill] sm:$0xff] %v10260_v11  ;;  %14728 = vst [vmem:[#allocation185_spill] sm:$0xff] %v10262_v63  ;;  %v10264_v22 = vpop.f32.mrb[189].mxu1  ;;  %v10266_v53 = vpop.f32.mrb[189].mxu0 }
 0x39e   : > { %14729 = vst [vmem:[#allocation186_spill] sm:$0xff] %v10264_v22  ;;  %14730 = vst [vmem:[#allocation187_spill] sm:$0xff] %v10266_v53  ;;  %v10268_v47 = vpop.f32.mrb[190].mxu1  ;;  %v10270_v42 = vpop.f32.mrb[190].mxu0 }
 0x39f   : > { %14731 = vst [vmem:[#allocation188_spill] sm:$0xff] %v10268_v47  ;;  %14732 = vst [vmem:[#allocation189_spill] sm:$0xff] %v10270_v42  ;;  %v10272_v3 = vpop.f32.mrb[191].mxu1  ;;  %v10274_v6 = vpop.f32.mrb[191].mxu0 }
 0x3a0   : > { %14733 = vst [vmem:[#allocation190_spill] sm:$0xff] %v10272_v3  ;;  %14734 = vst [vmem:[#allocation191_spill] sm:$0xff] %v10274_v6 }
 0x3a1   : > { %7784 = vmatmul.mubr.msk.bf16.gmra.mrb[40].mxu1 %vm1807_vm2, %v9486_v44  ;;  %7816 = vmatmul.mubr.msk.bf16.gmra.mrb[40].mxu0 %vm1807_vm2, %v9486_v44 }
 0x3a2   : > { %3547 = vmatprep.mubr.bf16.mxu1 %v14565_v52  ;;  %3900 = vmatprep.mubr.bf16.mxu0 %v14565_v52 }
 0x3a4   : > { %v10282_v9 = vpop.f32.mrb[192].mxu1  ;;  %v10284_v53 = vpop.f32.mrb[192].mxu0 }
 0x3a5   : > { %14735 = vst [vmem:[#allocation192_spill] sm:$0xff] %v10282_v9  ;;  %14736 = vst [vmem:[#allocation193_spill] sm:$0xff] %v10284_v53  ;;  %v10286_v47 = vpop.f32.mrb[193].mxu1  ;;  %v10288_v42 = vpop.f32.mrb[193].mxu0 }
 0x3a6   : > { %14737 = vst [vmem:[#allocation194_spill] sm:$0xff] %v10286_v47  ;;  %14738 = vst [vmem:[#allocation195_spill] sm:$0xff] %v10288_v42  ;;  %v10290_v3 = vpop.f32.mrb[194].mxu1  ;;  %v10292_v6 = vpop.f32.mrb[194].mxu0 }
 0x3a7   : > { %14739 = vst [vmem:[#allocation196_spill] sm:$0xff] %v10290_v3  ;;  %14740 = vst [vmem:[#allocation197_spill] sm:$0xff] %v10292_v6  ;;  %v10294_v22 = vpop.f32.mrb[195].mxu1  ;;  %v10296_v63 = vpop.f32.mrb[195].mxu0 }
 0x3a8   : > { %14741 = vst [vmem:[#allocation198_spill] sm:$0xff] %v10294_v22  ;;  %14742 = vst [vmem:[#allocation199_spill] sm:$0xff] %v10296_v63 }
 0x3a9   : > { %7785 = vmatmul.mubr.msk.bf16.gmra.mrb[44].mxu1 %vm1807_vm2, %v9484_v41  ;;  %7817 = vmatmul.mubr.msk.bf16.gmra.mrb[44].mxu0 %vm1807_vm2, %v9484_v41 }
 0x3aa   : > { %3557 = vmatprep.mubr.bf16.mxu1 %v14565_v52  ;;  %3910 = vmatprep.mubr.bf16.mxu0 %v14565_v52 }
 0x3ac   : > { %v10304_v44 = vpop.f32.mrb[196].mxu1  ;;  %v10306_v42 = vpop.f32.mrb[196].mxu0 }
 0x3ad   : > { %14743 = vst [vmem:[#allocation200_spill] sm:$0xff] %v10304_v44  ;;  %14744 = vst [vmem:[#allocation201_spill] sm:$0xff] %v10306_v42  ;;  %v10308_v3 = vpop.f32.mrb[197].mxu1  ;;  %v10310_v6 = vpop.f32.mrb[197].mxu0 }
 0x3ae   : > { %14745 = vst [vmem:[#allocation202_spill] sm:$0xff] %v10308_v3  ;;  %14746 = vst [vmem:[#allocation203_spill] sm:$0xff] %v10310_v6  ;;  %v10312_v22 = vpop.f32.mrb[198].mxu1  ;;  %v10314_v63 = vpop.f32.mrb[198].mxu0 }
 0x3af   : > { %14747 = vst [vmem:[#allocation204_spill] sm:$0xff] %v10312_v22  ;;  %14748 = vst [vmem:[#allocation205_spill] sm:$0xff] %v10314_v63  ;;  %v10316_v47 = vpop.f32.mrb[199].mxu1  ;;  %v10318_v53 = vpop.f32.mrb[199].mxu0 }
 0x3b0   : > { %14749 = vst [vmem:[#allocation206_spill] sm:$0xff] %v10316_v47  ;;  %14750 = vst [vmem:[#allocation207_spill] sm:$0xff] %v10318_v53 }
 0x3b1   : > { %7786 = vmatmul.mubr.msk.bf16.gmra.mrb[48].mxu1 %vm1807_vm2, %v9500_v13  ;;  %7818 = vmatmul.mubr.msk.bf16.gmra.mrb[48].mxu0 %vm1807_vm2, %v9500_v13 }
 0x3b2   : > { %3567 = vmatprep.mubr.bf16.mxu1 %v14565_v52  ;;  %3920 = vmatprep.mubr.bf16.mxu0 %v14565_v52 }
 0x3b4   : > { %v10326_v41 = vpop.f32.mrb[200].mxu1  ;;  %v10328_v6 = vpop.f32.mrb[200].mxu0 }
 0x3b5   : > { %14751 = vst [vmem:[#allocation208_spill] sm:$0xff] %v10326_v41  ;;  %14752 = vst [vmem:[#allocation209_spill] sm:$0xff] %v10328_v6  ;;  %v10330_v22 = vpop.f32.mrb[201].mxu1  ;;  %v10332_v63 = vpop.f32.mrb[201].mxu0 }
 0x3b6   : > { %14753 = vst [vmem:[#allocation210_spill] sm:$0xff] %v10330_v22  ;;  %14754 = vst [vmem:[#allocation211_spill] sm:$0xff] %v10332_v63  ;;  %v10334_v47 = vpop.f32.mrb[202].mxu1  ;;  %v10336_v53 = vpop.f32.mrb[202].mxu0 }
 0x3b7   : > { %14755 = vst [vmem:[#allocation212_spill] sm:$0xff] %v10334_v47  ;;  %14756 = vst [vmem:[#allocation213_spill] sm:$0xff] %v10336_v53  ;;  %v10338_v3 = vpop.f32.mrb[203].mxu1  ;;  %v10340_v42 = vpop.f32.mrb[203].mxu0 }
 0x3b8   : > { %14757 = vst [vmem:[#allocation214_spill] sm:$0xff] %v10338_v3  ;;  %14758 = vst [vmem:[#allocation215_spill] sm:$0xff] %v10340_v42 }
 0x3b9   : > { %7787 = vmatmul.mubr.msk.bf16.gmra.mrb[52].mxu1 %vm1807_vm2, %v9498_v5  ;;  %7819 = vmatmul.mubr.msk.bf16.gmra.mrb[52].mxu0 %vm1807_vm2, %v9498_v5 }
 0x3ba   : > { %3577 = vmatprep.mubr.bf16.mxu1 %v14565_v52  ;;  %3930 = vmatprep.mubr.bf16.mxu0 %v14565_v52 }
 0x3bc   : > { %v10348_v13 = vpop.f32.mrb[204].mxu1  ;;  %v10350_v63 = vpop.f32.mrb[204].mxu0 }
 0x3bd   : > { %14759 = vst [vmem:[#allocation216_spill] sm:$0xff] %v10348_v13  ;;  %14760 = vst [vmem:[#allocation217_spill] sm:$0xff] %v10350_v63  ;;  %v10352_v47 = vpop.f32.mrb[205].mxu1  ;;  %v10354_v53 = vpop.f32.mrb[205].mxu0 }
 0x3be   : > { %14761 = vst [vmem:[#allocation218_spill] sm:$0xff] %v10352_v47  ;;  %14762 = vst [vmem:[#allocation219_spill] sm:$0xff] %v10354_v53  ;;  %v10356_v3 = vpop.f32.mrb[206].mxu1  ;;  %v10358_v42 = vpop.f32.mrb[206].mxu0 }
 0x3bf   : > { %14763 = vst [vmem:[#allocation220_spill] sm:$0xff] %v10356_v3  ;;  %14764 = vst [vmem:[#allocation221_spill] sm:$0xff] %v10358_v42  ;;  %v10360_v22 = vpop.f32.mrb[207].mxu1  ;;  %v10362_v6 = vpop.f32.mrb[207].mxu0 }
 0x3c0   : > { %14765 = vst [vmem:[#allocation222_spill] sm:$0xff] %v10360_v22  ;;  %14766 = vst [vmem:[#allocation223_spill] sm:$0xff] %v10362_v6 }
 0x3c1   : > { %7788 = vmatmul.mubr.msk.bf16.gmra.mrb[56].mxu1 %vm1807_vm2, %v9514_v62  ;;  %7820 = vmatmul.mubr.msk.bf16.gmra.mrb[56].mxu0 %vm1807_vm2, %v9514_v62 }
 0x3c2   : > { %3587 = vmatprep.mubr.bf16.mxu1 %v14565_v52  ;;  %3940 = vmatprep.mubr.bf16.mxu0 %v14565_v52 }
 0x3c4   : > { %v10370_v5 = vpop.f32.mrb[208].mxu1  ;;  %v10372_v53 = vpop.f32.mrb[208].mxu0 }
 0x3c5   : > { %14767 = vst [vmem:[#allocation224_spill] sm:$0xff] %v10370_v5  ;;  %14768 = vst [vmem:[#allocation225_spill] sm:$0xff] %v10372_v53  ;;  %v10374_v3 = vpop.f32.mrb[209].mxu1  ;;  %v10376_v42 = vpop.f32.mrb[209].mxu0 }
 0x3c6   : > { %14769 = vst [vmem:[#allocation226_spill] sm:$0xff] %v10374_v3  ;;  %14770 = vst [vmem:[#allocation227_spill] sm:$0xff] %v10376_v42  ;;  %v10378_v22 = vpop.f32.mrb[210].mxu1  ;;  %v10380_v6 = vpop.f32.mrb[210].mxu0 }
 0x3c7   : > { %14771 = vst [vmem:[#allocation228_spill] sm:$0xff] %v10378_v22  ;;  %14772 = vst [vmem:[#allocation229_spill] sm:$0xff] %v10380_v6  ;;  %v10382_v47 = vpop.f32.mrb[211].mxu1  ;;  %v10384_v63 = vpop.f32.mrb[211].mxu0 }
 0x3c8   : > { %14773 = vst [vmem:[#allocation230_spill] sm:$0xff] %v10382_v47  ;;  %14774 = vst [vmem:[#allocation231_spill] sm:$0xff] %v10384_v63 }
 0x3c9   : > { %7789 = vmatmul.mubr.msk.bf16.gmra.mrb[60].mxu1 %vm1807_vm2, %v9512_v45  ;;  %7821 = vmatmul.mubr.msk.bf16.gmra.mrb[60].mxu0 %vm1807_vm2, %v9512_v45 }
 0x3ca   : > { %3597 = vmatprep.mubr.bf16.mxu1 %v14565_v52  ;;  %3950 = vmatprep.mubr.bf16.mxu0 %v14565_v52 }
 0x3cc   : > { %v10392_v62 = vpop.f32.mrb[212].mxu1  ;;  %v10394_v42 = vpop.f32.mrb[212].mxu0 }
 0x3cd   : > { %14775 = vst [vmem:[#allocation232_spill] sm:$0xff] %v10392_v62  ;;  %14776 = vst [vmem:[#allocation233_spill] sm:$0xff] %v10394_v42  ;;  %v10396_v22 = vpop.f32.mrb[213].mxu1  ;;  %v10398_v6 = vpop.f32.mrb[213].mxu0 }
 0x3ce   : > { %14777 = vst [vmem:[#allocation234_spill] sm:$0xff] %v10396_v22  ;;  %14778 = vst [vmem:[#allocation235_spill] sm:$0xff] %v10398_v6  ;;  %v10400_v47 = vpop.f32.mrb[214].mxu1  ;;  %v10402_v63 = vpop.f32.mrb[214].mxu0 }
 0x3cf   : > { %14779 = vst [vmem:[#allocation236_spill] sm:$0xff] %v10400_v47  ;;  %14780 = vst [vmem:[#allocation237_spill] sm:$0xff] %v10402_v63  ;;  %v10404_v3 = vpop.f32.mrb[215].mxu1  ;;  %v10406_v53 = vpop.f32.mrb[215].mxu0 }
 0x3d0   : > { %14781 = vst [vmem:[#allocation238_spill] sm:$0xff] %v10404_v3  ;;  %14782 = vst [vmem:[#allocation239_spill] sm:$0xff] %v10406_v53 }
 0x3d1   : > { %7790 = vmatmul.mubr.msk.bf16.gmra.mrb[64].mxu1 %vm1807_vm2, %v9528_v26  ;;  %7822 = vmatmul.mubr.msk.bf16.gmra.mrb[64].mxu0 %vm1807_vm2, %v9528_v26 }
 0x3d2   : > { %3607 = vmatprep.mubr.bf16.mxu1 %v14565_v52  ;;  %3960 = vmatprep.mubr.bf16.mxu0 %v14565_v52 }
 0x3d4   : > { %v10414_v45 = vpop.f32.mrb[216].mxu1  ;;  %v10416_v6 = vpop.f32.mrb[216].mxu0 }
 0x3d5   : > { %14783 = vst [vmem:[#allocation240_spill] sm:$0xff] %v10414_v45  ;;  %14784 = vst [vmem:[#allocation241_spill] sm:$0xff] %v10416_v6  ;;  %v10418_v47 = vpop.f32.mrb[217].mxu1  ;;  %v10420_v63 = vpop.f32.mrb[217].mxu0 }
 0x3d6   : > { %14785 = vst [vmem:[#allocation242_spill] sm:$0xff] %v10418_v47  ;;  %14786 = vst [vmem:[#allocation243_spill] sm:$0xff] %v10420_v63  ;;  %v10422_v3 = vpop.f32.mrb[218].mxu1  ;;  %v10424_v53 = vpop.f32.mrb[218].mxu0 }
 0x3d7   : > { %14787 = vst [vmem:[#allocation244_spill] sm:$0xff] %v10422_v3  ;;  %14788 = vst [vmem:[#allocation245_spill] sm:$0xff] %v10424_v53  ;;  %v10426_v22 = vpop.f32.mrb[219].mxu1  ;;  %v10428_v42 = vpop.f32.mrb[219].mxu0 }
 0x3d8   : > { %14789 = vst [vmem:[#allocation246_spill] sm:$0xff] %v10426_v22  ;;  %14790 = vst [vmem:[#allocation247_spill] sm:$0xff] %v10428_v42 }
 0x3d9   : > { %7791 = vmatmul.mubr.msk.bf16.gmra.mrb[68].mxu1 %vm1807_vm2, %v9526_v23  ;;  %7823 = vmatmul.mubr.msk.bf16.gmra.mrb[68].mxu0 %vm1807_vm2, %v9526_v23 }
 0x3da   : > { %3617 = vmatprep.mubr.bf16.mxu1 %v14565_v52  ;;  %3970 = vmatprep.mubr.bf16.mxu0 %v14565_v52 }
 0x3dc   : > { %v10436_v26 = vpop.f32.mrb[220].mxu1  ;;  %v10438_v63 = vpop.f32.mrb[220].mxu0 }
 0x3dd   : > { %14791 = vst [vmem:[#allocation248_spill] sm:$0xff] %v10436_v26  ;;  %14792 = vst [vmem:[#allocation249_spill] sm:$0xff] %v10438_v63  ;;  %v10440_v3 = vpop.f32.mrb[221].mxu1  ;;  %v10442_v53 = vpop.f32.mrb[221].mxu0 }
 0x3de   : > { %14793 = vst [vmem:[#allocation250_spill] sm:$0xff] %v10440_v3  ;;  %14794 = vst [vmem:[#allocation251_spill] sm:$0xff] %v10442_v53  ;;  %v10444_v22 = vpop.f32.mrb[222].mxu1  ;;  %v10446_v42 = vpop.f32.mrb[222].mxu0 }
 0x3df   : > { %14795 = vst [vmem:[#allocation252_spill] sm:$0xff] %v10444_v22  ;;  %14796 = vst [vmem:[#allocation253_spill] sm:$0xff] %v10446_v42  ;;  %v10448_v47 = vpop.f32.mrb[223].mxu1  ;;  %v10450_v6 = vpop.f32.mrb[223].mxu0 }
 0x3e0   : > { %14797 = vst [vmem:[#allocation254_spill] sm:$0xff] %v10448_v47  ;;  %14798 = vst [vmem:[#allocation255_spill] sm:$0xff] %v10450_v6 }
 0x3e1   : > { %7792 = vmatmul.mubr.msk.bf16.gmra.mrb[72].mxu1 %vm1807_vm2, %v9542_v34  ;;  %7824 = vmatmul.mubr.msk.bf16.gmra.mrb[72].mxu0 %vm1807_vm2, %v9542_v34 }
 0x3e2   : > { %3627 = vmatprep.mubr.bf16.mxu1 %v14565_v52  ;;  %3980 = vmatprep.mubr.bf16.mxu0 %v14565_v52 }
 0x3e4   : > { %v10458_v23 = vpop.f32.mrb[224].mxu1  ;;  %v10460_v53 = vpop.f32.mrb[224].mxu0 }
 0x3e5   : > { %14799 = vst [vmem:[#allocation256_spill] sm:$0xff] %v10458_v23  ;;  %14800 = vst [vmem:[#allocation257_spill] sm:$0xff] %v10460_v53  ;;  %v10462_v22 = vpop.f32.mrb[225].mxu1  ;;  %v10464_v42 = vpop.f32.mrb[225].mxu0 }
 0x3e6   : > { %14801 = vst [vmem:[#allocation258_spill] sm:$0xff] %v10462_v22  ;;  %14802 = vst [vmem:[#allocation259_spill] sm:$0xff] %v10464_v42  ;;  %v10466_v47 = vpop.f32.mrb[226].mxu1  ;;  %v10468_v6 = vpop.f32.mrb[226].mxu0 }
 0x3e7   : > { %14803 = vst [vmem:[#allocation260_spill] sm:$0xff] %v10466_v47  ;;  %14804 = vst [vmem:[#allocation261_spill] sm:$0xff] %v10468_v6  ;;  %v10470_v3 = vpop.f32.mrb[227].mxu1  ;;  %v10472_v63 = vpop.f32.mrb[227].mxu0 }
 0x3e8   : > { %14805 = vst [vmem:[#allocation262_spill] sm:$0xff] %v10470_v3  ;;  %14806 = vst [vmem:[#allocation263_spill] sm:$0xff] %v10472_v63 }
 0x3e9   : > { %7793 = vmatmul.mubr.msk.bf16.gmra.mrb[76].mxu1 %vm1807_vm2, %v9540_v54  ;;  %7825 = vmatmul.mubr.msk.bf16.gmra.mrb[76].mxu0 %vm1807_vm2, %v9540_v54 }
 0x3ea   : > { %3637 = vmatprep.mubr.bf16.mxu1 %v14565_v52  ;;  %3990 = vmatprep.mubr.bf16.mxu0 %v14565_v52 }
 0x3ec   : > { %v10480_v34 = vpop.f32.mrb[228].mxu1  ;;  %v10482_v42 = vpop.f32.mrb[228].mxu0 }
 0x3ed   : > { %14807 = vst [vmem:[#allocation264_spill] sm:$0xff] %v10480_v34  ;;  %14808 = vst [vmem:[#allocation265_spill] sm:$0xff] %v10482_v42  ;;  %v10484_v47 = vpop.f32.mrb[229].mxu1  ;;  %v10486_v6 = vpop.f32.mrb[229].mxu0 }
 0x3ee   : > { %14809 = vst [vmem:[#allocation266_spill] sm:$0xff] %v10484_v47  ;;  %14810 = vst [vmem:[#allocation267_spill] sm:$0xff] %v10486_v6  ;;  %v10488_v3 = vpop.f32.mrb[230].mxu1  ;;  %v10490_v63 = vpop.f32.mrb[230].mxu0 }
 0x3ef   : > { %14811 = vst [vmem:[#allocation268_spill] sm:$0xff] %v10488_v3  ;;  %14812 = vst [vmem:[#allocation269_spill] sm:$0xff] %v10490_v63  ;;  %v10492_v22 = vpop.f32.mrb[231].mxu1  ;;  %v10494_v53 = vpop.f32.mrb[231].mxu0 }
 0x3f0   : > { %14813 = vst [vmem:[#allocation270_spill] sm:$0xff] %v10492_v22  ;;  %14814 = vst [vmem:[#allocation271_spill] sm:$0xff] %v10494_v53 }
 0x3f1   : > { %7794 = vmatmul.mubr.msk.bf16.gmra.mrb[80].mxu1 %vm1807_vm2, %v9556_v43  ;;  %7826 = vmatmul.mubr.msk.bf16.gmra.mrb[80].mxu0 %vm1807_vm2, %v9556_v43 }
 0x3f2   : > { %3647 = vmatprep.mubr.bf16.mxu1 %v14565_v52  ;;  %4000 = vmatprep.mubr.bf16.mxu0 %v14565_v52 }
 0x3f4   : > { %v10502_v54 = vpop.f32.mrb[232].mxu1  ;;  %v10504_v6 = vpop.f32.mrb[232].mxu0 }
 0x3f5   : > { %14815 = vst [vmem:[#allocation272_spill] sm:$0xff] %v10502_v54  ;;  %14816 = vst [vmem:[#allocation273_spill] sm:$0xff] %v10504_v6  ;;  %v10506_v3 = vpop.f32.mrb[233].mxu1  ;;  %v10508_v63 = vpop.f32.mrb[233].mxu0  ;;  %v4053_v54 = vld [vmem:[%s14436_s10 + $0xb0] sm:$0xff] }
 0x3f6   : > { %14817 = vst [vmem:[#allocation274_spill] sm:$0xff] %v10506_v3  ;;  %14818 = vst [vmem:[#allocation275_spill] sm:$0xff] %v10508_v63  ;;  %v10510_v22 = vpop.f32.mrb[234].mxu1  ;;  %v10512_v53 = vpop.f32.mrb[234].mxu0 }
 0x3f7   : > { %14819 = vst [vmem:[#allocation276_spill] sm:$0xff] %v10510_v22  ;;  %14820 = vst [vmem:[#allocation277_spill] sm:$0xff] %v10512_v53  ;;  %v10514_v47 = vpop.f32.mrb[235].mxu1  ;;  %v10516_v42 = vpop.f32.mrb[235].mxu0 }
 0x3f8   : > { %14821 = vst [vmem:[#allocation278_spill] sm:$0xff] %v10514_v47  ;;  %14822 = vst [vmem:[#allocation279_spill] sm:$0xff] %v10516_v42 }
 0x3f9   : > { %7795 = vmatmul.mubr.msk.bf16.gmra.mrb[84].mxu1 %vm1807_vm2, %v9554_v56  ;;  %7827 = vmatmul.mubr.msk.bf16.gmra.mrb[84].mxu0 %vm1807_vm2, %v9554_v56 }
 0x3fa   : > { %3657 = vmatprep.mubr.bf16.mxu1 %v14565_v52  ;;  %4010 = vmatprep.mubr.bf16.mxu0 %v14565_v52 }
 0x3fc   : > { %v10524_v43 = vpop.f32.mrb[236].mxu1  ;;  %v10526_v63 = vpop.f32.mrb[236].mxu0 }
 0x3fd   : > { %14823 = vst [vmem:[#allocation280_spill] sm:$0xff] %v10524_v43  ;;  %14824 = vst [vmem:[#allocation281_spill] sm:$0xff] %v10526_v63  ;;  %v10528_v22 = vpop.f32.mrb[237].mxu1  ;;  %v10530_v53 = vpop.f32.mrb[237].mxu0 }
 0x3fe   : > { %14825 = vst [vmem:[#allocation282_spill] sm:$0xff] %v10528_v22  ;;  %14826 = vst [vmem:[#allocation283_spill] sm:$0xff] %v10530_v53  ;;  %v10532_v47 = vpop.f32.mrb[238].mxu1  ;;  %v10534_v42 = vpop.f32.mrb[238].mxu0 }
 0x3ff   : > { %14827 = vst [vmem:[#allocation284_spill] sm:$0xff] %v10532_v47  ;;  %14828 = vst [vmem:[#allocation285_spill] sm:$0xff] %v10534_v42  ;;  %v10536_v3 = vpop.f32.mrb[239].mxu1  ;;  %v10538_v6 = vpop.f32.mrb[239].mxu0 }
 0x400   : > { %14829 = vst [vmem:[#allocation286_spill] sm:$0xff] %v10536_v3  ;;  %14830 = vst [vmem:[#allocation287_spill] sm:$0xff] %v10538_v6 }
 0x401   : > { %7796 = vmatmul.mubr.msk.bf16.gmra.mrb[88].mxu1 %vm1807_vm2, %v9570_v37  ;;  %7828 = vmatmul.mubr.msk.bf16.gmra.mrb[88].mxu0 %vm1807_vm2, %v9570_v37 }
 0x402   : > { %3667 = vmatprep.mubr.bf16.mxu1 %v14565_v52  ;;  %4020 = vmatprep.mubr.bf16.mxu0 %v14565_v52 }
 0x404   : > { %v10546_v56 = vpop.f32.mrb[240].mxu1  ;;  %v10548_v53 = vpop.f32.mrb[240].mxu0 }
 0x405   : > { %14831 = vst [vmem:[#allocation288_spill] sm:$0xff] %v10546_v56  ;;  %14832 = vst [vmem:[#allocation289_spill] sm:$0xff] %v10548_v53  ;;  %v10550_v47 = vpop.f32.mrb[241].mxu1  ;;  %v10552_v42 = vpop.f32.mrb[241].mxu0  ;;  %v4049_v53 = vld [vmem:[%s14436_s10 + $0x90] sm:$0xff] }
 0x406   : > { %14833 = vst [vmem:[#allocation290_spill] sm:$0xff] %v10550_v47  ;;  %14834 = vst [vmem:[#allocation291_spill] sm:$0xff] %v10552_v42  ;;  %v10554_v3 = vpop.f32.mrb[242].mxu1  ;;  %v10556_v6 = vpop.f32.mrb[242].mxu0  ;;  %v7851_v26 = vcombine.high %v4049_v53, %v4053_v54 }
 0x407   : > { %14835 = vst [vmem:[#allocation292_spill] sm:$0xff] %v10554_v3  ;;  %14836 = vst [vmem:[#allocation293_spill] sm:$0xff] %v10556_v6  ;;  %v10558_v22 = vpop.f32.mrb[243].mxu1  ;;  %v10560_v63 = vpop.f32.mrb[243].mxu0  ;;  %v4042_v6 = vld [vmem:[%s14436_s10 + $0x58] sm:$0xff] }
 0x408   : > { %14837 = vst [vmem:[#allocation294_spill] sm:$0xff] %v10558_v22  ;;  %14838 = vst [vmem:[#allocation295_spill] sm:$0xff] %v10560_v63  ;;  %v4041_v22 = vld [vmem:[%s14436_s10 + $0x50] sm:$0xff] }
 0x409   : > { %7797 = vmatmul.mubr.msk.bf16.gmra.mrb[92].mxu1 %vm1807_vm2, %v9568_v50  ;;  %7829 = vmatmul.mubr.msk.bf16.gmra.mrb[92].mxu0 %vm1807_vm2, %v9568_v50  ;;  %v4045_v50 = vld [vmem:[%s14436_s10 + $0x70] sm:$0xff] }
 0x40a   : > { %4400 = vmatprep.mubr.bf16.mxu1 %v14565_v52  ;;  %4753 = vmatprep.mubr.bf16.mxu0 %v14565_v52  ;;  %v7843_v56 = vcombine.high %v4041_v22, %v4045_v50  ;;  %v7842_v34 = vcombine.low %v4041_v22, %v4045_v50  ;;  %v7850_v22 = vcombine.low %v4049_v53, %v4053_v54 }
 0x40c   : > { %v10568_v37 = vpop.f32.mrb[244].mxu1  ;;  %v10570_v42 = vpop.f32.mrb[244].mxu0 }
 0x40d   : > { %14839 = vst [vmem:[#allocation296_spill] sm:$0xff] %v10568_v37  ;;  %14840 = vst [vmem:[#allocation297_spill] sm:$0xff] %v10570_v42  ;;  %v10575_v3 = vpop.f32.mrb[245].mxu1  ;;  %v10577_v63 = vpop.f32.mrb[245].mxu0  ;;  %v4046_v42 = vld [vmem:[%s14436_s10 + $0x78] sm:$0xff] }
 0x40e   : > { %14841 = vst [vmem:[#allocation298_spill] sm:$0xff] %v10575_v3  ;;  %14842 = vst [vmem:[#allocation299_spill] sm:$0xff] %v10577_v63  ;;  %v10588_v37 = vpop.f32.mrb[246].mxu1  ;;  %v10590_v47 = vpop.f32.mrb[246].mxu0  ;;  %v7845_v43 = vcombine.high %v4042_v6, %v4046_v42  ;;  %v7844_v23 = vcombine.low %v4042_v6, %v4046_v42 }
 0x40f   : > { %14843 = vst [vmem:[#allocation300_spill] sm:$0xff] %v10588_v37  ;;  %14844 = vst [vmem:[#allocation301_spill] sm:$0xff] %v10590_v47  ;;  %v10592_v3 = vpop.f32.mrb[247].mxu1  ;;  %v10594_v63 = vpop.f32.mrb[247].mxu0  ;;  %v4050_v37 = vld [vmem:[%s14436_s10 + $0x98] sm:$0xff]  ;;  %v14848_v47 = vcombine.low %v10221_v18, %v10232_v55 }
 0x410   : > { %14845 = vst [vmem:[#allocation302_spill] sm:$0xff] %v10592_v3  ;;  %14846 = vst [vmem:[#allocation303_spill] sm:$0xff] %v10594_v63  ;;  %v4054_v3 = vld [vmem:[%s14436_s10 + $0xb8] sm:$0xff]  ;;  %v14847_v63 = vcombine.low %v10211_v32, %v10216_v0 }
 0x411   : > { %7870 = vmatmul.mubr.msk.bf16.vlgmr.msra.gmra.mrb[96].mxu1 %vm4271_vm3, %v8972_v35  ;;  %7902 = vmatmul.mubr.msk.bf16.vlgmr.msra.gmra.mrb[96].mxu0 %vm4271_vm3, %v8972_v35  ;;  %v7853_v45 = vcombine.high %v4050_v37, %v4054_v3  ;;  %v7852_v6 = vcombine.low %v4050_v37, %v4054_v3 }
 0x412   : > { %5075 = vmatpush1.bf16.msra.mxu1 %v14847_v63  ;;  %5428 = vmatpush1.bf16.msra.mxu0 %v14848_v47 }
 0x413   : > { %4410 = vmatprep.mubr.bf16.mxu1 %v14565_v52  ;;  %4763 = vmatprep.mubr.bf16.mxu0 %v14565_v52 }
 0x414   : > { %v10620_v62 = vpop.f32.mrb[248].mxu1  ;;  %v10622_v5 = vpop.f32.mrb[248].mxu0  ;;  %5076 = vmatprep.subr.bf16.mxu1 %v7843_v56  ;;  %5429 = vmatprep.subr.bf16.mxu0 %v7845_v43 }
 0x415   : > { %14849 = vst [vmem:[#allocation304_spill] sm:$0xff] %v10620_v62  ;;  %14850 = vst [vmem:[#allocation305_spill] sm:$0xff] %v10622_v5  ;;  %v10624_v0 = vpop.f32.mrb[249].mxu1  ;;  %v10626_v32 = vpop.f32.mrb[249].mxu0  ;;  %v15029_v5 = vld [vmem:[#allocation6_spill] sm:$0xff]  ;;  %v15038_v62 = vld [vmem:[#allocation9_spill] sm:$0xff] }
 0x416   : > { %14851 = vst [vmem:[#allocation306_spill] sm:$0xff] %v10624_v0  ;;  %14852 = vst [vmem:[#allocation307_spill] sm:$0xff] %v10626_v32  ;;  %v10628_v55 = vpop.f32.mrb[250].mxu1  ;;  %v10630_v18 = vpop.f32.mrb[250].mxu0  ;;  %5077 = vmatpush1.bf16.msra.mxu1 %v7842_v34  ;;  %5430 = vmatpush1.bf16.msra.mxu0 %v7844_v23  ;;  %v15011_v32 = vld [vmem:[#allocation4_spill] sm:$0xff]  ;;  %v15020_v0 = vld [vmem:[#allocation7_spill] sm:$0xff] }
 0x417   : > { %14853 = vst [vmem:[#allocation308_spill] sm:$0xff] %v10628_v55  ;;  %14854 = vst [vmem:[#allocation309_spill] sm:$0xff] %v10630_v18  ;;  %v10632_v47 = vpop.f32.mrb[251].mxu1  ;;  %v10634_v42 = vpop.f32.mrb[251].mxu0  ;;  %5078 = vmatprep.subr.bf16.mxu1 %v7851_v26  ;;  %5431 = vmatprep.subr.bf16.mxu0 %v7853_v45  ;;  %v14993_v55 = vld [vmem:[#allocation2_spill] sm:$0xff]  ;;  %v15002_v18 = vld [vmem:[#allocation5_spill] sm:$0xff] }
 0x418   : > { %14855 = vst [vmem:[#allocation310_spill] sm:$0xff] %v10632_v47  ;;  %14856 = vst [vmem:[#allocation311_spill] sm:$0xff] %v10634_v42  ;;  %v14975_v42 = vld [vmem:[#allocation23_spill] sm:$0xff] }
 0x419   : > { %7871 = vmatmul.mubr.msk.bf16.gmra.mrb[100].mxu1 %vm4271_vm3, %v8967_v36  ;;  %7903 = vmatmul.mubr.msk.bf16.gmra.mrb[100].mxu0 %vm4271_vm3, %v8967_v36  ;;  %v14984_v47 = vld [vmem:[#allocation3_spill] sm:$0xff] }
 0x41a   : > { %4420 = vmatprep.mubr.bf16.mxu1 %v14565_v52  ;;  %4773 = vmatprep.mubr.bf16.mxu0 %v14565_v52 }
 0x41b   : > { %5079 = vmatpush1.bf16.msra.mxu1 %v7850_v22  ;;  %5432 = vmatpush1.bf16.msra.mxu0 %v7852_v6 }
 0x41c   : > { %v10642_v63 = vpop.f32.mrb[252].mxu1  ;;  %v10644_v23 = vpop.f32.mrb[252].mxu0 }
 0x41d   : > { %14857 = vst [vmem:[#allocation312_spill] sm:$0xff] %v10642_v63  ;;  %14858 = vst [vmem:[#allocation313_spill] sm:$0xff] %v10644_v23  ;;  %v10646_v53 = vpop.f32.mrb[253].mxu1  ;;  %v10648_v3 = vpop.f32.mrb[253].mxu0 }
 0x41e   : > { %14859 = vst [vmem:[#allocation314_spill] sm:$0xff] %v10646_v53  ;;  %14860 = vst [vmem:[#allocation315_spill] sm:$0xff] %v10648_v3  ;;  %v10650_v45 = vpop.f32.mrb[254].mxu1  ;;  %v10652_v26 = vpop.f32.mrb[254].mxu0 }
 0x41f   : > { %14861 = vst [vmem:[#allocation316_spill] sm:$0xff] %v10650_v45  ;;  %14862 = vst [vmem:[#allocation317_spill] sm:$0xff] %v10652_v26  ;;  %v10654_v34 = vpop.f32.mrb[255].mxu1  ;;  %v10656_v54 = vpop.f32.mrb[255].mxu0 }
 0x420   : > { %14863 = vst [vmem:[#allocation318_spill] sm:$0xff] %v10654_v34  ;;  %14864 = vst [vmem:[#allocation319_spill] sm:$0xff] %v10656_v54 }
 0x421   : > { %7872 = vmatmul.mubr.msk.bf16.gmra.mrb[104].mxu1 %vm4271_vm3, %v9021_v57  ;;  %7904 = vmatmul.mubr.msk.bf16.gmra.mrb[104].mxu0 %vm4271_vm3, %v9021_v57 }
 0x422   : > { %4430 = vmatprep.mubr.bf16.mxu1 %v14565_v52  ;;  %4783 = vmatprep.mubr.bf16.mxu0 %v14565_v52 }
 0x424   : > { %v10664_v43 = vpop.f32.mrb[0].mxu1  ;;  %v10666_v56 = vpop.f32.mrb[0].mxu0 }
 0x425   : > { %14865 = vst [vmem:[#allocation320_spill] sm:$0xff] %v10664_v43  ;;  %14866 = vst [vmem:[#allocation321_spill] sm:$0xff] %v10666_v56  ;;  %v10668_v37 = vpop.f32.mrb[1].mxu1  ;;  %v10670_v50 = vpop.f32.mrb[1].mxu0 }
 0x426   : > { %14867 = vst [vmem:[#allocation322_spill] sm:$0xff] %v10668_v37  ;;  %14868 = vst [vmem:[#allocation323_spill] sm:$0xff] %v10670_v50  ;;  %v10672_v22 = vpop.f32.mrb[2].mxu1  ;;  %v10674_v6 = vpop.f32.mrb[2].mxu0  ;;  %v4057_v37 = vld [vmem:[%s14436_s10 + $0xd0] sm:$0xff]  ;;  %v4062_v50 = vld [vmem:[%s14436_s10 + $0xf8] sm:$0xff] }
 0x427   : > { %14869 = vst [vmem:[#allocation324_spill] sm:$0xff] %v10672_v22  ;;  %14870 = vst [vmem:[#allocation325_spill] sm:$0xff] %v10674_v6  ;;  %v10676_v54 = vpop.f32.mrb[3].mxu1  ;;  %v10678_v34 = vpop.f32.mrb[3].mxu0  ;;  %v4061_v22 = vld [vmem:[%s14436_s10 + $0xf0] sm:$0xff] }
 0x428   : > { %14871 = vst [vmem:[#allocation326_spill] sm:$0xff] %v10676_v54  ;;  %14872 = vst [vmem:[#allocation327_spill] sm:$0xff] %v10678_v34  ;;  %v4058_v54 = vld [vmem:[%s14436_s10 + $0xd8] sm:$0xff]  ;;  %v7858_v34 = vcombine.low %v4057_v37, %v4061_v22  ;;  %v7859_v6 = vcombine.high %v4057_v37, %v4061_v22 }
 0x429   : > { %7873 = vmatmul.mubr.msk.bf16.gmra.mrb[108].mxu1 %vm4271_vm3, %v9005_v33  ;;  %7905 = vmatmul.mubr.msk.bf16.gmra.mrb[108].mxu0 %vm4271_vm3, %v9005_v33  ;;  %v7860_v56 = vcombine.low %v4058_v54, %v4062_v50  ;;  %v7861_v43 = vcombine.high %v4058_v54, %v4062_v50 }
 0x42a   : > { %4440 = vmatprep.mubr.bf16.mxu1 %v14565_v52  ;;  %4793 = vmatprep.mubr.bf16.mxu0 %v14565_v52 }
 0x42b   : > { %5080 = vmatprep.subr.bf16.mxu1 %v7859_v6  ;;  %5433 = vmatprep.subr.bf16.mxu0 %v7861_v43 }
 0x42c   : > { %v10698_v45 = vpop.f32.mrb[4].mxu1  ;;  %v10700_v26 = vpop.f32.mrb[4].mxu0  ;;  %5081 = vmatpush1.bf16.msra.mxu1 %v7858_v34  ;;  %5434 = vmatpush1.bf16.msra.mxu0 %v7860_v56 }
 0x42d   : > { %14873 = vst [vmem:[#allocation328_spill] sm:$0xff] %v10698_v45  ;;  %14874 = vst [vmem:[#allocation329_spill] sm:$0xff] %v10700_v26  ;;  %v10702_v3 = vpop.f32.mrb[5].mxu1  ;;  %v10704_v53 = vpop.f32.mrb[5].mxu0 }
 0x42e   : > { %14875 = vst [vmem:[#allocation330_spill] sm:$0xff] %v10702_v3  ;;  %14876 = vst [vmem:[#allocation331_spill] sm:$0xff] %v10704_v53  ;;  %v10706_v23 = vpop.f32.mrb[6].mxu1  ;;  %v10708_v37 = vpop.f32.mrb[6].mxu0  ;;  %v14930_v3 = vld [vmem:[#allocation20_spill] sm:$0xff] }
 0x42f   : > { %14877 = vst [vmem:[#allocation332_spill] sm:$0xff] %v10706_v23  ;;  %14878 = vst [vmem:[#allocation333_spill] sm:$0xff] %v10708_v37  ;;  %v10710_v22 = vpop.f32.mrb[7].mxu1  ;;  %v10712_v63 = vpop.f32.mrb[7].mxu0  ;;  %v14921_v23 = vld [vmem:[#allocation17_spill] sm:$0xff] }
 0x430   : > { %14879 = vst [vmem:[#allocation334_spill] sm:$0xff] %v10710_v22  ;;  %14880 = vst [vmem:[#allocation335_spill] sm:$0xff] %v10712_v63 }
 0x431   : > { %7874 = vmatmul.mubr.msk.bf16.gmra.mrb[112].mxu1 %vm4271_vm3, %v9051_v48  ;;  %7906 = vmatmul.mubr.msk.bf16.gmra.mrb[112].mxu0 %vm4271_vm3, %v9051_v48 }
 0x432   : > { %4450 = vmatprep.mubr.bf16.mxu1 %v14565_v52  ;;  %4803 = vmatprep.mubr.bf16.mxu0 %v14565_v52 }
 0x434   : > { %v10720_v34 = vpop.f32.mrb[8].mxu1  ;;  %v10722_v54 = vpop.f32.mrb[8].mxu0 }
 0x435   : > { %14881 = vst [vmem:[#allocation336_spill] sm:$0xff] %v10720_v34  ;;  %14882 = vst [vmem:[#allocation337_spill] sm:$0xff] %v10722_v54  ;;  %v10724_v43 = vpop.f32.mrb[9].mxu1  ;;  %v10726_v56 = vpop.f32.mrb[9].mxu0 }
 0x436   : > { %14883 = vst [vmem:[#allocation338_spill] sm:$0xff] %v10724_v43  ;;  %14884 = vst [vmem:[#allocation339_spill] sm:$0xff] %v10726_v56  ;;  %v10728_v50 = vpop.f32.mrb[10].mxu1  ;;  %v10730_v6 = vpop.f32.mrb[10].mxu0 }
 0x437   : > { %14885 = vst [vmem:[#allocation340_spill] sm:$0xff] %v10728_v50  ;;  %14886 = vst [vmem:[#allocation341_spill] sm:$0xff] %v10730_v6  ;;  %v10732_v63 = vpop.f32.mrb[11].mxu1  ;;  %v10734_v22 = vpop.f32.mrb[11].mxu0 }
 0x438   : > { %14887 = vst [vmem:[#allocation342_spill] sm:$0xff] %v10732_v63  ;;  %14888 = vst [vmem:[#allocation343_spill] sm:$0xff] %v10734_v22 }
 0x439   : > { %7875 = vmatmul.mubr.msk.bf16.gmra.mrb[116].mxu1 %vm4271_vm3, %v9045_v21  ;;  %7907 = vmatmul.mubr.msk.bf16.gmra.mrb[116].mxu0 %vm4271_vm3, %v9045_v21 }
 0x43a   : > { %4460 = vmatprep.mubr.bf16.mxu1 %v14565_v52  ;;  %4813 = vmatprep.mubr.bf16.mxu0 %v14565_v52 }
 0x43c   : > { %v10742_v43 = vpop.f32.mrb[12].mxu1  ;;  %v10744_v56 = vpop.f32.mrb[12].mxu0 }
 0x43d   : > { %14889 = vst [vmem:[#allocation344_spill] sm:$0xff] %v10742_v43  ;;  %14890 = vst [vmem:[#allocation345_spill] sm:$0xff] %v10744_v56  ;;  %v10746_v50 = vpop.f32.mrb[13].mxu1  ;;  %v10748_v6 = vpop.f32.mrb[13].mxu0 }
 0x43e   : > { %14891 = vst [vmem:[#allocation346_spill] sm:$0xff] %v10746_v50  ;;  %14892 = vst [vmem:[#allocation347_spill] sm:$0xff] %v10748_v6  ;;  %v10750_v63 = vpop.f32.mrb[14].mxu1  ;;  %v10752_v22 = vpop.f32.mrb[14].mxu0 }
 0x43f   : > { %14893 = vst [vmem:[#allocation348_spill] sm:$0xff] %v10750_v63  ;;  %14894 = vst [vmem:[#allocation349_spill] sm:$0xff] %v10752_v22  ;;  %v10754_v54 = vpop.f32.mrb[15].mxu1  ;;  %v10756_v34 = vpop.f32.mrb[15].mxu0 }
 0x440   : > { %14895 = vst [vmem:[#allocation350_spill] sm:$0xff] %v10754_v54  ;;  %14896 = vst [vmem:[#allocation351_spill] sm:$0xff] %v10756_v34 }
 0x441   : > { %7876 = vmatmul.mubr.msk.bf16.gmra.mrb[120].mxu1 %vm4271_vm3, %v9082_v29  ;;  %7908 = vmatmul.mubr.msk.bf16.gmra.mrb[120].mxu0 %vm4271_vm3, %v9082_v29 }
 0x442   : > { %4470 = vmatprep.mubr.bf16.mxu1 %v14565_v52  ;;  %4823 = vmatprep.mubr.bf16.mxu0 %v14565_v52 }
 0x444   : > { %v10764_v50 = vpop.f32.mrb[16].mxu1  ;;  %v10766_v6 = vpop.f32.mrb[16].mxu0 }
 0x445   : > { %14897 = vst [vmem:[#allocation352_spill] sm:$0xff] %v10764_v50  ;;  %14898 = vst [vmem:[#allocation353_spill] sm:$0xff] %v10766_v6  ;;  %v10768_v63 = vpop.f32.mrb[17].mxu1  ;;  %v10770_v22 = vpop.f32.mrb[17].mxu0 }
 0x446   : > { %14899 = vst [vmem:[#allocation354_spill] sm:$0xff] %v10768_v63  ;;  %14900 = vst [vmem:[#allocation355_spill] sm:$0xff] %v10770_v22  ;;  %v10772_v54 = vpop.f32.mrb[18].mxu1  ;;  %v10774_v34 = vpop.f32.mrb[18].mxu0 }
 0x447   : > { %14901 = vst [vmem:[#allocation356_spill] sm:$0xff] %v10772_v54  ;;  %14902 = vst [vmem:[#allocation357_spill] sm:$0xff] %v10774_v34  ;;  %v10776_v56 = vpop.f32.mrb[19].mxu1  ;;  %v10778_v43 = vpop.f32.mrb[19].mxu0 }
 0x448   : > { %14903 = vst [vmem:[#allocation358_spill] sm:$0xff] %v10776_v56  ;;  %14904 = vst [vmem:[#allocation359_spill] sm:$0xff] %v10778_v43 }
 0x449   : > { %7877 = vmatmul.mubr.msk.bf16.gmra.mrb[124].mxu1 %vm4271_vm3, %v9074_v58  ;;  %7909 = vmatmul.mubr.msk.bf16.gmra.mrb[124].mxu0 %vm4271_vm3, %v9074_v58 }
 0x44a   : > { %4480 = vmatprep.mubr.bf16.mxu1 %v14565_v52  ;;  %4833 = vmatprep.mubr.bf16.mxu0 %v14565_v52 }
 0x44c   : > { %v10786_v63 = vpop.f32.mrb[20].mxu1  ;;  %v10788_v22 = vpop.f32.mrb[20].mxu0 }
 0x44d   : > { %14905 = vst [vmem:[#allocation360_spill] sm:$0xff] %v10786_v63  ;;  %14906 = vst [vmem:[#allocation361_spill] sm:$0xff] %v10788_v22  ;;  %v10790_v54 = vpop.f32.mrb[21].mxu1  ;;  %v10792_v34 = vpop.f32.mrb[21].mxu0 }
 0x44e   : > { %14907 = vst [vmem:[#allocation362_spill] sm:$0xff] %v10790_v54  ;;  %14908 = vst [vmem:[#allocation363_spill] sm:$0xff] %v10792_v34  ;;  %v10794_v56 = vpop.f32.mrb[22].mxu1  ;;  %v10796_v43 = vpop.f32.mrb[22].mxu0 }
 0x44f   : > { %14909 = vst [vmem:[#allocation364_spill] sm:$0xff] %v10794_v56  ;;  %14910 = vst [vmem:[#allocation365_spill] sm:$0xff] %v10796_v43  ;;  %v10798_v6 = vpop.f32.mrb[23].mxu1  ;;  %v10800_v50 = vpop.f32.mrb[23].mxu0 }
 0x450   : > { %14911 = vst [vmem:[#allocation366_spill] sm:$0xff] %v10798_v6  ;;  %14912 = vst [vmem:[#allocation367_spill] sm:$0xff] %v10800_v50 }
 0x451   : > { %7878 = vmatmul.mubr.msk.bf16.gmra.mrb[128].mxu1 %vm4271_vm3, %v9114_v46  ;;  %7910 = vmatmul.mubr.msk.bf16.gmra.mrb[128].mxu0 %vm4271_vm3, %v9114_v46 }
 0x452   : > { %4490 = vmatprep.mubr.bf16.mxu1 %v14565_v52  ;;  %4843 = vmatprep.mubr.bf16.mxu0 %v14565_v52 }
 0x454   : > { %v10808_v54 = vpop.f32.mrb[24].mxu1  ;;  %v10810_v34 = vpop.f32.mrb[24].mxu0 }
 0x455   : > { %14913 = vst [vmem:[#allocation368_spill] sm:$0xff] %v10808_v54  ;;  %14914 = vst [vmem:[#allocation369_spill] sm:$0xff] %v10810_v34  ;;  %v10812_v56 = vpop.f32.mrb[25].mxu1  ;;  %v10814_v43 = vpop.f32.mrb[25].mxu0  ;;  %v4065_v34 = vld [vmem:[%s14436_s10 + $0x110] sm:$0xff] }
 0x456   : > { %14915 = vst [vmem:[#allocation370_spill] sm:$0xff] %v10812_v56  ;;  %14916 = vst [vmem:[#allocation371_spill] sm:$0xff] %v10814_v43  ;;  %v10816_v6 = vpop.f32.mrb[26].mxu1  ;;  %v10818_v50 = vpop.f32.mrb[26].mxu0  ;;  %v4069_v54 = vld [vmem:[%s14436_s10 + $0x130] sm:$0xff] }
 0x457   : > { %14917 = vst [vmem:[#allocation372_spill] sm:$0xff] %v10816_v6  ;;  %14918 = vst [vmem:[#allocation373_spill] sm:$0xff] %v10818_v50  ;;  %v10820_v22 = vpop.f32.mrb[27].mxu1  ;;  %v10822_v63 = vpop.f32.mrb[27].mxu0 }
 0x458   : > { %14919 = vst [vmem:[#allocation374_spill] sm:$0xff] %v10820_v22  ;;  %14920 = vst [vmem:[#allocation375_spill] sm:$0xff] %v10822_v63 }
 0x459   : > { %7879 = vmatmul.mubr.msk.bf16.gmra.mrb[132].mxu1 %vm4271_vm3, %v14921_v23  ;;  %7911 = vmatmul.mubr.msk.bf16.gmra.mrb[132].mxu0 %vm4271_vm3, %v14921_v23 }
 0x45a   : > { %4500 = vmatprep.mubr.bf16.mxu1 %v14565_v52  ;;  %4853 = vmatprep.mubr.bf16.mxu0 %v14565_v52 }
 0x45c   : > { %v10830_v56 = vpop.f32.mrb[28].mxu1  ;;  %v10832_v43 = vpop.f32.mrb[28].mxu0 }
 0x45d   : > { %14922 = vst [vmem:[#allocation17_spill] sm:$0xff] %v10830_v56  ;;  %14923 = vst [vmem:[#allocation376_spill] sm:$0xff] %v10832_v43  ;;  %v10834_v6 = vpop.f32.mrb[29].mxu1  ;;  %v10836_v50 = vpop.f32.mrb[29].mxu0  ;;  %v4066_v43 = vld [vmem:[%s14436_s10 + $0x118] sm:$0xff] }
 0x45e   : > { %14924 = vst [vmem:[#allocation377_spill] sm:$0xff] %v10834_v6  ;;  %14925 = vst [vmem:[#allocation378_spill] sm:$0xff] %v10836_v50  ;;  %v10838_v22 = vpop.f32.mrb[30].mxu1  ;;  %v10840_v63 = vpop.f32.mrb[30].mxu0  ;;  %v7867_v50 = vcombine.high %v4065_v34, %v4069_v54 }
 0x45f   : > { %14926 = vst [vmem:[#allocation379_spill] sm:$0xff] %v10838_v22  ;;  %14927 = vst [vmem:[#allocation380_spill] sm:$0xff] %v10840_v63  ;;  %v10851_v56 = vpop.f32.mrb[31].mxu1  ;;  %v10853_v6 = vpop.f32.mrb[31].mxu0  ;;  %v4070_v22 = vld [vmem:[%s14436_s10 + $0x138] sm:$0xff]  ;;  %v7866_v63 = vcombine.low %v4065_v34, %v4069_v54 }
 0x460   : > { %14928 = vst [vmem:[#allocation381_spill] sm:$0xff] %v10851_v56  ;;  %14929 = vst [vmem:[#allocation382_spill] sm:$0xff] %v10853_v6  ;;  %v7868_v37 = vcombine.low %v4066_v43, %v4070_v22  ;;  %v7869_v53 = vcombine.high %v4066_v43, %v4070_v22  ;;  %5082 = vmatprep.subr.bf16.mxu1 %v7867_v50  ;;  %v14939_v50 = vld [vmem:[#allocation19_spill] sm:$0xff] }
 0x461   : > { %7880 = vmatmul.mubr.msk.bf16.gmra.mrb[136].mxu1 %vm4271_vm3, %v14930_v3  ;;  %7912 = vmatmul.mubr.msk.bf16.gmra.mrb[136].mxu0 %vm4271_vm3, %v14930_v3 }
 0x462   : > { %4510 = vmatprep.mubr.bf16.mxu1 %v14565_v52  ;;  %4863 = vmatprep.mubr.bf16.mxu0 %v14565_v52 }
 0x463   : > { %5435 = vmatprep.subr.bf16.mxu0 %v7869_v53  ;;  %5083 = vmatpush1.bf16.msra.mxu1 %v7866_v63 }
 0x464   : > { %v10864_v6 = vpop.f32.mrb[32].mxu1  ;;  %v10866_v56 = vpop.f32.mrb[32].mxu0  ;;  %5436 = vmatpush1.bf16.msra.mxu0 %v7868_v37 }
 0x465   : > { %14931 = vst [vmem:[#allocation20_spill] sm:$0xff] %v10864_v6  ;;  %14932 = vst [vmem:[#allocation383_spill] sm:$0xff] %v10866_v56  ;;  %v10868_v34 = vpop.f32.mrb[33].mxu1  ;;  %v10870_v22 = vpop.f32.mrb[33].mxu0  ;;  %v14957_v6 = vld [vmem:[#allocation21_spill] sm:$0xff]  ;;  %v14966_v56 = vld [vmem:[#allocation24_spill] sm:$0xff] }
 0x466   : > { %14933 = vst [vmem:[#allocation384_spill] sm:$0xff] %v10868_v34  ;;  %14934 = vst [vmem:[#allocation385_spill] sm:$0xff] %v10870_v22  ;;  %v10872_v54 = vpop.f32.mrb[34].mxu1  ;;  %v10874_v43 = vpop.f32.mrb[34].mxu0  ;;  %v14948_v34 = vld [vmem:[#allocation22_spill] sm:$0xff] }
 0x467   : > { %14935 = vst [vmem:[#allocation386_spill] sm:$0xff] %v10872_v54  ;;  %14936 = vst [vmem:[#allocation387_spill] sm:$0xff] %v10874_v43  ;;  %v10876_v26 = vpop.f32.mrb[35].mxu1  ;;  %v10878_v45 = vpop.f32.mrb[35].mxu0 }
 0x468   : > { %14937 = vst [vmem:[#allocation388_spill] sm:$0xff] %v10876_v26  ;;  %14938 = vst [vmem:[#allocation389_spill] sm:$0xff] %v10878_v45 }
 0x469   : > { %7881 = vmatmul.mubr.msk.bf16.gmra.mrb[140].mxu1 %vm4271_vm3, %v14939_v50  ;;  %7913 = vmatmul.mubr.msk.bf16.gmra.mrb[140].mxu0 %vm4271_vm3, %v14939_v50 }
 0x46a   : > { %4520 = vmatprep.mubr.bf16.mxu1 %v14565_v52  ;;  %4873 = vmatprep.mubr.bf16.mxu0 %v14565_v52 }
 0x46c   : > { %v10886_v63 = vpop.f32.mrb[36].mxu1  ;;  %v10888_v53 = vpop.f32.mrb[36].mxu0 }
 0x46d   : > { %14940 = vst [vmem:[#allocation19_spill] sm:$0xff] %v10886_v63  ;;  %14941 = vst [vmem:[#allocation390_spill] sm:$0xff] %v10888_v53  ;;  %v10890_v37 = vpop.f32.mrb[37].mxu1  ;;  %v10892_v43 = vpop.f32.mrb[37].mxu0 }
 0x46e   : > { %14942 = vst [vmem:[#allocation391_spill] sm:$0xff] %v10890_v37  ;;  %14943 = vst [vmem:[#allocation392_spill] sm:$0xff] %v10892_v43  ;;  %v10894_v26 = vpop.f32.mrb[38].mxu1  ;;  %v10896_v45 = vpop.f32.mrb[38].mxu0 }
 0x46f   : > { %14944 = vst [vmem:[#allocation393_spill] sm:$0xff] %v10894_v26  ;;  %14945 = vst [vmem:[#allocation394_spill] sm:$0xff] %v10896_v45  ;;  %v10898_v54 = vpop.f32.mrb[39].mxu1  ;;  %v10900_v22 = vpop.f32.mrb[39].mxu0 }
 0x470   : > { %14946 = vst [vmem:[#allocation395_spill] sm:$0xff] %v10898_v54  ;;  %14947 = vst [vmem:[#allocation396_spill] sm:$0xff] %v10900_v22 }
 0x471   : > { %7882 = vmatmul.mubr.msk.bf16.gmra.mrb[144].mxu1 %vm4271_vm3, %v14948_v34  ;;  %7914 = vmatmul.mubr.msk.bf16.gmra.mrb[144].mxu0 %vm4271_vm3, %v14948_v34 }
 0x472   : > { %4530 = vmatprep.mubr.bf16.mxu1 %v14565_v52  ;;  %4883 = vmatprep.mubr.bf16.mxu0 %v14565_v52 }
 0x474   : > { %v10908_v37 = vpop.f32.mrb[40].mxu1  ;;  %v10910_v43 = vpop.f32.mrb[40].mxu0 }
 0x475   : > { %14949 = vst [vmem:[#allocation22_spill] sm:$0xff] %v10908_v37  ;;  %14950 = vst [vmem:[#allocation397_spill] sm:$0xff] %v10910_v43  ;;  %v10912_v26 = vpop.f32.mrb[41].mxu1  ;;  %v10914_v45 = vpop.f32.mrb[41].mxu0 }
 0x476   : > { %14951 = vst [vmem:[#allocation398_spill] sm:$0xff] %v10912_v26  ;;  %14952 = vst [vmem:[#allocation399_spill] sm:$0xff] %v10914_v45  ;;  %v10916_v54 = vpop.f32.mrb[42].mxu1  ;;  %v10918_v22 = vpop.f32.mrb[42].mxu0 }
 0x477   : > { %14953 = vst [vmem:[#allocation400_spill] sm:$0xff] %v10916_v54  ;;  %14954 = vst [vmem:[#allocation401_spill] sm:$0xff] %v10918_v22  ;;  %v10920_v63 = vpop.f32.mrb[43].mxu1  ;;  %v10922_v53 = vpop.f32.mrb[43].mxu0 }
 0x478   : > { %14955 = vst [vmem:[#allocation402_spill] sm:$0xff] %v10920_v63  ;;  %14956 = vst [vmem:[#allocation403_spill] sm:$0xff] %v10922_v53 }
 0x479   : > { %7883 = vmatmul.mubr.msk.bf16.gmra.mrb[148].mxu1 %vm4271_vm3, %v14957_v6  ;;  %7915 = vmatmul.mubr.msk.bf16.gmra.mrb[148].mxu0 %vm4271_vm3, %v14957_v6 }
 0x47a   : > { %4540 = vmatprep.mubr.bf16.mxu1 %v14565_v52  ;;  %4893 = vmatprep.mubr.bf16.mxu0 %v14565_v52 }
 0x47c   : > { %v10930_v26 = vpop.f32.mrb[44].mxu1  ;;  %v10932_v45 = vpop.f32.mrb[44].mxu0 }
 0x47d   : > { %14958 = vst [vmem:[#allocation21_spill] sm:$0xff] %v10930_v26  ;;  %14959 = vst [vmem:[#allocation404_spill] sm:$0xff] %v10932_v45  ;;  %v10934_v54 = vpop.f32.mrb[45].mxu1  ;;  %v10936_v22 = vpop.f32.mrb[45].mxu0 }
 0x47e   : > { %14960 = vst [vmem:[#allocation405_spill] sm:$0xff] %v10934_v54  ;;  %14961 = vst [vmem:[#allocation406_spill] sm:$0xff] %v10936_v22  ;;  %v10938_v63 = vpop.f32.mrb[46].mxu1  ;;  %v10940_v53 = vpop.f32.mrb[46].mxu0 }
 0x47f   : > { %14962 = vst [vmem:[#allocation407_spill] sm:$0xff] %v10938_v63  ;;  %14963 = vst [vmem:[#allocation408_spill] sm:$0xff] %v10940_v53  ;;  %v10942_v43 = vpop.f32.mrb[47].mxu1  ;;  %v10944_v37 = vpop.f32.mrb[47].mxu0 }
 0x480   : > { %14964 = vst [vmem:[#allocation409_spill] sm:$0xff] %v10942_v43  ;;  %14965 = vst [vmem:[#allocation410_spill] sm:$0xff] %v10944_v37 }
 0x481   : > { %7884 = vmatmul.mubr.msk.bf16.gmra.mrb[152].mxu1 %vm4271_vm3, %v14966_v56  ;;  %7916 = vmatmul.mubr.msk.bf16.gmra.mrb[152].mxu0 %vm4271_vm3, %v14966_v56 }
 0x482   : > { %4550 = vmatprep.mubr.bf16.mxu1 %v14565_v52  ;;  %4903 = vmatprep.mubr.bf16.mxu0 %v14565_v52 }
 0x484   : > { %v10952_v54 = vpop.f32.mrb[48].mxu1  ;;  %v10954_v22 = vpop.f32.mrb[48].mxu0 }
 0x485   : > { %14967 = vst [vmem:[#allocation411_spill] sm:$0xff] %v10952_v54  ;;  %14968 = vst [vmem:[#allocation412_spill] sm:$0xff] %v10954_v22  ;;  %v10956_v63 = vpop.f32.mrb[49].mxu1  ;;  %v10958_v53 = vpop.f32.mrb[49].mxu0 }
 0x486   : > { %14969 = vst [vmem:[#allocation413_spill] sm:$0xff] %v10956_v63  ;;  %14970 = vst [vmem:[#allocation414_spill] sm:$0xff] %v10958_v53  ;;  %v10960_v43 = vpop.f32.mrb[50].mxu1  ;;  %v10962_v37 = vpop.f32.mrb[50].mxu0 }
 0x487   : > { %14971 = vst [vmem:[#allocation415_spill] sm:$0xff] %v10960_v43  ;;  %14972 = vst [vmem:[#allocation416_spill] sm:$0xff] %v10962_v37  ;;  %v10964_v45 = vpop.f32.mrb[51].mxu1  ;;  %v10966_v26 = vpop.f32.mrb[51].mxu0 }
 0x488   : > { %14973 = vst [vmem:[#allocation417_spill] sm:$0xff] %v10964_v45  ;;  %14974 = vst [vmem:[#allocation418_spill] sm:$0xff] %v10966_v26 }
 0x489   : > { %7885 = vmatmul.mubr.msk.bf16.gmra.mrb[156].mxu1 %vm4271_vm3, %v14975_v42  ;;  %7917 = vmatmul.mubr.msk.bf16.gmra.mrb[156].mxu0 %vm4271_vm3, %v14975_v42 }
 0x48a   : > { %4560 = vmatprep.mubr.bf16.mxu1 %v14565_v52  ;;  %4913 = vmatprep.mubr.bf16.mxu0 %v14565_v52 }
 0x48c   : > { %v10974_v63 = vpop.f32.mrb[52].mxu1  ;;  %v10976_v53 = vpop.f32.mrb[52].mxu0 }
 0x48d   : > { %14976 = vst [vmem:[#allocation419_spill] sm:$0xff] %v10974_v63  ;;  %14977 = vst [vmem:[#allocation420_spill] sm:$0xff] %v10976_v53  ;;  %v10978_v43 = vpop.f32.mrb[53].mxu1  ;;  %v10980_v37 = vpop.f32.mrb[53].mxu0 }
 0x48e   : > { %14978 = vst [vmem:[#allocation421_spill] sm:$0xff] %v10978_v43  ;;  %14979 = vst [vmem:[#allocation422_spill] sm:$0xff] %v10980_v37  ;;  %v10982_v45 = vpop.f32.mrb[54].mxu1  ;;  %v10984_v26 = vpop.f32.mrb[54].mxu0 }
 0x48f   : > { %14980 = vst [vmem:[#allocation423_spill] sm:$0xff] %v10982_v45  ;;  %14981 = vst [vmem:[#allocation424_spill] sm:$0xff] %v10984_v26  ;;  %v10986_v22 = vpop.f32.mrb[55].mxu1  ;;  %v10988_v54 = vpop.f32.mrb[55].mxu0 }
 0x490   : > { %14982 = vst [vmem:[#allocation425_spill] sm:$0xff] %v10986_v22  ;;  %14983 = vst [vmem:[#allocation426_spill] sm:$0xff] %v10988_v54 }
 0x491   : > { %7886 = vmatmul.mubr.msk.bf16.gmra.mrb[160].mxu1 %vm4271_vm3, %v14984_v47  ;;  %7918 = vmatmul.mubr.msk.bf16.gmra.mrb[160].mxu0 %vm4271_vm3, %v14984_v47 }
 0x492   : > { %4570 = vmatprep.mubr.bf16.mxu1 %v14565_v52  ;;  %4923 = vmatprep.mubr.bf16.mxu0 %v14565_v52 }
 0x494   : > { %v10996_v43 = vpop.f32.mrb[56].mxu1  ;;  %v10998_v37 = vpop.f32.mrb[56].mxu0 }
 0x495   : > { %14985 = vst [vmem:[#allocation427_spill] sm:$0xff] %v10996_v43  ;;  %14986 = vst [vmem:[#allocation428_spill] sm:$0xff] %v10998_v37  ;;  %v11000_v45 = vpop.f32.mrb[57].mxu1  ;;  %v11002_v26 = vpop.f32.mrb[57].mxu0 }
 0x496   : > { %14987 = vst [vmem:[#allocation429_spill] sm:$0xff] %v11000_v45  ;;  %14988 = vst [vmem:[#allocation430_spill] sm:$0xff] %v11002_v26  ;;  %v11004_v22 = vpop.f32.mrb[58].mxu1  ;;  %v11006_v54 = vpop.f32.mrb[58].mxu0 }
 0x497   : > { %14989 = vst [vmem:[#allocation431_spill] sm:$0xff] %v11004_v22  ;;  %14990 = vst [vmem:[#allocation432_spill] sm:$0xff] %v11006_v54  ;;  %v11008_v53 = vpop.f32.mrb[59].mxu1  ;;  %v11010_v63 = vpop.f32.mrb[59].mxu0 }
 0x498   : > { %14991 = vst [vmem:[#allocation433_spill] sm:$0xff] %v11008_v53  ;;  %14992 = vst [vmem:[#allocation434_spill] sm:$0xff] %v11010_v63 }
 0x499   : > { %7887 = vmatmul.mubr.msk.bf16.gmra.mrb[164].mxu1 %vm4271_vm3, %v14993_v55  ;;  %7919 = vmatmul.mubr.msk.bf16.gmra.mrb[164].mxu0 %vm4271_vm3, %v14993_v55  ;;  %v15082_v55 = vld [vmem:[#allocation29_spill] sm:$0xff] }
 0x49a   : > { %4580 = vmatprep.mubr.bf16.mxu1 %v14565_v52  ;;  %4933 = vmatprep.mubr.bf16.mxu0 %v14565_v52 }
 0x49c   : > { %v11018_v45 = vpop.f32.mrb[60].mxu1  ;;  %v11020_v26 = vpop.f32.mrb[60].mxu0 }
 0x49d   : > { %14994 = vst [vmem:[#allocation435_spill] sm:$0xff] %v11018_v45  ;;  %14995 = vst [vmem:[#allocation436_spill] sm:$0xff] %v11020_v26  ;;  %v11022_v22 = vpop.f32.mrb[61].mxu1  ;;  %v11024_v54 = vpop.f32.mrb[61].mxu0 }
 0x49e   : > { %14996 = vst [vmem:[#allocation437_spill] sm:$0xff] %v11022_v22  ;;  %14997 = vst [vmem:[#allocation438_spill] sm:$0xff] %v11024_v54  ;;  %v11026_v53 = vpop.f32.mrb[62].mxu1  ;;  %v11028_v63 = vpop.f32.mrb[62].mxu0 }
 0x49f   : > { %14998 = vst [vmem:[#allocation439_spill] sm:$0xff] %v11026_v53  ;;  %14999 = vst [vmem:[#allocation440_spill] sm:$0xff] %v11028_v63  ;;  %v11030_v37 = vpop.f32.mrb[63].mxu1  ;;  %v11032_v43 = vpop.f32.mrb[63].mxu0 }
 0x4a0   : > { %15000 = vst [vmem:[#allocation441_spill] sm:$0xff] %v11030_v37  ;;  %15001 = vst [vmem:[#allocation442_spill] sm:$0xff] %v11032_v43 }
 0x4a1   : > { %7888 = vmatmul.mubr.msk.bf16.gmra.mrb[168].mxu1 %vm4271_vm3, %v15002_v18  ;;  %7920 = vmatmul.mubr.msk.bf16.gmra.mrb[168].mxu0 %vm4271_vm3, %v15002_v18 }
 0x4a2   : > { %4590 = vmatprep.mubr.bf16.mxu1 %v14565_v52  ;;  %4943 = vmatprep.mubr.bf16.mxu0 %v14565_v52 }
 0x4a4   : > { %v11040_v22 = vpop.f32.mrb[64].mxu1  ;;  %v11042_v54 = vpop.f32.mrb[64].mxu0 }
 0x4a5   : > { %15003 = vst [vmem:[#allocation443_spill] sm:$0xff] %v11040_v22  ;;  %15004 = vst [vmem:[#allocation444_spill] sm:$0xff] %v11042_v54  ;;  %v11044_v53 = vpop.f32.mrb[65].mxu1  ;;  %v11046_v63 = vpop.f32.mrb[65].mxu0 }
 0x4a6   : > { %15005 = vst [vmem:[#allocation445_spill] sm:$0xff] %v11044_v53  ;;  %15006 = vst [vmem:[#allocation446_spill] sm:$0xff] %v11046_v63  ;;  %v11048_v37 = vpop.f32.mrb[66].mxu1  ;;  %v11050_v43 = vpop.f32.mrb[66].mxu0 }
 0x4a7   : > { %15007 = vst [vmem:[#allocation447_spill] sm:$0xff] %v11048_v37  ;;  %15008 = vst [vmem:[#allocation448_spill] sm:$0xff] %v11050_v43  ;;  %v11052_v26 = vpop.f32.mrb[67].mxu1  ;;  %v11054_v45 = vpop.f32.mrb[67].mxu0 }
 0x4a8   : > { %15009 = vst [vmem:[#allocation449_spill] sm:$0xff] %v11052_v26  ;;  %15010 = vst [vmem:[#allocation450_spill] sm:$0xff] %v11054_v45 }
 0x4a9   : > { %7889 = vmatmul.mubr.msk.bf16.gmra.mrb[172].mxu1 %vm4271_vm3, %v15011_v32  ;;  %7921 = vmatmul.mubr.msk.bf16.gmra.mrb[172].mxu0 %vm4271_vm3, %v15011_v32 }
 0x4aa   : > { %4600 = vmatprep.mubr.bf16.mxu1 %v14565_v52  ;;  %4953 = vmatprep.mubr.bf16.mxu0 %v14565_v52 }
 0x4ac   : > { %v11062_v53 = vpop.f32.mrb[68].mxu1  ;;  %v11064_v63 = vpop.f32.mrb[68].mxu0 }
 0x4ad   : > { %15012 = vst [vmem:[#allocation451_spill] sm:$0xff] %v11062_v53  ;;  %15013 = vst [vmem:[#allocation452_spill] sm:$0xff] %v11064_v63  ;;  %v11066_v37 = vpop.f32.mrb[69].mxu1  ;;  %v11068_v43 = vpop.f32.mrb[69].mxu0 }
 0x4ae   : > { %15014 = vst [vmem:[#allocation453_spill] sm:$0xff] %v11066_v37  ;;  %15015 = vst [vmem:[#allocation454_spill] sm:$0xff] %v11068_v43  ;;  %v11070_v26 = vpop.f32.mrb[70].mxu1  ;;  %v11072_v45 = vpop.f32.mrb[70].mxu0 }
 0x4af   : > { %15016 = vst [vmem:[#allocation455_spill] sm:$0xff] %v11070_v26  ;;  %15017 = vst [vmem:[#allocation456_spill] sm:$0xff] %v11072_v45  ;;  %v11074_v54 = vpop.f32.mrb[71].mxu1  ;;  %v11076_v22 = vpop.f32.mrb[71].mxu0 }
 0x4b0   : > { %15018 = vst [vmem:[#allocation457_spill] sm:$0xff] %v11074_v54  ;;  %15019 = vst [vmem:[#allocation458_spill] sm:$0xff] %v11076_v22 }
 0x4b1   : > { %7890 = vmatmul.mubr.msk.bf16.gmra.mrb[176].mxu1 %vm4271_vm3, %v15020_v0  ;;  %7922 = vmatmul.mubr.msk.bf16.gmra.mrb[176].mxu0 %vm4271_vm3, %v15020_v0 }
 0x4b2   : > { %4610 = vmatprep.mubr.bf16.mxu1 %v14565_v52  ;;  %4963 = vmatprep.mubr.bf16.mxu0 %v14565_v52 }
 0x4b4   : > { %v11084_v37 = vpop.f32.mrb[72].mxu1  ;;  %v11086_v43 = vpop.f32.mrb[72].mxu0 }
 0x4b5   : > { %15021 = vst [vmem:[#allocation459_spill] sm:$0xff] %v11084_v37  ;;  %15022 = vst [vmem:[#allocation460_spill] sm:$0xff] %v11086_v43  ;;  %v11088_v26 = vpop.f32.mrb[73].mxu1  ;;  %v11090_v45 = vpop.f32.mrb[73].mxu0 }
 0x4b6   : > { %15023 = vst [vmem:[#allocation461_spill] sm:$0xff] %v11088_v26  ;;  %15024 = vst [vmem:[#allocation462_spill] sm:$0xff] %v11090_v45  ;;  %v11092_v54 = vpop.f32.mrb[74].mxu1  ;;  %v11094_v22 = vpop.f32.mrb[74].mxu0 }
 0x4b7   : > { %15025 = vst [vmem:[#allocation463_spill] sm:$0xff] %v11092_v54  ;;  %15026 = vst [vmem:[#allocation464_spill] sm:$0xff] %v11094_v22  ;;  %v11096_v63 = vpop.f32.mrb[75].mxu1  ;;  %v11098_v53 = vpop.f32.mrb[75].mxu0 }
 0x4b8   : > { %15027 = vst [vmem:[#allocation465_spill] sm:$0xff] %v11096_v63  ;;  %15028 = vst [vmem:[#allocation466_spill] sm:$0xff] %v11098_v53 }
 0x4b9   : > { %7891 = vmatmul.mubr.msk.bf16.gmra.mrb[180].mxu1 %vm4271_vm3, %v15029_v5  ;;  %7923 = vmatmul.mubr.msk.bf16.gmra.mrb[180].mxu0 %vm4271_vm3, %v15029_v5  ;;  %v15066_v5 = vld [vmem:[#allocation10_spill] sm:$0xff] }
 0x4ba   : > { %4620 = vmatprep.mubr.bf16.mxu1 %v14565_v52  ;;  %4973 = vmatprep.mubr.bf16.mxu0 %v14565_v52 }
 0x4bc   : > { %v11106_v26 = vpop.f32.mrb[76].mxu1  ;;  %v11108_v45 = vpop.f32.mrb[76].mxu0 }
 0x4bd   : > { %15030 = vst [vmem:[#allocation467_spill] sm:$0xff] %v11106_v26  ;;  %15031 = vst [vmem:[#allocation468_spill] sm:$0xff] %v11108_v45  ;;  %v11110_v54 = vpop.f32.mrb[77].mxu1  ;;  %v11112_v22 = vpop.f32.mrb[77].mxu0 }
 0x4be   : > { %15032 = vst [vmem:[#allocation469_spill] sm:$0xff] %v11110_v54  ;;  %15033 = vst [vmem:[#allocation470_spill] sm:$0xff] %v11112_v22  ;;  %v11114_v63 = vpop.f32.mrb[78].mxu1  ;;  %v11116_v53 = vpop.f32.mrb[78].mxu0 }
 0x4bf   : > { %15034 = vst [vmem:[#allocation471_spill] sm:$0xff] %v11114_v63  ;;  %15035 = vst [vmem:[#allocation472_spill] sm:$0xff] %v11116_v53  ;;  %v11118_v43 = vpop.f32.mrb[79].mxu1  ;;  %v11120_v37 = vpop.f32.mrb[79].mxu0 }
 0x4c0   : > { %15036 = vst [vmem:[#allocation473_spill] sm:$0xff] %v11118_v43  ;;  %15037 = vst [vmem:[#allocation474_spill] sm:$0xff] %v11120_v37 }
 0x4c1   : > { %7892 = vmatmul.mubr.msk.bf16.gmra.mrb[184].mxu1 %vm4271_vm3, %v15038_v62  ;;  %7924 = vmatmul.mubr.msk.bf16.gmra.mrb[184].mxu0 %vm4271_vm3, %v15038_v62  ;;  %v15047_v62 = vld [vmem:[#allocation8_spill] sm:$0xff] }
 0x4c2   : > { %4630 = vmatprep.mubr.bf16.mxu1 %v14565_v52  ;;  %4983 = vmatprep.mubr.bf16.mxu0 %v14565_v52 }
 0x4c4   : > { %v11128_v54 = vpop.f32.mrb[80].mxu1  ;;  %v11130_v22 = vpop.f32.mrb[80].mxu0 }
 0x4c5   : > { %15039 = vst [vmem:[#allocation475_spill] sm:$0xff] %v11128_v54  ;;  %15040 = vst [vmem:[#allocation476_spill] sm:$0xff] %v11130_v22  ;;  %v11132_v63 = vpop.f32.mrb[81].mxu1  ;;  %v11134_v53 = vpop.f32.mrb[81].mxu0 }
 0x4c6   : > { %15041 = vst [vmem:[#allocation477_spill] sm:$0xff] %v11132_v63  ;;  %15042 = vst [vmem:[#allocation478_spill] sm:$0xff] %v11134_v53  ;;  %v11136_v43 = vpop.f32.mrb[82].mxu1  ;;  %v11138_v37 = vpop.f32.mrb[82].mxu0 }
 0x4c7   : > { %15043 = vst [vmem:[#allocation479_spill] sm:$0xff] %v11136_v43  ;;  %15044 = vst [vmem:[#allocation480_spill] sm:$0xff] %v11138_v37  ;;  %v11140_v45 = vpop.f32.mrb[83].mxu1  ;;  %v11142_v26 = vpop.f32.mrb[83].mxu0 }
 0x4c8   : > { %15045 = vst [vmem:[#allocation481_spill] sm:$0xff] %v11140_v45  ;;  %15046 = vst [vmem:[#allocation482_spill] sm:$0xff] %v11142_v26 }
 0x4c9   : > { %7893 = vmatmul.mubr.msk.bf16.gmra.mrb[188].mxu1 %vm4271_vm3, %v15047_v62  ;;  %7925 = vmatmul.mubr.msk.bf16.gmra.mrb[188].mxu0 %vm4271_vm3, %v15047_v62  ;;  %v15056_v62 = vld [vmem:[#allocation11_spill] sm:$0xff] }
 0x4ca   : > { %4640 = vmatprep.mubr.bf16.mxu1 %v14565_v52  ;;  %4993 = vmatprep.mubr.bf16.mxu0 %v14565_v52 }
 0x4cc   : > { %v11150_v63 = vpop.f32.mrb[84].mxu1  ;;  %v11152_v53 = vpop.f32.mrb[84].mxu0 }
 0x4cd   : > { %15048 = vst [vmem:[#allocation483_spill] sm:$0xff] %v11150_v63  ;;  %15049 = vst [vmem:[#allocation484_spill] sm:$0xff] %v11152_v53  ;;  %v11154_v43 = vpop.f32.mrb[85].mxu1  ;;  %v11156_v37 = vpop.f32.mrb[85].mxu0 }
 0x4ce   : > { %15050 = vst [vmem:[#allocation485_spill] sm:$0xff] %v11154_v43  ;;  %15051 = vst [vmem:[#allocation486_spill] sm:$0xff] %v11156_v37  ;;  %v11158_v45 = vpop.f32.mrb[86].mxu1  ;;  %v11160_v26 = vpop.f32.mrb[86].mxu0  ;;  %v2323_v43 = vlaneseq }
 0x4cf   : > { %15052 = vst [vmem:[#allocation487_spill] sm:$0xff] %v11158_v45  ;;  %15053 = vst [vmem:[#allocation488_spill] sm:$0xff] %v11160_v26  ;;  %v11162_v22 = vpop.f32.mrb[87].mxu1  ;;  %v11164_v54 = vpop.f32.mrb[87].mxu0 }
 0x4d0   : > { %15054 = vst [vmem:[#allocation489_spill] sm:$0xff] %v11162_v22  ;;  %15055 = vst [vmem:[#allocation490_spill] sm:$0xff] %v11164_v54  ;;  %v11188_v13 = vshrl.u32 %v2323_v43, 7  ;;  %v2321_v43 = vld [vmem:[%s14435_s9] sm:$0xff] }
 0x4d1   : > { %7894 = vmatmul.mubr.msk.bf16.gmra.mrb[192].mxu1 %vm4271_vm3, %v15056_v62  ;;  %7926 = vmatmul.mubr.msk.bf16.gmra.mrb[192].mxu0 %vm4271_vm3, %v15056_v62 }
 0x4d2   : > { %4650 = vmatprep.mubr.bf16.mxu1 %v14565_v52  ;;  %5003 = vmatprep.mubr.bf16.mxu0 %v14565_v52  ;;  %15065 = vst [vmem:[#allocation499_spill] sm:$0xff] %v11188_v13 }
 0x4d4   : > { %v11172_v37 = vpop.f32.mrb[88].mxu1  ;;  %v11174_v45 = vpop.f32.mrb[88].mxu0 }
 0x4d5   : > { %15057 = vst [vmem:[#allocation491_spill] sm:$0xff] %v11172_v37  ;;  %15058 = vst [vmem:[#allocation492_spill] sm:$0xff] %v11174_v45  ;;  %v11176_v26 = vpop.f32.mrb[89].mxu1  ;;  %v11178_v22 = vpop.f32.mrb[89].mxu0 }
 0x4d6   : > { %15059 = vst [vmem:[#allocation493_spill] sm:$0xff] %v11176_v26  ;;  %15060 = vst [vmem:[#allocation494_spill] sm:$0xff] %v11178_v22  ;;  %v11180_v54 = vpop.f32.mrb[90].mxu1  ;;  %v11182_v53 = vpop.f32.mrb[90].mxu0  ;;  %v2337_v22 = vsub.s32 3, %v11188_v13 }
 0x4d7   : > { %15061 = vst [vmem:[#allocation495_spill] sm:$0xff] %v11180_v54  ;;  %15062 = vst [vmem:[#allocation496_spill] sm:$0xff] %v11182_v53  ;;  %v11184_v63 = vpop.f32.mrb[91].mxu1  ;;  %v11186_v62 = vpop.f32.mrb[91].mxu0  ;;  %v2325_v54 = vsub.s32 0, %v11188_v13  ;;  %v2333_v53 = vsub.s32 2, %v11188_v13 }
 0x4d8   : > { %15063 = vst [vmem:[#allocation497_spill] sm:$0xff] %v11184_v63  ;;  %15064 = vst [vmem:[#allocation498_spill] sm:$0xff] %v11186_v62  ;;  %v2329_v62 = vsub.s32 1, %v11188_v13  ;;  %v11225_v9 = vrot.slane %v2321_v43, %v2337_v22  ;;  %v15075_v13 = vld [vmem:[#allocation13_spill] sm:$0xff]  ;;  %v15078_v22 = vld [vmem:[#allocation27_spill] sm:$0xff] }
 0x4d9   : > { %7895 = vmatmul.mubr.msk.bf16.gmra.mrb[196].mxu1 %vm4271_vm3, %v15066_v5  ;;  %7927 = vmatmul.mubr.msk.bf16.gmra.mrb[196].mxu0 %vm4271_vm3, %v15066_v5  ;;  %v11221_v44 = vrot.slane %v2321_v43, %v2333_v53  ;;  %v15077_v53 = vld [vmem:[#allocation26_spill] sm:$0xff] }
 0x4da   : > { %4660 = vmatprep.mubr.bf16.mxu1 %v14565_v52  ;;  %5013 = vmatprep.mubr.bf16.mxu0 %v14565_v52  ;;  %v11223_v32 = vrot.slane %v2321_v43, %v2329_v62 }
 0x4dc   : > { %v11198_v26 = vpop.f32.mrb[92].mxu1  ;;  %v11200_v63 = vpop.f32.mrb[92].mxu0 }
 0x4dd   : > { %15067 = vst [vmem:[#allocation500_spill] sm:$0xff] %v11198_v26  ;;  %15068 = vst [vmem:[#allocation501_spill] sm:$0xff] %v11200_v63  ;;  %v11207_v45 = vpop.f32.mrb[93].mxu1  ;;  %v11209_v37 = vpop.f32.mrb[93].mxu0  ;;  %v11219_v63 = vrot.slane %v2321_v43, %v2325_v54  ;;  %v2656_v43 = vadd.f32 %v15078_v22, %v11223_v32 }
 0x4de   : > { %15069 = vst [vmem:[#allocation502_spill] sm:$0xff] %v11207_v45  ;;  %15070 = vst [vmem:[#allocation503_spill] sm:$0xff] %v11209_v37  ;;  %v11211_v5 = vpop.f32.mrb[94].mxu1  ;;  %v11213_v41 = vpop.f32.mrb[94].mxu0 }
 0x4df   : > { %15071 = vst [vmem:[#allocation504_spill] sm:$0xff] %v11211_v5  ;;  %15072 = vst [vmem:[#allocation505_spill] sm:$0xff] %v11213_v41  ;;  %v11215_v0 = vpop.f32.mrb[95].mxu1  ;;  %v11217_v26 = vpop.f32.mrb[95].mxu0  ;;  %v15079_v5 = vld [vmem:[#allocation28_spill] sm:$0xff] }
 0x4e0   : > { %15073 = vst [vmem:[#allocation506_spill] sm:$0xff] %v11215_v0  ;;  %15074 = vst [vmem:[#allocation507_spill] sm:$0xff] %v11217_v26  ;;  %v15076_v0 = vld [vmem:[#allocation25_spill] sm:$0xff]  ;;  %v3007_v26 = vadd.f32 %v15077_v53, %v11221_v44  ;;  %v3009_v45 = vadd.f32 %v15079_v5, %v11225_v9  ;;  %v3011_v53 = vadd.f32 %v15083_v40, %v11221_v44  ;;  %v15086_v5 = vld [vmem:[#allocation31_spill] sm:$0xff] }
 0x4e1   : > { %7896 = vmatmul.mubr.msk.bf16.gmra.mrb[200].mxu1 %vm4271_vm3, %v15075_v13  ;;  %7928 = vmatmul.mubr.msk.bf16.gmra.mrb[200].mxu0 %vm4271_vm3, %v15075_v13  ;;  %v2654_v54 = vadd.f32 %v15076_v0, %v11219_v63  ;;  %v2658_v0 = vadd.f32 %v15082_v55, %v11219_v63 }
 0x4e2   : > { %4670 = vmatprep.mubr.bf16.mxu1 %v14565_v52  ;;  %5023 = vmatprep.mubr.bf16.mxu0 %v14565_v52 }
 0x4e4   : > { %v4402_v62 = vpop.f32.mrb[96].mxu1  ;;  %v4755_v41 = vpop.f32.mrb[96].mxu0 }
 0x4e5   : > { %v11241_v37 = vmul.f32 %v4402_v62, %v2654_v54  ;;  %v11243_v13 = vmul.f32 %v4755_v41, %v3007_v26  ;;  %v4404_v18 = vpop.f32.mrb[97].mxu1  ;;  %v4757_v11 = vpop.f32.mrb[97].mxu0  ;;  %v2660_v54 = vadd.f32 %v15086_v5, %v11223_v32  ;;  %v15087_v41 = vld [vmem:[#allocation32_spill] sm:$0xff] }
 0x4e6   : > { %v11249_v49 = vmul.f32 %v4404_v18, %v2656_v43  ;;  %v11251_v47 = vmul.f32 %v4757_v11, %v3009_v45  ;;  %v4406_v22 = vpop.f32.mrb[98].mxu1  ;;  %v4759_v42 = vpop.f32.mrb[98].mxu0  ;;  %v3013_v26 = vadd.f32 %v15087_v41, %v11225_v9  ;;  %v15092_v11 = vld [vmem:[#allocation12_spill] sm:$0xff]  ;;  %v15093_v18 = vld [vmem:[#allocation33_spill] sm:$0xff]  ;;  %v15094_v45 = vld [vmem:[#allocation34_spill] sm:$0xff] }
 0x4e7   : > { %15080 = vst [vmem:[#allocation25_spill] sm:$0xff] %v11241_v37  ;;  %15081 = vst [vmem:[#allocation26_spill] sm:$0xff] %v11243_v13  ;;  %v11257_v62 = vmul.f32 %v4406_v22, %v2658_v0  ;;  %v11259_v13 = vmul.f32 %v4759_v42, %v3011_v53  ;;  %v4408_v55 = vpop.f32.mrb[99].mxu1  ;;  %v4761_v37 = vpop.f32.mrb[99].mxu0  ;;  %v2664_v42 = vadd.f32 %v15093_v18, %v11219_v63  ;;  %v15096_v5 = vld [vmem:[#allocation36_spill] sm:$0xff] }
 0x4e8   : > { %15084 = vst [vmem:[#allocation27_spill] sm:$0xff] %v11249_v49  ;;  %15085 = vst [vmem:[#allocation28_spill] sm:$0xff] %v11251_v47  ;;  %v11261_v56 = vmul.f32 %v4408_v55, %v2660_v54  ;;  %v11263_v40 = vmul.f32 %v4761_v37, %v3013_v26  ;;  %v3017_v43 = vadd.f32 %v15094_v45, %v11221_v44  ;;  %v15095_v37 = vld [vmem:[#allocation35_spill] sm:$0xff] }
 0x4e9   : > { %15088 = vst [vmem:[#allocation29_spill] sm:$0xff] %v11257_v62  ;;  %15089 = vst [vmem:[#allocation30_spill] sm:$0xff] %v11259_v13  ;;  %7897 = vmatmul.mubr.msk.bf16.gmra.mrb[204].mxu1 %vm4271_vm3, %v15092_v11  ;;  %7929 = vmatmul.mubr.msk.bf16.gmra.mrb[204].mxu0 %vm4271_vm3, %v15092_v11  ;;  %v2666_v22 = vadd.f32 %v15095_v37, %v11223_v32  ;;  %v3019_v54 = vadd.f32 %v15096_v5, %v11225_v9  ;;  %v15100_v11 = vld [vmem:[#allocation38_spill] sm:$0xff]  ;;  %v15103_v5 = vld [vmem:[#allocation39_spill] sm:$0xff] }
 0x4ea   : > { %15090 = vst [vmem:[#allocation31_spill] sm:$0xff] %v11261_v56  ;;  %15091 = vst [vmem:[#allocation32_spill] sm:$0xff] %v11263_v40  ;;  %4680 = vmatprep.mubr.bf16.mxu1 %v14565_v52  ;;  %5033 = vmatprep.mubr.bf16.mxu0 %v14565_v52  ;;  %v15099_v56 = vld [vmem:[#allocation37_spill] sm:$0xff]  ;;  %v3021_v45 = vadd.f32 %v15100_v11, %v11221_v44 }
 0x4eb   : > { %v2668_v18 = vadd.f32 %v15099_v56, %v11219_v63 }
 0x4ec   : > { %v4412_v0 = vpop.f32.mrb[100].mxu1  ;;  %v4765_v53 = vpop.f32.mrb[100].mxu0 }
 0x4ed   : > { %v11279_v41 = vmul.f32 %v4412_v0, %v2664_v42  ;;  %v11281_v26 = vmul.f32 %v4765_v53, %v3017_v43  ;;  %v4414_v55 = vpop.f32.mrb[101].mxu1  ;;  %v4767_v40 = vpop.f32.mrb[101].mxu0  ;;  %v2670_v42 = vadd.f32 %v15103_v5, %v11223_v32  ;;  %v15104_v43 = vld [vmem:[#allocation40_spill] sm:$0xff] }
 0x4ee   : > { %v11287_v13 = vmul.f32 %v4414_v55, %v2666_v22  ;;  %v11289_v62 = vmul.f32 %v4767_v40, %v3019_v54  ;;  %v4416_v37 = vpop.f32.mrb[102].mxu1  ;;  %v4769_v47 = vpop.f32.mrb[102].mxu0  ;;  %v3023_v0 = vadd.f32 %v15104_v43, %v11225_v9  ;;  %v15109_v40 = vld [vmem:[#allocation15_spill] sm:$0xff]  ;;  %v15110_v22 = vld [vmem:[#allocation41_spill] sm:$0xff]  ;;  %v15111_v54 = vld [vmem:[#allocation42_spill] sm:$0xff] }
 0x4ef   : > { %15097 = vst [vmem:[#allocation33_spill] sm:$0xff] %v11279_v41  ;;  %15098 = vst [vmem:[#allocation34_spill] sm:$0xff] %v11281_v26  ;;  %v11295_v53 = vmul.f32 %v4416_v37, %v2668_v18  ;;  %v11297_v26 = vmul.f32 %v4769_v47, %v3021_v45  ;;  %v4418_v56 = vpop.f32.mrb[103].mxu1  ;;  %v4771_v41 = vpop.f32.mrb[103].mxu0  ;;  %v2674_v47 = vadd.f32 %v15110_v22, %v11219_v63  ;;  %v15113_v5 = vld [vmem:[#allocation44_spill] sm:$0xff] }
 0x4f0   : > { %15101 = vst [vmem:[#allocation35_spill] sm:$0xff] %v11287_v13  ;;  %15102 = vst [vmem:[#allocation36_spill] sm:$0xff] %v11289_v62  ;;  %v11299_v49 = vmul.f32 %v4418_v56, %v2670_v42  ;;  %v11301_v11 = vmul.f32 %v4771_v41, %v3023_v0  ;;  %v3027_v55 = vadd.f32 %v15111_v54, %v11221_v44  ;;  %v15112_v41 = vld [vmem:[#allocation43_spill] sm:$0xff] }
 0x4f1   : > { %15105 = vst [vmem:[#allocation37_spill] sm:$0xff] %v11295_v53  ;;  %15106 = vst [vmem:[#allocation38_spill] sm:$0xff] %v11297_v26  ;;  %7898 = vmatmul.mubr.msk.bf16.gmra.mrb[208].mxu1 %vm4271_vm3, %v15109_v40  ;;  %7930 = vmatmul.mubr.msk.bf16.gmra.mrb[208].mxu0 %vm4271_vm3, %v15109_v40  ;;  %v2676_v37 = vadd.f32 %v15112_v41, %v11223_v32  ;;  %v3029_v42 = vadd.f32 %v15113_v5, %v11225_v9  ;;  %v15117_v40 = vld [vmem:[#allocation46_spill] sm:$0xff]  ;;  %v15120_v5 = vld [vmem:[#allocation47_spill] sm:$0xff] }
 0x4f2   : > { %15107 = vst [vmem:[#allocation39_spill] sm:$0xff] %v11299_v49  ;;  %15108 = vst [vmem:[#allocation40_spill] sm:$0xff] %v11301_v11  ;;  %4690 = vmatprep.mubr.bf16.mxu1 %v14565_v52  ;;  %5043 = vmatprep.mubr.bf16.mxu0 %v14565_v52  ;;  %v15116_v49 = vld [vmem:[#allocation45_spill] sm:$0xff]  ;;  %v3031_v54 = vadd.f32 %v15117_v40, %v11221_v44 }
 0x4f3   : > { %v2678_v22 = vadd.f32 %v15116_v49, %v11219_v63 }
 0x4f4   : > { %v4422_v18 = vpop.f32.mrb[104].mxu1  ;;  %v4775_v45 = vpop.f32.mrb[104].mxu0 }
 0x4f5   : > { %v11317_v43 = vmul.f32 %v4422_v18, %v2674_v47  ;;  %v11319_v0 = vmul.f32 %v4775_v45, %v3027_v55  ;;  %v4424_v56 = vpop.f32.mrb[105].mxu1  ;;  %v4777_v11 = vpop.f32.mrb[105].mxu0  ;;  %v2680_v47 = vadd.f32 %v15120_v5, %v11223_v32  ;;  %v15121_v55 = vld [vmem:[#allocation48_spill] sm:$0xff] }
 0x4f6   : > { %v11325_v53 = vmul.f32 %v4424_v56, %v2676_v37  ;;  %v11327_v26 = vmul.f32 %v4777_v11, %v3029_v42  ;;  %v4426_v41 = vpop.f32.mrb[106].mxu1  ;;  %v4779_v62 = vpop.f32.mrb[106].mxu0  ;;  %v3033_v18 = vadd.f32 %v15121_v55, %v11225_v9  ;;  %v15126_v11 = vld [vmem:[#allocation14_spill] sm:$0xff]  ;;  %v15127_v37 = vld [vmem:[#allocation49_spill] sm:$0xff]  ;;  %v15130_v5 = vld [vmem:[#allocation52_spill] sm:$0xff] }
 0x4f7   : > { %15114 = vst [vmem:[#allocation41_spill] sm:$0xff] %v11317_v43  ;;  %15115 = vst [vmem:[#allocation42_spill] sm:$0xff] %v11319_v0  ;;  %v11333_v45 = vmul.f32 %v4426_v41, %v2678_v22  ;;  %v11335_v0 = vmul.f32 %v4779_v62, %v3031_v54  ;;  %v4428_v49 = vpop.f32.mrb[107].mxu1  ;;  %v4781_v43 = vpop.f32.mrb[107].mxu0  ;;  %v2684_v62 = vadd.f32 %v15127_v37, %v11219_v63  ;;  %v15128_v42 = vld [vmem:[#allocation50_spill] sm:$0xff] }
 0x4f8   : > { %15118 = vst [vmem:[#allocation43_spill] sm:$0xff] %v11325_v53  ;;  %15119 = vst [vmem:[#allocation44_spill] sm:$0xff] %v11327_v26  ;;  %v11337_v13 = vmul.f32 %v4428_v49, %v2680_v47  ;;  %v11339_v40 = vmul.f32 %v4781_v43, %v3033_v18  ;;  %v3037_v56 = vadd.f32 %v15128_v42, %v11221_v44  ;;  %v15129_v43 = vld [vmem:[#allocation51_spill] sm:$0xff] }
 0x4f9   : > { %15122 = vst [vmem:[#allocation45_spill] sm:$0xff] %v11333_v45  ;;  %15123 = vst [vmem:[#allocation46_spill] sm:$0xff] %v11335_v0  ;;  %7899 = vmatmul.mubr.msk.bf16.gmra.mrb[212].mxu1 %vm4271_vm3, %v15126_v11  ;;  %7931 = vmatmul.mubr.msk.bf16.gmra.mrb[212].mxu0 %vm4271_vm3, %v15126_v11  ;;  %v2686_v41 = vadd.f32 %v15129_v43, %v11223_v32  ;;  %v3039_v47 = vadd.f32 %v15130_v5, %v11225_v9  ;;  %v15134_v11 = vld [vmem:[#allocation54_spill] sm:$0xff]  ;;  %v15137_v5 = vld [vmem:[#allocation55_spill] sm:$0xff] }
 0x4fa   : > { %15124 = vst [vmem:[#allocation47_spill] sm:$0xff] %v11337_v13  ;;  %15125 = vst [vmem:[#allocation48_spill] sm:$0xff] %v11339_v40  ;;  %4700 = vmatprep.mubr.bf16.mxu1 %v14565_v52  ;;  %5053 = vmatprep.mubr.bf16.mxu0 %v14565_v52  ;;  %v15133_v13 = vld [vmem:[#allocation53_spill] sm:$0xff]  ;;  %v3041_v42 = vadd.f32 %v15134_v11, %v11221_v44 }
 0x4fb   : > { %v2688_v37 = vadd.f32 %v15133_v13, %v11219_v63 }
 0x4fc   : > { %v4432_v22 = vpop.f32.mrb[108].mxu1  ;;  %v4785_v54 = vpop.f32.mrb[108].mxu0 }
 0x4fd   : > { %v11355_v55 = vmul.f32 %v4432_v22, %v2684_v62  ;;  %v11357_v18 = vmul.f32 %v4785_v54, %v3037_v56  ;;  %v4434_v49 = vpop.f32.mrb[109].mxu1  ;;  %v4787_v40 = vpop.f32.mrb[109].mxu0  ;;  %v2690_v62 = vadd.f32 %v15137_v5, %v11223_v32  ;;  %v15138_v56 = vld [vmem:[#allocation56_spill] sm:$0xff] }
 0x4fe   : > { %v11363_v45 = vmul.f32 %v4434_v49, %v2686_v41  ;;  %v11365_v0 = vmul.f32 %v4787_v40, %v3039_v47  ;;  %v4436_v43 = vpop.f32.mrb[110].mxu1  ;;  %v4789_v26 = vpop.f32.mrb[110].mxu0  ;;  %v3043_v22 = vadd.f32 %v15138_v56, %v11225_v9  ;;  %v15143_v40 = vld [vmem:[#allocation18_spill] sm:$0xff]  ;;  %v15144_v41 = vld [vmem:[#allocation57_spill] sm:$0xff]  ;;  %v15147_v5 = vld [vmem:[#allocation60_spill] sm:$0xff] }
 0x4ff   : > { %15131 = vst [vmem:[#allocation49_spill] sm:$0xff] %v11355_v55  ;;  %15132 = vst [vmem:[#allocation50_spill] sm:$0xff] %v11357_v18  ;;  %v11371_v54 = vmul.f32 %v4436_v43, %v2688_v37  ;;  %v11373_v18 = vmul.f32 %v4789_v26, %v3041_v42  ;;  %v4438_v13 = vpop.f32.mrb[111].mxu1  ;;  %v4791_v55 = vpop.f32.mrb[111].mxu0  ;;  %v2694_v26 = vadd.f32 %v15144_v41, %v11219_v63  ;;  %v15145_v47 = vld [vmem:[#allocation58_spill] sm:$0xff] }
 0x500   : > { %15135 = vst [vmem:[#allocation51_spill] sm:$0xff] %v11363_v45  ;;  %15136 = vst [vmem:[#allocation52_spill] sm:$0xff] %v11365_v0  ;;  %v11375_v53 = vmul.f32 %v4438_v13, %v2690_v62  ;;  %v11377_v11 = vmul.f32 %v4791_v55, %v3043_v22  ;;  %v3047_v49 = vadd.f32 %v15145_v47, %v11221_v44  ;;  %v15146_v55 = vld [vmem:[#allocation59_spill] sm:$0xff] }
 0x501   : > { %15139 = vst [vmem:[#allocation53_spill] sm:$0xff] %v11371_v54  ;;  %15140 = vst [vmem:[#allocation54_spill] sm:$0xff] %v11373_v18  ;;  %7900 = vmatmul.mubr.msk.bf16.gmra.mrb[216].mxu1 %vm4271_vm3, %v15143_v40  ;;  %7932 = vmatmul.mubr.msk.bf16.gmra.mrb[216].mxu0 %vm4271_vm3, %v15143_v40  ;;  %v2696_v43 = vadd.f32 %v15146_v55, %v11223_v32  ;;  %v3049_v62 = vadd.f32 %v15147_v5, %v11225_v9  ;;  %v15151_v40 = vld [vmem:[#allocation62_spill] sm:$0xff]  ;;  %v15154_v5 = vld [vmem:[#allocation63_spill] sm:$0xff] }
 0x502   : > { %15141 = vst [vmem:[#allocation55_spill] sm:$0xff] %v11375_v53  ;;  %15142 = vst [vmem:[#allocation56_spill] sm:$0xff] %v11377_v11  ;;  %4710 = vmatprep.mubr.bf16.mxu1 %v14565_v52  ;;  %5063 = vmatprep.mubr.bf16.mxu0 %v14565_v52  ;;  %v15150_v53 = vld [vmem:[#allocation61_spill] sm:$0xff]  ;;  %v3051_v47 = vadd.f32 %v15151_v40, %v11221_v44 }
 0x503   : > { %v2698_v41 = vadd.f32 %v15150_v53, %v11219_v63 }
 0x504   : > { %v4442_v37 = vpop.f32.mrb[112].mxu1  ;;  %v4795_v42 = vpop.f32.mrb[112].mxu0 }
 0x505   : > { %v11393_v56 = vmul.f32 %v4442_v37, %v2694_v26  ;;  %v11395_v22 = vmul.f32 %v4795_v42, %v3047_v49  ;;  %v4444_v13 = vpop.f32.mrb[113].mxu1  ;;  %v4797_v11 = vpop.f32.mrb[113].mxu0  ;;  %v2700_v26 = vadd.f32 %v15154_v5, %v11223_v32  ;;  %v15155_v49 = vld [vmem:[#allocation64_spill] sm:$0xff] }
 0x506   : > { %v11401_v54 = vmul.f32 %v4444_v13, %v2696_v43  ;;  %v11403_v18 = vmul.f32 %v4797_v11, %v3049_v62  ;;  %v4446_v55 = vpop.f32.mrb[114].mxu1  ;;  %v4799_v0 = vpop.f32.mrb[114].mxu0  ;;  %v3053_v37 = vadd.f32 %v15155_v49, %v11225_v9  ;;  %v15160_v11 = vld [vmem:[#allocation16_spill] sm:$0xff]  ;;  %v15161_v43 = vld [vmem:[#allocation65_spill] sm:$0xff]  ;;  %v15162_v62 = vld [vmem:[#allocation66_spill] sm:$0xff] }
 0x507   : > { %15148 = vst [vmem:[#allocation57_spill] sm:$0xff] %v11393_v56  ;;  %15149 = vst [vmem:[#allocation58_spill] sm:$0xff] %v11395_v22  ;;  %v11409_v42 = vmul.f32 %v4446_v55, %v2698_v41  ;;  %v11411_v22 = vmul.f32 %v4799_v0, %v3051_v47  ;;  %v4448_v53 = vpop.f32.mrb[115].mxu1  ;;  %v4801_v56 = vpop.f32.mrb[115].mxu0  ;;  %v2704_v0 = vadd.f32 %v15161_v43, %v11219_v63  ;;  %v15164_v5 = vld [vmem:[#allocation68_spill] sm:$0xff] }
 0x508   : > { %15152 = vst [vmem:[#allocation59_spill] sm:$0xff] %v11401_v54  ;;  %15153 = vst [vmem:[#allocation60_spill] sm:$0xff] %v11403_v18  ;;  %v11413_v45 = vmul.f32 %v4448_v53, %v2700_v26  ;;  %v11415_v40 = vmul.f32 %v4801_v56, %v3053_v37  ;;  %v3057_v13 = vadd.f32 %v15162_v62, %v11221_v44  ;;  %v15163_v56 = vld [vmem:[#allocation67_spill] sm:$0xff] }
 0x509   : > { %15156 = vst [vmem:[#allocation61_spill] sm:$0xff] %v11409_v42  ;;  %15157 = vst [vmem:[#allocation62_spill] sm:$0xff] %v11411_v22  ;;  %7901 = vmatmul.mubr.msk.bf16.gmra.mrb[220].mxu1 %vm4271_vm3, %v15160_v11  ;;  %7933 = vmatmul.mubr.msk.bf16.gmra.mrb[220].mxu0 %vm4271_vm3, %v15160_v11  ;;  %v2706_v55 = vadd.f32 %v15163_v56, %v11223_v32  ;;  %v3059_v26 = vadd.f32 %v15164_v5, %v11225_v9  ;;  %v15168_v11 = vld [vmem:[#allocation70_spill] sm:$0xff]  ;;  %v15169_v5 = vld [vmem:[#allocation71_spill] sm:$0xff] }
 0x50a   : > { %15158 = vst [vmem:[#allocation63_spill] sm:$0xff] %v11413_v45  ;;  %15159 = vst [vmem:[#allocation64_spill] sm:$0xff] %v11415_v40  ;;  %5106 = vmatprep.mubr.bf16.mxu1 %v14565_v52  ;;  %5459 = vmatprep.mubr.bf16.mxu0 %v14565_v52  ;;  %v15167_v45 = vld [vmem:[#allocation69_spill] sm:$0xff]  ;;  %v3061_v62 = vadd.f32 %v15168_v11, %v11221_v44 }
 0x50b   : > { %v2708_v43 = vadd.f32 %v15167_v45, %v11219_v63 }
 0x50c   : > { %v4452_v41 = vpop.f32.mrb[116].mxu1  ;;  %v4805_v47 = vpop.f32.mrb[116].mxu0 }
 0x50d   : > { %v11431_v49 = vmul.f32 %v4452_v41, %v2704_v0  ;;  %v11433_v37 = vmul.f32 %v4805_v47, %v3057_v13  ;;  %v4454_v53 = vpop.f32.mrb[117].mxu1  ;;  %v4807_v40 = vpop.f32.mrb[117].mxu0  ;;  %v2710_v0 = vadd.f32 %v15169_v5, %v11223_v32  ;;  %v15170_v13 = vld [vmem:[#allocation72_spill] sm:$0xff] }
 0x50e   : > { %v11439_v42 = vmul.f32 %v4454_v53, %v2706_v55  ;;  %v11441_v22 = vmul.f32 %v4807_v40, %v3059_v26  ;;  %v4456_v56 = vpop.f32.mrb[118].mxu1  ;;  %v4809_v18 = vpop.f32.mrb[118].mxu0  ;;  %v3063_v41 = vadd.f32 %v15170_v13, %v11225_v9  ;;  %v3067_v40 = vadd.f32 %v9836_v61, %v11221_v44 }
 0x50f   : > { %15165 = vst [vmem:[#allocation65_spill] sm:$0xff] %v11431_v49  ;;  %15166 = vst [vmem:[#allocation66_spill] sm:$0xff] %v11433_v37  ;;  %v11447_v47 = vmul.f32 %v4456_v56, %v2708_v43  ;;  %v11449_v37 = vmul.f32 %v4809_v18, %v3061_v62  ;;  %v4458_v45 = vpop.f32.mrb[119].mxu1  ;;  %v4811_v49 = vpop.f32.mrb[119].mxu0  ;;  %v2714_v18 = vadd.f32 %v9834_v27, %v11219_v63 }
 0x510   : > { %v11451_v54 = vmul.f32 %v4458_v45, %v2710_v0  ;;  %v11453_v11 = vmul.f32 %v4811_v49, %v3063_v41  ;;  %v2716_v49 = vadd.f32 %v9838_v17, %v11223_v32  ;;  %v3069_v53 = vadd.f32 %v9840_v1, %v11225_v9 }
 0x511   : > { %7934 = vmatmul.mubr.msk.bf16.vlgmr.msra.gmra.mrb[224].mxu1 %vm4271_vm3, %v8972_v35  ;;  %7966 = vmatmul.mubr.msk.bf16.vlgmr.msra.gmra.mrb[224].mxu0 %vm4271_vm3, %v8972_v35  ;;  %v2718_v27 = vadd.f32 %v9842_v4, %v11219_v63  ;;  %v3071_v61 = vadd.f32 %v9844_v59, %v11221_v44  ;;  %v2720_v1 = vadd.f32 %v9846_v38, %v11223_v32 }
 0x512   : > { %5116 = vmatprep.mubr.bf16.mxu1 %v14565_v52  ;;  %5469 = vmatprep.mubr.bf16.mxu0 %v14565_v52  ;;  %v3073_v41 = vadd.f32 %v9848_v30, %v11225_v9  ;;  %v2724_v38 = vadd.f32 %v9856_v15, %v11219_v63  ;;  %v3077_v30 = vadd.f32 %v9858_v20, %v11221_v44 }
 0x514   : > { %v4462_v55 = vpop.f32.mrb[120].mxu1  ;;  %v4815_v26 = vpop.f32.mrb[120].mxu0 }
 0x515   : > { %v11469_v43 = vmul.f32 %v4462_v55, %v2714_v18  ;;  %v11471_v35 = vmul.f32 %v4815_v26, %v3067_v40  ;;  %v4464_v62 = vpop.f32.mrb[121].mxu1  ;;  %v4817_v56 = vpop.f32.mrb[121].mxu0 }
 0x516   : > { %v11477_v5 = vmul.f32 %v4464_v62, %v2716_v49  ;;  %v11479_v0 = vmul.f32 %v4817_v56, %v3069_v53  ;;  %v4466_v17 = vpop.f32.mrb[122].mxu1  ;;  %v4819_v13 = vpop.f32.mrb[122].mxu0  ;;  %v2726_v53 = vadd.f32 %v9860_v24, %v11223_v32  ;;  %v3079_v62 = vadd.f32 %v9862_v7, %v11225_v9  ;;  %v15176_v7 = vld [vmem:[#allocation75_spill] sm:$0xff] }
 0x517   : > { %v11485_v45 = vmul.f32 %v4466_v17, %v2718_v27  ;;  %v11487_v18 = vmul.f32 %v4819_v13, %v3071_v61  ;;  %v4468_v4 = vpop.f32.mrb[123].mxu1  ;;  %v4821_v40 = vpop.f32.mrb[123].mxu0  ;;  %v15173_v17 = vld [vmem:[#allocation73_spill] sm:$0xff]  ;;  %v15174_v13 = vld [vmem:[#allocation74_spill] sm:$0xff] }
 0x518   : > { %v11489_v55 = vmul.f32 %v4468_v4, %v2720_v1  ;;  %v11491_v59 = vmul.f32 %v4821_v40, %v3073_v41  ;;  %v2728_v15 = vadd.f32 %v15173_v17, %v11219_v63  ;;  %v3081_v20 = vadd.f32 %v15174_v13, %v11221_v44 }
 0x519   : > { %7935 = vmatmul.mubr.msk.bf16.gmra.mrb[228].mxu1 %vm4271_vm3, %v8967_v36  ;;  %7967 = vmatmul.mubr.msk.bf16.gmra.mrb[228].mxu0 %vm4271_vm3, %v8967_v36  ;;  %v2730_v40 = vadd.f32 %v15176_v7, %v11223_v32 }
 0x51a   : > { %5126 = vmatprep.mubr.bf16.mxu1 %v14565_v52  ;;  %5479 = vmatprep.mubr.bf16.mxu0 %v14565_v52 }
 0x51c   : > { %v4472_v26 = vpop.f32.mrb[124].mxu1  ;;  %v4825_v49 = vpop.f32.mrb[124].mxu0 }
 0x51d   : > { %v11507_v56 = vmul.f32 %v4472_v26, %v2724_v38  ;;  %v11509_v36 = vmul.f32 %v4825_v49, %v3077_v30  ;;  %v4474_v27 = vpop.f32.mrb[125].mxu1  ;;  %v4827_v61 = vpop.f32.mrb[125].mxu0  ;;  %v15177_v38 = vld [vmem:[#allocation76_spill] sm:$0xff] }
 0x51e   : > { %v11515_v1 = vmul.f32 %v4474_v27, %v2726_v53  ;;  %v11517_v41 = vmul.f32 %v4827_v61, %v3079_v62  ;;  %v4476_v24 = vpop.f32.mrb[126].mxu1  ;;  %v4829_v4 = vpop.f32.mrb[126].mxu0  ;;  %v3083_v30 = vadd.f32 %v15177_v38, %v11225_v9  ;;  %v15182_v62 = vld [vmem:[#allocation77_spill] sm:$0xff]  ;;  %v15183_v61 = vld [vmem:[#allocation78_spill] sm:$0xff] }
 0x51f   : > { %15171 = vst [vmem:[#allocation67_spill] sm:$0xff] %v11507_v56  ;;  %15172 = vst [vmem:[#allocation68_spill] sm:$0xff] %v11509_v36  ;;  %v11523_v26 = vmul.f32 %v4476_v24, %v2728_v15  ;;  %v11525_v49 = vmul.f32 %v4829_v4, %v3081_v20  ;;  %v4478_v17 = vpop.f32.mrb[127].mxu1  ;;  %v4831_v36 = vpop.f32.mrb[127].mxu0  ;;  %v2734_v27 = vadd.f32 %v15182_v62, %v11219_v63  ;;  %v15185_v4 = vld [vmem:[#allocation80_spill] sm:$0xff] }
 0x520   : > { %15175 = vst [vmem:[#allocation69_spill] sm:$0xff] %v11517_v41  ;;  %v11527_v56 = vmul.f32 %v4478_v17, %v2730_v40  ;;  %v11529_v53 = vmul.f32 %v4831_v36, %v3083_v30  ;;  %v3087_v15 = vadd.f32 %v15183_v61, %v11221_v44  ;;  %v15184_v36 = vld [vmem:[#allocation79_spill] sm:$0xff]  ;;  %v3089_v7 = vadd.f32 %v15185_v4, %v11225_v9  ;;  %v15188_v17 = vld [vmem:[#allocation81_spill] sm:$0xff] }
 0x521   : > { %15178 = vst [vmem:[#allocation70_spill] sm:$0xff] %v11523_v26  ;;  %15179 = vst [vmem:[#allocation71_spill] sm:$0xff] %v11525_v49  ;;  %7936 = vmatmul.mubr.msk.bf16.gmra.mrb[232].mxu1 %vm4271_vm3, %v9021_v57  ;;  %7968 = vmatmul.mubr.msk.bf16.gmra.mrb[232].mxu0 %vm4271_vm3, %v9021_v57  ;;  %v2736_v24 = vadd.f32 %v15184_v36, %v11223_v32  ;;  %v2738_v62 = vadd.f32 %v15188_v17, %v11219_v63  ;;  %v15190_v4 = vld [vmem:[#allocation83_spill] sm:$0xff] }
 0x522   : > { %15180 = vst [vmem:[#allocation72_spill] sm:$0xff] %v11527_v56  ;;  %15181 = vst [vmem:[#allocation73_spill] sm:$0xff] %v11529_v53  ;;  %5136 = vmatprep.mubr.bf16.mxu1 %v14565_v52  ;;  %5489 = vmatprep.mubr.bf16.mxu0 %v14565_v52  ;;  %v15189_v53 = vld [vmem:[#allocation82_spill] sm:$0xff] }
 0x523   : > { %v3091_v61 = vadd.f32 %v15189_v53, %v11221_v44 }
 0x524   : > { %v4482_v13 = vpop.f32.mrb[128].mxu1  ;;  %v4835_v20 = vpop.f32.mrb[128].mxu0 }
 0x525   : > { %v11545_v40 = vmul.f32 %v4482_v13, %v2734_v27  ;;  %v11547_v57 = vmul.f32 %v4835_v20, %v3087_v15  ;;  %v4484_v38 = vpop.f32.mrb[129].mxu1  ;;  %v4837_v30 = vpop.f32.mrb[129].mxu0  ;;  %v2740_v27 = vadd.f32 %v15190_v4, %v11223_v32  ;;  %v15191_v15 = vld [vmem:[#allocation84_spill] sm:$0xff] }
 0x526   : > { %v11553_v56 = vmul.f32 %v4484_v38, %v2736_v24  ;;  %v11555_v26 = vmul.f32 %v4837_v30, %v3089_v7  ;;  %v4486_v36 = vpop.f32.mrb[130].mxu1  ;;  %v4839_v49 = vpop.f32.mrb[130].mxu0  ;;  %v3093_v13 = vadd.f32 %v15191_v15, %v11225_v9  ;;  %v3097_v24 = vadd.f32 %v9914_v19, %v11221_v44 }
 0x527   : > { %15186 = vst [vmem:[#allocation74_spill] sm:$0xff] %v11545_v40  ;;  %15187 = vst [vmem:[#allocation75_spill] sm:$0xff] %v11547_v57  ;;  %v11561_v20 = vmul.f32 %v4486_v36, %v2738_v62  ;;  %v11563_v57 = vmul.f32 %v4839_v49, %v3091_v61  ;;  %v4488_v17 = vpop.f32.mrb[131].mxu1  ;;  %v4841_v40 = vpop.f32.mrb[131].mxu0  ;;  %v2744_v49 = vadd.f32 %v9912_v2, %v11219_v63 }
 0x528   : > { %v11565_v41 = vmul.f32 %v4488_v17, %v2740_v27  ;;  %v11567_v53 = vmul.f32 %v4841_v40, %v3093_v13  ;;  %v2746_v40 = vadd.f32 %v9916_v28, %v11223_v32  ;;  %v3099_v30 = vadd.f32 %v9918_v39, %v11225_v9  ;;  %v15193_v39 = vld [vmem:[#allocation85_spill] sm:$0xff]  ;;  %v15194_v17 = vld [vmem:[#allocation86_spill] sm:$0xff] }
 0x529   : > { %7937 = vmatmul.mubr.msk.bf16.gmra.mrb[236].mxu1 %vm4271_vm3, %v9005_v33  ;;  %7969 = vmatmul.mubr.msk.bf16.gmra.mrb[236].mxu0 %vm4271_vm3, %v9005_v33  ;;  %v2748_v2 = vadd.f32 %v9920_v10, %v11219_v63  ;;  %v3101_v19 = vadd.f32 %v9922_v14, %v11221_v44  ;;  %v2750_v13 = vadd.f32 %v15193_v39, %v11223_v32 }
 0x52a   : > { %5146 = vmatprep.mubr.bf16.mxu1 %v14565_v52  ;;  %5499 = vmatprep.mubr.bf16.mxu0 %v14565_v52 }
 0x52c   : > { %v4492_v7 = vpop.f32.mrb[132].mxu1  ;;  %v4845_v38 = vpop.f32.mrb[132].mxu0 }
 0x52d   : > { %v11583_v62 = vmul.f32 %v4492_v7, %v2744_v49  ;;  %v11585_v33 = vmul.f32 %v4845_v38, %v3097_v24  ;;  %v4494_v61 = vpop.f32.mrb[133].mxu1  ;;  %v4847_v36 = vpop.f32.mrb[133].mxu0  ;;  %v3103_v49 = vadd.f32 %v15194_v17, %v11225_v9 }
 0x52e   : > { %v11591_v4 = vmul.f32 %v4494_v61, %v2746_v40  ;;  %v11593_v27 = vmul.f32 %v4847_v36, %v3099_v30  ;;  %v4496_v28 = vpop.f32.mrb[134].mxu1  ;;  %v4849_v15 = vpop.f32.mrb[134].mxu0  ;;  %v2754_v40 = vadd.f32 %v9934_v8, %v11219_v63  ;;  %v15199_v30 = vld [vmem:[#allocation87_spill] sm:$0xff] }
 0x52f   : > { %15192 = vst [vmem:[#allocation76_spill] sm:$0xff] %v11585_v33  ;;  %v11599_v24 = vmul.f32 %v4496_v28, %v2748_v2  ;;  %v11601_v7 = vmul.f32 %v4849_v15, %v3101_v19  ;;  %v4498_v10 = vpop.f32.mrb[135].mxu1  ;;  %v4851_v38 = vpop.f32.mrb[135].mxu0  ;;  %v3107_v61 = vadd.f32 %v15199_v30, %v11221_v44  ;;  %v15200_v19 = vld [vmem:[#allocation88_spill] sm:$0xff]  ;;  %v15201_v15 = vld [vmem:[#allocation89_spill] sm:$0xff] }
 0x530   : > { %v11603_v33 = vmul.f32 %v4498_v10, %v2750_v13  ;;  %v11605_v14 = vmul.f32 %v4851_v38, %v3103_v49  ;;  %v2756_v28 = vadd.f32 %v15200_v19, %v11223_v32  ;;  %v3109_v39 = vadd.f32 %v15201_v15, %v11225_v9  ;;  %v15204_v10 = vld [vmem:[#allocation90_spill] sm:$0xff]  ;;  %v15205_v38 = vld [vmem:[#allocation91_spill] sm:$0xff]  ;;  %v15206_v15 = vld [vmem:[#allocation92_spill] sm:$0xff] }
 0x531   : > { %15195 = vst [vmem:[#allocation77_spill] sm:$0xff] %v11599_v24  ;;  %15196 = vst [vmem:[#allocation78_spill] sm:$0xff] %v11601_v7  ;;  %7938 = vmatmul.mubr.msk.bf16.gmra.mrb[240].mxu1 %vm4271_vm3, %v9051_v48  ;;  %7970 = vmatmul.mubr.msk.bf16.gmra.mrb[240].mxu0 %vm4271_vm3, %v9051_v48  ;;  %v2758_v8 = vadd.f32 %v15204_v10, %v11219_v63  ;;  %v3111_v30 = vadd.f32 %v15205_v38, %v11221_v44 }
 0x532   : > { %15197 = vst [vmem:[#allocation79_spill] sm:$0xff] %v11603_v33  ;;  %15198 = vst [vmem:[#allocation80_spill] sm:$0xff] %v11605_v14  ;;  %5156 = vmatprep.mubr.bf16.mxu1 %v14565_v52  ;;  %5509 = vmatprep.mubr.bf16.mxu0 %v14565_v52 }
 0x534   : > { %v4502_v36 = vpop.f32.mrb[136].mxu1  ;;  %v4855_v2 = vpop.f32.mrb[136].mxu0 }
 0x535   : > { %v11621_v13 = vmul.f32 %v4502_v36, %v2754_v40  ;;  %v11623_v48 = vmul.f32 %v4855_v2, %v3107_v61  ;;  %v4504_v17 = vpop.f32.mrb[137].mxu1  ;;  %v4857_v49 = vpop.f32.mrb[137].mxu0  ;;  %v2760_v40 = vadd.f32 %v15206_v15, %v11223_v32  ;;  %v15207_v61 = vld [vmem:[#allocation93_spill] sm:$0xff] }
 0x536   : > { %v11629_v14 = vmul.f32 %v4504_v17, %v2756_v28  ;;  %v11631_v33 = vmul.f32 %v4857_v49, %v3109_v39  ;;  %v4506_v19 = vpop.f32.mrb[138].mxu1  ;;  %v4859_v24 = vpop.f32.mrb[138].mxu0  ;;  %v3113_v36 = vadd.f32 %v15207_v61, %v11225_v9  ;;  %v15212_v39 = vld [vmem:[#allocation94_spill] sm:$0xff] }
 0x537   : > { %15202 = vst [vmem:[#allocation81_spill] sm:$0xff] %v11621_v13  ;;  %15203 = vst [vmem:[#allocation82_spill] sm:$0xff] %v11623_v48  ;;  %v11637_v2 = vmul.f32 %v4506_v19, %v2758_v8  ;;  %v11639_v48 = vmul.f32 %v4859_v24, %v3111_v30  ;;  %v4508_v10 = vpop.f32.mrb[139].mxu1  ;;  %v4861_v13 = vpop.f32.mrb[139].mxu0  ;;  %v2764_v24 = vadd.f32 %v9956_v12, %v11219_v63  ;;  %v15214_v30 = vld [vmem:[#allocation96_spill] sm:$0xff] }
 0x538   : > { %v11641_v7 = vmul.f32 %v4508_v10, %v2760_v40  ;;  %v11643_v28 = vmul.f32 %v4861_v13, %v3113_v36  ;;  %v3117_v17 = vadd.f32 %v15212_v39, %v11221_v44  ;;  %v15213_v13 = vld [vmem:[#allocation95_spill] sm:$0xff]  ;;  %v3119_v19 = vadd.f32 %v15214_v30, %v11225_v9  ;;  %v15217_v36 = vld [vmem:[#allocation97_spill] sm:$0xff]  ;;  %v15218_v10 = vld [vmem:[#allocation98_spill] sm:$0xff] }
 0x539   : > { %15208 = vst [vmem:[#allocation83_spill] sm:$0xff] %v11637_v2  ;;  %15209 = vst [vmem:[#allocation84_spill] sm:$0xff] %v11639_v48  ;;  %7939 = vmatmul.mubr.msk.bf16.gmra.mrb[244].mxu1 %vm4271_vm3, %v9045_v21  ;;  %7971 = vmatmul.mubr.msk.bf16.gmra.mrb[244].mxu0 %vm4271_vm3, %v9045_v21  ;;  %v2766_v38 = vadd.f32 %v15213_v13, %v11223_v32  ;;  %v2768_v12 = vadd.f32 %v15217_v36, %v11219_v63  ;;  %v15219_v30 = vld [vmem:[#allocation99_spill] sm:$0xff] }
 0x53a   : > { %15210 = vst [vmem:[#allocation85_spill] sm:$0xff] %v11641_v7  ;;  %15211 = vst [vmem:[#allocation86_spill] sm:$0xff] %v11643_v28  ;;  %5166 = vmatprep.mubr.bf16.mxu1 %v14565_v52  ;;  %5519 = vmatprep.mubr.bf16.mxu0 %v14565_v52  ;;  %v3121_v39 = vadd.f32 %v15218_v10, %v11221_v44 }
 0x53c   : > { %v4512_v49 = vpop.f32.mrb[140].mxu1  ;;  %v4865_v8 = vpop.f32.mrb[140].mxu0 }
 0x53d   : > { %v11659_v15 = vmul.f32 %v4512_v49, %v2764_v24  ;;  %v11661_v21 = vmul.f32 %v4865_v8, %v3117_v17  ;;  %v4514_v40 = vpop.f32.mrb[141].mxu1  ;;  %v4867_v61 = vpop.f32.mrb[141].mxu0  ;;  %v2770_v24 = vadd.f32 %v15219_v30, %v11223_v32  ;;  %v15220_v17 = vld [vmem:[#allocation100_spill] sm:$0xff] }
 0x53e   : > { %v11667_v28 = vmul.f32 %v4514_v40, %v2766_v38  ;;  %v11669_v7 = vmul.f32 %v4867_v61, %v3119_v19  ;;  %v4516_v13 = vpop.f32.mrb[142].mxu1  ;;  %v4869_v2 = vpop.f32.mrb[142].mxu0  ;;  %v3123_v49 = vadd.f32 %v15220_v17, %v11225_v9  ;;  %v15225_v19 = vld [vmem:[#allocation101_spill] sm:$0xff] }
 0x53f   : > { %15215 = vst [vmem:[#allocation87_spill] sm:$0xff] %v11659_v15  ;;  %15216 = vst [vmem:[#allocation88_spill] sm:$0xff] %v11661_v21  ;;  %v11675_v8 = vmul.f32 %v4516_v13, %v2768_v12  ;;  %v11677_v21 = vmul.f32 %v4869_v2, %v3121_v39  ;;  %v4518_v36 = vpop.f32.mrb[143].mxu1  ;;  %v4871_v15 = vpop.f32.mrb[143].mxu0  ;;  %v2774_v2 = vadd.f32 %v9978_v25, %v11219_v63  ;;  %v15227_v39 = vld [vmem:[#allocation103_spill] sm:$0xff] }
 0x540   : > { %v11679_v48 = vmul.f32 %v4518_v36, %v2770_v24  ;;  %v11681_v38 = vmul.f32 %v4871_v15, %v3123_v49  ;;  %v3127_v40 = vadd.f32 %v15225_v19, %v11221_v44  ;;  %v15226_v15 = vld [vmem:[#allocation102_spill] sm:$0xff]  ;;  %v3129_v13 = vadd.f32 %v15227_v39, %v11225_v9  ;;  %v15230_v49 = vld [vmem:[#allocation104_spill] sm:$0xff]  ;;  %v15231_v36 = vld [vmem:[#allocation105_spill] sm:$0xff] }
 0x541   : > { %15221 = vst [vmem:[#allocation89_spill] sm:$0xff] %v11675_v8  ;;  %15222 = vst [vmem:[#allocation90_spill] sm:$0xff] %v11677_v21  ;;  %7940 = vmatmul.mubr.msk.bf16.gmra.mrb[248].mxu1 %vm4271_vm3, %v9082_v29  ;;  %7972 = vmatmul.mubr.msk.bf16.gmra.mrb[248].mxu0 %vm4271_vm3, %v9082_v29  ;;  %v2776_v10 = vadd.f32 %v15226_v15, %v11223_v32  ;;  %v2778_v25 = vadd.f32 %v15230_v49, %v11219_v63  ;;  %v15234_v39 = vld [vmem:[#allocation106_spill] sm:$0xff] }
 0x542   : > { %15223 = vst [vmem:[#allocation91_spill] sm:$0xff] %v11679_v48  ;;  %15224 = vst [vmem:[#allocation92_spill] sm:$0xff] %v11681_v38  ;;  %5176 = vmatprep.mubr.bf16.mxu1 %v14565_v52  ;;  %5529 = vmatprep.mubr.bf16.mxu0 %v14565_v52  ;;  %v3131_v19 = vadd.f32 %v15231_v36, %v11221_v44 }
 0x544   : > { %v4522_v61 = vpop.f32.mrb[144].mxu1  ;;  %v4875_v12 = vpop.f32.mrb[144].mxu0 }
 0x545   : > { %v11697_v30 = vmul.f32 %v4522_v61, %v2774_v2  ;;  %v11699_v29 = vmul.f32 %v4875_v12, %v3127_v40  ;;  %v4524_v24 = vpop.f32.mrb[145].mxu1  ;;  %v4877_v17 = vpop.f32.mrb[145].mxu0  ;;  %v2780_v2 = vadd.f32 %v15234_v39, %v11223_v32  ;;  %v15235_v40 = vld [vmem:[#allocation107_spill] sm:$0xff] }
 0x546   : > { %v11705_v38 = vmul.f32 %v4524_v24, %v2776_v10  ;;  %v11707_v48 = vmul.f32 %v4877_v17, %v3129_v13  ;;  %v4526_v15 = vpop.f32.mrb[146].mxu1  ;;  %v4879_v8 = vpop.f32.mrb[146].mxu0  ;;  %v3133_v61 = vadd.f32 %v15235_v40, %v11225_v9  ;;  %v15240_v13 = vld [vmem:[#allocation108_spill] sm:$0xff]  ;;  %v15241_v24 = vld [vmem:[#allocation109_spill] sm:$0xff] }
 0x547   : > { %15228 = vst [vmem:[#allocation93_spill] sm:$0xff] %v11697_v30  ;;  %15229 = vst [vmem:[#allocation94_spill] sm:$0xff] %v11699_v29  ;;  %v11713_v12 = vmul.f32 %v4526_v15, %v2778_v25  ;;  %v11715_v29 = vmul.f32 %v4879_v8, %v3131_v19  ;;  %v4528_v49 = vpop.f32.mrb[147].mxu1  ;;  %v4881_v30 = vpop.f32.mrb[147].mxu0  ;;  %v2784_v8 = vadd.f32 %v15240_v13, %v11219_v63  ;;  %v15243_v15 = vld [vmem:[#allocation111_spill] sm:$0xff] }
 0x548   : > { %15232 = vst [vmem:[#allocation95_spill] sm:$0xff] %v11705_v38  ;;  %15233 = vst [vmem:[#allocation96_spill] sm:$0xff] %v11707_v48  ;;  %v11717_v21 = vmul.f32 %v4528_v49, %v2780_v2  ;;  %v11719_v10 = vmul.f32 %v4881_v30, %v3133_v61  ;;  %v3137_v17 = vadd.f32 %v15241_v24, %v11221_v44  ;;  %v15242_v30 = vld [vmem:[#allocation110_spill] sm:$0xff]  ;;  %v15246_v49 = vld [vmem:[#allocation112_spill] sm:$0xff] }
 0x549   : > { %15236 = vst [vmem:[#allocation97_spill] sm:$0xff] %v11713_v12  ;;  %15237 = vst [vmem:[#allocation98_spill] sm:$0xff] %v11715_v29  ;;  %7941 = vmatmul.mubr.msk.bf16.gmra.mrb[252].mxu1 %vm4271_vm3, %v9074_v58  ;;  %7973 = vmatmul.mubr.msk.bf16.gmra.mrb[252].mxu0 %vm4271_vm3, %v9074_v58  ;;  %v2786_v19 = vadd.f32 %v15242_v30, %v11223_v32  ;;  %v3139_v39 = vadd.f32 %v15243_v15, %v11225_v9  ;;  %v15250_v15 = vld [vmem:[#allocation114_spill] sm:$0xff]  ;;  %v15586_v38 = vld [vmem:[#allocation37_spill] sm:$0xff] }
 0x54a   : > { %15238 = vst [vmem:[#allocation99_spill] sm:$0xff] %v11717_v21  ;;  %15239 = vst [vmem:[#allocation100_spill] sm:$0xff] %v11719_v10  ;;  %5186 = vmatprep.mubr.bf16.mxu1 %v14565_v52  ;;  %5539 = vmatprep.mubr.bf16.mxu0 %v14565_v52  ;;  %v2788_v13 = vadd.f32 %v15246_v49, %v11219_v63  ;;  %v15247_v10 = vld [vmem:[#allocation113_spill] sm:$0xff] }
 0x54b   : > { %v3141_v24 = vadd.f32 %v15247_v10, %v11221_v44 }
 0x54c   : > { %v4532_v25 = vpop.f32.mrb[148].mxu1  ;;  %v4885_v36 = vpop.f32.mrb[148].mxu0 }
 0x54d   : > { %v11735_v2 = vmul.f32 %v4532_v25, %v2784_v8  ;;  %v11737_v58 = vmul.f32 %v4885_v36, %v3137_v17  ;;  %v4534_v40 = vpop.f32.mrb[149].mxu1  ;;  %v4887_v61 = vpop.f32.mrb[149].mxu0  ;;  %v2790_v8 = vadd.f32 %v15250_v15, %v11223_v32  ;;  %v15251_v17 = vld [vmem:[#allocation115_spill] sm:$0xff] }
 0x54e   : > { %v11743_v21 = vmul.f32 %v4534_v40, %v2786_v19  ;;  %v11745_v12 = vmul.f32 %v4887_v61, %v3139_v39  ;;  %v4536_v30 = vpop.f32.mrb[150].mxu1  ;;  %v4889_v29 = vpop.f32.mrb[150].mxu0  ;;  %v3143_v25 = vadd.f32 %v15251_v17, %v11225_v9  ;;  %v15256_v19 = vld [vmem:[#allocation116_spill] sm:$0xff]  ;;  %v15257_v39 = vld [vmem:[#allocation117_spill] sm:$0xff] }
 0x54f   : > { %15244 = vst [vmem:[#allocation101_spill] sm:$0xff] %v11735_v2  ;;  %15245 = vst [vmem:[#allocation102_spill] sm:$0xff] %v11737_v58  ;;  %v11751_v36 = vmul.f32 %v4536_v30, %v2788_v13  ;;  %v11753_v58 = vmul.f32 %v4889_v29, %v3141_v24  ;;  %v4538_v49 = vpop.f32.mrb[151].mxu1  ;;  %v4891_v2 = vpop.f32.mrb[151].mxu0  ;;  %v2794_v29 = vadd.f32 %v15256_v19, %v11219_v63  ;;  %v15259_v30 = vld [vmem:[#allocation119_spill] sm:$0xff] }
 0x550   : > { %15248 = vst [vmem:[#allocation103_spill] sm:$0xff] %v11743_v21  ;;  %15249 = vst [vmem:[#allocation104_spill] sm:$0xff] %v11745_v12  ;;  %v11755_v48 = vmul.f32 %v4538_v49, %v2790_v8  ;;  %v11757_v10 = vmul.f32 %v4891_v2, %v3143_v25  ;;  %v3147_v40 = vadd.f32 %v15257_v39, %v11221_v44  ;;  %v15258_v2 = vld [vmem:[#allocation118_spill] sm:$0xff]  ;;  %v15262_v49 = vld [vmem:[#allocation120_spill] sm:$0xff] }
 0x551   : > { %15252 = vst [vmem:[#allocation105_spill] sm:$0xff] %v11751_v36  ;;  %15253 = vst [vmem:[#allocation106_spill] sm:$0xff] %v11753_v58  ;;  %7942 = vmatmul.mubr.msk.bf16.gmra.mrb[0].mxu1 %vm4271_vm3, %v9114_v46  ;;  %7974 = vmatmul.mubr.msk.bf16.gmra.mrb[0].mxu0 %vm4271_vm3, %v9114_v46  ;;  %v2796_v24 = vadd.f32 %v15258_v2, %v11223_v32  ;;  %v3149_v15 = vadd.f32 %v15259_v30, %v11225_v9  ;;  %v15266_v30 = vld [vmem:[#allocation122_spill] sm:$0xff]  ;;  %v15568_v21 = vld [vmem:[#allocation12_spill] sm:$0xff] }
 0x552   : > { %15254 = vst [vmem:[#allocation107_spill] sm:$0xff] %v11755_v48  ;;  %15255 = vst [vmem:[#allocation108_spill] sm:$0xff] %v11757_v10  ;;  %5196 = vmatprep.mubr.bf16.mxu1 %v14565_v52  ;;  %5549 = vmatprep.mubr.bf16.mxu0 %v14565_v52  ;;  %v2798_v19 = vadd.f32 %v15262_v49, %v11219_v63  ;;  %v15263_v10 = vld [vmem:[#allocation121_spill] sm:$0xff] }
 0x553   : > { %v3151_v39 = vadd.f32 %v15263_v10, %v11221_v44 }
 0x554   : > { %v4542_v61 = vpop.f32.mrb[152].mxu1  ;;  %v4895_v13 = vpop.f32.mrb[152].mxu0 }
 0x555   : > { %v11773_v8 = vmul.f32 %v4542_v61, %v2794_v29  ;;  %v11775_v46 = vmul.f32 %v4895_v13, %v3147_v40  ;;  %v4544_v17 = vpop.f32.mrb[153].mxu1  ;;  %v4897_v25 = vpop.f32.mrb[153].mxu0  ;;  %v2800_v29 = vadd.f32 %v15266_v30, %v11223_v32  ;;  %v15267_v40 = vld [vmem:[#allocation123_spill] sm:$0xff] }
 0x556   : > { %v11781_v48 = vmul.f32 %v4544_v17, %v2796_v24  ;;  %v11783_v36 = vmul.f32 %v4897_v25, %v3149_v15  ;;  %v4546_v2 = vpop.f32.mrb[154].mxu1  ;;  %v4899_v58 = vpop.f32.mrb[154].mxu0  ;;  %v3153_v61 = vadd.f32 %v15267_v40, %v11225_v9  ;;  %v15272_v24 = vld [vmem:[#allocation124_spill] sm:$0xff]  ;;  %v15273_v15 = vld [vmem:[#allocation125_spill] sm:$0xff] }
 0x557   : > { %15260 = vst [vmem:[#allocation109_spill] sm:$0xff] %v11773_v8  ;;  %15261 = vst [vmem:[#allocation110_spill] sm:$0xff] %v11775_v46  ;;  %v11789_v13 = vmul.f32 %v4546_v2, %v2798_v19  ;;  %v11791_v46 = vmul.f32 %v4899_v58, %v3151_v39  ;;  %v4548_v49 = vpop.f32.mrb[155].mxu1  ;;  %v4901_v8 = vpop.f32.mrb[155].mxu0  ;;  %v2804_v58 = vadd.f32 %v15272_v24, %v11219_v63  ;;  %v15275_v2 = vld [vmem:[#allocation127_spill] sm:$0xff] }
 0x558   : > { %15264 = vst [vmem:[#allocation111_spill] sm:$0xff] %v11781_v48  ;;  %15265 = vst [vmem:[#allocation112_spill] sm:$0xff] %v11783_v36  ;;  %v11793_v12 = vmul.f32 %v4548_v49, %v2800_v29  ;;  %v11795_v10 = vmul.f32 %v4901_v8, %v3153_v61  ;;  %v3157_v17 = vadd.f32 %v15273_v15, %v11221_v44  ;;  %v15274_v8 = vld [vmem:[#allocation126_spill] sm:$0xff]  ;;  %v15278_v49 = vld [vmem:[#allocation128_spill] sm:$0xff] }
 0x559   : > { %15268 = vst [vmem:[#allocation113_spill] sm:$0xff] %v11789_v13  ;;  %15269 = vst [vmem:[#allocation114_spill] sm:$0xff] %v11791_v46  ;;  %7943 = vmatmul.mubr.msk.bf16.gmra.mrb[4].mxu1 %vm4271_vm3, %v14921_v23  ;;  %7975 = vmatmul.mubr.msk.bf16.gmra.mrb[4].mxu0 %vm4271_vm3, %v14921_v23  ;;  %v2806_v39 = vadd.f32 %v15274_v8, %v11223_v32  ;;  %v3159_v30 = vadd.f32 %v15275_v2, %v11225_v9  ;;  %v15282_v2 = vld [vmem:[#allocation130_spill] sm:$0xff] }
 0x55a   : > { %15270 = vst [vmem:[#allocation115_spill] sm:$0xff] %v11793_v12  ;;  %15271 = vst [vmem:[#allocation116_spill] sm:$0xff] %v11795_v10  ;;  %5206 = vmatprep.mubr.bf16.mxu1 %v14565_v52  ;;  %5559 = vmatprep.mubr.bf16.mxu0 %v14565_v52  ;;  %v2808_v24 = vadd.f32 %v15278_v49, %v11219_v63  ;;  %v15279_v10 = vld [vmem:[#allocation129_spill] sm:$0xff] }
 0x55b   : > { %v3161_v15 = vadd.f32 %v15279_v10, %v11221_v44 }
 0x55c   : > { %v4552_v25 = vpop.f32.mrb[156].mxu1  ;;  %v4905_v19 = vpop.f32.mrb[156].mxu0 }
 0x55d   : > { %v11811_v29 = vmul.f32 %v4552_v25, %v2804_v58  ;;  %v11813_v23 = vmul.f32 %v4905_v19, %v3157_v17  ;;  %v4554_v40 = vpop.f32.mrb[157].mxu1  ;;  %v4907_v61 = vpop.f32.mrb[157].mxu0  ;;  %v2810_v58 = vadd.f32 %v15282_v2, %v11223_v32  ;;  %v15283_v17 = vld [vmem:[#allocation131_spill] sm:$0xff]  ;;  %v15290_v2 = vld [vmem:[#allocation132_spill] sm:$0xff] }
 0x55e   : > { %v11819_v12 = vmul.f32 %v4554_v40, %v2806_v39  ;;  %v11821_v13 = vmul.f32 %v4907_v61, %v3159_v30  ;;  %v4556_v8 = vpop.f32.mrb[158].mxu1  ;;  %v4909_v46 = vpop.f32.mrb[158].mxu0  ;;  %v3163_v25 = vadd.f32 %v15283_v17, %v11225_v9  ;;  %v3167_v39 = vadd.f32 %v10080_v60, %v11221_v44 }
 0x55f   : > { %15276 = vst [vmem:[#allocation117_spill] sm:$0xff] %v11811_v29  ;;  %15277 = vst [vmem:[#allocation118_spill] sm:$0xff] %v11813_v23  ;;  %v11827_v19 = vmul.f32 %v4556_v8, %v2808_v24  ;;  %v11829_v23 = vmul.f32 %v4909_v46, %v3161_v15  ;;  %v4558_v49 = vpop.f32.mrb[159].mxu1  ;;  %v4911_v29 = vpop.f32.mrb[159].mxu0  ;;  %v2814_v46 = vadd.f32 %v10078_v51, %v11219_v63 }
 0x560   : > { %15280 = vst [vmem:[#allocation119_spill] sm:$0xff] %v11819_v12  ;;  %15281 = vst [vmem:[#allocation120_spill] sm:$0xff] %v11821_v13  ;;  %v11831_v36 = vmul.f32 %v4558_v49, %v2810_v58  ;;  %v11833_v10 = vmul.f32 %v4911_v29, %v3163_v25  ;;  %v2816_v29 = vadd.f32 %v10082_v16, %v11223_v32  ;;  %v15291_v58 = vld [vmem:[#allocation133_spill] sm:$0xff] }
 0x561   : > { %15284 = vst [vmem:[#allocation121_spill] sm:$0xff] %v11827_v19  ;;  %15285 = vst [vmem:[#allocation122_spill] sm:$0xff] %v11829_v23  ;;  %7944 = vmatmul.mubr.msk.bf16.gmra.mrb[8].mxu1 %vm4271_vm3, %v14930_v3  ;;  %7976 = vmatmul.mubr.msk.bf16.gmra.mrb[8].mxu0 %vm4271_vm3, %v14930_v3  ;;  %v3169_v61 = vadd.f32 %v10084_v31, %v11225_v9  ;;  %v2818_v51 = vadd.f32 %v15290_v2, %v11219_v63  ;;  %v15294_v31 = vld [vmem:[#allocation134_spill] sm:$0xff]  ;;  %v15564_v23 = vld [vmem:[#allocation27_spill] sm:$0xff] }
 0x562   : > { %15286 = vst [vmem:[#allocation123_spill] sm:$0xff] %v11831_v36  ;;  %15287 = vst [vmem:[#allocation124_spill] sm:$0xff] %v11833_v10  ;;  %5216 = vmatprep.mubr.bf16.mxu1 %v14565_v52  ;;  %5569 = vmatprep.mubr.bf16.mxu0 %v14565_v52  ;;  %v3171_v60 = vadd.f32 %v15291_v58, %v11221_v44  ;;  %v15566_v13 = vld [vmem:[#allocation29_spill] sm:$0xff] }
 0x564   : > { %v4562_v30 = vpop.f32.mrb[160].mxu1  ;;  %v4915_v40 = vpop.f32.mrb[160].mxu0 }
 0x565   : > { %v11849_v24 = vmul.f32 %v4562_v30, %v2814_v46  ;;  %v11851_v3 = vmul.f32 %v4915_v40, %v3167_v39  ;;  %v4564_v15 = vpop.f32.mrb[161].mxu1  ;;  %v4917_v8 = vpop.f32.mrb[161].mxu0  ;;  %v2820_v46 = vadd.f32 %v15294_v31, %v11223_v32  ;;  %v15295_v39 = vld [vmem:[#allocation135_spill] sm:$0xff] }
 0x566   : > { %v11857_v17 = vmul.f32 %v4564_v15, %v2816_v29  ;;  %v11859_v25 = vmul.f32 %v4917_v8, %v3169_v61  ;;  %v4566_v16 = vpop.f32.mrb[162].mxu1  ;;  %v4919_v49 = vpop.f32.mrb[162].mxu0  ;;  %v3173_v30 = vadd.f32 %v15295_v39, %v11225_v9  ;;  %v15300_v61 = vld [vmem:[#allocation136_spill] sm:$0xff]  ;;  %v15301_v8 = vld [vmem:[#allocation137_spill] sm:$0xff] }
 0x567   : > { %15288 = vst [vmem:[#allocation125_spill] sm:$0xff] %v11849_v24  ;;  %15289 = vst [vmem:[#allocation126_spill] sm:$0xff] %v11851_v3  ;;  %v11865_v40 = vmul.f32 %v4566_v16, %v2818_v51  ;;  %v11867_v24 = vmul.f32 %v4919_v49, %v3171_v60  ;;  %v4568_v2 = vpop.f32.mrb[163].mxu1  ;;  %v4921_v3 = vpop.f32.mrb[163].mxu0  ;;  %v2824_v15 = vadd.f32 %v15300_v61, %v11219_v63  ;;  %v15303_v49 = vld [vmem:[#allocation139_spill] sm:$0xff] }
 0x568   : > { %15292 = vst [vmem:[#allocation127_spill] sm:$0xff] %v11857_v17  ;;  %15293 = vst [vmem:[#allocation128_spill] sm:$0xff] %v11859_v25  ;;  %v11869_v10 = vmul.f32 %v4568_v2, %v2820_v46  ;;  %v11871_v29 = vmul.f32 %v4921_v3, %v3173_v30  ;;  %v3177_v51 = vadd.f32 %v15301_v8, %v11221_v44  ;;  %v15302_v3 = vld [vmem:[#allocation138_spill] sm:$0xff]  ;;  %v15306_v2 = vld [vmem:[#allocation140_spill] sm:$0xff] }
 0x569   : > { %15296 = vst [vmem:[#allocation129_spill] sm:$0xff] %v11865_v40  ;;  %15297 = vst [vmem:[#allocation130_spill] sm:$0xff] %v11867_v24  ;;  %7945 = vmatmul.mubr.msk.bf16.gmra.mrb[12].mxu1 %vm4271_vm3, %v14939_v50  ;;  %7977 = vmatmul.mubr.msk.bf16.gmra.mrb[12].mxu0 %vm4271_vm3, %v14939_v50  ;;  %v2826_v16 = vadd.f32 %v15302_v3, %v11223_v32  ;;  %v3179_v31 = vadd.f32 %v15303_v49, %v11225_v9  ;;  %v15310_v49 = vld [vmem:[#allocation142_spill] sm:$0xff] }
 0x56a   : > { %15298 = vst [vmem:[#allocation131_spill] sm:$0xff] %v11869_v10  ;;  %15299 = vst [vmem:[#allocation132_spill] sm:$0xff] %v11871_v29  ;;  %5226 = vmatprep.mubr.bf16.mxu1 %v14565_v52  ;;  %5579 = vmatprep.mubr.bf16.mxu0 %v14565_v52  ;;  %v2828_v61 = vadd.f32 %v15306_v2, %v11219_v63  ;;  %v15307_v10 = vld [vmem:[#allocation141_spill] sm:$0xff] }
 0x56b   : > { %v3181_v8 = vadd.f32 %v15307_v10, %v11221_v44 }
 0x56c   : > { %v4572_v58 = vpop.f32.mrb[164].mxu1  ;;  %v4925_v60 = vpop.f32.mrb[164].mxu0 }
 0x56d   : > { %v11887_v46 = vmul.f32 %v4572_v58, %v2824_v15  ;;  %v11889_v50 = vmul.f32 %v4925_v60, %v3177_v51  ;;  %v4574_v39 = vpop.f32.mrb[165].mxu1  ;;  %v4927_v30 = vpop.f32.mrb[165].mxu0  ;;  %v2830_v15 = vadd.f32 %v15310_v49, %v11223_v32  ;;  %v15311_v51 = vld [vmem:[#allocation143_spill] sm:$0xff] }
 0x56e   : > { %v11895_v29 = vmul.f32 %v4574_v39, %v2826_v16  ;;  %v11897_v40 = vmul.f32 %v4927_v30, %v3179_v31  ;;  %v4576_v3 = vpop.f32.mrb[166].mxu1  ;;  %v4929_v24 = vpop.f32.mrb[166].mxu0  ;;  %v3183_v58 = vadd.f32 %v15311_v51, %v11225_v9  ;;  %v15316_v16 = vld [vmem:[#allocation144_spill] sm:$0xff]  ;;  %v15317_v31 = vld [vmem:[#allocation145_spill] sm:$0xff] }
 0x56f   : > { %15304 = vst [vmem:[#allocation133_spill] sm:$0xff] %v11887_v46  ;;  %15305 = vst [vmem:[#allocation134_spill] sm:$0xff] %v11889_v50  ;;  %v11903_v60 = vmul.f32 %v4576_v3, %v2828_v61  ;;  %v11905_v46 = vmul.f32 %v4929_v24, %v3181_v8  ;;  %v4578_v2 = vpop.f32.mrb[167].mxu1  ;;  %v4931_v50 = vpop.f32.mrb[167].mxu0  ;;  %v2834_v24 = vadd.f32 %v15316_v16, %v11219_v63  ;;  %v15319_v3 = vld [vmem:[#allocation147_spill] sm:$0xff] }
 0x570   : > { %15308 = vst [vmem:[#allocation135_spill] sm:$0xff] %v11895_v29  ;;  %15309 = vst [vmem:[#allocation136_spill] sm:$0xff] %v11897_v40  ;;  %v11907_v17 = vmul.f32 %v4578_v2, %v2830_v15  ;;  %v11909_v10 = vmul.f32 %v4931_v50, %v3183_v58  ;;  %v3187_v39 = vadd.f32 %v15317_v31, %v11221_v44  ;;  %v15318_v50 = vld [vmem:[#allocation146_spill] sm:$0xff]  ;;  %v15322_v2 = vld [vmem:[#allocation148_spill] sm:$0xff] }
 0x571   : > { %15312 = vst [vmem:[#allocation137_spill] sm:$0xff] %v11903_v60  ;;  %15313 = vst [vmem:[#allocation138_spill] sm:$0xff] %v11905_v46  ;;  %7946 = vmatmul.mubr.msk.bf16.gmra.mrb[16].mxu1 %vm4271_vm3, %v14948_v34  ;;  %7978 = vmatmul.mubr.msk.bf16.gmra.mrb[16].mxu0 %vm4271_vm3, %v14948_v34  ;;  %v2836_v8 = vadd.f32 %v15318_v50, %v11223_v32  ;;  %v3189_v49 = vadd.f32 %v15319_v3, %v11225_v9  ;;  %v15326_v3 = vld [vmem:[#allocation150_spill] sm:$0xff] }
 0x572   : > { %15314 = vst [vmem:[#allocation139_spill] sm:$0xff] %v11907_v17  ;;  %15315 = vst [vmem:[#allocation140_spill] sm:$0xff] %v11909_v10  ;;  %5236 = vmatprep.mubr.bf16.mxu1 %v14565_v52  ;;  %5589 = vmatprep.mubr.bf16.mxu0 %v14565_v52  ;;  %v2838_v16 = vadd.f32 %v15322_v2, %v11219_v63  ;;  %v15323_v17 = vld [vmem:[#allocation149_spill] sm:$0xff] }
 0x573   : > { %v3191_v31 = vadd.f32 %v15323_v17, %v11221_v44 }
 0x574   : > { %v4582_v30 = vpop.f32.mrb[168].mxu1  ;;  %v4935_v61 = vpop.f32.mrb[168].mxu0 }
 0x575   : > { %v11925_v15 = vmul.f32 %v4582_v30, %v2834_v24  ;;  %v11927_v34 = vmul.f32 %v4935_v61, %v3187_v39  ;;  %v4584_v51 = vpop.f32.mrb[169].mxu1  ;;  %v4937_v58 = vpop.f32.mrb[169].mxu0  ;;  %v2840_v24 = vadd.f32 %v15326_v3, %v11223_v32  ;;  %v15327_v39 = vld [vmem:[#allocation151_spill] sm:$0xff] }
 0x576   : > { %v11933_v10 = vmul.f32 %v4584_v51, %v2836_v8  ;;  %v11935_v60 = vmul.f32 %v4937_v58, %v3189_v49  ;;  %v4586_v50 = vpop.f32.mrb[170].mxu1  ;;  %v4939_v46 = vpop.f32.mrb[170].mxu0  ;;  %v3193_v30 = vadd.f32 %v15327_v39, %v11225_v9  ;;  %v15332_v8 = vld [vmem:[#allocation152_spill] sm:$0xff]  ;;  %v15333_v49 = vld [vmem:[#allocation153_spill] sm:$0xff] }
 0x577   : > { %15320 = vst [vmem:[#allocation141_spill] sm:$0xff] %v11925_v15  ;;  %15321 = vst [vmem:[#allocation142_spill] sm:$0xff] %v11927_v34  ;;  %v11941_v61 = vmul.f32 %v4586_v50, %v2838_v16  ;;  %v11943_v34 = vmul.f32 %v4939_v46, %v3191_v31  ;;  %v4588_v2 = vpop.f32.mrb[171].mxu1  ;;  %v4941_v15 = vpop.f32.mrb[171].mxu0  ;;  %v2844_v46 = vadd.f32 %v15332_v8, %v11219_v63  ;;  %v15335_v50 = vld [vmem:[#allocation155_spill] sm:$0xff] }
 0x578   : > { %15324 = vst [vmem:[#allocation143_spill] sm:$0xff] %v11933_v10  ;;  %15325 = vst [vmem:[#allocation144_spill] sm:$0xff] %v11935_v60  ;;  %v11945_v29 = vmul.f32 %v4588_v2, %v2840_v24  ;;  %v11947_v17 = vmul.f32 %v4941_v15, %v3193_v30  ;;  %v3197_v51 = vadd.f32 %v15333_v49, %v11221_v44  ;;  %v15334_v15 = vld [vmem:[#allocation154_spill] sm:$0xff]  ;;  %v15338_v2 = vld [vmem:[#allocation156_spill] sm:$0xff] }
 0x579   : > { %15328 = vst [vmem:[#allocation145_spill] sm:$0xff] %v11941_v61  ;;  %15329 = vst [vmem:[#allocation146_spill] sm:$0xff] %v11943_v34  ;;  %7947 = vmatmul.mubr.msk.bf16.gmra.mrb[20].mxu1 %vm4271_vm3, %v14957_v6  ;;  %7979 = vmatmul.mubr.msk.bf16.gmra.mrb[20].mxu0 %vm4271_vm3, %v14957_v6  ;;  %v2846_v31 = vadd.f32 %v15334_v15, %v11223_v32  ;;  %v3199_v3 = vadd.f32 %v15335_v50, %v11225_v9  ;;  %v15342_v50 = vld [vmem:[#allocation158_spill] sm:$0xff] }
 0x57a   : > { %15330 = vst [vmem:[#allocation147_spill] sm:$0xff] %v11945_v29  ;;  %15331 = vst [vmem:[#allocation148_spill] sm:$0xff] %v11947_v17  ;;  %5246 = vmatprep.mubr.bf16.mxu1 %v14565_v52  ;;  %5599 = vmatprep.mubr.bf16.mxu0 %v14565_v52  ;;  %v2848_v8 = vadd.f32 %v15338_v2, %v11219_v63  ;;  %v15339_v29 = vld [vmem:[#allocation157_spill] sm:$0xff] }
 0x57b   : > { %v3201_v49 = vadd.f32 %v15339_v29, %v11221_v44 }
 0x57c   : > { %v4592_v58 = vpop.f32.mrb[172].mxu1  ;;  %v4945_v16 = vpop.f32.mrb[172].mxu0 }
 0x57d   : > { %v11963_v24 = vmul.f32 %v4592_v58, %v2844_v46  ;;  %v11965_v6 = vmul.f32 %v4945_v16, %v3197_v51  ;;  %v4594_v39 = vpop.f32.mrb[173].mxu1  ;;  %v4947_v30 = vpop.f32.mrb[173].mxu0  ;;  %v2850_v46 = vadd.f32 %v15342_v50, %v11223_v32  ;;  %v15343_v51 = vld [vmem:[#allocation159_spill] sm:$0xff] }
 0x57e   : > { %v11971_v17 = vmul.f32 %v4594_v39, %v2846_v31  ;;  %v11973_v34 = vmul.f32 %v4947_v30, %v3199_v3  ;;  %v4596_v15 = vpop.f32.mrb[174].mxu1  ;;  %v4949_v61 = vpop.f32.mrb[174].mxu0  ;;  %v3203_v58 = vadd.f32 %v15343_v51, %v11225_v9  ;;  %v15348_v31 = vld [vmem:[#allocation24_spill] sm:$0xff]  ;;  %v15350_v39 = vld [vmem:[#allocation161_spill] sm:$0xff]  ;;  %v15352_v50 = vld [vmem:[#allocation163_spill] sm:$0xff] }
 0x57f   : > { %15336 = vst [vmem:[#allocation149_spill] sm:$0xff] %v11963_v24  ;;  %15337 = vst [vmem:[#allocation150_spill] sm:$0xff] %v11965_v6  ;;  %v11979_v16 = vmul.f32 %v4596_v15, %v2848_v8  ;;  %v11981_v6 = vmul.f32 %v4949_v61, %v3201_v49  ;;  %v4598_v2 = vpop.f32.mrb[175].mxu1  ;;  %v4951_v24 = vpop.f32.mrb[175].mxu0  ;;  %v15349_v3 = vld [vmem:[#allocation160_spill] sm:$0xff]  ;;  %v3207_v30 = vadd.f32 %v15350_v39, %v11221_v44 }
 0x580   : > { %15340 = vst [vmem:[#allocation151_spill] sm:$0xff] %v11971_v17  ;;  %15341 = vst [vmem:[#allocation152_spill] sm:$0xff] %v11973_v34  ;;  %v11983_v60 = vmul.f32 %v4598_v2, %v2850_v46  ;;  %v11985_v29 = vmul.f32 %v4951_v24, %v3203_v58  ;;  %v2854_v61 = vadd.f32 %v15349_v3, %v11219_v63  ;;  %v15351_v24 = vld [vmem:[#allocation162_spill] sm:$0xff] }
 0x581   : > { %15344 = vst [vmem:[#allocation153_spill] sm:$0xff] %v11979_v16  ;;  %15345 = vst [vmem:[#allocation154_spill] sm:$0xff] %v11981_v6  ;;  %7948 = vmatmul.mubr.msk.bf16.gmra.mrb[24].mxu1 %vm4271_vm3, %v15348_v31  ;;  %7980 = vmatmul.mubr.msk.bf16.gmra.mrb[24].mxu0 %vm4271_vm3, %v15348_v31  ;;  %v2856_v15 = vadd.f32 %v15351_v24, %v11223_v32  ;;  %v3209_v46 = vadd.f32 %v15352_v50, %v11225_v9  ;;  %v15359_v50 = vld [vmem:[#allocation166_spill] sm:$0xff] }
 0x582   : > { %15346 = vst [vmem:[#allocation155_spill] sm:$0xff] %v11983_v60  ;;  %15347 = vst [vmem:[#allocation156_spill] sm:$0xff] %v11985_v29  ;;  %5256 = vmatprep.mubr.bf16.mxu1 %v14565_v52  ;;  %5609 = vmatprep.mubr.bf16.mxu0 %v14565_v52  ;;  %v15355_v60 = vld [vmem:[#allocation164_spill] sm:$0xff]  ;;  %v15356_v29 = vld [vmem:[#allocation165_spill] sm:$0xff] }
 0x583   : > { %v2858_v3 = vadd.f32 %v15355_v60, %v11219_v63  ;;  %v3211_v39 = vadd.f32 %v15356_v29, %v11221_v44 }
 0x584   : > { %v4602_v8 = vpop.f32.mrb[176].mxu1  ;;  %v4955_v49 = vpop.f32.mrb[176].mxu0 }
 0x585   : > { %v12001_v51 = vmul.f32 %v4602_v8, %v2854_v61  ;;  %v12003_v58 = vmul.f32 %v4955_v49, %v3207_v30  ;;  %v4604_v2 = vpop.f32.mrb[177].mxu1  ;;  %v4957_v31 = vpop.f32.mrb[177].mxu0  ;;  %v2860_v61 = vadd.f32 %v15359_v50, %v11223_v32  ;;  %v15360_v30 = vld [vmem:[#allocation167_spill] sm:$0xff] }
 0x586   : > { %v12009_v6 = vmul.f32 %v4604_v2, %v2856_v15  ;;  %v12011_v16 = vmul.f32 %v4957_v31, %v3209_v46  ;;  %v4606_v24 = vpop.f32.mrb[178].mxu1  ;;  %v4959_v34 = vpop.f32.mrb[178].mxu0  ;;  %v3213_v8 = vadd.f32 %v15360_v30, %v11225_v9  ;;  %v15365_v15 = vld [vmem:[#allocation23_spill] sm:$0xff]  ;;  %v15366_v46 = vld [vmem:[#allocation168_spill] sm:$0xff]  ;;  %v15367_v2 = vld [vmem:[#allocation169_spill] sm:$0xff] }
 0x587   : > { %15353 = vst [vmem:[#allocation157_spill] sm:$0xff] %v12001_v51  ;;  %15354 = vst [vmem:[#allocation158_spill] sm:$0xff] %v12003_v58  ;;  %v12017_v49 = vmul.f32 %v4606_v24, %v2858_v3  ;;  %v12019_v58 = vmul.f32 %v4959_v34, %v3211_v39  ;;  %v4608_v60 = vpop.f32.mrb[179].mxu1  ;;  %v4961_v51 = vpop.f32.mrb[179].mxu0  ;;  %v2864_v34 = vadd.f32 %v15366_v46, %v11219_v63  ;;  %v15369_v50 = vld [vmem:[#allocation171_spill] sm:$0xff] }
 0x588   : > { %15357 = vst [vmem:[#allocation159_spill] sm:$0xff] %v12009_v6  ;;  %15358 = vst [vmem:[#allocation24_spill] sm:$0xff] %v12011_v16  ;;  %v12021_v17 = vmul.f32 %v4608_v60, %v2860_v61  ;;  %v12023_v29 = vmul.f32 %v4961_v51, %v3213_v8  ;;  %v3217_v31 = vadd.f32 %v15367_v2, %v11221_v44  ;;  %v15368_v51 = vld [vmem:[#allocation170_spill] sm:$0xff] }
 0x589   : > { %15361 = vst [vmem:[#allocation160_spill] sm:$0xff] %v12017_v49  ;;  %15362 = vst [vmem:[#allocation161_spill] sm:$0xff] %v12019_v58  ;;  %7949 = vmatmul.mubr.msk.bf16.gmra.mrb[28].mxu1 %vm4271_vm3, %v15365_v15  ;;  %7981 = vmatmul.mubr.msk.bf16.gmra.mrb[28].mxu0 %vm4271_vm3, %v15365_v15  ;;  %v2866_v24 = vadd.f32 %v15368_v51, %v11223_v32  ;;  %v3219_v61 = vadd.f32 %v15369_v50, %v11225_v9  ;;  %v15376_v50 = vld [vmem:[#allocation174_spill] sm:$0xff] }
 0x58a   : > { %15363 = vst [vmem:[#allocation162_spill] sm:$0xff] %v12021_v17  ;;  %15364 = vst [vmem:[#allocation163_spill] sm:$0xff] %v12023_v29  ;;  %5266 = vmatprep.mubr.bf16.mxu1 %v14565_v52  ;;  %5619 = vmatprep.mubr.bf16.mxu0 %v14565_v52  ;;  %v15372_v17 = vld [vmem:[#allocation172_spill] sm:$0xff]  ;;  %v15373_v29 = vld [vmem:[#allocation173_spill] sm:$0xff] }
 0x58b   : > { %v2868_v46 = vadd.f32 %v15372_v17, %v11219_v63  ;;  %v3221_v2 = vadd.f32 %v15373_v29, %v11221_v44 }
 0x58c   : > { %v4612_v3 = vpop.f32.mrb[180].mxu1  ;;  %v4965_v39 = vpop.f32.mrb[180].mxu0 }
 0x58d   : > { %v12039_v30 = vmul.f32 %v4612_v3, %v2864_v34  ;;  %v12041_v8 = vmul.f32 %v4965_v39, %v3217_v31  ;;  %v4614_v60 = vpop.f32.mrb[181].mxu1  ;;  %v4967_v15 = vpop.f32.mrb[181].mxu0  ;;  %v2870_v34 = vadd.f32 %v15376_v50, %v11223_v32  ;;  %v15377_v31 = vld [vmem:[#allocation175_spill] sm:$0xff] }
 0x58e   : > { %v12047_v58 = vmul.f32 %v4614_v60, %v2866_v24  ;;  %v12049_v49 = vmul.f32 %v4967_v15, %v3219_v61  ;;  %v4616_v51 = vpop.f32.mrb[182].mxu1  ;;  %v4969_v16 = vpop.f32.mrb[182].mxu0  ;;  %v3223_v3 = vadd.f32 %v15377_v31, %v11225_v9  ;;  %v15382_v24 = vld [vmem:[#allocation3_spill] sm:$0xff]  ;;  %v15383_v61 = vld [vmem:[#allocation176_spill] sm:$0xff]  ;;  %v15384_v60 = vld [vmem:[#allocation177_spill] sm:$0xff] }
 0x58f   : > { %15370 = vst [vmem:[#allocation164_spill] sm:$0xff] %v12039_v30  ;;  %15371 = vst [vmem:[#allocation165_spill] sm:$0xff] %v12041_v8  ;;  %v12055_v39 = vmul.f32 %v4616_v51, %v2868_v46  ;;  %v12057_v8 = vmul.f32 %v4969_v16, %v3221_v2  ;;  %v4618_v17 = vpop.f32.mrb[183].mxu1  ;;  %v4971_v30 = vpop.f32.mrb[183].mxu0  ;;  %v2874_v16 = vadd.f32 %v15383_v61, %v11219_v63  ;;  %v15386_v50 = vld [vmem:[#allocation179_spill] sm:$0xff] }
 0x590   : > { %15374 = vst [vmem:[#allocation166_spill] sm:$0xff] %v12047_v58  ;;  %15375 = vst [vmem:[#allocation167_spill] sm:$0xff] %v12049_v49  ;;  %v12059_v6 = vmul.f32 %v4618_v17, %v2870_v34  ;;  %v12061_v29 = vmul.f32 %v4971_v30, %v3223_v3  ;;  %v3227_v15 = vadd.f32 %v15384_v60, %v11221_v44  ;;  %v15385_v30 = vld [vmem:[#allocation178_spill] sm:$0xff] }
 0x591   : > { %15378 = vst [vmem:[#allocation23_spill] sm:$0xff] %v12055_v39  ;;  %15379 = vst [vmem:[#allocation168_spill] sm:$0xff] %v12057_v8  ;;  %7950 = vmatmul.mubr.msk.bf16.gmra.mrb[32].mxu1 %vm4271_vm3, %v15382_v24  ;;  %7982 = vmatmul.mubr.msk.bf16.gmra.mrb[32].mxu0 %vm4271_vm3, %v15382_v24  ;;  %v2876_v51 = vadd.f32 %v15385_v30, %v11223_v32  ;;  %v3229_v34 = vadd.f32 %v15386_v50, %v11225_v9  ;;  %v15393_v50 = vld [vmem:[#allocation182_spill] sm:$0xff] }
 0x592   : > { %15380 = vst [vmem:[#allocation169_spill] sm:$0xff] %v12059_v6  ;;  %15381 = vst [vmem:[#allocation170_spill] sm:$0xff] %v12061_v29  ;;  %5276 = vmatprep.mubr.bf16.mxu1 %v14565_v52  ;;  %5629 = vmatprep.mubr.bf16.mxu0 %v14565_v52  ;;  %v15389_v6 = vld [vmem:[#allocation180_spill] sm:$0xff]  ;;  %v15390_v29 = vld [vmem:[#allocation181_spill] sm:$0xff] }
 0x593   : > { %v2878_v61 = vadd.f32 %v15389_v6, %v11219_v63  ;;  %v3231_v60 = vadd.f32 %v15390_v29, %v11221_v44 }
 0x594   : > { %v4622_v46 = vpop.f32.mrb[184].mxu1  ;;  %v4975_v2 = vpop.f32.mrb[184].mxu0 }
 0x595   : > { %v12077_v31 = vmul.f32 %v4622_v46, %v2874_v16  ;;  %v12079_v3 = vmul.f32 %v4975_v2, %v3227_v15  ;;  %v4624_v17 = vpop.f32.mrb[185].mxu1  ;;  %v4977_v24 = vpop.f32.mrb[185].mxu0  ;;  %v2880_v16 = vadd.f32 %v15393_v50, %v11223_v32  ;;  %v15394_v15 = vld [vmem:[#allocation183_spill] sm:$0xff] }
 0x596   : > { %v12085_v8 = vmul.f32 %v4624_v17, %v2876_v51  ;;  %v12087_v39 = vmul.f32 %v4977_v24, %v3229_v34  ;;  %v4626_v30 = vpop.f32.mrb[186].mxu1  ;;  %v4979_v49 = vpop.f32.mrb[186].mxu0  ;;  %v3233_v46 = vadd.f32 %v15394_v15, %v11225_v9  ;;  %v15399_v51 = vld [vmem:[#allocation2_spill] sm:$0xff]  ;;  %v15400_v34 = vld [vmem:[#allocation184_spill] sm:$0xff]  ;;  %v15401_v17 = vld [vmem:[#allocation185_spill] sm:$0xff] }
 0x597   : > { %15387 = vst [vmem:[#allocation171_spill] sm:$0xff] %v12077_v31  ;;  %15388 = vst [vmem:[#allocation172_spill] sm:$0xff] %v12079_v3  ;;  %v12093_v2 = vmul.f32 %v4626_v30, %v2878_v61  ;;  %v12095_v3 = vmul.f32 %v4979_v49, %v3231_v60  ;;  %v4628_v6 = vpop.f32.mrb[187].mxu1  ;;  %v4981_v31 = vpop.f32.mrb[187].mxu0  ;;  %v2884_v49 = vadd.f32 %v15400_v34, %v11219_v63  ;;  %v15403_v50 = vld [vmem:[#allocation187_spill] sm:$0xff] }
 0x598   : > { %15391 = vst [vmem:[#allocation173_spill] sm:$0xff] %v12085_v8  ;;  %15392 = vst [vmem:[#allocation174_spill] sm:$0xff] %v12087_v39  ;;  %v12097_v58 = vmul.f32 %v4628_v6, %v2880_v16  ;;  %v12099_v29 = vmul.f32 %v4981_v31, %v3233_v46  ;;  %v3237_v24 = vadd.f32 %v15401_v17, %v11221_v44  ;;  %v15402_v31 = vld [vmem:[#allocation186_spill] sm:$0xff] }
 0x599   : > { %15395 = vst [vmem:[#allocation175_spill] sm:$0xff] %v12093_v2  ;;  %15396 = vst [vmem:[#allocation3_spill] sm:$0xff] %v12095_v3  ;;  %7951 = vmatmul.mubr.msk.bf16.gmra.mrb[36].mxu1 %vm4271_vm3, %v15399_v51  ;;  %7983 = vmatmul.mubr.msk.bf16.gmra.mrb[36].mxu0 %vm4271_vm3, %v15399_v51  ;;  %v2886_v30 = vadd.f32 %v15402_v31, %v11223_v32  ;;  %v3239_v16 = vadd.f32 %v15403_v50, %v11225_v9  ;;  %v15410_v50 = vld [vmem:[#allocation190_spill] sm:$0xff] }
 0x59a   : > { %15397 = vst [vmem:[#allocation176_spill] sm:$0xff] %v12097_v58  ;;  %15398 = vst [vmem:[#allocation177_spill] sm:$0xff] %v12099_v29  ;;  %5286 = vmatprep.mubr.bf16.mxu1 %v14565_v52  ;;  %5639 = vmatprep.mubr.bf16.mxu0 %v14565_v52  ;;  %v15406_v58 = vld [vmem:[#allocation188_spill] sm:$0xff]  ;;  %v15407_v29 = vld [vmem:[#allocation189_spill] sm:$0xff] }
 0x59b   : > { %v2888_v34 = vadd.f32 %v15406_v58, %v11219_v63  ;;  %v3241_v17 = vadd.f32 %v15407_v29, %v11221_v44 }
 0x59c   : > { %v4632_v61 = vpop.f32.mrb[188].mxu1  ;;  %v4985_v60 = vpop.f32.mrb[188].mxu0 }
 0x59d   : > { %v12115_v15 = vmul.f32 %v4632_v61, %v2884_v49  ;;  %v12117_v46 = vmul.f32 %v4985_v60, %v3237_v24  ;;  %v4634_v6 = vpop.f32.mrb[189].mxu1  ;;  %v4987_v51 = vpop.f32.mrb[189].mxu0  ;;  %v2890_v49 = vadd.f32 %v15410_v50, %v11223_v32  ;;  %v15411_v24 = vld [vmem:[#allocation191_spill] sm:$0xff] }
 0x59e   : > { %v12123_v3 = vmul.f32 %v4634_v6, %v2886_v30  ;;  %v12125_v2 = vmul.f32 %v4987_v51, %v3239_v16  ;;  %v4636_v31 = vpop.f32.mrb[190].mxu1  ;;  %v4989_v39 = vpop.f32.mrb[190].mxu0  ;;  %v3243_v61 = vadd.f32 %v15411_v24, %v11225_v9  ;;  %v15416_v30 = vld [vmem:[#allocation5_spill] sm:$0xff]  ;;  %v15417_v16 = vld [vmem:[#allocation192_spill] sm:$0xff]  ;;  %v15420_v50 = vld [vmem:[#allocation195_spill] sm:$0xff] }
 0x59f   : > { %15404 = vst [vmem:[#allocation178_spill] sm:$0xff] %v12115_v15  ;;  %15405 = vst [vmem:[#allocation179_spill] sm:$0xff] %v12117_v46  ;;  %v12131_v60 = vmul.f32 %v4636_v31, %v2888_v34  ;;  %v12133_v46 = vmul.f32 %v4989_v39, %v3241_v17  ;;  %v4638_v58 = vpop.f32.mrb[191].mxu1  ;;  %v4991_v15 = vpop.f32.mrb[191].mxu0  ;;  %v2894_v39 = vadd.f32 %v15417_v16, %v11219_v63  ;;  %v15418_v6 = vld [vmem:[#allocation193_spill] sm:$0xff] }
 0x5a0   : > { %15408 = vst [vmem:[#allocation180_spill] sm:$0xff] %v12123_v3  ;;  %15409 = vst [vmem:[#allocation181_spill] sm:$0xff] %v12125_v2  ;;  %v12135_v8 = vmul.f32 %v4638_v58, %v2890_v49  ;;  %v12137_v29 = vmul.f32 %v4991_v15, %v3243_v61  ;;  %v3247_v51 = vadd.f32 %v15418_v6, %v11221_v44  ;;  %v15419_v15 = vld [vmem:[#allocation194_spill] sm:$0xff] }
 0x5a1   : > { %15412 = vst [vmem:[#allocation182_spill] sm:$0xff] %v12131_v60  ;;  %15413 = vst [vmem:[#allocation183_spill] sm:$0xff] %v12133_v46  ;;  %7952 = vmatmul.mubr.msk.bf16.gmra.mrb[40].mxu1 %vm4271_vm3, %v15416_v30  ;;  %7984 = vmatmul.mubr.msk.bf16.gmra.mrb[40].mxu0 %vm4271_vm3, %v15416_v30  ;;  %v2896_v31 = vadd.f32 %v15419_v15, %v11223_v32  ;;  %v3249_v49 = vadd.f32 %v15420_v50, %v11225_v9  ;;  %v15427_v50 = vld [vmem:[#allocation198_spill] sm:$0xff] }
 0x5a2   : > { %15414 = vst [vmem:[#allocation2_spill] sm:$0xff] %v12135_v8  ;;  %15415 = vst [vmem:[#allocation184_spill] sm:$0xff] %v12137_v29  ;;  %5296 = vmatprep.mubr.bf16.mxu1 %v14565_v52  ;;  %5649 = vmatprep.mubr.bf16.mxu0 %v14565_v52  ;;  %v15423_v8 = vld [vmem:[#allocation196_spill] sm:$0xff]  ;;  %v15424_v29 = vld [vmem:[#allocation197_spill] sm:$0xff] }
 0x5a3   : > { %v2898_v16 = vadd.f32 %v15423_v8, %v11219_v63  ;;  %v3251_v6 = vadd.f32 %v15424_v29, %v11221_v44 }
 0x5a4   : > { %v4642_v34 = vpop.f32.mrb[192].mxu1  ;;  %v4995_v17 = vpop.f32.mrb[192].mxu0 }
 0x5a5   : > { %v12153_v24 = vmul.f32 %v4642_v34, %v2894_v39  ;;  %v12155_v61 = vmul.f32 %v4995_v17, %v3247_v51  ;;  %v4644_v58 = vpop.f32.mrb[193].mxu1  ;;  %v4997_v30 = vpop.f32.mrb[193].mxu0  ;;  %v2900_v39 = vadd.f32 %v15427_v50, %v11223_v32  ;;  %v15428_v51 = vld [vmem:[#allocation199_spill] sm:$0xff] }
 0x5a6   : > { %v12161_v46 = vmul.f32 %v4644_v58, %v2896_v31  ;;  %v12163_v60 = vmul.f32 %v4997_v30, %v3249_v49  ;;  %v4646_v15 = vpop.f32.mrb[194].mxu1  ;;  %v4999_v2 = vpop.f32.mrb[194].mxu0  ;;  %v3253_v34 = vadd.f32 %v15428_v51, %v11225_v9  ;;  %v15433_v31 = vld [vmem:[#allocation4_spill] sm:$0xff]  ;;  %v15435_v58 = vld [vmem:[#allocation201_spill] sm:$0xff]  ;;  %v15437_v50 = vld [vmem:[#allocation203_spill] sm:$0xff] }
 0x5a7   : > { %15421 = vst [vmem:[#allocation185_spill] sm:$0xff] %v12153_v24  ;;  %15422 = vst [vmem:[#allocation186_spill] sm:$0xff] %v12155_v61  ;;  %v12169_v17 = vmul.f32 %v4646_v15, %v2898_v16  ;;  %v12171_v61 = vmul.f32 %v4999_v2, %v3251_v6  ;;  %v4648_v8 = vpop.f32.mrb[195].mxu1  ;;  %v5001_v24 = vpop.f32.mrb[195].mxu0  ;;  %v15434_v49 = vld [vmem:[#allocation200_spill] sm:$0xff]  ;;  %v3257_v30 = vadd.f32 %v15435_v58, %v11221_v44 }
 0x5a8   : > { %15425 = vst [vmem:[#allocation187_spill] sm:$0xff] %v12161_v46  ;;  %15426 = vst [vmem:[#allocation188_spill] sm:$0xff] %v12163_v60  ;;  %v12173_v3 = vmul.f32 %v4648_v8, %v2900_v39  ;;  %v12175_v29 = vmul.f32 %v5001_v24, %v3253_v34  ;;  %v2904_v2 = vadd.f32 %v15434_v49, %v11219_v63  ;;  %v15436_v24 = vld [vmem:[#allocation202_spill] sm:$0xff] }
 0x5a9   : > { %15429 = vst [vmem:[#allocation189_spill] sm:$0xff] %v12169_v17  ;;  %15430 = vst [vmem:[#allocation190_spill] sm:$0xff] %v12171_v61  ;;  %7953 = vmatmul.mubr.msk.bf16.gmra.mrb[44].mxu1 %vm4271_vm3, %v15433_v31  ;;  %7985 = vmatmul.mubr.msk.bf16.gmra.mrb[44].mxu0 %vm4271_vm3, %v15433_v31  ;;  %v2906_v15 = vadd.f32 %v15436_v24, %v11223_v32  ;;  %v3259_v39 = vadd.f32 %v15437_v50, %v11225_v9  ;;  %v15444_v50 = vld [vmem:[#allocation206_spill] sm:$0xff] }
 0x5aa   : > { %15431 = vst [vmem:[#allocation191_spill] sm:$0xff] %v12173_v3  ;;  %15432 = vst [vmem:[#allocation5_spill] sm:$0xff] %v12175_v29  ;;  %5306 = vmatprep.mubr.bf16.mxu1 %v14565_v52  ;;  %5659 = vmatprep.mubr.bf16.mxu0 %v14565_v52  ;;  %v15440_v3 = vld [vmem:[#allocation204_spill] sm:$0xff]  ;;  %v15441_v29 = vld [vmem:[#allocation205_spill] sm:$0xff] }
 0x5ab   : > { %v2908_v49 = vadd.f32 %v15440_v3, %v11219_v63  ;;  %v3261_v58 = vadd.f32 %v15441_v29, %v11221_v44 }
 0x5ac   : > { %v4652_v16 = vpop.f32.mrb[196].mxu1  ;;  %v5005_v6 = vpop.f32.mrb[196].mxu0 }
 0x5ad   : > { %v12191_v51 = vmul.f32 %v4652_v16, %v2904_v2  ;;  %v12193_v34 = vmul.f32 %v5005_v6, %v3257_v30  ;;  %v4654_v8 = vpop.f32.mrb[197].mxu1  ;;  %v5007_v31 = vpop.f32.mrb[197].mxu0  ;;  %v2910_v2 = vadd.f32 %v15444_v50, %v11223_v32  ;;  %v15445_v30 = vld [vmem:[#allocation207_spill] sm:$0xff] }
 0x5ae   : > { %v12199_v61 = vmul.f32 %v4654_v8, %v2906_v15  ;;  %v12201_v17 = vmul.f32 %v5007_v31, %v3259_v39  ;;  %v4656_v24 = vpop.f32.mrb[198].mxu1  ;;  %v5009_v60 = vpop.f32.mrb[198].mxu0  ;;  %v3263_v16 = vadd.f32 %v15445_v30, %v11225_v9  ;;  %v15450_v15 = vld [vmem:[#allocation7_spill] sm:$0xff]  ;;  %v15451_v39 = vld [vmem:[#allocation208_spill] sm:$0xff]  ;;  %v15452_v8 = vld [vmem:[#allocation209_spill] sm:$0xff] }
 0x5af   : > { %15438 = vst [vmem:[#allocation192_spill] sm:$0xff] %v12191_v51  ;;  %15439 = vst [vmem:[#allocation193_spill] sm:$0xff] %v12193_v34  ;;  %v12207_v6 = vmul.f32 %v4656_v24, %v2908_v49  ;;  %v12209_v34 = vmul.f32 %v5009_v60, %v3261_v58  ;;  %v4658_v3 = vpop.f32.mrb[199].mxu1  ;;  %v5011_v51 = vpop.f32.mrb[199].mxu0  ;;  %v2914_v60 = vadd.f32 %v15451_v39, %v11219_v63  ;;  %v15454_v50 = vld [vmem:[#allocation211_spill] sm:$0xff] }
 0x5b0   : > { %15442 = vst [vmem:[#allocation194_spill] sm:$0xff] %v12199_v61  ;;  %15443 = vst [vmem:[#allocation195_spill] sm:$0xff] %v12201_v17  ;;  %v12211_v46 = vmul.f32 %v4658_v3, %v2910_v2  ;;  %v12213_v29 = vmul.f32 %v5011_v51, %v3263_v16  ;;  %v3267_v31 = vadd.f32 %v15452_v8, %v11221_v44  ;;  %v15453_v51 = vld [vmem:[#allocation210_spill] sm:$0xff] }
 0x5b1   : > { %15446 = vst [vmem:[#allocation196_spill] sm:$0xff] %v12207_v6  ;;  %15447 = vst [vmem:[#allocation197_spill] sm:$0xff] %v12209_v34  ;;  %7954 = vmatmul.mubr.msk.bf16.gmra.mrb[48].mxu1 %vm4271_vm3, %v15450_v15  ;;  %7986 = vmatmul.mubr.msk.bf16.gmra.mrb[48].mxu0 %vm4271_vm3, %v15450_v15  ;;  %v2916_v24 = vadd.f32 %v15453_v51, %v11223_v32  ;;  %v3269_v2 = vadd.f32 %v15454_v50, %v11225_v9  ;;  %v15461_v50 = vld [vmem:[#allocation214_spill] sm:$0xff] }
 0x5b2   : > { %15448 = vst [vmem:[#allocation198_spill] sm:$0xff] %v12211_v46  ;;  %15449 = vst [vmem:[#allocation199_spill] sm:$0xff] %v12213_v29  ;;  %5316 = vmatprep.mubr.bf16.mxu1 %v14565_v52  ;;  %5669 = vmatprep.mubr.bf16.mxu0 %v14565_v52  ;;  %v15457_v46 = vld [vmem:[#allocation212_spill] sm:$0xff]  ;;  %v15458_v29 = vld [vmem:[#allocation213_spill] sm:$0xff] }
 0x5b3   : > { %v2918_v39 = vadd.f32 %v15457_v46, %v11219_v63  ;;  %v3271_v8 = vadd.f32 %v15458_v29, %v11221_v44 }
 0x5b4   : > { %v4662_v49 = vpop.f32.mrb[200].mxu1  ;;  %v5015_v58 = vpop.f32.mrb[200].mxu0 }
 0x5b5   : > { %v12229_v30 = vmul.f32 %v4662_v49, %v2914_v60  ;;  %v12231_v16 = vmul.f32 %v5015_v58, %v3267_v31  ;;  %v4664_v3 = vpop.f32.mrb[201].mxu1  ;;  %v5017_v15 = vpop.f32.mrb[201].mxu0  ;;  %v2920_v60 = vadd.f32 %v15461_v50, %v11223_v32  ;;  %v15462_v31 = vld [vmem:[#allocation215_spill] sm:$0xff] }
 0x5b6   : > { %v12237_v34 = vmul.f32 %v4664_v3, %v2916_v24  ;;  %v12239_v6 = vmul.f32 %v5017_v15, %v3269_v2  ;;  %v4666_v51 = vpop.f32.mrb[202].mxu1  ;;  %v5019_v17 = vpop.f32.mrb[202].mxu0  ;;  %v3273_v49 = vadd.f32 %v15462_v31, %v11225_v9  ;;  %v15467_v24 = vld [vmem:[#allocation6_spill] sm:$0xff]  ;;  %v15468_v2 = vld [vmem:[#allocation216_spill] sm:$0xff]  ;;  %v15469_v3 = vld [vmem:[#allocation217_spill] sm:$0xff] }
 0x5b7   : > { %15455 = vst [vmem:[#allocation4_spill] sm:$0xff] %v12229_v30  ;;  %15456 = vst [vmem:[#allocation200_spill] sm:$0xff] %v12231_v16  ;;  %v12245_v58 = vmul.f32 %v4666_v51, %v2918_v39  ;;  %v12247_v16 = vmul.f32 %v5019_v17, %v3271_v8  ;;  %v4668_v46 = vpop.f32.mrb[203].mxu1  ;;  %v5021_v30 = vpop.f32.mrb[203].mxu0  ;;  %v2924_v17 = vadd.f32 %v15468_v2, %v11219_v63  ;;  %v15471_v50 = vld [vmem:[#allocation219_spill] sm:$0xff] }
 0x5b8   : > { %15459 = vst [vmem:[#allocation201_spill] sm:$0xff] %v12237_v34  ;;  %15460 = vst [vmem:[#allocation202_spill] sm:$0xff] %v12239_v6  ;;  %v12249_v61 = vmul.f32 %v4668_v46, %v2920_v60  ;;  %v12251_v29 = vmul.f32 %v5021_v30, %v3273_v49  ;;  %v3277_v15 = vadd.f32 %v15469_v3, %v11221_v44  ;;  %v15470_v30 = vld [vmem:[#allocation218_spill] sm:$0xff] }
 0x5b9   : > { %15463 = vst [vmem:[#allocation203_spill] sm:$0xff] %v12245_v58  ;;  %15464 = vst [vmem:[#allocation204_spill] sm:$0xff] %v12247_v16  ;;  %7955 = vmatmul.mubr.msk.bf16.gmra.mrb[52].mxu1 %vm4271_vm3, %v15467_v24  ;;  %7987 = vmatmul.mubr.msk.bf16.gmra.mrb[52].mxu0 %vm4271_vm3, %v15467_v24  ;;  %v2926_v51 = vadd.f32 %v15470_v30, %v11223_v32  ;;  %v3279_v60 = vadd.f32 %v15471_v50, %v11225_v9  ;;  %v15478_v50 = vld [vmem:[#allocation222_spill] sm:$0xff] }
 0x5ba   : > { %15465 = vst [vmem:[#allocation205_spill] sm:$0xff] %v12249_v61  ;;  %15466 = vst [vmem:[#allocation206_spill] sm:$0xff] %v12251_v29  ;;  %5326 = vmatprep.mubr.bf16.mxu1 %v14565_v52  ;;  %5679 = vmatprep.mubr.bf16.mxu0 %v14565_v52  ;;  %v15474_v61 = vld [vmem:[#allocation220_spill] sm:$0xff]  ;;  %v15475_v29 = vld [vmem:[#allocation221_spill] sm:$0xff] }
 0x5bb   : > { %v2928_v2 = vadd.f32 %v15474_v61, %v11219_v63  ;;  %v3281_v3 = vadd.f32 %v15475_v29, %v11221_v44 }
 0x5bc   : > { %v4672_v39 = vpop.f32.mrb[204].mxu1  ;;  %v5025_v8 = vpop.f32.mrb[204].mxu0 }
 0x5bd   : > { %v12267_v31 = vmul.f32 %v4672_v39, %v2924_v17  ;;  %v12269_v49 = vmul.f32 %v5025_v8, %v3277_v15  ;;  %v4674_v46 = vpop.f32.mrb[205].mxu1  ;;  %v5027_v24 = vpop.f32.mrb[205].mxu0  ;;  %v2930_v17 = vadd.f32 %v15478_v50, %v11223_v32  ;;  %v15479_v15 = vld [vmem:[#allocation223_spill] sm:$0xff] }
 0x5be   : > { %v12275_v16 = vmul.f32 %v4674_v46, %v2926_v51  ;;  %v12277_v58 = vmul.f32 %v5027_v24, %v3279_v60  ;;  %v4676_v30 = vpop.f32.mrb[206].mxu1  ;;  %v5029_v6 = vpop.f32.mrb[206].mxu0  ;;  %v3283_v39 = vadd.f32 %v15479_v15, %v11225_v9  ;;  %v15484_v51 = vld [vmem:[#allocation9_spill] sm:$0xff]  ;;  %v15485_v60 = vld [vmem:[#allocation224_spill] sm:$0xff]  ;;  %v15488_v50 = vld [vmem:[#allocation227_spill] sm:$0xff] }
 0x5bf   : > { %15472 = vst [vmem:[#allocation207_spill] sm:$0xff] %v12267_v31  ;;  %15473 = vst [vmem:[#allocation7_spill] sm:$0xff] %v12269_v49  ;;  %v12283_v8 = vmul.f32 %v4676_v30, %v2928_v2  ;;  %v12285_v49 = vmul.f32 %v5029_v6, %v3281_v3  ;;  %v4678_v61 = vpop.f32.mrb[207].mxu1  ;;  %v5031_v31 = vpop.f32.mrb[207].mxu0  ;;  %v2934_v6 = vadd.f32 %v15485_v60, %v11219_v63  ;;  %v15486_v46 = vld [vmem:[#allocation225_spill] sm:$0xff] }
 0x5c0   : > { %15476 = vst [vmem:[#allocation208_spill] sm:$0xff] %v12275_v16  ;;  %15477 = vst [vmem:[#allocation209_spill] sm:$0xff] %v12277_v58  ;;  %v12287_v34 = vmul.f32 %v4678_v61, %v2930_v17  ;;  %v12289_v29 = vmul.f32 %v5031_v31, %v3283_v39  ;;  %v3287_v24 = vadd.f32 %v15486_v46, %v11221_v44  ;;  %v15487_v31 = vld [vmem:[#allocation226_spill] sm:$0xff] }
 0x5c1   : > { %15480 = vst [vmem:[#allocation210_spill] sm:$0xff] %v12283_v8  ;;  %15481 = vst [vmem:[#allocation211_spill] sm:$0xff] %v12285_v49  ;;  %7956 = vmatmul.mubr.msk.bf16.gmra.mrb[56].mxu1 %vm4271_vm3, %v15484_v51  ;;  %7988 = vmatmul.mubr.msk.bf16.gmra.mrb[56].mxu0 %vm4271_vm3, %v15484_v51  ;;  %v2936_v30 = vadd.f32 %v15487_v31, %v11223_v32  ;;  %v3289_v17 = vadd.f32 %v15488_v50, %v11225_v9  ;;  %v15495_v50 = vld [vmem:[#allocation230_spill] sm:$0xff] }
 0x5c2   : > { %15482 = vst [vmem:[#allocation212_spill] sm:$0xff] %v12287_v34  ;;  %15483 = vst [vmem:[#allocation213_spill] sm:$0xff] %v12289_v29  ;;  %5336 = vmatprep.mubr.bf16.mxu1 %v14565_v52  ;;  %5689 = vmatprep.mubr.bf16.mxu0 %v14565_v52  ;;  %v15491_v34 = vld [vmem:[#allocation228_spill] sm:$0xff]  ;;  %v15492_v29 = vld [vmem:[#allocation229_spill] sm:$0xff] }
 0x5c3   : > { %v2938_v60 = vadd.f32 %v15491_v34, %v11219_v63  ;;  %v3291_v46 = vadd.f32 %v15492_v29, %v11221_v44 }
 0x5c4   : > { %v4682_v2 = vpop.f32.mrb[208].mxu1  ;;  %v5035_v3 = vpop.f32.mrb[208].mxu0 }
 0x5c5   : > { %v12305_v15 = vmul.f32 %v4682_v2, %v2934_v6  ;;  %v12307_v39 = vmul.f32 %v5035_v3, %v3287_v24  ;;  %v4684_v61 = vpop.f32.mrb[209].mxu1  ;;  %v5037_v51 = vpop.f32.mrb[209].mxu0  ;;  %v2940_v6 = vadd.f32 %v15495_v50, %v11223_v32  ;;  %v15496_v24 = vld [vmem:[#allocation231_spill] sm:$0xff] }
 0x5c6   : > { %v12313_v49 = vmul.f32 %v4684_v61, %v2936_v30  ;;  %v12315_v8 = vmul.f32 %v5037_v51, %v3289_v17  ;;  %v4686_v31 = vpop.f32.mrb[210].mxu1  ;;  %v5039_v58 = vpop.f32.mrb[210].mxu0  ;;  %v3293_v2 = vadd.f32 %v15496_v24, %v11225_v9  ;;  %v15501_v30 = vld [vmem:[#allocation8_spill] sm:$0xff]  ;;  %v15503_v61 = vld [vmem:[#allocation233_spill] sm:$0xff]  ;;  %v15505_v50 = vld [vmem:[#allocation235_spill] sm:$0xff] }
 0x5c7   : > { %15489 = vst [vmem:[#allocation214_spill] sm:$0xff] %v12305_v15  ;;  %15490 = vst [vmem:[#allocation215_spill] sm:$0xff] %v12307_v39  ;;  %v12321_v3 = vmul.f32 %v4686_v31, %v2938_v60  ;;  %v12323_v39 = vmul.f32 %v5039_v58, %v3291_v46  ;;  %v4688_v34 = vpop.f32.mrb[211].mxu1  ;;  %v5041_v15 = vpop.f32.mrb[211].mxu0  ;;  %v15502_v17 = vld [vmem:[#allocation232_spill] sm:$0xff]  ;;  %v3297_v51 = vadd.f32 %v15503_v61, %v11221_v44 }
 0x5c8   : > { %15493 = vst [vmem:[#allocation6_spill] sm:$0xff] %v12313_v49  ;;  %15494 = vst [vmem:[#allocation216_spill] sm:$0xff] %v12315_v8  ;;  %v12325_v16 = vmul.f32 %v4688_v34, %v2940_v6  ;;  %v12327_v29 = vmul.f32 %v5041_v15, %v3293_v2  ;;  %v2944_v58 = vadd.f32 %v15502_v17, %v11219_v63  ;;  %v15504_v15 = vld [vmem:[#allocation234_spill] sm:$0xff] }
 0x5c9   : > { %15497 = vst [vmem:[#allocation217_spill] sm:$0xff] %v12321_v3  ;;  %15498 = vst [vmem:[#allocation218_spill] sm:$0xff] %v12323_v39  ;;  %7957 = vmatmul.mubr.msk.bf16.gmra.mrb[60].mxu1 %vm4271_vm3, %v15501_v30  ;;  %7989 = vmatmul.mubr.msk.bf16.gmra.mrb[60].mxu0 %vm4271_vm3, %v15501_v30  ;;  %v2946_v31 = vadd.f32 %v15504_v15, %v11223_v32  ;;  %v3299_v6 = vadd.f32 %v15505_v50, %v11225_v9  ;;  %v15512_v50 = vld [vmem:[#allocation238_spill] sm:$0xff] }
 0x5ca   : > { %15499 = vst [vmem:[#allocation219_spill] sm:$0xff] %v12325_v16  ;;  %15500 = vst [vmem:[#allocation220_spill] sm:$0xff] %v12327_v29  ;;  %5346 = vmatprep.mubr.bf16.mxu1 %v14565_v52  ;;  %5699 = vmatprep.mubr.bf16.mxu0 %v14565_v52  ;;  %v15508_v16 = vld [vmem:[#allocation236_spill] sm:$0xff]  ;;  %v15509_v29 = vld [vmem:[#allocation237_spill] sm:$0xff] }
 0x5cb   : > { %v2948_v17 = vadd.f32 %v15508_v16, %v11219_v63  ;;  %v3301_v61 = vadd.f32 %v15509_v29, %v11221_v44 }
 0x5cc   : > { %v4692_v60 = vpop.f32.mrb[212].mxu1  ;;  %v5045_v46 = vpop.f32.mrb[212].mxu0 }
 0x5cd   : > { %v12343_v24 = vmul.f32 %v4692_v60, %v2944_v58  ;;  %v12345_v2 = vmul.f32 %v5045_v46, %v3297_v51  ;;  %v4694_v34 = vpop.f32.mrb[213].mxu1  ;;  %v5047_v30 = vpop.f32.mrb[213].mxu0  ;;  %v2950_v58 = vadd.f32 %v15512_v50, %v11223_v32  ;;  %v15513_v51 = vld [vmem:[#allocation239_spill] sm:$0xff] }
 0x5ce   : > { %v12351_v39 = vmul.f32 %v4694_v34, %v2946_v31  ;;  %v12353_v3 = vmul.f32 %v5047_v30, %v3299_v6  ;;  %v4696_v15 = vpop.f32.mrb[214].mxu1  ;;  %v5049_v8 = vpop.f32.mrb[214].mxu0  ;;  %v3303_v60 = vadd.f32 %v15513_v51, %v11225_v9  ;;  %v15518_v31 = vld [vmem:[#allocation11_spill] sm:$0xff]  ;;  %v15519_v6 = vld [vmem:[#allocation240_spill] sm:$0xff]  ;;  %v15520_v34 = vld [vmem:[#allocation241_spill] sm:$0xff] }
 0x5cf   : > { %15506 = vst [vmem:[#allocation221_spill] sm:$0xff] %v12343_v24  ;;  %15507 = vst [vmem:[#allocation222_spill] sm:$0xff] %v12345_v2  ;;  %v12359_v46 = vmul.f32 %v4696_v15, %v2948_v17  ;;  %v12361_v2 = vmul.f32 %v5049_v8, %v3301_v61  ;;  %v4698_v16 = vpop.f32.mrb[215].mxu1  ;;  %v5051_v24 = vpop.f32.mrb[215].mxu0  ;;  %v2954_v8 = vadd.f32 %v15519_v6, %v11219_v63  ;;  %v15522_v50 = vld [vmem:[#allocation243_spill] sm:$0xff] }
 0x5d0   : > { %15510 = vst [vmem:[#allocation223_spill] sm:$0xff] %v12351_v39  ;;  %15511 = vst [vmem:[#allocation9_spill] sm:$0xff] %v12353_v3  ;;  %v12363_v49 = vmul.f32 %v4698_v16, %v2950_v58  ;;  %v12365_v29 = vmul.f32 %v5051_v24, %v3303_v60  ;;  %v3307_v30 = vadd.f32 %v15520_v34, %v11221_v44  ;;  %v15521_v24 = vld [vmem:[#allocation242_spill] sm:$0xff] }
 0x5d1   : > { %15514 = vst [vmem:[#allocation224_spill] sm:$0xff] %v12359_v46  ;;  %15515 = vst [vmem:[#allocation225_spill] sm:$0xff] %v12361_v2  ;;  %7958 = vmatmul.mubr.msk.bf16.gmra.mrb[64].mxu1 %vm4271_vm3, %v15518_v31  ;;  %7990 = vmatmul.mubr.msk.bf16.gmra.mrb[64].mxu0 %vm4271_vm3, %v15518_v31  ;;  %v2956_v15 = vadd.f32 %v15521_v24, %v11223_v32  ;;  %v3309_v58 = vadd.f32 %v15522_v50, %v11225_v9  ;;  %v15529_v50 = vld [vmem:[#allocation246_spill] sm:$0xff] }
 0x5d2   : > { %15516 = vst [vmem:[#allocation226_spill] sm:$0xff] %v12363_v49  ;;  %15517 = vst [vmem:[#allocation227_spill] sm:$0xff] %v12365_v29  ;;  %5356 = vmatprep.mubr.bf16.mxu1 %v14565_v52  ;;  %5709 = vmatprep.mubr.bf16.mxu0 %v14565_v52  ;;  %v15525_v49 = vld [vmem:[#allocation244_spill] sm:$0xff]  ;;  %v15526_v29 = vld [vmem:[#allocation245_spill] sm:$0xff] }
 0x5d3   : > { %v2958_v6 = vadd.f32 %v15525_v49, %v11219_v63  ;;  %v3311_v34 = vadd.f32 %v15526_v29, %v11221_v44 }
 0x5d4   : > { %v4702_v17 = vpop.f32.mrb[216].mxu1  ;;  %v5055_v61 = vpop.f32.mrb[216].mxu0 }
 0x5d5   : > { %v12381_v51 = vmul.f32 %v4702_v17, %v2954_v8  ;;  %v12383_v60 = vmul.f32 %v5055_v61, %v3307_v30  ;;  %v4704_v16 = vpop.f32.mrb[217].mxu1  ;;  %v5057_v31 = vpop.f32.mrb[217].mxu0  ;;  %v2960_v8 = vadd.f32 %v15529_v50, %v11223_v32  ;;  %v15530_v30 = vld [vmem:[#allocation247_spill] sm:$0xff] }
 0x5d6   : > { %v12389_v2 = vmul.f32 %v4704_v16, %v2956_v15  ;;  %v12391_v46 = vmul.f32 %v5057_v31, %v3309_v58  ;;  %v4706_v24 = vpop.f32.mrb[218].mxu1  ;;  %v5059_v3 = vpop.f32.mrb[218].mxu0  ;;  %v3313_v17 = vadd.f32 %v15530_v30, %v11225_v9  ;;  %v15535_v15 = vld [vmem:[#allocation10_spill] sm:$0xff]  ;;  %v15536_v58 = vld [vmem:[#allocation248_spill] sm:$0xff]  ;;  %v15537_v16 = vld [vmem:[#allocation249_spill] sm:$0xff] }
 0x5d7   : > { %15523 = vst [vmem:[#allocation228_spill] sm:$0xff] %v12381_v51  ;;  %15524 = vst [vmem:[#allocation229_spill] sm:$0xff] %v12383_v60  ;;  %v12397_v61 = vmul.f32 %v4706_v24, %v2958_v6  ;;  %v12399_v60 = vmul.f32 %v5059_v3, %v3311_v34  ;;  %v4708_v49 = vpop.f32.mrb[219].mxu1  ;;  %v5061_v51 = vpop.f32.mrb[219].mxu0  ;;  %v2964_v3 = vadd.f32 %v15536_v58, %v11219_v63  ;;  %v15538_v6 = vld [vmem:[#allocation499_spill] sm:$0xff] }
 0x5d8   : > { %15527 = vst [vmem:[#allocation230_spill] sm:$0xff] %v12389_v2  ;;  %15528 = vst [vmem:[#allocation231_spill] sm:$0xff] %v12391_v46  ;;  %v12401_v39 = vmul.f32 %v4708_v49, %v2960_v8  ;;  %v12403_v29 = vmul.f32 %v5061_v51, %v3313_v17  ;;  %v3317_v31 = vadd.f32 %v15537_v16, %v11221_v44  ;;  %v2341_v34 = vsub.s32 4, %v15538_v6  ;;  %v15539_v8 = vld [vmem:[#allocation250_spill] sm:$0xff]  ;;  %v15540_v17 = vld [vmem:[#allocation251_spill] sm:$0xff] }
 0x5d9   : > { %15531 = vst [vmem:[#allocation8_spill] sm:$0xff] %v12397_v61  ;;  %15532 = vst [vmem:[#allocation232_spill] sm:$0xff] %v12399_v60  ;;  %7959 = vmatmul.mubr.msk.bf16.gmra.mrb[68].mxu1 %vm4271_vm3, %v15535_v15  ;;  %7991 = vmatmul.mubr.msk.bf16.gmra.mrb[68].mxu0 %vm4271_vm3, %v15535_v15  ;;  %v2349_v51 = vsub.s32 6, %v15538_v6  ;;  %v2966_v30 = vadd.f32 %v15539_v8, %v11223_v32  ;;  %v3319_v49 = vadd.f32 %v15540_v17, %v11225_v9  ;;  %v15543_v60 = vld [vmem:[#allocation252_spill] sm:$0xff]  ;;  %v15544_v46 = vld [vmem:[#allocation253_spill] sm:$0xff] }
 0x5da   : > { %15533 = vst [vmem:[#allocation233_spill] sm:$0xff] %v12401_v39  ;;  %15534 = vst [vmem:[#allocation234_spill] sm:$0xff] %v12403_v29  ;;  %5366 = vmatprep.mubr.bf16.mxu1 %v14565_v52  ;;  %5719 = vmatprep.mubr.bf16.mxu0 %v14565_v52  ;;  %v2345_v15 = vsub.s32 5, %v15538_v6  ;;  %v2353_v39 = vsub.s32 7, %v15538_v6  ;;  %v2968_v2 = vadd.f32 %v15543_v60, %v11219_v63  ;;  %v15547_v6 = vld [vmem:[#allocation254_spill] sm:$0xff] }
 0x5db   : > { %v3321_v10 = vadd.f32 %v15544_v46, %v11221_v44  ;;  %v8531_v44 = vld [vmem:[%s14435_s9] sm:$0xff] }
 0x5dc   : > { %v4712_v24 = vpop.f32.mrb[220].mxu1  ;;  %v5065_v50 = vpop.f32.mrb[220].mxu0  ;;  %v12446_v46 = vrot.slane %v8531_v44, %v2341_v34  ;;  %v15555_v34 = vld [vmem:[#allocation257_spill] sm:$0xff] }
 0x5dd   : > { %v12423_v58 = vmul.f32 %v4712_v24, %v2964_v3  ;;  %v12425_v29 = vmul.f32 %v5065_v50, %v3317_v31  ;;  %v4714_v16 = vpop.f32.mrb[221].mxu1  ;;  %v5067_v61 = vpop.f32.mrb[221].mxu0  ;;  %v2970_v3 = vadd.f32 %v15547_v6, %v11223_v32  ;;  %v15548_v31 = vld [vmem:[#allocation255_spill] sm:$0xff] }
 0x5de   : > { %v12431_v8 = vmul.f32 %v4714_v16, %v2966_v30  ;;  %v12433_v40 = vmul.f32 %v5067_v61, %v3319_v49  ;;  %v4716_v17 = vpop.f32.mrb[222].mxu1  ;;  %v5069_v25 = vpop.f32.mrb[222].mxu0  ;;  %v3323_v24 = vadd.f32 %v15548_v31, %v11225_v9  ;;  %v12448_v61 = vrot.slane %v8531_v44, %v2349_v51  ;;  %v15557_v6 = vld [vmem:[#allocation259_spill] sm:$0xff] }
 0x5df   : > { %15541 = vst [vmem:[#allocation235_spill] sm:$0xff] %v12423_v58  ;;  %15542 = vst [vmem:[#allocation236_spill] sm:$0xff] %v12425_v29  ;;  %v12439_v50 = vmul.f32 %v4716_v17, %v2968_v2  ;;  %v12441_v29 = vmul.f32 %v5069_v25, %v3321_v10  ;;  %v4718_v63 = vpop.f32.mrb[223].mxu1  ;;  %v5071_v60 = vpop.f32.mrb[223].mxu0  ;;  %v12454_v49 = vrot.slane %v8531_v44, %v2345_v15  ;;  %v15553_v25 = vld [vmem:[#allocation13_spill] sm:$0xff]  ;;  %v15554_v10 = vld [vmem:[#allocation256_spill] sm:$0xff] }
 0x5e0   : > { %15545 = vst [vmem:[#allocation237_spill] sm:$0xff] %v12431_v8  ;;  %15546 = vst [vmem:[#allocation238_spill] sm:$0xff] %v12433_v40  ;;  %v12450_v30 = vmul.f32 %v4718_v63, %v2970_v3  ;;  %v12452_v32 = vmul.f32 %v5071_v60, %v3323_v24  ;;  %v12456_v9 = vrot.slane %v8531_v44, %v2353_v39  ;;  %v15556_v39 = vld [vmem:[#allocation258_spill] sm:$0xff]  ;;  %v15558_v44 = vld [vmem:[#allocation260_spill] sm:$0xff] }
 0x5e1   : > { %15549 = vst [vmem:[#allocation239_spill] sm:$0xff] %v12439_v50  ;;  %15550 = vst [vmem:[#allocation11_spill] sm:$0xff] %v12441_v29  ;;  %7960 = vmatmul.mubr.msk.bf16.gmra.mrb[72].mxu1 %vm4271_vm3, %v15553_v25  ;;  %7992 = vmatmul.mubr.msk.bf16.gmra.mrb[72].mxu0 %vm4271_vm3, %v15553_v25  ;;  %v3360_v2 = vadd.f32 %v15554_v10, %v12446_v46  ;;  %v3713_v51 = vadd.f32 %v15555_v34, %v12448_v61  ;;  %v15559_v10 = vld [vmem:[#allocation261_spill] sm:$0xff]  ;;  %v15560_v8 = vld [vmem:[#allocation262_spill] sm:$0xff] }
 0x5e2   : > { %15551 = vst [vmem:[#allocation240_spill] sm:$0xff] %v12450_v30  ;;  %15552 = vst [vmem:[#allocation241_spill] sm:$0xff] %v12452_v32  ;;  %5376 = vmatprep.mubr.bf16.mxu1 %v14565_v52  ;;  %5729 = vmatprep.mubr.bf16.mxu0 %v14565_v52  ;;  %v3362_v17 = vadd.f32 %v15556_v39, %v12454_v49  ;;  %v3715_v3 = vadd.f32 %v15557_v6, %v12456_v9  ;;  %v15561_v40 = vld [vmem:[#allocation263_spill] sm:$0xff] }
 0x5e3   : > { %v3364_v25 = vadd.f32 %v15558_v44, %v12446_v46  ;;  %v3717_v30 = vadd.f32 %v15559_v10, %v12448_v61  ;;  %v3366_v39 = vadd.f32 %v15560_v8, %v12454_v49  ;;  %v3719_v6 = vadd.f32 %v15561_v40, %v12456_v9  ;;  %v15567_v8 = vld [vmem:[#allocation30_spill] sm:$0xff] }
 0x5e4   : > { %v5108_v15 = vpop.f32.mrb[224].mxu1  ;;  %v5461_v16 = vpop.f32.mrb[224].mxu0 }
 0x5e5   : > { %v5784_v31 = vmul.f32 %v5108_v15, %v3360_v2  ;;  %v5786_v24 = vmul.f32 %v5461_v16, %v3713_v51  ;;  %v5110_v63 = vpop.f32.mrb[225].mxu1  ;;  %v5463_v60 = vpop.f32.mrb[225].mxu0  ;;  %v15562_v2 = vld [vmem:[#allocation25_spill] sm:$0xff]  ;;  %v15563_v15 = vld [vmem:[#allocation26_spill] sm:$0xff] }
 0x5e6   : > { %v5785_v32 = vmul.f32 %v5110_v63, %v3362_v17  ;;  %v5787_v34 = vmul.f32 %v5463_v60, %v3715_v3  ;;  %v5112_v29 = vpop.f32.mrb[226].mxu1  ;;  %v5465_v50 = vpop.f32.mrb[226].mxu0  ;;  %v15565_v17 = vld [vmem:[#allocation28_spill] sm:$0xff] }
 0x5e7   : > { %v6292_v51 = vadd.f32 %v5784_v31, %v15562_v2  ;;  %v6294_v16 = vadd.f32 %v5786_v24, %v15563_v15  ;;  %v5792_v58 = vmul.f32 %v5112_v29, %v3364_v25  ;;  %v5794_v36 = vmul.f32 %v5465_v50, %v3717_v30  ;;  %v5114_v44 = vpop.f32.mrb[227].mxu1  ;;  %v5467_v19 = vpop.f32.mrb[227].mxu0  ;;  %v15569_v29 = vld [vmem:[#allocation31_spill] sm:$0xff]  ;;  %v15570_v30 = vld [vmem:[#allocation32_spill] sm:$0xff]  ;;  %v15573_v24 = vld [vmem:[#allocation266_spill] sm:$0xff] }
 0x5e8   : > { %v6293_v10 = vadd.f32 %v5785_v32, %v15564_v23  ;;  %v6295_v3 = vadd.f32 %v5787_v34, %v15565_v17  ;;  %v5793_v63 = vmul.f32 %v5114_v44, %v3366_v39  ;;  %v5795_v60 = vmul.f32 %v5467_v19, %v3719_v6  ;;  %v15574_v6 = vld [vmem:[#allocation267_spill] sm:$0xff]  ;;  %v15577_v17 = vld [vmem:[#allocation268_spill] sm:$0xff] }
 0x5e9   : > { %v6296_v12 = vadd.f32 %v5792_v58, %v15566_v13  ;;  %v6298_v48 = vadd.f32 %v5794_v36, %v15567_v8  ;;  %7961 = vmatmul.mubr.msk.bf16.gmra.mrb[76].mxu1 %vm4271_vm3, %v15568_v21  ;;  %7993 = vmatmul.mubr.msk.bf16.gmra.mrb[76].mxu0 %vm4271_vm3, %v15568_v21  ;;  %v6548_v40 = vadd.f32 %v6294_v16, %v6292_v51  ;;  %v15571_v13 = vld [vmem:[#allocation264_spill] sm:$0xff]  ;;  %v15572_v58 = vld [vmem:[#allocation265_spill] sm:$0xff] }
 0x5ea   : > { %v6297_v50 = vadd.f32 %v5793_v63, %v15569_v29  ;;  %v6299_v31 = vadd.f32 %v5795_v60, %v15570_v30  ;;  %v6549_v23 = vadd.f32 %v6295_v3, %v6293_v10  ;;  %5386 = vmatprep.mubr.bf16.mxu1 %v14565_v52  ;;  %5739 = vmatprep.mubr.bf16.mxu0 %v14565_v52  ;;  %v15575_v51 = vld [vmem:[#allocation269_spill] sm:$0xff]  ;;  %v15578_v63 = vld [vmem:[#allocation270_spill] sm:$0xff] }
 0x5eb   : > { %v6550_v19 = vadd.f32 %v6298_v48, %v6296_v12  ;;  %v3370_v36 = vadd.f32 %v15571_v13, %v12446_v46  ;;  %v3723_v32 = vadd.f32 %v15572_v58, %v12448_v61  ;;  %v3372_v21 = vadd.f32 %v15573_v24, %v12454_v49  ;;  %v15581_v13 = vld [vmem:[#allocation33_spill] sm:$0xff]  ;;  %v15582_v58 = vld [vmem:[#allocation34_spill] sm:$0xff] }
 0x5ec   : > { %v6551_v25 = vadd.f32 %v6299_v31, %v6297_v50  ;;  %v5118_v34 = vpop.f32.mrb[228].mxu1  ;;  %v5471_v39 = vpop.f32.mrb[228].mxu0  ;;  %v3725_v2 = vadd.f32 %v15574_v6, %v12456_v9  ;;  %v3727_v15 = vadd.f32 %v15575_v51, %v12448_v61  ;;  %v12504_v16 = vadd.f32 %v6549_v23, %v6548_v40  ;;  %v15579_v40 = vld [vmem:[#allocation271_spill] sm:$0xff]  ;;  %v15584_v51 = vld [vmem:[#allocation36_spill] sm:$0xff] }
 0x5ed   : > { %v5800_v48 = vmul.f32 %v5118_v34, %v3370_v36  ;;  %v5802_v12 = vmul.f32 %v5471_v39, %v3723_v32  ;;  %v5120_v44 = vpop.f32.mrb[229].mxu1  ;;  %v5473_v10 = vpop.f32.mrb[229].mxu0  ;;  %v3374_v3 = vadd.f32 %v15577_v17, %v12446_v46  ;;  %v3376_v60 = vadd.f32 %v15578_v63, %v12454_v49  ;;  %v15583_v6 = vld [vmem:[#allocation35_spill] sm:$0xff]  ;;  %v15585_v63 = vld [vmem:[#allocation38_spill] sm:$0xff] }
 0x5ee   : > { %15576 = vst [vmem:[#allocation242_spill] sm:$0xff] %v12504_v16  ;;  %v5801_v8 = vmul.f32 %v5120_v44, %v3372_v21  ;;  %v5803_v29 = vmul.f32 %v5473_v10, %v3725_v2  ;;  %v5475_v50 = vpop.f32.mrb[230].mxu0  ;;  %6740 = vrot.lane.b32.xlu0 %v12504_v16, %s8541_s25  ;;  %v5122_v30 = vpop.f32.mrb[230].mxu1  ;;  %v3729_v31 = vadd.f32 %v15579_v40, %v12456_v9 }
 0x5ef   : > { %v12514_v23 = vadd.f32 %v6551_v25, %v6550_v19  ;;  %v6300_v36 = vadd.f32 %v5800_v48, %v15581_v13  ;;  %v6302_v32 = vadd.f32 %v5802_v12, %v15582_v58  ;;  %v5810_v24 = vmul.f32 %v5475_v50, %v3727_v15  ;;  %v5124_v39 = vpop.f32.mrb[231].mxu1  ;;  %v5477_v21 = vpop.f32.mrb[231].mxu0  ;;  %v15587_v19 = vld [vmem:[#allocation15_spill] sm:$0xff]  ;;  %v15589_v12 = vld [vmem:[#allocation40_spill] sm:$0xff]  ;;  %v15591_v50 = vld [vmem:[#allocation273_spill] sm:$0xff] }
 0x5f0   : > { %v5808_v34 = vmul.f32 %v5122_v30, %v3374_v3  ;;  %v6301_v2 = vadd.f32 %v5801_v8, %v15583_v6  ;;  %v6303_v44 = vadd.f32 %v5803_v29, %v15584_v51  ;;  %v5809_v10 = vmul.f32 %v5124_v39, %v3376_v60  ;;  %v15588_v15 = vld [vmem:[#allocation39_spill] sm:$0xff]  ;;  %v15594_v39 = vld [vmem:[#allocation277_spill] sm:$0xff] }
 0x5f1   : > { %15580 = vst [vmem:[#allocation243_spill] sm:$0xff] %v12514_v23  ;;  %v5811_v17 = vmul.f32 %v5477_v21, %v3729_v31  ;;  %v6306_v16 = vadd.f32 %v5810_v24, %v15585_v63  ;;  %7962 = vmatmul.mubr.msk.bf16.gmra.mrb[80].mxu1 %vm4271_vm3, %v15587_v19  ;;  %7994 = vmatmul.mubr.msk.bf16.gmra.mrb[80].mxu0 %vm4271_vm3, %v15587_v19  ;;  %v15592_v31 = vld [vmem:[#allocation274_spill] sm:$0xff]  ;;  %v15593_v24 = vld [vmem:[#allocation275_spill] sm:$0xff] }
 0x5f2   : > { %v6304_v40 = vadd.f32 %v5808_v34, %v15586_v38  ;;  %v6552_v25 = vadd.f32 %v6302_v32, %v6300_v36  ;;  %v6305_v48 = vadd.f32 %v5809_v10, %v15588_v15  ;;  %6742 = vrot.lane.b32.xlu0 %v12514_v23, %s8541_s25  ;;  %v6553_v60 = vadd.f32 %v6303_v44, %v6301_v2  ;;  %v15590_v38 = vld [vmem:[#allocation272_spill] sm:$0xff]  ;;  %v15597_v63 = vld [vmem:[#allocation278_spill] sm:$0xff] }
 0x5f3   : > { %v6307_v3 = vadd.f32 %v5811_v17, %v15589_v12  ;;  %5396 = vmatprep.mubr.bf16.mxu1 %v14565_v52  ;;  %v3380_v29 = vadd.f32 %v15590_v38, %v12446_v46  ;;  %v3733_v30 = vadd.f32 %v15591_v50, %v12448_v61  ;;  %v3382_v13 = vadd.f32 %v15592_v31, %v12454_v49  ;;  %v15596_v10 = vld [vmem:[#allocation276_spill] sm:$0xff]  ;;  %v15599_v38 = vld [vmem:[#allocation41_spill] sm:$0xff]  ;;  %v15600_v50 = vld [vmem:[#allocation42_spill] sm:$0xff] }
 0x5f4   : > { %v6554_v8 = vadd.f32 %v6306_v16, %v6304_v40  ;;  %5749 = vmatprep.mubr.bf16.mxu0 %v14565_v52  ;;  %v5128_v58 = vpop.f32.mrb[232].mxu1  ;;  %v5481_v32 = vpop.f32.mrb[232].mxu0  ;;  %v3735_v34 = vadd.f32 %v15593_v24, %v12456_v9  ;;  %v3737_v16 = vadd.f32 %v15594_v39, %v12448_v61  ;;  %v12542_v21 = vadd.f32 %v6553_v60, %v6552_v25  ;;  %v15598_v25 = vld [vmem:[#allocation279_spill] sm:$0xff]  ;;  %v15602_v39 = vld [vmem:[#allocation44_spill] sm:$0xff] }
 0x5f5   : > { %v6555_v36 = vadd.f32 %v6307_v3, %v6305_v48  ;;  %v5816_v6 = vmul.f32 %v5128_v58, %v3380_v29  ;;  %v5818_v2 = vmul.f32 %v5481_v32, %v3733_v30  ;;  %v5130_v51 = vpop.f32.mrb[233].mxu1  ;;  %v5483_v44 = vpop.f32.mrb[233].mxu0  ;;  %v3384_v17 = vadd.f32 %v15596_v10, %v12446_v46 }
 0x5f6   : > { %15595 = vst [vmem:[#allocation244_spill] sm:$0xff] %v12542_v21  ;;  %v3386_v40 = vadd.f32 %v15597_v63, %v12454_v49  ;;  %v5817_v19 = vmul.f32 %v5130_v51, %v3382_v13  ;;  %v5819_v15 = vmul.f32 %v5483_v44, %v3735_v34  ;;  %v5485_v48 = vpop.f32.mrb[234].mxu0  ;;  %6744 = vrot.lane.b32.xlu1 %v12542_v21, %s8541_s25  ;;  %v5132_v12 = vpop.f32.mrb[234].mxu1  ;;  %v15601_v13 = vld [vmem:[#allocation43_spill] sm:$0xff]  ;;  %v15603_v21 = vld [vmem:[#allocation46_spill] sm:$0xff] }
 0x5f7   : > { %v3739_v3 = vadd.f32 %v15598_v25, %v12456_v9  ;;  %v12552_v60 = vadd.f32 %v6555_v36, %v6554_v8  ;;  %v6308_v29 = vadd.f32 %v5816_v6, %v15599_v38  ;;  %v6310_v30 = vadd.f32 %v5818_v2, %v15600_v50  ;;  %v5134_v32 = vpop.f32.mrb[235].mxu1  ;;  %v5487_v24 = vpop.f32.mrb[235].mxu0  ;;  %v15604_v25 = vld [vmem:[#allocation45_spill] sm:$0xff]  ;;  %v15605_v36 = vld [vmem:[#allocation14_spill] sm:$0xff]  ;;  %v15606_v6 = vld [vmem:[#allocation47_spill] sm:$0xff] }
 0x5f8   : > { %v5826_v31 = vmul.f32 %v5485_v48, %v3737_v16  ;;  %v5824_v58 = vmul.f32 %v5132_v12, %v3384_v17  ;;  %v6309_v34 = vadd.f32 %v5817_v19, %v15601_v13  ;;  %v6311_v51 = vadd.f32 %v5819_v15, %v15602_v39  ;;  %v15607_v17 = vld [vmem:[#allocation48_spill] sm:$0xff]  ;;  %v15609_v48 = vld [vmem:[#allocation281_spill] sm:$0xff] }
 0x5f9   : > { %v5825_v44 = vmul.f32 %v5134_v32, %v3386_v40  ;;  %v5827_v10 = vmul.f32 %v5487_v24, %v3739_v3  ;;  %v6556_v63 = vadd.f32 %v6310_v30, %v6308_v29  ;;  %7963 = vmatmul.mubr.msk.bf16.gmra.mrb[84].mxu1 %vm4271_vm3, %v15605_v36  ;;  %7995 = vmatmul.mubr.msk.bf16.gmra.mrb[84].mxu0 %vm4271_vm3, %v15605_v36  ;;  %v15610_v3 = vld [vmem:[#allocation282_spill] sm:$0xff]  ;;  %v15612_v32 = vld [vmem:[#allocation285_spill] sm:$0xff] }
 0x5fa   : > { %v6314_v23 = vadd.f32 %v5826_v31, %v15603_v21  ;;  %v6312_v8 = vadd.f32 %v5824_v58, %v15604_v25  ;;  %v6557_v16 = vadd.f32 %v6311_v51, %v6309_v34  ;;  %6746 = vrot.lane.b32.xlu1 %v12552_v60, %s8541_s25  ;;  %5406 = vmatprep.mubr.bf16.mxu1 %v14565_v52  ;;  %v15608_v21 = vld [vmem:[#allocation280_spill] sm:$0xff]  ;;  %v15611_v31 = vld [vmem:[#allocation283_spill] sm:$0xff]  ;;  %v15614_v25 = vld [vmem:[#allocation286_spill] sm:$0xff] }
 0x5fb   : > { %v6313_v2 = vadd.f32 %v5825_v44, %v15606_v6  ;;  %v6315_v19 = vadd.f32 %v5827_v10, %v15607_v17  ;;  %v3390_v15 = vadd.f32 %v15608_v21, %v12446_v46  ;;  %v3743_v12 = vadd.f32 %v15609_v48, %v12448_v61  ;;  %5759 = vmatprep.mubr.bf16.mxu0 %v14565_v52  ;;  %v15613_v44 = vld [vmem:[#allocation284_spill] sm:$0xff]  ;;  %v15616_v21 = vld [vmem:[#allocation49_spill] sm:$0xff]  ;;  %v15617_v48 = vld [vmem:[#allocation50_spill] sm:$0xff] }
 0x5fc   : > { %v6558_v40 = vadd.f32 %v6314_v23, %v6312_v8  ;;  %v3392_v38 = vadd.f32 %v15610_v3, %v12454_v49  ;;  %v5138_v50 = vpop.f32.mrb[236].mxu1  ;;  %v5491_v30 = vpop.f32.mrb[236].mxu0  ;;  %v3745_v58 = vadd.f32 %v15611_v31, %v12456_v9  ;;  %v3747_v23 = vadd.f32 %v15612_v32, %v12448_v61  ;;  %v15619_v32 = vld [vmem:[#allocation52_spill] sm:$0xff] }
 0x5fd   : > { %v6559_v29 = vadd.f32 %v6315_v19, %v6313_v2  ;;  %v12580_v24 = vadd.f32 %v6557_v16, %v6556_v63  ;;  %v5832_v13 = vmul.f32 %v5138_v50, %v3390_v15  ;;  %v5834_v34 = vmul.f32 %v5491_v30, %v3743_v12  ;;  %v5140_v39 = vpop.f32.mrb[237].mxu1  ;;  %v5493_v51 = vpop.f32.mrb[237].mxu0  ;;  %v15615_v63 = vld [vmem:[#allocation287_spill] sm:$0xff] }
 0x5fe   : > { %v3394_v10 = vadd.f32 %v15613_v44, %v12446_v46  ;;  %v3396_v8 = vadd.f32 %v15614_v25, %v12454_v49  ;;  %v5833_v36 = vmul.f32 %v5140_v39, %v3392_v38  ;;  %v5835_v6 = vmul.f32 %v5493_v51, %v3745_v58  ;;  %v5495_v2 = vpop.f32.mrb[238].mxu0  ;;  %v5142_v17 = vpop.f32.mrb[238].mxu1  ;;  %v15618_v38 = vld [vmem:[#allocation51_spill] sm:$0xff] }
 0x5ff   : > { %6748 = vrot.lane.b32.xlu0 %v12580_v24, %s8541_s25  ;;  %v3749_v16 = vadd.f32 %v15615_v63, %v12456_v9  ;;  %v12590_v19 = vadd.f32 %v6559_v29, %v6558_v40  ;;  %v6316_v15 = vadd.f32 %v5832_v13, %v15616_v21  ;;  %v6318_v12 = vadd.f32 %v5834_v34, %v15617_v48  ;;  %v5144_v30 = vpop.f32.mrb[239].mxu1  ;;  %v5497_v31 = vpop.f32.mrb[239].mxu0  ;;  %v15620_v40 = vld [vmem:[#allocation54_spill] sm:$0xff]  ;;  %v15621_v63 = vld [vmem:[#allocation53_spill] sm:$0xff]  ;;  %v15623_v34 = vld [vmem:[#allocation55_spill] sm:$0xff] }
 0x600   : > { %v5842_v3 = vmul.f32 %v5495_v2, %v3747_v23  ;;  %v5840_v50 = vmul.f32 %v5142_v17, %v3394_v10  ;;  %v6317_v58 = vadd.f32 %v5833_v36, %v15618_v38  ;;  %v6319_v39 = vadd.f32 %v5835_v6, %v15619_v32  ;;  %v15622_v21 = vld [vmem:[#allocation18_spill] sm:$0xff]  ;;  %v15624_v36 = vld [vmem:[#allocation56_spill] sm:$0xff] }
 0x601   : > { %v5841_v51 = vmul.f32 %v5144_v30, %v3396_v8  ;;  %v5843_v44 = vmul.f32 %v5497_v31, %v3749_v16  ;;  %6750 = vrot.lane.b32.xlu1 %v12590_v19, %s8541_s25  ;;  %v6560_v25 = vadd.f32 %v6318_v12, %v6316_v15  ;;  %7964 = vmatmul.mubr.msk.bf16.gmra.mrb[88].mxu1 %vm4271_vm3, %v15622_v21  ;;  %v15625_v2 = vld [vmem:[#allocation288_spill] sm:$0xff]  ;;  %v15626_v16 = vld [vmem:[#allocation289_spill] sm:$0xff]  ;;  %v15627_v48 = vld [vmem:[#allocation290_spill] sm:$0xff] }
 0x602   : > { %v6322_v29 = vadd.f32 %v5842_v3, %v15620_v40  ;;  %v6320_v13 = vadd.f32 %v5840_v50, %v15621_v63  ;;  %7996 = vmatmul.mubr.msk.bf16.gmra.mrb[88].mxu0 %vm4271_vm3, %v15622_v21  ;;  %v6561_v23 = vadd.f32 %v6319_v39, %v6317_v58  ;;  %5416 = vmatprep.mubr.bf16.mxu1 %v14565_v52  ;;  %v15628_v31 = vld [vmem:[#allocation291_spill] sm:$0xff]  ;;  %v15629_v58 = vld [vmem:[#allocation293_spill] sm:$0xff] }
 0x603   : > { %v6321_v10 = vadd.f32 %v5841_v51, %v15623_v34  ;;  %v6323_v8 = vadd.f32 %v5843_v44, %v15624_v36  ;;  %5769 = vmatprep.mubr.bf16.mxu0 %v14565_v52  ;;  %v3400_v17 = vadd.f32 %v15625_v2, %v12446_v46  ;;  %v3753_v15 = vadd.f32 %v15626_v16, %v12448_v61 }
 0x604   : > { %v6562_v6 = vadd.f32 %v6322_v29, %v6320_v13  ;;  %v3402_v12 = vadd.f32 %v15627_v48, %v12454_v49  ;;  %v5148_v50 = vpop.f32.mrb[240].mxu1  ;;  %v5501_v30 = vpop.f32.mrb[240].mxu0  ;;  %v3755_v38 = vadd.f32 %v15628_v31, %v12456_v9  ;;  %v3757_v32 = vadd.f32 %v15629_v58, %v12448_v61  ;;  %v15631_v29 = vld [vmem:[#allocation292_spill] sm:$0xff]  ;;  %v15632_v13 = vld [vmem:[#allocation294_spill] sm:$0xff] }
 0x605   : > { %v6563_v3 = vadd.f32 %v6323_v8, %v6321_v10  ;;  %v12618_v52 = vadd.f32 %v6561_v23, %v6560_v25  ;;  %v5848_v39 = vmul.f32 %v5148_v50, %v3400_v17  ;;  %v5850_v51 = vmul.f32 %v5501_v30, %v3753_v15  ;;  %v5150_v44 = vpop.f32.mrb[241].mxu1  ;;  %v5503_v40 = vpop.f32.mrb[241].mxu0  ;;  %v15633_v25 = vld [vmem:[#allocation295_spill] sm:$0xff]  ;;  %v15634_v17 = vld [vmem:[#allocation57_spill] sm:$0xff]  ;;  %v15635_v15 = vld [vmem:[#allocation58_spill] sm:$0xff] }
 0x606   : > { %v3404_v63 = vadd.f32 %v15631_v29, %v12446_v46  ;;  %v3406_v21 = vadd.f32 %v15632_v13, %v12454_v49  ;;  %v5849_v34 = vmul.f32 %v5150_v44, %v3402_v12  ;;  %v5851_v10 = vmul.f32 %v5503_v40, %v3755_v38  ;;  %v5505_v36 = vpop.f32.mrb[242].mxu0  ;;  %v5152_v8 = vpop.f32.mrb[242].mxu1  ;;  %v15636_v12 = vld [vmem:[#allocation59_spill] sm:$0xff]  ;;  %v15637_v44 = vld [vmem:[#allocation60_spill] sm:$0xff] }
 0x607   : > { %15630 = vst [vmem:[#allocation245_spill] sm:$0xff] %v12618_v52  ;;  %6752 = vrot.lane.b32.xlu0 %v12618_v52, %s8541_s25  ;;  %v3759_v23 = vadd.f32 %v15633_v25, %v12456_v9  ;;  %v12628_v2 = vadd.f32 %v6563_v3, %v6562_v6  ;;  %v6324_v16 = vadd.f32 %v5848_v39, %v15634_v17  ;;  %v5154_v31 = vpop.f32.mrb[243].mxu1  ;;  %v5507_v58 = vpop.f32.mrb[243].mxu0  ;;  %v15638_v6 = vld [vmem:[#allocation62_spill] sm:$0xff]  ;;  %v15639_v52 = vld [vmem:[#allocation61_spill] sm:$0xff]  ;;  %v15640_v17 = vld [vmem:[#allocation16_spill] sm:$0xff] }
 0x608   : > { %v6326_v48 = vadd.f32 %v5850_v51, %v15635_v15  ;;  %v5858_v50 = vmul.f32 %v5505_v36, %v3757_v32  ;;  %v5856_v30 = vmul.f32 %v5152_v8, %v3404_v63  ;;  %v6325_v38 = vadd.f32 %v5849_v34, %v15636_v12  ;;  %v15641_v51 = vld [vmem:[#allocation63_spill] sm:$0xff]  ;;  %v15642_v34 = vld [vmem:[#allocation64_spill] sm:$0xff]  ;;  %v15647_v12 = vld [vmem:[#allocation301_spill] sm:$0xff] }
 0x609   : > { %v6327_v40 = vadd.f32 %v5851_v10, %v15637_v44  ;;  %v5857_v29 = vmul.f32 %v5154_v31, %v3406_v21  ;;  %v5859_v13 = vmul.f32 %v5507_v58, %v3759_v23  ;;  %6754 = vrot.lane.b32.xlu1 %v12628_v2, %s8541_s25  ;;  %7965 = vmatmul.mubr.msk.bf16.gmra.mrb[92].mxu1 %vm4271_vm3, %v15640_v17  ;;  %v15643_v36 = vld [vmem:[#allocation296_spill] sm:$0xff]  ;;  %v15644_v23 = vld [vmem:[#allocation297_spill] sm:$0xff]  ;;  %v15646_v31 = vld [vmem:[#allocation299_spill] sm:$0xff] }
 0x60a   : > { %v6564_v25 = vadd.f32 %v6326_v48, %v6324_v16  ;;  %v6330_v3 = vadd.f32 %v5858_v50, %v15638_v6  ;;  %v6328_v39 = vadd.f32 %v5856_v30, %v15639_v52  ;;  %7997 = vmatmul.mubr.msk.bf16.gmra.mrb[92].mxu0 %vm4271_vm3, %v15640_v17  ;;  %v3410_v8 = vadd.f32 %v15643_v36, %v12446_v46  ;;  %v15645_v52 = vld [vmem:[#allocation298_spill] sm:$0xff] }
 0x60b   : > { %v6565_v32 = vadd.f32 %v6327_v40, %v6325_v38  ;;  %v6329_v63 = vadd.f32 %v5857_v29, %v15641_v51  ;;  %v6331_v21 = vadd.f32 %v5859_v13, %v15642_v34  ;;  %v3763_v16 = vadd.f32 %v15644_v23, %v12448_v61  ;;  %v15649_v17 = vld [vmem:[#allocation302_spill] sm:$0xff]  ;;  %v15651_v23 = vld [vmem:[#allocation65_spill] sm:$0xff] }
 0x60c   : > { %v6566_v10 = vadd.f32 %v6330_v3, %v6328_v39  ;;  %v3412_v15 = vadd.f32 %v15645_v52, %v12454_v49  ;;  %v5158_v50 = vpop.f32.mrb[244].mxu1  ;;  %v5511_v30 = vpop.f32.mrb[244].mxu0  ;;  %v3765_v58 = vadd.f32 %v15646_v31, %v12456_v9  ;;  %v3767_v38 = vadd.f32 %v15647_v12, %v12448_v61  ;;  %v15648_v3 = vld [vmem:[#allocation300_spill] sm:$0xff]  ;;  %v15652_v52 = vld [vmem:[#allocation66_spill] sm:$0xff] }
 0x60d   : > { %v6567_v48 = vadd.f32 %v6331_v21, %v6329_v63  ;;  %v12654_v44 = vadd.f32 %v6565_v32, %v6564_v25  ;;  %v5864_v40 = vmul.f32 %v5158_v50, %v3410_v8  ;;  %v5866_v29 = vmul.f32 %v5511_v30, %v3763_v16  ;;  %v5160_v13 = vpop.f32.mrb[245].mxu1  ;;  %v5513_v6 = vpop.f32.mrb[245].mxu0  ;;  %v15650_v25 = vld [vmem:[#allocation303_spill] sm:$0xff] }
 0x60e   : > { %v3414_v39 = vadd.f32 %v15648_v3, %v12446_v46  ;;  %v3416_v51 = vadd.f32 %v15649_v17, %v12454_v49  ;;  %v5865_v63 = vmul.f32 %v5160_v13, %v3412_v15  ;;  %v5867_v34 = vmul.f32 %v5513_v6, %v3765_v58  ;;  %v5515_v21 = vpop.f32.mrb[246].mxu0  ;;  %v5162_v36 = vpop.f32.mrb[246].mxu1 }
 0x60f   : > { %6756 = vrot.lane.b32.xlu0 %v12654_v44, %s8541_s25  ;;  %v3769_v32 = vadd.f32 %v15650_v25, %v12456_v9  ;;  %v12664_v8 = vadd.f32 %v6567_v48, %v6566_v10  ;;  %v6332_v16 = vadd.f32 %v5864_v40, %v15651_v23  ;;  %v6334_v50 = vadd.f32 %v5866_v29, %v15652_v52  ;;  %v5164_v12 = vpop.f32.mrb[247].mxu1  ;;  %v5517_v3 = vpop.f32.mrb[247].mxu0 }
 0x610   : > { %v5874_v30 = vmul.f32 %v5515_v21, %v3767_v38  ;;  %v5872_v31 = vmul.f32 %v5162_v36, %v3414_v39  ;;  %v6333_v15 = vadd.f32 %v5865_v63, %v11439_v42  ;;  %v6335_v58 = vadd.f32 %v5867_v34, %v11441_v22  ;;  %v15653_v42 = vld [vmem:[#allocation304_spill] sm:$0xff]  ;;  %v15654_v22 = vld [vmem:[#allocation305_spill] sm:$0xff]  ;;  %v15655_v34 = vld [vmem:[#allocation306_spill] sm:$0xff] }
 0x611   : > { %v5873_v13 = vmul.f32 %v5164_v12, %v3416_v51  ;;  %v5875_v6 = vmul.f32 %v5517_v3, %v3769_v32  ;;  %6758 = vrot.lane.b32.xlu1 %v12664_v8, %s8541_s25  ;;  %v6568_v17 = vadd.f32 %v6334_v50, %v6332_v16  ;;  %v3420_v63 = vadd.f32 %v15653_v42, %v12446_v46  ;;  %v15659_v3 = vld [vmem:[#allocation310_spill] sm:$0xff] }
 0x612   : > { %v6338_v10 = vadd.f32 %v5874_v30, %v11449_v37  ;;  %v6336_v48 = vadd.f32 %v5872_v31, %v11447_v47  ;;  %v6569_v40 = vadd.f32 %v6335_v58, %v6333_v15  ;;  %v3773_v51 = vadd.f32 %v15654_v22, %v12448_v61  ;;  %v15656_v47 = vld [vmem:[#allocation307_spill] sm:$0xff]  ;;  %v15658_v31 = vld [vmem:[#allocation308_spill] sm:$0xff] }
 0x613   : > { %v6337_v38 = vadd.f32 %v5873_v13, %v11451_v54  ;;  %v6339_v29 = vadd.f32 %v5875_v6, %v11453_v11  ;;  %v3422_v21 = vadd.f32 %v15655_v34, %v12454_v49  ;;  %v3775_v32 = vadd.f32 %v15656_v47, %v12456_v9  ;;  %v15657_v54 = vld [vmem:[#allocation309_spill] sm:$0xff] }
 0x614   : > { %v6570_v39 = vadd.f32 %v6338_v10, %v6336_v48  ;;  %v5168_v25 = vpop.f32.mrb[248].mxu1  ;;  %v5521_v37 = vpop.f32.mrb[248].mxu0  ;;  %v3777_v23 = vadd.f32 %v15657_v54, %v12448_v61  ;;  %v12686_v11 = vadd.f32 %v6569_v40, %v6568_v17  ;;  %v3424_v12 = vadd.f32 %v15658_v31, %v12446_v46  ;;  %v15660_v17 = vld [vmem:[#allocation311_spill] sm:$0xff] }
 0x615   : > { %v6571_v36 = vadd.f32 %v6339_v29, %v6337_v38  ;;  %v5880_v16 = vmul.f32 %v5168_v25, %v3420_v63  ;;  %v5882_v52 = vmul.f32 %v5521_v37, %v3773_v51  ;;  %v5170_v50 = vpop.f32.mrb[249].mxu1  ;;  %v5523_v30 = vpop.f32.mrb[249].mxu0  ;;  %v3426_v15 = vadd.f32 %v15659_v3, %v12454_v49 }
 0x616   : > { %v5881_v58 = vmul.f32 %v5170_v50, %v3422_v21  ;;  %v5883_v13 = vmul.f32 %v5523_v30, %v3775_v32  ;;  %v5525_v6 = vpop.f32.mrb[250].mxu0  ;;  %6760 = vrot.lane.b32.xlu0 %v12686_v11, %s8541_s25  ;;  %v5172_v10 = vpop.f32.mrb[250].mxu1  ;;  %v3779_v48 = vadd.f32 %v15660_v17, %v12456_v9 }
 0x617   : > { %v12696_v40 = vadd.f32 %v6571_v36, %v6570_v39  ;;  %v6340_v38 = vadd.f32 %v5880_v16, %v11469_v43  ;;  %v6342_v29 = vadd.f32 %v5882_v52, %v11471_v35  ;;  %v5890_v42 = vmul.f32 %v5525_v6, %v3777_v23  ;;  %v5174_v22 = vpop.f32.mrb[251].mxu1  ;;  %v5527_v51 = vpop.f32.mrb[251].mxu0  ;;  %v15663_v52 = vld [vmem:[#allocation314_spill] sm:$0xff] }
 0x618   : > { %v5888_v63 = vmul.f32 %v5172_v10, %v3424_v12  ;;  %v6341_v34 = vadd.f32 %v5881_v58, %v11477_v5  ;;  %v6343_v21 = vadd.f32 %v5883_v13, %v11479_v0  ;;  %v5889_v25 = vmul.f32 %v5174_v22, %v3426_v15  ;;  %v15661_v5 = vld [vmem:[#allocation312_spill] sm:$0xff]  ;;  %v15662_v0 = vld [vmem:[#allocation313_spill] sm:$0xff] }
 0x619   : > { %v5891_v37 = vmul.f32 %v5527_v51, %v3779_v48  ;;  %6762 = vrot.lane.b32.xlu1 %v12696_v40, %s8541_s25  ;;  %v6572_v47 = vadd.f32 %v6342_v29, %v6340_v38  ;;  %v6346_v39 = vadd.f32 %v5890_v42, %v11487_v18  ;;  %v3430_v23 = vadd.f32 %v15661_v5, %v12446_v46  ;;  %v15666_v10 = vld [vmem:[#allocation316_spill] sm:$0xff]  ;;  %v15667_v48 = vld [vmem:[#allocation318_spill] sm:$0xff]  ;;  %v15668_v51 = vld [vmem:[#allocation319_spill] sm:$0xff] }
 0x61a   : > { %v6344_v43 = vadd.f32 %v5888_v63, %v11485_v45  ;;  %v6573_v36 = vadd.f32 %v6343_v21, %v6341_v34  ;;  %v6345_v35 = vadd.f32 %v5889_v25, %v11489_v55  ;;  %v3783_v16 = vadd.f32 %v15662_v0, %v12448_v61  ;;  %v15664_v45 = vld [vmem:[#allocation315_spill] sm:$0xff]  ;;  %v15665_v55 = vld [vmem:[#allocation317_spill] sm:$0xff] }
 0x61b   : > { %v6347_v32 = vadd.f32 %v5891_v37, %v11491_v59  ;;  %v3432_v50 = vadd.f32 %v15663_v52, %v12454_v49  ;;  %v3785_v12 = vadd.f32 %v15664_v45, %v12456_v9  ;;  %v3787_v3 = vadd.f32 %v15665_v55, %v12448_v61  ;;  %v15669_v25 = vld [vmem:[#allocation67_spill] sm:$0xff] }
 0x61c   : > { %v6574_v54 = vadd.f32 %v6346_v39, %v6344_v43  ;;  %v5178_v31 = vpop.f32.mrb[252].mxu1  ;;  %v5531_v18 = vpop.f32.mrb[252].mxu0  ;;  %v12718_v59 = vadd.f32 %v6573_v36, %v6572_v47  ;;  %v3434_v17 = vadd.f32 %v15666_v10, %v12446_v46  ;;  %v3436_v38 = vadd.f32 %v15667_v48, %v12454_v49  ;;  %v15670_v47 = vld [vmem:[#allocation68_spill] sm:$0xff] }
 0x61d   : > { %v6575_v30 = vadd.f32 %v6347_v32, %v6345_v35  ;;  %v5896_v15 = vmul.f32 %v5178_v31, %v3430_v23  ;;  %v5898_v58 = vmul.f32 %v5531_v18, %v3783_v16  ;;  %v5180_v13 = vpop.f32.mrb[253].mxu1  ;;  %v5533_v6 = vpop.f32.mrb[253].mxu0  ;;  %v3789_v34 = vadd.f32 %v15668_v51, %v12456_v9  ;;  %v15671_v23 = vld [vmem:[#allocation69_spill] sm:$0xff]  ;;  %v15673_v31 = vld [vmem:[#allocation70_spill] sm:$0xff] }
 0x61e   : > { %v5897_v29 = vmul.f32 %v5180_v13, %v3432_v50  ;;  %v5899_v42 = vmul.f32 %v5533_v6, %v3785_v12  ;;  %v5535_v63 = vpop.f32.mrb[254].mxu0  ;;  %6764 = vrot.lane.b32.xlu0 %v12718_v59, %s8541_s25  ;;  %v5182_v22 = vpop.f32.mrb[254].mxu1  ;;  %v15674_v12 = vld [vmem:[#allocation72_spill] sm:$0xff]  ;;  %v15677_v6 = vld [vmem:[#allocation321_spill] sm:$0xff] }
 0x61f   : > { %v12728_v21 = vadd.f32 %v6575_v30, %v6574_v54  ;;  %v6348_v37 = vadd.f32 %v5896_v15, %v15669_v25  ;;  %v6350_v39 = vadd.f32 %v5898_v58, %v15670_v47  ;;  %v5906_v43 = vmul.f32 %v5535_v63, %v3787_v3  ;;  %v5184_v35 = vpop.f32.mrb[255].mxu1  ;;  %v5537_v32 = vpop.f32.mrb[255].mxu0  ;;  %v15672_v54 = vld [vmem:[#allocation71_spill] sm:$0xff]  ;;  %v15675_v3 = vld [vmem:[#allocation73_spill] sm:$0xff] }
 0x620   : > { %v5904_v36 = vmul.f32 %v5182_v22, %v3434_v17  ;;  %v6349_v5 = vadd.f32 %v5897_v29, %v11515_v1  ;;  %v6351_v0 = vadd.f32 %v5899_v42, %v15671_v23  ;;  %v5905_v16 = vmul.f32 %v5184_v35, %v3436_v38  ;;  %v15676_v1 = vld [vmem:[#allocation320_spill] sm:$0xff]  ;;  %v15678_v17 = vld [vmem:[#allocation322_spill] sm:$0xff]  ;;  %v15679_v63 = vld [vmem:[#allocation323_spill] sm:$0xff] }
 0x621   : > { %v5907_v52 = vmul.f32 %v5537_v32, %v3789_v34  ;;  %6766 = vrot.lane.b32.xlu1 %v12728_v21, %s8541_s25  ;;  %v6576_v50 = vadd.f32 %v6350_v39, %v6348_v37  ;;  %v6354_v30 = vadd.f32 %v5906_v43, %v15672_v54  ;;  %v3440_v13 = vadd.f32 %v15676_v1, %v12446_v46  ;;  %v15680_v51 = vld [vmem:[#allocation325_spill] sm:$0xff]  ;;  %v15682_v32 = vld [vmem:[#allocation326_spill] sm:$0xff] }
 0x622   : > { %v6352_v18 = vadd.f32 %v5904_v36, %v15673_v31  ;;  %v6577_v45 = vadd.f32 %v6351_v0, %v6349_v5  ;;  %v6353_v55 = vadd.f32 %v5905_v16, %v15674_v12  ;;  %v3793_v10 = vadd.f32 %v15677_v6, %v12448_v61  ;;  %v15681_v36 = vld [vmem:[#allocation324_spill] sm:$0xff]  ;;  %v15684_v31 = vld [vmem:[#allocation74_spill] sm:$0xff] }
 0x623   : > { %v6355_v15 = vadd.f32 %v5907_v52, %v15675_v3  ;;  %v3442_v48 = vadd.f32 %v15678_v17, %v12454_v49  ;;  %v3795_v22 = vadd.f32 %v15679_v63, %v12456_v9  ;;  %v3797_v34 = vadd.f32 %v15680_v51, %v12448_v61 }
 0x624   : > { %v6578_v58 = vadd.f32 %v6354_v30, %v6352_v18  ;;  %v5188_v29 = vpop.f32.mrb[0].mxu1  ;;  %v5541_v42 = vpop.f32.mrb[0].mxu0  ;;  %v12750_v25 = vadd.f32 %v6577_v45, %v6576_v50  ;;  %v3444_v35 = vadd.f32 %v15681_v36, %v12446_v46  ;;  %v3446_v5 = vadd.f32 %v15682_v32, %v12454_v49  ;;  %v15683_v50 = vld [vmem:[#allocation327_spill] sm:$0xff] }
 0x625   : > { %v6579_v38 = vadd.f32 %v6355_v15, %v6353_v55  ;;  %v5912_v37 = vmul.f32 %v5188_v29, %v3440_v13  ;;  %v5914_v47 = vmul.f32 %v5541_v42, %v3793_v10  ;;  %v5190_v39 = vpop.f32.mrb[1].mxu1  ;;  %v5543_v43 = vpop.f32.mrb[1].mxu0  ;;  %v3799_v54 = vadd.f32 %v15683_v50, %v12456_v9  ;;  %v15685_v45 = vld [vmem:[#allocation75_spill] sm:$0xff]  ;;  %v15692_v50 = vld [vmem:[#allocation334_spill] sm:$0xff] }
 0x626   : > { %v5913_v23 = vmul.f32 %v5190_v39, %v3442_v48  ;;  %v5915_v0 = vmul.f32 %v5543_v43, %v3795_v22  ;;  %v5545_v16 = vpop.f32.mrb[2].mxu0  ;;  %6768 = vrot.lane.b32.xlu0 %v12750_v25, %s8541_s25  ;;  %v5192_v52 = vpop.f32.mrb[2].mxu1 }
 0x627   : > { %v12760_v30 = vadd.f32 %v6579_v38, %v6578_v58  ;;  %v6356_v18 = vadd.f32 %v5912_v37, %v15684_v31  ;;  %v6358_v12 = vadd.f32 %v5914_v47, %v15685_v45  ;;  %v5922_v55 = vmul.f32 %v5545_v16, %v3797_v34  ;;  %v5194_v15 = vpop.f32.mrb[3].mxu1  ;;  %v5547_v1 = vpop.f32.mrb[3].mxu0  ;;  %v15688_v37 = vld [vmem:[#allocation330_spill] sm:$0xff]  ;;  %v15691_v16 = vld [vmem:[#allocation332_spill] sm:$0xff] }
 0x628   : > { %v5920_v3 = vmul.f32 %v5192_v52, %v3444_v35  ;;  %v6357_v13 = vadd.f32 %v5913_v23, %v11553_v56  ;;  %v6359_v6 = vadd.f32 %v5915_v0, %v11555_v26  ;;  %v5921_v10 = vmul.f32 %v5194_v15, %v3446_v5  ;;  %v15686_v56 = vld [vmem:[#allocation328_spill] sm:$0xff]  ;;  %v15687_v26 = vld [vmem:[#allocation329_spill] sm:$0xff] }
 0x629   : > { %v5923_v17 = vmul.f32 %v5547_v1, %v3799_v54  ;;  %6770 = vrot.lane.b32.xlu1 %v12760_v30, %s8541_s25  ;;  %v6580_v48 = vadd.f32 %v6358_v12, %v6356_v18  ;;  %v6362_v58 = vadd.f32 %v5922_v55, %v11563_v57  ;;  %v3450_v51 = vadd.f32 %v15686_v56, %v12446_v46  ;;  %v15693_v55 = vld [vmem:[#allocation335_spill] sm:$0xff] }
 0x62a   : > { %v6360_v38 = vadd.f32 %v5920_v3, %v11561_v20  ;;  %v6581_v29 = vadd.f32 %v6359_v6, %v6357_v13  ;;  %v6361_v42 = vadd.f32 %v5921_v10, %v11565_v41  ;;  %v3803_v34 = vadd.f32 %v15687_v26, %v12448_v61  ;;  %v15689_v20 = vld [vmem:[#allocation331_spill] sm:$0xff]  ;;  %v15690_v41 = vld [vmem:[#allocation333_spill] sm:$0xff]  ;;  %v15694_v13 = vld [vmem:[#allocation76_spill] sm:$0xff] }
 0x62b   : > { %v6363_v63 = vadd.f32 %v5923_v17, %v11567_v53  ;;  %v3452_v47 = vadd.f32 %v15688_v37, %v12454_v49  ;;  %v3805_v36 = vadd.f32 %v15689_v20, %v12456_v9  ;;  %v3807_v35 = vadd.f32 %v15690_v41, %v12448_v61  ;;  %v15696_v26 = vld [vmem:[#allocation77_spill] sm:$0xff]  ;;  %v15697_v37 = vld [vmem:[#allocation79_spill] sm:$0xff]  ;;  %v15701_v41 = vld [vmem:[#allocation338_spill] sm:$0xff] }
 0x62c   : > { %v6582_v22 = vadd.f32 %v6362_v58, %v6360_v38  ;;  %v5198_v43 = vpop.f32.mrb[4].mxu1  ;;  %v5551_v57 = vpop.f32.mrb[4].mxu0  ;;  %v12782_v53 = vadd.f32 %v6581_v29, %v6580_v48  ;;  %v3454_v52 = vadd.f32 %v15691_v16, %v12446_v46  ;;  %v3456_v54 = vadd.f32 %v15692_v50, %v12454_v49 }
 0x62d   : > { %v6583_v39 = vadd.f32 %v6363_v63, %v6361_v42  ;;  %v5928_v32 = vmul.f32 %v5198_v43, %v3450_v51  ;;  %v5930_v5 = vmul.f32 %v5551_v57, %v3803_v34  ;;  %v5200_v23 = vpop.f32.mrb[5].mxu1  ;;  %v5553_v0 = vpop.f32.mrb[5].mxu0  ;;  %v3809_v3 = vadd.f32 %v15693_v55, %v12456_v9  ;;  %v15704_v55 = vld [vmem:[#allocation340_spill] sm:$0xff] }
 0x62e   : > { %v5929_v31 = vmul.f32 %v5200_v23, %v3452_v47  ;;  %v5931_v18 = vmul.f32 %v5553_v0, %v3805_v36  ;;  %v5555_v45 = vpop.f32.mrb[6].mxu0  ;;  %6772 = vrot.lane.b32.xlu0 %v12782_v53, %s8541_s25  ;;  %v5202_v12 = vpop.f32.mrb[6].mxu1  ;;  %v15702_v0 = vld [vmem:[#allocation339_spill] sm:$0xff] }
 0x62f   : > { %v12792_v15 = vadd.f32 %v6583_v39, %v6582_v22  ;;  %v6364_v1 = vadd.f32 %v5928_v32, %v11583_v62  ;;  %v6366_v6 = vadd.f32 %v5930_v5, %v15694_v13  ;;  %v5938_v10 = vmul.f32 %v5555_v45, %v3807_v35  ;;  %v5204_v48 = vpop.f32.mrb[7].mxu1  ;;  %v5557_v58 = vpop.f32.mrb[7].mxu0  ;;  %v15695_v22 = vld [vmem:[#allocation78_spill] sm:$0xff]  ;;  %v15698_v39 = vld [vmem:[#allocation80_spill] sm:$0xff] }
 0x630   : > { %v5936_v17 = vmul.f32 %v5202_v12, %v3454_v52  ;;  %v6365_v38 = vadd.f32 %v5929_v31, %v11591_v4  ;;  %v6367_v29 = vadd.f32 %v5931_v18, %v11593_v27  ;;  %v5937_v42 = vmul.f32 %v5204_v48, %v3456_v54  ;;  %v15699_v4 = vld [vmem:[#allocation336_spill] sm:$0xff]  ;;  %v15700_v27 = vld [vmem:[#allocation337_spill] sm:$0xff] }
 0x631   : > { %v5939_v63 = vmul.f32 %v5557_v58, %v3809_v3  ;;  %6774 = vrot.lane.b32.xlu1 %v12792_v15, %s8541_s25  ;;  %v6584_v56 = vadd.f32 %v6366_v6, %v6364_v1  ;;  %v6370_v51 = vadd.f32 %v5938_v10, %v15695_v22  ;;  %v3460_v20 = vadd.f32 %v15699_v4, %v12446_v46  ;;  %v15703_v52 = vld [vmem:[#allocation341_spill] sm:$0xff]  ;;  %v15705_v1 = vld [vmem:[#allocation342_spill] sm:$0xff]  ;;  %v15706_v58 = vld [vmem:[#allocation343_spill] sm:$0xff] }
 0x632   : > { %v6368_v62 = vadd.f32 %v5936_v17, %v15696_v26  ;;  %v6585_v34 = vadd.f32 %v6367_v29, %v6365_v38  ;;  %v6369_v47 = vadd.f32 %v5937_v42, %v15697_v37  ;;  %v3813_v36 = vadd.f32 %v15700_v27, %v12448_v61  ;;  %v15707_v42 = vld [vmem:[#allocation81_spill] sm:$0xff]  ;;  %v15710_v27 = vld [vmem:[#allocation83_spill] sm:$0xff] }
 0x633   : > { %v6371_v43 = vadd.f32 %v5939_v63, %v15698_v39  ;;  %v3462_v35 = vadd.f32 %v15701_v41, %v12454_v49  ;;  %v3815_v16 = vadd.f32 %v15702_v0, %v12456_v9  ;;  %v3817_v50 = vadd.f32 %v15703_v52, %v12448_v61 }
 0x634   : > { %v6586_v57 = vadd.f32 %v6370_v51, %v6368_v62  ;;  %v5208_v5 = vpop.f32.mrb[8].mxu1  ;;  %v5561_v23 = vpop.f32.mrb[8].mxu0  ;;  %v12814_v54 = vadd.f32 %v6585_v34, %v6584_v56  ;;  %v3464_v3 = vadd.f32 %v15704_v55, %v12446_v46  ;;  %v3466_v13 = vadd.f32 %v15705_v1, %v12454_v49  ;;  %v15708_v56 = vld [vmem:[#allocation82_spill] sm:$0xff]  ;;  %v15716_v55 = vld [vmem:[#allocation347_spill] sm:$0xff]  ;;  %v15717_v1 = vld [vmem:[#allocation349_spill] sm:$0xff] }
 0x635   : > { %v6587_v32 = vadd.f32 %v6371_v43, %v6369_v47  ;;  %v5944_v31 = vmul.f32 %v5208_v5, %v3460_v20  ;;  %v5946_v18 = vmul.f32 %v5561_v23, %v3813_v36  ;;  %v5210_v45 = vpop.f32.mrb[9].mxu1  ;;  %v5563_v12 = vpop.f32.mrb[9].mxu0  ;;  %v3819_v38 = vadd.f32 %v15706_v58, %v12456_v9  ;;  %v15712_v5 = vld [vmem:[#allocation86_spill] sm:$0xff] }
 0x636   : > { %v5945_v6 = vmul.f32 %v5210_v45, %v3462_v35  ;;  %v5947_v10 = vmul.f32 %v5563_v12, %v3815_v16  ;;  %v5565_v17 = vpop.f32.mrb[10].mxu0  ;;  %6776 = vrot.lane.b32.xlu0 %v12814_v54, %s8541_s25  ;;  %v5212_v48 = vpop.f32.mrb[10].mxu1  ;;  %v15711_v35 = vld [vmem:[#allocation85_spill] sm:$0xff] }
 0x637   : > { %v12824_v29 = vadd.f32 %v6587_v32, %v6586_v57  ;;  %v6372_v63 = vadd.f32 %v5944_v31, %v15707_v42  ;;  %v6374_v22 = vadd.f32 %v5946_v18, %v15708_v56  ;;  %v5954_v51 = vmul.f32 %v5565_v17, %v3817_v50  ;;  %v5214_v62 = vpop.f32.mrb[11].mxu1  ;;  %v5567_v34 = vpop.f32.mrb[11].mxu0  ;;  %v15709_v57 = vld [vmem:[#allocation84_spill] sm:$0xff]  ;;  %v15715_v50 = vld [vmem:[#allocation346_spill] sm:$0xff] }
 0x638   : > { %v5952_v26 = vmul.f32 %v5212_v48, %v3464_v3  ;;  %v6373_v37 = vadd.f32 %v5945_v6, %v11629_v14  ;;  %v6375_v47 = vadd.f32 %v5947_v10, %v11631_v33  ;;  %v5953_v39 = vmul.f32 %v5214_v62, %v3466_v13  ;;  %v15713_v14 = vld [vmem:[#allocation344_spill] sm:$0xff]  ;;  %v15714_v33 = vld [vmem:[#allocation345_spill] sm:$0xff] }
 0x639   : > { %v5955_v43 = vmul.f32 %v5567_v34, %v3819_v38  ;;  %6778 = vrot.lane.b32.xlu1 %v12824_v29, %s8541_s25  ;;  %v6588_v4 = vadd.f32 %v6374_v22, %v6372_v63  ;;  %v6378_v20 = vadd.f32 %v5954_v51, %v15709_v57  ;;  %v3470_v16 = vadd.f32 %v15713_v14, %v12446_v46  ;;  %v15718_v38 = vld [vmem:[#allocation348_spill] sm:$0xff]  ;;  %v15719_v63 = vld [vmem:[#allocation350_spill] sm:$0xff]  ;;  %v15720_v34 = vld [vmem:[#allocation351_spill] sm:$0xff] }
 0x63a   : > { %v6376_v36 = vadd.f32 %v5952_v26, %v15710_v27  ;;  %v6589_v41 = vadd.f32 %v6375_v47, %v6373_v37  ;;  %v6377_v32 = vadd.f32 %v5953_v39, %v15711_v35  ;;  %v3823_v52 = vadd.f32 %v15714_v33, %v12448_v61  ;;  %v15721_v39 = vld [vmem:[#allocation87_spill] sm:$0xff]  ;;  %v15724_v33 = vld [vmem:[#allocation89_spill] sm:$0xff] }
 0x63b   : > { %v6379_v23 = vadd.f32 %v5955_v43, %v15712_v5  ;;  %v3472_v31 = vadd.f32 %v15715_v50, %v12454_v49  ;;  %v3825_v3 = vadd.f32 %v15716_v55, %v12456_v9  ;;  %v3827_v13 = vadd.f32 %v15717_v1, %v12448_v61 }
 0x63c   : > { %v6590_v0 = vadd.f32 %v6378_v20, %v6376_v36  ;;  %v5218_v45 = vpop.f32.mrb[12].mxu1  ;;  %v5571_v12 = vpop.f32.mrb[12].mxu0  ;;  %v12846_v6 = vadd.f32 %v6589_v41, %v6588_v4  ;;  %v3474_v42 = vadd.f32 %v15718_v38, %v12446_v46  ;;  %v3476_v56 = vadd.f32 %v15719_v63, %v12454_v49  ;;  %v15722_v4 = vld [vmem:[#allocation88_spill] sm:$0xff]  ;;  %v15730_v38 = vld [vmem:[#allocation355_spill] sm:$0xff]  ;;  %v15731_v63 = vld [vmem:[#allocation357_spill] sm:$0xff] }
 0x63d   : > { %v6591_v18 = vadd.f32 %v6379_v23, %v6377_v32  ;;  %v5960_v10 = vmul.f32 %v5218_v45, %v3470_v16  ;;  %v5962_v17 = vmul.f32 %v5571_v12, %v3823_v52  ;;  %v5220_v48 = vpop.f32.mrb[13].mxu1  ;;  %v5573_v58 = vpop.f32.mrb[13].mxu0  ;;  %v3829_v37 = vadd.f32 %v15720_v34, %v12456_v9  ;;  %v15726_v45 = vld [vmem:[#allocation92_spill] sm:$0xff] }
 0x63e   : > { %v5961_v22 = vmul.f32 %v5220_v48, %v3472_v31  ;;  %v5963_v51 = vmul.f32 %v5573_v58, %v3825_v3  ;;  %v5575_v26 = vpop.f32.mrb[14].mxu0  ;;  %6780 = vrot.lane.b32.xlu0 %v12846_v6, %s8541_s25  ;;  %v5222_v62 = vpop.f32.mrb[14].mxu1  ;;  %v15725_v31 = vld [vmem:[#allocation91_spill] sm:$0xff] }
 0x63f   : > { %v12856_v47 = vadd.f32 %v6591_v18, %v6590_v0  ;;  %v6380_v43 = vadd.f32 %v5960_v10, %v15721_v39  ;;  %v6382_v57 = vadd.f32 %v5962_v17, %v15722_v4  ;;  %v5970_v20 = vmul.f32 %v5575_v26, %v3827_v13  ;;  %v5224_v36 = vpop.f32.mrb[15].mxu1  ;;  %v5577_v41 = vpop.f32.mrb[15].mxu0  ;;  %v15723_v0 = vld [vmem:[#allocation90_spill] sm:$0xff] }
 0x640   : > { %v5968_v27 = vmul.f32 %v5222_v62, %v3474_v42  ;;  %v6381_v35 = vadd.f32 %v5961_v22, %v11667_v28  ;;  %v6383_v32 = vadd.f32 %v5963_v51, %v11669_v7  ;;  %v5969_v5 = vmul.f32 %v5224_v36, %v3476_v56  ;;  %v15727_v28 = vld [vmem:[#allocation352_spill] sm:$0xff]  ;;  %v15728_v7 = vld [vmem:[#allocation353_spill] sm:$0xff]  ;;  %v15729_v13 = vld [vmem:[#allocation354_spill] sm:$0xff] }
 0x641   : > { %v5971_v23 = vmul.f32 %v5577_v41, %v3829_v37  ;;  %6782 = vrot.lane.b32.xlu1 %v12856_v47, %s8541_s25  ;;  %v6592_v14 = vadd.f32 %v6382_v57, %v6380_v43  ;;  %v6386_v16 = vadd.f32 %v5970_v20, %v15723_v0  ;;  %v3480_v3 = vadd.f32 %v15727_v28, %v12446_v46  ;;  %v15732_v37 = vld [vmem:[#allocation356_spill] sm:$0xff]  ;;  %v15733_v43 = vld [vmem:[#allocation358_spill] sm:$0xff]  ;;  %v15734_v41 = vld [vmem:[#allocation359_spill] sm:$0xff] }
 0x642   : > { %v6384_v52 = vadd.f32 %v5968_v27, %v15724_v33  ;;  %v6593_v50 = vadd.f32 %v6383_v32, %v6381_v35  ;;  %v6385_v18 = vadd.f32 %v5969_v5, %v15725_v31  ;;  %v3833_v1 = vadd.f32 %v15728_v7, %v12448_v61  ;;  %v15735_v5 = vld [vmem:[#allocation93_spill] sm:$0xff]  ;;  %v15737_v31 = vld [vmem:[#allocation95_spill] sm:$0xff] }
 0x643   : > { %v6387_v12 = vadd.f32 %v5971_v23, %v15726_v45  ;;  %v3482_v10 = vadd.f32 %v15729_v13, %v12454_v49  ;;  %v3835_v42 = vadd.f32 %v15730_v38, %v12456_v9  ;;  %v3837_v56 = vadd.f32 %v15731_v63, %v12448_v61  ;;  %v15738_v45 = vld [vmem:[#allocation96_spill] sm:$0xff]  ;;  %v15740_v13 = vld [vmem:[#allocation97_spill] sm:$0xff] }
 0x644   : > { %v6594_v55 = vadd.f32 %v6386_v16, %v6384_v52  ;;  %v5228_v48 = vpop.f32.mrb[16].mxu1  ;;  %v5581_v58 = vpop.f32.mrb[16].mxu0  ;;  %v12878_v22 = vadd.f32 %v6593_v50, %v6592_v14  ;;  %v3484_v39 = vadd.f32 %v15732_v37, %v12446_v46  ;;  %v3486_v4 = vadd.f32 %v15733_v43, %v12454_v49  ;;  %v15736_v14 = vld [vmem:[#allocation94_spill] sm:$0xff]  ;;  %v15742_v38 = vld [vmem:[#allocation100_spill] sm:$0xff] }
 0x645   : > { %v6595_v17 = vadd.f32 %v6387_v12, %v6385_v18  ;;  %v5976_v51 = vmul.f32 %v5228_v48, %v3480_v3  ;;  %v5978_v26 = vmul.f32 %v5581_v58, %v3833_v1  ;;  %v5230_v62 = vpop.f32.mrb[17].mxu1  ;;  %v5583_v34 = vpop.f32.mrb[17].mxu0  ;;  %v3839_v35 = vadd.f32 %v15734_v41, %v12456_v9  ;;  %v15741_v48 = vld [vmem:[#allocation99_spill] sm:$0xff] }
 0x646   : > { %v5977_v57 = vmul.f32 %v5230_v62, %v3482_v10  ;;  %v5979_v20 = vmul.f32 %v5583_v34, %v3835_v42  ;;  %v5585_v27 = vpop.f32.mrb[18].mxu0  ;;  %6784 = vrot.lane.b32.xlu0 %v12878_v22, %s8541_s25  ;;  %v5232_v36 = vpop.f32.mrb[18].mxu1  ;;  %v15745_v34 = vld [vmem:[#allocation362_spill] sm:$0xff] }
 0x647   : > { %v12888_v32 = vadd.f32 %v6595_v17, %v6594_v55  ;;  %v6388_v23 = vadd.f32 %v5976_v51, %v15735_v5  ;;  %v6390_v0 = vadd.f32 %v5978_v26, %v15736_v14  ;;  %v5986_v16 = vmul.f32 %v5585_v27, %v3837_v56  ;;  %v5234_v52 = vpop.f32.mrb[19].mxu1  ;;  %v5587_v50 = vpop.f32.mrb[19].mxu0  ;;  %v15739_v55 = vld [vmem:[#allocation98_spill] sm:$0xff]  ;;  %v15743_v56 = vld [vmem:[#allocation360_spill] sm:$0xff]  ;;  %v15744_v26 = vld [vmem:[#allocation361_spill] sm:$0xff] }
 0x648   : > { %v5984_v33 = vmul.f32 %v5232_v36, %v3484_v39  ;;  %v6389_v18 = vadd.f32 %v5977_v57, %v15737_v31  ;;  %v6391_v12 = vadd.f32 %v5979_v20, %v15738_v45  ;;  %v5985_v28 = vmul.f32 %v5234_v52, %v3486_v4  ;;  %v15746_v57 = vld [vmem:[#allocation363_spill] sm:$0xff]  ;;  %v15747_v27 = vld [vmem:[#allocation365_spill] sm:$0xff] }
 0x649   : > { %v5987_v3 = vmul.f32 %v5587_v50, %v3839_v35  ;;  %6786 = vrot.lane.b32.xlu1 %v12888_v32, %s8541_s25  ;;  %v6596_v7 = vadd.f32 %v6390_v0, %v6388_v23  ;;  %v6394_v1 = vadd.f32 %v5986_v16, %v15739_v55  ;;  %v3490_v51 = vadd.f32 %v15743_v56, %v12446_v46  ;;  %v15748_v0 = vld [vmem:[#allocation364_spill] sm:$0xff] }
 0x64a   : > { %v6392_v10 = vadd.f32 %v5984_v33, %v15740_v13  ;;  %v6597_v17 = vadd.f32 %v6391_v12, %v6389_v18  ;;  %v6393_v58 = vadd.f32 %v5985_v28, %v15741_v48  ;;  %v3843_v62 = vadd.f32 %v15744_v26, %v12448_v61  ;;  %v15749_v33 = vld [vmem:[#allocation366_spill] sm:$0xff]  ;;  %v15750_v12 = vld [vmem:[#allocation367_spill] sm:$0xff]  ;;  %v15754_v56 = vld [vmem:[#allocation104_spill] sm:$0xff] }
 0x64b   : > { %v6395_v42 = vadd.f32 %v5987_v3, %v15742_v38  ;;  %v3492_v37 = vadd.f32 %v15745_v34, %v12454_v49  ;;  %v3845_v20 = vadd.f32 %v15746_v57, %v12456_v9  ;;  %v3847_v36 = vadd.f32 %v15747_v27, %v12448_v61  ;;  %v15753_v38 = vld [vmem:[#allocation103_spill] sm:$0xff]  ;;  %v15758_v27 = vld [vmem:[#allocation108_spill] sm:$0xff] }
 0x64c   : > { %v6598_v63 = vadd.f32 %v6394_v1, %v6392_v10  ;;  %v5238_v43 = vpop.f32.mrb[20].mxu1  ;;  %v5591_v4 = vpop.f32.mrb[20].mxu0  ;;  %v12910_v41 = vadd.f32 %v6597_v17, %v6596_v7  ;;  %v3494_v16 = vadd.f32 %v15748_v0, %v12446_v46  ;;  %v3496_v52 = vadd.f32 %v15749_v33, %v12454_v49  ;;  %v15751_v7 = vld [vmem:[#allocation101_spill] sm:$0xff]  ;;  %v15752_v1 = vld [vmem:[#allocation102_spill] sm:$0xff]  ;;  %v15757_v57 = vld [vmem:[#allocation107_spill] sm:$0xff] }
 0x64d   : > { %v6599_v39 = vadd.f32 %v6395_v42, %v6393_v58  ;;  %v5992_v35 = vmul.f32 %v5238_v43, %v3490_v51  ;;  %v5994_v5 = vmul.f32 %v5591_v4, %v3843_v62  ;;  %v5240_v23 = vpop.f32.mrb[21].mxu1  ;;  %v5593_v14 = vpop.f32.mrb[21].mxu0  ;;  %v3849_v28 = vadd.f32 %v15750_v12, %v12456_v9  ;;  %v15763_v12 = vld [vmem:[#allocation373_spill] sm:$0xff] }
 0x64e   : > { %v5993_v50 = vmul.f32 %v5240_v23, %v3492_v37  ;;  %v5995_v31 = vmul.f32 %v5593_v14, %v3845_v20  ;;  %v5595_v18 = vpop.f32.mrb[22].mxu0  ;;  %6788 = vrot.lane.b32.xlu0 %v12910_v41, %s8541_s25  ;;  %v5242_v45 = vpop.f32.mrb[22].mxu1  ;;  %v15760_v14 = vld [vmem:[#allocation369_spill] sm:$0xff] }
 0x64f   : > { %v12920_v3 = vadd.f32 %v6599_v39, %v6598_v63  ;;  %v6396_v55 = vadd.f32 %v5992_v35, %v15751_v7  ;;  %v6398_v13 = vadd.f32 %v5994_v5, %v15752_v1  ;;  %v6002_v10 = vmul.f32 %v5595_v18, %v3847_v36  ;;  %v5244_v48 = vpop.f32.mrb[23].mxu1  ;;  %v5597_v58 = vpop.f32.mrb[23].mxu0  ;;  %v15755_v63 = vld [vmem:[#allocation106_spill] sm:$0xff]  ;;  %v15756_v39 = vld [vmem:[#allocation105_spill] sm:$0xff]  ;;  %v15759_v35 = vld [vmem:[#allocation368_spill] sm:$0xff] }
 0x650   : > { %v6000_v17 = vmul.f32 %v5242_v45, %v3494_v16  ;;  %v6397_v42 = vadd.f32 %v5993_v50, %v15753_v38  ;;  %v6399_v51 = vadd.f32 %v5995_v31, %v15754_v56  ;;  %v6001_v26 = vmul.f32 %v5244_v48, %v3496_v52  ;;  %v15761_v16 = vld [vmem:[#allocation370_spill] sm:$0xff]  ;;  %v15762_v52 = vld [vmem:[#allocation371_spill] sm:$0xff] }
 0x651   : > { %v6003_v62 = vmul.f32 %v5597_v58, %v3849_v28  ;;  %6790 = vrot.lane.b32.xlu1 %v12920_v3, %s8541_s25  ;;  %v6600_v34 = vadd.f32 %v6398_v13, %v6396_v55  ;;  %v6402_v37 = vadd.f32 %v6002_v10, %v15755_v63  ;;  %v3500_v5 = vadd.f32 %v15759_v35, %v12446_v46  ;;  %v15764_v55 = vld [vmem:[#allocation372_spill] sm:$0xff]  ;;  %v15765_v58 = vld [vmem:[#allocation374_spill] sm:$0xff] }
 0x652   : > { %v6400_v43 = vadd.f32 %v6000_v17, %v15756_v39  ;;  %v6601_v4 = vadd.f32 %v6399_v51, %v6397_v42  ;;  %v6401_v20 = vadd.f32 %v6001_v26, %v15757_v57  ;;  %v3853_v0 = vadd.f32 %v15760_v14, %v12448_v61  ;;  %v15766_v42 = vld [vmem:[#allocation375_spill] sm:$0xff]  ;;  %v15769_v57 = vld [vmem:[#allocation110_spill] sm:$0xff] }
 0x653   : > { %v6403_v36 = vadd.f32 %v6003_v62, %v15758_v27  ;;  %v3502_v33 = vadd.f32 %v15761_v16, %v12454_v49  ;;  %v3855_v50 = vadd.f32 %v15762_v52, %v12456_v9  ;;  %v3857_v28 = vadd.f32 %v15763_v12, %v12448_v61  ;;  %v15770_v14 = vld [vmem:[#allocation111_spill] sm:$0xff]  ;;  %v15771_v16 = vld [vmem:[#allocation112_spill] sm:$0xff] }
 0x654   : > { %v6602_v23 = vadd.f32 %v6402_v37, %v6400_v43  ;;  %v5248_v18 = vpop.f32.mrb[24].mxu1  ;;  %v5601_v45 = vpop.f32.mrb[24].mxu0  ;;  %v12942_v7 = vadd.f32 %v6601_v4, %v6600_v34  ;;  %v3504_v1 = vadd.f32 %v15764_v55, %v12446_v46  ;;  %v3506_v38 = vadd.f32 %v15765_v58, %v12454_v49  ;;  %v15767_v37 = vld [vmem:[#allocation17_spill] sm:$0xff]  ;;  %v15774_v55 = vld [vmem:[#allocation376_spill] sm:$0xff] }
 0x655   : > { %v6603_v31 = vadd.f32 %v6403_v36, %v6401_v20  ;;  %v6008_v13 = vmul.f32 %v5248_v18, %v3500_v5  ;;  %v6010_v10 = vmul.f32 %v5601_v45, %v3853_v0  ;;  %v5250_v17 = vpop.f32.mrb[25].mxu1  ;;  %v5603_v48 = vpop.f32.mrb[25].mxu0  ;;  %v3859_v56 = vadd.f32 %v15766_v42, %v12456_v9  ;;  %v15768_v43 = vld [vmem:[#allocation109_spill] sm:$0xff] }
 0x656   : > { %v6009_v51 = vmul.f32 %v5250_v17, %v3502_v33  ;;  %v6011_v26 = vmul.f32 %v5603_v48, %v3855_v50  ;;  %v5605_v62 = vpop.f32.mrb[26].mxu0  ;;  %6792 = vrot.lane.b32.xlu0 %v12942_v7, %s8541_s25  ;;  %v5252_v34 = vpop.f32.mrb[26].mxu1  ;;  %v3510_v39 = vadd.f32 %v15767_v37, %v12446_v46  ;;  %v15773_v45 = vld [vmem:[#allocation113_spill] sm:$0xff]  ;;  %v15776_v17 = vld [vmem:[#allocation116_spill] sm:$0xff] }
 0x657   : > { %v12952_v63 = vadd.f32 %v6603_v31, %v6602_v23  ;;  %v6404_v4 = vadd.f32 %v6008_v13, %v15768_v43  ;;  %v6406_v20 = vadd.f32 %v6010_v10, %v15769_v57  ;;  %v6018_v27 = vmul.f32 %v5605_v62, %v3857_v28  ;;  %v5254_v35 = vpop.f32.mrb[27].mxu1  ;;  %v5607_v5 = vpop.f32.mrb[27].mxu0  ;;  %v15772_v31 = vld [vmem:[#allocation114_spill] sm:$0xff]  ;;  %v15775_v13 = vld [vmem:[#allocation115_spill] sm:$0xff]  ;;  %v15777_v58 = vld [vmem:[#allocation377_spill] sm:$0xff] }
 0x658   : > { %v6016_v36 = vmul.f32 %v5252_v34, %v3504_v1  ;;  %v6405_v0 = vadd.f32 %v6009_v51, %v15770_v14  ;;  %v6407_v33 = vadd.f32 %v6011_v26, %v15771_v16  ;;  %v6017_v52 = vmul.f32 %v5254_v35, %v3506_v38  ;;  %v15779_v26 = vld [vmem:[#allocation380_spill] sm:$0xff]  ;;  %v15780_v34 = vld [vmem:[#allocation379_spill] sm:$0xff]  ;;  %v15782_v35 = vld [vmem:[#allocation382_spill] sm:$0xff] }
 0x659   : > { %v6019_v50 = vmul.f32 %v5607_v5, %v3859_v56  ;;  %6794 = vrot.lane.b32.xlu1 %v12952_v63, %s8541_s25  ;;  %v6604_v23 = vadd.f32 %v6406_v20, %v6404_v4  ;;  %v6410_v18 = vadd.f32 %v6018_v27, %v15772_v31  ;;  %v3863_v28 = vadd.f32 %v15774_v55, %v12448_v61  ;;  %v15778_v56 = vld [vmem:[#allocation378_spill] sm:$0xff]  ;;  %v15781_v27 = vld [vmem:[#allocation381_spill] sm:$0xff]  ;;  %v15784_v31 = vld [vmem:[#allocation20_spill] sm:$0xff] }
 0x65a   : > { %v6408_v12 = vadd.f32 %v6016_v36, %v15773_v45  ;;  %v6605_v1 = vadd.f32 %v6407_v33, %v6405_v0  ;;  %v6409_v10 = vadd.f32 %v6017_v52, %v15775_v13  ;;  %v3512_v38 = vadd.f32 %v15777_v58, %v12454_v49  ;;  %v15783_v52 = vld [vmem:[#allocation383_spill] sm:$0xff]  ;;  %v15787_v13 = vld [vmem:[#allocation117_spill] sm:$0xff] }
 0x65b   : > { %v6411_v48 = vadd.f32 %v6019_v50, %v15776_v17  ;;  %v3865_v51 = vadd.f32 %v15778_v56, %v12456_v9  ;;  %v3867_v62 = vadd.f32 %v15779_v26, %v12448_v61  ;;  %v3514_v37 = vadd.f32 %v15780_v34, %v12446_v46  ;;  %v15788_v17 = vld [vmem:[#allocation118_spill] sm:$0xff] }
 0x65c   : > { %v6606_v42 = vadd.f32 %v6410_v18, %v6408_v12  ;;  %v5258_v4 = vpop.f32.mrb[28].mxu1  ;;  %v5611_v57 = vpop.f32.mrb[28].mxu0  ;;  %v12976_v20 = vadd.f32 %v6605_v1, %v6604_v23  ;;  %v3516_v36 = vadd.f32 %v15781_v27, %v12454_v49  ;;  %v3869_v5 = vadd.f32 %v15782_v35, %v12456_v9 }
 0x65d   : > { %v6607_v43 = vadd.f32 %v6411_v48, %v6409_v10  ;;  %v6024_v14 = vmul.f32 %v5258_v4, %v3510_v39  ;;  %v6026_v0 = vmul.f32 %v5611_v57, %v3863_v28  ;;  %v5260_v16 = vpop.f32.mrb[29].mxu1  ;;  %v5613_v33 = vpop.f32.mrb[29].mxu0  ;;  %v3873_v50 = vadd.f32 %v15783_v52, %v12448_v61  ;;  %v15786_v39 = vld [vmem:[#allocation384_spill] sm:$0xff] }
 0x65e   : > { %v3520_v18 = vadd.f32 %v15784_v31, %v12446_v46  ;;  %v6025_v45 = vmul.f32 %v5260_v16, %v3512_v38  ;;  %v6027_v12 = vmul.f32 %v5613_v33, %v3865_v51  ;;  %v5615_v23 = vpop.f32.mrb[30].mxu0  ;;  %6796 = vrot.lane.b32.xlu0 %v12976_v20, %s8541_s25  ;;  %v5262_v55 = vpop.f32.mrb[30].mxu1  ;;  %v3522_v28 = vadd.f32 %v15786_v39, %v12454_v49  ;;  %v15789_v38 = vld [vmem:[#allocation119_spill] sm:$0xff]  ;;  %v15790_v4 = vld [vmem:[#allocation120_spill] sm:$0xff]  ;;  %v15798_v39 = vld [vmem:[#allocation386_spill] sm:$0xff] }
 0x65f   : > { %v12988_v1 = vadd.f32 %v6607_v43, %v6606_v42  ;;  %v6412_v10 = vadd.f32 %v6024_v14, %v15787_v13  ;;  %v6414_v48 = vadd.f32 %v6026_v0, %v15788_v17  ;;  %v6034_v58 = vmul.f32 %v5615_v23, %v3867_v62  ;;  %v5264_v26 = vpop.f32.mrb[31].mxu1  ;;  %v5617_v34 = vpop.f32.mrb[31].mxu0  ;;  %v15791_v43 = vld [vmem:[#allocation122_spill] sm:$0xff]  ;;  %v15792_v14 = vld [vmem:[#allocation121_spill] sm:$0xff]  ;;  %v15795_v31 = vld [vmem:[#allocation123_spill] sm:$0xff] }
 0x660   : > { %v6032_v56 = vmul.f32 %v5262_v55, %v3514_v37  ;;  %v6413_v51 = vadd.f32 %v6025_v45, %v15789_v38  ;;  %v6415_v57 = vadd.f32 %v6027_v12, %v15790_v4  ;;  %v6033_v27 = vmul.f32 %v5264_v26, %v3516_v36  ;;  %v6741_v16 = vpop.permute.xlu0 %6740  ;;  %v15793_v0 = vld [vmem:[#allocation242_spill] sm:$0xff]  ;;  %v15796_v45 = vld [vmem:[#allocation124_spill] sm:$0xff]  ;;  %v15797_v36 = vld [vmem:[#allocation385_spill] sm:$0xff] }
 0x661   : > { %15785 = vst [vmem:[#allocation246_spill] sm:$0xff] %v12988_v1  ;;  %v6035_v35 = vmul.f32 %v5617_v34, %v3869_v5  ;;  %6798 = vrot.lane.b32.xlu1 %v12988_v1, %s8541_s25  ;;  %v6608_v42 = vadd.f32 %v6414_v48, %v6412_v10  ;;  %v6418_v33 = vadd.f32 %v6034_v58, %v15791_v43  ;;  %v15799_v10 = vld [vmem:[#allocation387_spill] sm:$0xff]  ;;  %v15800_v48 = vld [vmem:[#allocation389_spill] sm:$0xff] }
 0x662   : > { %v6416_v52 = vadd.f32 %v6032_v56, %v15792_v14  ;;  %v13001_v62 = vadd.f32 %v6741_v16, %v15793_v0  ;;  %v6609_v37 = vadd.f32 %v6415_v57, %v6413_v51  ;;  %v6417_v23 = vadd.f32 %v6033_v27, %v15795_v31  ;;  %v15802_v51 = vld [vmem:[#allocation388_spill] sm:$0xff]  ;;  %v15803_v57 = vld [vmem:[#allocation390_spill] sm:$0xff]  ;;  %v15804_v16 = vld [vmem:[#allocation243_spill] sm:$0xff] }
 0x663   : > { %v6419_v55 = vadd.f32 %v6035_v35, %v15796_v45  ;;  %v3875_v5 = vadd.f32 %v15797_v36, %v12456_v9  ;;  %v3524_v13 = vadd.f32 %v15798_v39, %v12446_v46  ;;  %v3877_v17 = vadd.f32 %v15799_v10, %v12448_v61  ;;  %v15807_v31 = vld [vmem:[#allocation391_spill] sm:$0xff]  ;;  %v15808_v39 = vld [vmem:[#allocation392_spill] sm:$0xff]  ;;  %v15809_v10 = vld [vmem:[#allocation126_spill] sm:$0xff] }
 0x664   : > { %15794 = vst [vmem:[#allocation247_spill] sm:$0xff] %v13001_v62  ;;  %v6610_v12 = vadd.f32 %v6418_v33, %v6416_v52  ;;  %6932 = vrot.lane.b32.xlu0 %v13001_v62, %s8542_s26  ;;  %v3879_v58 = vadd.f32 %v15800_v48, %v12456_v9  ;;  %v5621_v26 = vpop.f32.mrb[32].mxu0  ;;  %v6743_v34 = vpop.permute.xlu0 %6742  ;;  %v13015_v38 = vadd.f32 %v6609_v37, %v6608_v42  ;;  %v15806_v52 = vld [vmem:[#allocation19_spill] sm:$0xff] }
 0x665   : > { %v6611_v56 = vadd.f32 %v6419_v55, %v6417_v23  ;;  %v3526_v4 = vadd.f32 %v15802_v51, %v12454_v49  ;;  %v3883_v27 = vadd.f32 %v15803_v57, %v12448_v61  ;;  %v6042_v35 = vmul.f32 %v5621_v26, %v3873_v50  ;;  %v5268_v33 = vpop.f32.mrb[32].mxu1  ;;  %v5623_v14 = vpop.f32.mrb[33].mxu0 }
 0x666   : > { %15801 = vst [vmem:[#allocation10_spill] sm:$0xff] %v13015_v38  ;;  %v13022_v43 = vadd.f32 %v6743_v34, %v15804_v16  ;;  %v3530_v0 = vadd.f32 %v15806_v52, %v12446_v46  ;;  %v3532_v23 = vadd.f32 %v15807_v31, %v12454_v49  ;;  %v6040_v42 = vmul.f32 %v5268_v33, %v3520_v18  ;;  %v5270_v37 = vpop.f32.mrb[33].mxu1  ;;  %v5625_v55 = vpop.f32.mrb[34].mxu0  ;;  %v15810_v18 = vld [vmem:[#allocation125_spill] sm:$0xff]  ;;  %v15811_v16 = vld [vmem:[#allocation128_spill] sm:$0xff]  ;;  %v15812_v31 = vld [vmem:[#allocation127_spill] sm:$0xff] }
 0x667   : > { %v6043_v45 = vmul.f32 %v5623_v14, %v3875_v5  ;;  %v13028_v36 = vadd.f32 %v6611_v56, %v6610_v12  ;;  %v3885_v50 = vadd.f32 %v15808_v39, %v12456_v9  ;;  %v6422_v48 = vadd.f32 %v6042_v35, %v15809_v10  ;;  %v5272_v34 = vpop.f32.mrb[34].mxu1  ;;  %v5627_v57 = vpop.f32.mrb[35].mxu0 }
 0x668   : > { %15805 = vst [vmem:[#allocation248_spill] sm:$0xff] %v13022_v43  ;;  %v6041_v26 = vmul.f32 %v5270_v37, %v3522_v28  ;;  %v6050_v51 = vmul.f32 %v5625_v55, %v3877_v17  ;;  %6934 = vrot.lane.b32.xlu1 %v13022_v43, %s8542_s26  ;;  %6800 = vrot.lane.b32.xlu0 %v13015_v38, %s8541_s25  ;;  %v5274_v14 = vpop.f32.mrb[35].mxu1  ;;  %v6745_v52 = vpop.permute.xlu1 %6744  ;;  %v15813_v28 = vld [vmem:[#allocation130_spill] sm:$0xff]  ;;  %v15814_v55 = vld [vmem:[#allocation244_spill] sm:$0xff]  ;;  %v15815_v43 = vld [vmem:[#allocation129_spill] sm:$0xff] }
 0x669   : > { %v6420_v5 = vadd.f32 %v6040_v42, %v15810_v18  ;;  %v6423_v12 = vadd.f32 %v6043_v45, %v15811_v16  ;;  %v6048_v56 = vmul.f32 %v5272_v34, %v3524_v13  ;;  %v6051_v33 = vmul.f32 %v5627_v57, %v3879_v58  ;;  %v15816_v38 = vld [vmem:[#allocation132_spill] sm:$0xff]  ;;  %v15817_v42 = vld [vmem:[#allocation393_spill] sm:$0xff]  ;;  %v15818_v58 = vld [vmem:[#allocation131_spill] sm:$0xff] }
 0x66a   : > { %v6421_v35 = vadd.f32 %v6041_v26, %v15812_v31  ;;  %v6426_v37 = vadd.f32 %v6050_v51, %v15813_v28  ;;  %v6049_v17 = vmul.f32 %v5274_v14, %v3526_v4  ;;  %v13042_v39 = vadd.f32 %v6745_v52, %v15814_v55  ;;  %v15819_v4 = vld [vmem:[#allocation394_spill] sm:$0xff]  ;;  %v15821_v18 = vld [vmem:[#allocation395_spill] sm:$0xff]  ;;  %v15825_v55 = vld [vmem:[#allocation397_spill] sm:$0xff] }
 0x66b   : > { %v6612_v10 = vadd.f32 %v6422_v48, %v6420_v5  ;;  %v6424_v62 = vadd.f32 %v6048_v56, %v15815_v43  ;;  %v6427_v1 = vadd.f32 %v6051_v33, %v15816_v38  ;;  %v3534_v45 = vadd.f32 %v15817_v42, %v12446_v46  ;;  %v15820_v38 = vld [vmem:[#allocation396_spill] sm:$0xff]  ;;  %v15822_v16 = vld [vmem:[#allocation22_spill] sm:$0xff] }
 0x66c   : > { %v6613_v13 = vadd.f32 %v6423_v12, %v6421_v35  ;;  %v6425_v34 = vadd.f32 %v6049_v17, %v15818_v58  ;;  %6936 = vrot.lane.b32.xlu0 %v13042_v39, %s8542_s26  ;;  %6802 = vrot.lane.b32.xlu1 %v13028_v36, %s8541_s25  ;;  %v3887_v26 = vadd.f32 %v15819_v4, %v12448_v61  ;;  %v5631_v51 = vpop.f32.mrb[36].mxu0  ;;  %v6747_v43 = vpop.permute.xlu1 %6746  ;;  %v15826_v58 = vld [vmem:[#allocation398_spill] sm:$0xff] }
 0x66d   : > { %v6614_v48 = vadd.f32 %v6426_v37, %v6424_v62  ;;  %v3889_v57 = vadd.f32 %v15820_v38, %v12456_v9  ;;  %v3536_v5 = vadd.f32 %v15821_v18, %v12454_v49  ;;  %v3540_v12 = vadd.f32 %v15822_v16, %v12446_v46  ;;  %v5278_v52 = vpop.f32.mrb[36].mxu1  ;;  %v5633_v31 = vpop.f32.mrb[37].mxu0  ;;  %v15827_v38 = vld [vmem:[#allocation134_spill] sm:$0xff] }
 0x66e   : > { %v6615_v56 = vadd.f32 %v6427_v1, %v6425_v34  ;;  %v6058_v33 = vmul.f32 %v5631_v51, %v3883_v27  ;;  %v13062_v14 = vadd.f32 %v6747_v43, %v12552_v60  ;;  %v13064_v35 = vadd.f32 %v6613_v13, %v6612_v10  ;;  %v5280_v28 = vpop.f32.mrb[37].mxu1  ;;  %v5635_v17 = vpop.f32.mrb[38].mxu0  ;;  %v15829_v10 = vld [vmem:[#allocation136_spill] sm:$0xff] }
 0x66f   : > { %v6056_v62 = vmul.f32 %v5278_v52, %v3530_v0  ;;  %v6059_v37 = vmul.f32 %v5633_v31, %v3885_v50  ;;  %v3893_v42 = vadd.f32 %v15825_v55, %v12448_v61  ;;  %v3542_v4 = vadd.f32 %v15826_v58, %v12454_v49  ;;  %v5282_v34 = vpop.f32.mrb[38].mxu1  ;;  %v5637_v51 = vpop.f32.mrb[39].mxu0  ;;  %v15828_v0 = vld [vmem:[#allocation133_spill] sm:$0xff]  ;;  %v15830_v31 = vld [vmem:[#allocation135_spill] sm:$0xff] }
 0x670   : > { %15823 = vst [vmem:[#allocation249_spill] sm:$0xff] %v13062_v14  ;;  %15824 = vst [vmem:[#allocation499_spill] sm:$0xff] %v13064_v35  ;;  %v6430_v1 = vadd.f32 %v6058_v33, %v15827_v38  ;;  %v6057_v27 = vmul.f32 %v5280_v28, %v3532_v23  ;;  %v6066_v60 = vmul.f32 %v5635_v17, %v3887_v26  ;;  %6938 = vrot.lane.b32.xlu1 %v13062_v14, %s8542_s26  ;;  %v5284_v16 = vpop.f32.mrb[39].mxu1  ;;  %v15831_v23 = vld [vmem:[#allocation138_spill] sm:$0xff]  ;;  %v15832_v58 = vld [vmem:[#allocation137_spill] sm:$0xff] }
 0x671   : > { %6804 = vrot.lane.b32.xlu0 %v13064_v35, %s8541_s25  ;;  %v6428_v50 = vadd.f32 %v6056_v62, %v15828_v0  ;;  %v6431_v13 = vadd.f32 %v6059_v37, %v15829_v10  ;;  %v6064_v43 = vmul.f32 %v5282_v34, %v3534_v45  ;;  %v6067_v18 = vmul.f32 %v5637_v51, %v3889_v57  ;;  %v6749_v52 = vpop.permute.xlu0 %6748  ;;  %v15833_v14 = vld [vmem:[#allocation140_spill] sm:$0xff]  ;;  %v15834_v45 = vld [vmem:[#allocation139_spill] sm:$0xff]  ;;  %v15839_v10 = vld [vmem:[#allocation402_spill] sm:$0xff] }
 0x672   : > { %v6429_v33 = vadd.f32 %v6057_v27, %v15830_v31  ;;  %v6434_v28 = vadd.f32 %v6066_v60, %v15831_v23  ;;  %v6065_v26 = vmul.f32 %v5284_v16, %v3536_v5  ;;  %v13080_v17 = vadd.f32 %v6749_v52, %v12580_v24  ;;  %v15835_v27 = vld [vmem:[#allocation399_spill] sm:$0xff]  ;;  %v15836_v24 = vld [vmem:[#allocation400_spill] sm:$0xff] }
 0x673   : > { %v6616_v55 = vadd.f32 %v6430_v1, %v6428_v50  ;;  %v6432_v38 = vadd.f32 %v6064_v43, %v15832_v58  ;;  %v6435_v35 = vadd.f32 %v6067_v18, %v15833_v14  ;;  %v13084_v62 = vadd.f32 %v6615_v56, %v6614_v48  ;;  %v6751_v34 = vpop.permute.xlu1 %6750  ;;  %v15837_v56 = vld [vmem:[#allocation401_spill] sm:$0xff]  ;;  %v15838_v0 = vld [vmem:[#allocation403_spill] sm:$0xff] }
 0x674   : > { %v6617_v37 = vadd.f32 %v6431_v13, %v6429_v33  ;;  %v6433_v57 = vadd.f32 %v6065_v26, %v15834_v45  ;;  %v3895_v5 = vadd.f32 %v15835_v27, %v12456_v9  ;;  %v3544_v60 = vadd.f32 %v15836_v24, %v12446_v46  ;;  %v5288_v14 = vpop.f32.mrb[40].mxu1  ;;  %v5641_v48 = vpop.f32.mrb[40].mxu0  ;;  %v15840_v45 = vld [vmem:[#allocation21_spill] sm:$0xff] }
 0x675   : > { %6940 = vrot.lane.b32.xlu0 %v13080_v17, %s8542_s26  ;;  %v6618_v1 = vadd.f32 %v6434_v28, %v6432_v38  ;;  %6806 = vrot.lane.b32.xlu1 %v13084_v62, %s8541_s25  ;;  %v3897_v51 = vadd.f32 %v15837_v56, %v12448_v61  ;;  %v3899_v50 = vadd.f32 %v15838_v0, %v12456_v9  ;;  %v5290_v52 = vpop.f32.mrb[41].mxu1  ;;  %v5643_v31 = vpop.f32.mrb[41].mxu0  ;;  %v15841_v24 = vld [vmem:[#allocation141_spill] sm:$0xff]  ;;  %v15842_v0 = vld [vmem:[#allocation142_spill] sm:$0xff] }
 0x676   : > { %v3546_v13 = vadd.f32 %v15839_v10, %v12454_v49  ;;  %v6619_v43 = vadd.f32 %v6435_v35, %v6433_v57  ;;  %v6072_v18 = vmul.f32 %v5288_v14, %v3540_v12  ;;  %v6074_v16 = vmul.f32 %v5641_v48, %v3893_v42  ;;  %v5292_v58 = vpop.f32.mrb[42].mxu1  ;;  %v5645_v38 = vpop.f32.mrb[42].mxu0 }
 0x677   : > { %v13101_v33 = vadd.f32 %v6617_v37, %v6616_v55  ;;  %v13104_v23 = vadd.f32 %v6751_v34, %v12590_v19  ;;  %v6073_v28 = vmul.f32 %v5290_v52, %v3542_v4  ;;  %v6075_v26 = vmul.f32 %v5643_v31, %v3895_v5  ;;  %v5647_v57 = vpop.f32.mrb[43].mxu0  ;;  %v5294_v55 = vpop.f32.mrb[43].mxu1  ;;  %v15843_v19 = vld [vmem:[#allocation143_spill] sm:$0xff]  ;;  %v15844_v4 = vld [vmem:[#allocation144_spill] sm:$0xff]  ;;  %v15847_v52 = vld [vmem:[#allocation245_spill] sm:$0xff] }
 0x678   : > { %v3550_v27 = vadd.f32 %v15840_v45, %v12446_v46  ;;  %v6436_v56 = vadd.f32 %v6072_v18, %v15841_v24  ;;  %v6438_v35 = vadd.f32 %v6074_v16, %v15842_v0  ;;  %v6080_v12 = vmul.f32 %v5292_v58, %v3544_v60  ;;  %v15845_v18 = vld [vmem:[#allocation145_spill] sm:$0xff]  ;;  %v15846_v60 = vld [vmem:[#allocation146_spill] sm:$0xff] }
 0x679   : > { %v6082_v42 = vmul.f32 %v5645_v38, %v3897_v51  ;;  %6808 = vrot.lane.b32.xlu0 %v13101_v33, %s8541_s25  ;;  %v6437_v37 = vadd.f32 %v6073_v28, %v15843_v19  ;;  %v6439_v34 = vadd.f32 %v6075_v26, %v15844_v4  ;;  %v6083_v5 = vmul.f32 %v5647_v57, %v3899_v50  ;;  %v6753_v48 = vpop.permute.xlu0 %6752  ;;  %v15848_v38 = vld [vmem:[#allocation148_spill] sm:$0xff]  ;;  %v15849_v28 = vld [vmem:[#allocation147_spill] sm:$0xff] }
 0x67a   : > { %6942 = vrot.lane.b32.xlu1 %v13104_v23, %s8542_s26  ;;  %v6081_v14 = vmul.f32 %v5294_v55, %v3546_v13  ;;  %v6620_v10 = vadd.f32 %v6438_v35, %v6436_v56  ;;  %v6440_v16 = vadd.f32 %v6080_v12, %v15845_v18  ;;  %v13119_v31 = vadd.f32 %v6753_v48, %v15847_v52  ;;  %v15850_v13 = vld [vmem:[#allocation404_spill] sm:$0xff]  ;;  %v15851_v35 = vld [vmem:[#allocation405_spill] sm:$0xff]  ;;  %v15853_v19 = vld [vmem:[#allocation407_spill] sm:$0xff] }
 0x67b   : > { %v6442_v51 = vadd.f32 %v6082_v42, %v15846_v60  ;;  %v6621_v58 = vadd.f32 %v6439_v34, %v6437_v37  ;;  %v6443_v45 = vadd.f32 %v6083_v5, %v15848_v38  ;;  %v13123_v26 = vadd.f32 %v6619_v43, %v6618_v1  ;;  %v6755_v0 = vpop.permute.xlu1 %6754  ;;  %v15852_v42 = vld [vmem:[#allocation406_spill] sm:$0xff]  ;;  %v15854_v4 = vld [vmem:[#allocation408_spill] sm:$0xff]  ;;  %v15856_v52 = vld [vmem:[#allocation409_spill] sm:$0xff] }
 0x67c   : > { %v6441_v24 = vadd.f32 %v6081_v14, %v15849_v28  ;;  %v3903_v56 = vadd.f32 %v15850_v13, %v12448_v61  ;;  %v3552_v12 = vadd.f32 %v15851_v35, %v12454_v49  ;;  %v3905_v57 = vadd.f32 %v15852_v42, %v12456_v9  ;;  %v5298_v1 = vpop.f32.mrb[44].mxu1  ;;  %v5651_v43 = vpop.f32.mrb[44].mxu0  ;;  %v15855_v60 = vld [vmem:[#allocation410_spill] sm:$0xff] }
 0x67d   : > { %v6622_v50 = vadd.f32 %v6442_v51, %v6440_v16  ;;  %6944 = vrot.lane.b32.xlu0 %v13119_v31, %s8542_s26  ;;  %v3554_v37 = vadd.f32 %v15853_v19, %v12446_v46  ;;  %v3907_v34 = vadd.f32 %v15854_v4, %v12448_v61  ;;  %v13139_v5 = vadd.f32 %v6621_v58, %v6620_v10  ;;  %v5300_v18 = vpop.f32.mrb[45].mxu1  ;;  %v5653_v16 = vpop.f32.mrb[45].mxu0  ;;  %v15858_v10 = vld [vmem:[#allocation149_spill] sm:$0xff]  ;;  %v15859_v58 = vld [vmem:[#allocation150_spill] sm:$0xff] }
 0x67e   : > { %v6623_v55 = vadd.f32 %v6443_v45, %v6441_v24  ;;  %6810 = vrot.lane.b32.xlu1 %v13123_v26, %s8541_s25  ;;  %v6088_v14 = vmul.f32 %v5298_v1, %v3550_v27  ;;  %v6090_v48 = vmul.f32 %v5651_v43, %v3903_v56  ;;  %v3909_v51 = vadd.f32 %v15855_v60, %v12456_v9  ;;  %v5302_v13 = vpop.f32.mrb[46].mxu1  ;;  %v5655_v35 = vpop.f32.mrb[46].mxu0  ;;  %v15860_v60 = vld [vmem:[#allocation151_spill] sm:$0xff] }
 0x67f   : > { %v3556_v38 = vadd.f32 %v15856_v52, %v12454_v49  ;;  %v13146_v45 = vadd.f32 %v6755_v0, %v12628_v2  ;;  %v6089_v28 = vmul.f32 %v5300_v18, %v3552_v12  ;;  %v6091_v24 = vmul.f32 %v5653_v16, %v3905_v57  ;;  %v5657_v19 = vpop.f32.mrb[47].mxu0  ;;  %v5304_v4 = vpop.f32.mrb[47].mxu1  ;;  %v15861_v0 = vld [vmem:[#allocation152_spill] sm:$0xff]  ;;  %v15862_v18 = vld [vmem:[#allocation153_spill] sm:$0xff] }
 0x680   : > { %v13148_v42 = vadd.f32 %v6623_v55, %v6622_v50  ;;  %v6444_v27 = vadd.f32 %v6088_v14, %v15858_v10  ;;  %v6446_v56 = vadd.f32 %v6090_v48, %v15859_v58  ;;  %v6096_v1 = vmul.f32 %v5302_v13, %v3554_v37  ;;  %v15863_v37 = vld [vmem:[#allocation154_spill] sm:$0xff]  ;;  %v15864_v13 = vld [vmem:[#allocation156_spill] sm:$0xff] }
 0x681   : > { %v6098_v43 = vmul.f32 %v5655_v35, %v3907_v34  ;;  %6812 = vrot.lane.b32.xlu0 %v13139_v5, %s8541_s25  ;;  %v6445_v2 = vadd.f32 %v6089_v28, %v15860_v60  ;;  %v6447_v12 = vadd.f32 %v6091_v24, %v15861_v0  ;;  %v6099_v57 = vmul.f32 %v5657_v19, %v3909_v51  ;;  %v6757_v55 = vpop.permute.xlu0 %6756  ;;  %v15865_v28 = vld [vmem:[#allocation155_spill] sm:$0xff] }
 0x682   : > { %15857 = vst [vmem:[#allocation250_spill] sm:$0xff] %v13148_v42  ;;  %6946 = vrot.lane.b32.xlu1 %v13146_v45, %s8542_s26  ;;  %v6097_v50 = vmul.f32 %v5304_v4, %v3556_v38  ;;  %v6624_v14 = vadd.f32 %v6446_v56, %v6444_v27  ;;  %v6448_v48 = vadd.f32 %v6096_v1, %v15862_v18  ;;  %v15866_v51 = vld [vmem:[#allocation411_spill] sm:$0xff]  ;;  %v15867_v38 = vld [vmem:[#allocation412_spill] sm:$0xff]  ;;  %v15868_v56 = vld [vmem:[#allocation413_spill] sm:$0xff] }
 0x683   : > { %v6450_v34 = vadd.f32 %v6098_v43, %v15863_v37  ;;  %v13161_v16 = vadd.f32 %v6757_v55, %v12654_v44  ;;  %v6625_v52 = vadd.f32 %v6447_v12, %v6445_v2  ;;  %v6451_v35 = vadd.f32 %v6099_v57, %v15864_v13  ;;  %v6759_v19 = vpop.permute.xlu1 %6758  ;;  %v15869_v1 = vld [vmem:[#allocation414_spill] sm:$0xff]  ;;  %v15870_v0 = vld [vmem:[#allocation415_spill] sm:$0xff]  ;;  %v15871_v57 = vld [vmem:[#allocation416_spill] sm:$0xff] }
 0x684   : > { %v6449_v10 = vadd.f32 %v6097_v50, %v15865_v28  ;;  %v3560_v24 = vadd.f32 %v15866_v51, %v12446_v46  ;;  %v3913_v27 = vadd.f32 %v15867_v38, %v12448_v61  ;;  %v3562_v44 = vadd.f32 %v15868_v56, %v12454_v49  ;;  %v5308_v60 = vpop.f32.mrb[48].mxu1  ;;  %v5661_v2 = vpop.f32.mrb[48].mxu0  ;;  %v15872_v13 = vld [vmem:[#allocation418_spill] sm:$0xff]  ;;  %v15873_v28 = vld [vmem:[#allocation417_spill] sm:$0xff] }
 0x685   : > { %v6626_v58 = vadd.f32 %v6450_v34, %v6448_v48  ;;  %6948 = vrot.lane.b32.xlu0 %v13161_v16, %s8542_s26  ;;  %v3915_v43 = vadd.f32 %v15869_v1, %v12456_v9  ;;  %v3564_v12 = vadd.f32 %v15870_v0, %v12446_v46  ;;  %v3917_v50 = vadd.f32 %v15871_v57, %v12448_v61  ;;  %v5310_v37 = vpop.f32.mrb[49].mxu1  ;;  %v5663_v34 = vpop.f32.mrb[49].mxu0 }
 0x686   : > { %v6627_v4 = vadd.f32 %v6451_v35, %v6449_v10  ;;  %6814 = vrot.lane.b32.xlu1 %v13148_v42, %s8541_s25  ;;  %v13181_v55 = vadd.f32 %v6625_v52, %v6624_v14  ;;  %v6104_v18 = vmul.f32 %v5308_v60, %v3560_v24  ;;  %v6106_v48 = vmul.f32 %v5661_v2, %v3913_v27  ;;  %v5312_v1 = vpop.f32.mrb[50].mxu1  ;;  %v5665_v0 = vpop.f32.mrb[50].mxu0  ;;  %v15875_v14 = vld [vmem:[#allocation157_spill] sm:$0xff]  ;;  %v15876_v24 = vld [vmem:[#allocation158_spill] sm:$0xff] }
 0x687   : > { %v3919_v35 = vadd.f32 %v15872_v13, %v12456_v9  ;;  %v3566_v10 = vadd.f32 %v15873_v28, %v12454_v49  ;;  %v13188_v51 = vadd.f32 %v6759_v19, %v12664_v8  ;;  %v6105_v38 = vmul.f32 %v5310_v37, %v3562_v44  ;;  %v5667_v42 = vpop.f32.mrb[51].mxu0  ;;  %v5314_v13 = vpop.f32.mrb[51].mxu1  ;;  %v15877_v28 = vld [vmem:[#allocation159_spill] sm:$0xff]  ;;  %v15878_v19 = vld [vmem:[#allocation24_spill] sm:$0xff] }
 0x688   : > { %v6107_v56 = vmul.f32 %v5663_v34, %v3915_v43  ;;  %v13190_v57 = vadd.f32 %v6627_v4, %v6626_v58  ;;  %v6452_v52 = vadd.f32 %v6104_v18, %v15875_v14  ;;  %v6454_v27 = vadd.f32 %v6106_v48, %v15876_v24  ;;  %v6761_v4 = vpop.permute.xlu0 %6760  ;;  %v15879_v37 = vld [vmem:[#allocation160_spill] sm:$0xff] }
 0x689   : > { %v6112_v60 = vmul.f32 %v5312_v1, %v3564_v12  ;;  %v6114_v2 = vmul.f32 %v5665_v0, %v3917_v50  ;;  %6816 = vrot.lane.b32.xlu0 %v13181_v55, %s8541_s25  ;;  %v6453_v8 = vadd.f32 %v6105_v38, %v15877_v28  ;;  %v6115_v43 = vmul.f32 %v5667_v42, %v3919_v35  ;;  %v15880_v12 = vld [vmem:[#allocation161_spill] sm:$0xff]  ;;  %v15882_v0 = vld [vmem:[#allocation163_spill] sm:$0xff]  ;;  %v15883_v38 = vld [vmem:[#allocation162_spill] sm:$0xff] }
 0x68a   : > { %15874 = vst [vmem:[#allocation251_spill] sm:$0xff] %v13190_v57  ;;  %v6455_v44 = vadd.f32 %v6107_v56, %v15878_v19  ;;  %6950 = vrot.lane.b32.xlu1 %v13188_v51, %s8542_s26  ;;  %v6113_v58 = vmul.f32 %v5314_v13, %v3566_v10  ;;  %v6628_v18 = vadd.f32 %v6454_v27, %v6452_v52  ;;  %v15884_v42 = vld [vmem:[#allocation419_spill] sm:$0xff]  ;;  %v15885_v10 = vld [vmem:[#allocation420_spill] sm:$0xff]  ;;  %v15886_v27 = vld [vmem:[#allocation421_spill] sm:$0xff] }
 0x68b   : > { %v6456_v48 = vadd.f32 %v6112_v60, %v15879_v37  ;;  %v6458_v50 = vadd.f32 %v6114_v2, %v15880_v12  ;;  %v13203_v34 = vadd.f32 %v6761_v4, %v12686_v11  ;;  %v6459_v14 = vadd.f32 %v6115_v43, %v15882_v0  ;;  %v6763_v28 = vpop.permute.xlu1 %6762  ;;  %v15887_v60 = vld [vmem:[#allocation422_spill] sm:$0xff] }
 0x68c   : > { %v6629_v1 = vadd.f32 %v6455_v44, %v6453_v8  ;;  %v6457_v24 = vadd.f32 %v6113_v58, %v15883_v38  ;;  %v3570_v35 = vadd.f32 %v15884_v42, %v12446_v46  ;;  %v3923_v52 = vadd.f32 %v15885_v10, %v12448_v61  ;;  %v5318_v8 = vpop.f32.mrb[52].mxu1  ;;  %v5671_v19 = vpop.f32.mrb[52].mxu0  ;;  %v15888_v44 = vld [vmem:[#allocation423_spill] sm:$0xff]  ;;  %v15889_v58 = vld [vmem:[#allocation424_spill] sm:$0xff]  ;;  %v15890_v38 = vld [vmem:[#allocation426_spill] sm:$0xff] }
 0x68d   : > { %15881 = vst [vmem:[#allocation252_spill] sm:$0xff] %v13203_v34  ;;  %v6630_v56 = vadd.f32 %v6458_v50, %v6456_v48  ;;  %6952 = vrot.lane.b32.xlu0 %v13203_v34, %s8542_s26  ;;  %v3572_v11 = vadd.f32 %v15886_v27, %v12454_v49  ;;  %v3925_v2 = vadd.f32 %v15887_v60, %v12456_v9  ;;  %v5320_v50 = vpop.f32.mrb[53].mxu1  ;;  %v5673_v0 = vpop.f32.mrb[53].mxu0 }
 0x68e   : > { %v6631_v13 = vadd.f32 %v6459_v14, %v6457_v24  ;;  %6818 = vrot.lane.b32.xlu1 %v13190_v57, %s8541_s25  ;;  %v3574_v43 = vadd.f32 %v15888_v44, %v12446_v46  ;;  %v3927_v4 = vadd.f32 %v15889_v58, %v12448_v61  ;;  %v13223_v37 = vadd.f32 %v6629_v1, %v6628_v18  ;;  %v15891_v24 = vld [vmem:[#allocation425_spill] sm:$0xff]  ;;  %v5322_v44 = vpop.f32.mrb[54].mxu1  ;;  %v5675_v57 = vpop.f32.mrb[54].mxu0  ;;  %v15893_v18 = vld [vmem:[#allocation164_spill] sm:$0xff] }
 0x68f   : > { %v6120_v48 = vmul.f32 %v5318_v8, %v3570_v35  ;;  %v6122_v12 = vmul.f32 %v5671_v19, %v3923_v52  ;;  %v3929_v14 = vadd.f32 %v15890_v38, %v12456_v9  ;;  %v3576_v42 = vadd.f32 %v15891_v24, %v12454_v49  ;;  %v15894_v35 = vld [vmem:[#allocation165_spill] sm:$0xff]  ;;  %v5677_v34 = vpop.f32.mrb[55].mxu0  ;;  %v5324_v38 = vpop.f32.mrb[55].mxu1  ;;  %v15895_v24 = vld [vmem:[#allocation166_spill] sm:$0xff] }
 0x690   : > { %v13230_v10 = vadd.f32 %v6763_v28, %v12696_v40  ;;  %v6121_v27 = vmul.f32 %v5320_v50, %v3572_v11  ;;  %v6123_v60 = vmul.f32 %v5673_v0, %v3925_v2  ;;  %v13232_v58 = vadd.f32 %v6631_v13, %v6630_v56  ;;  %v15896_v28 = vld [vmem:[#allocation167_spill] sm:$0xff]  ;;  %v6765_v13 = vpop.permute.xlu0 %6764 }
 0x691   : > { %v6460_v1 = vadd.f32 %v6120_v48, %v15893_v18  ;;  %v6462_v52 = vadd.f32 %v6122_v12, %v15894_v35  ;;  %v6128_v8 = vmul.f32 %v5322_v44, %v3574_v43  ;;  %v6130_v19 = vmul.f32 %v5675_v57, %v3927_v4  ;;  %6820 = vrot.lane.b32.xlu0 %v13223_v37, %s8541_s25  ;;  %v15897_v50 = vld [vmem:[#allocation23_spill] sm:$0xff]  ;;  %v15898_v43 = vld [vmem:[#allocation168_spill] sm:$0xff]  ;;  %v15900_v44 = vld [vmem:[#allocation170_spill] sm:$0xff] }
 0x692   : > { %15892 = vst [vmem:[#allocation253_spill] sm:$0xff] %v13232_v58  ;;  %v6461_v40 = vadd.f32 %v6121_v27, %v15895_v24  ;;  %v6463_v11 = vadd.f32 %v6123_v60, %v15896_v28  ;;  %v6131_v2 = vmul.f32 %v5677_v34, %v3929_v14  ;;  %6954 = vrot.lane.b32.xlu1 %v13230_v10, %s8542_s26  ;;  %v15901_v27 = vld [vmem:[#allocation169_spill] sm:$0xff]  ;;  %v15902_v34 = vld [vmem:[#allocation427_spill] sm:$0xff] }
 0x693   : > { %v6129_v56 = vmul.f32 %v5324_v38, %v3576_v42  ;;  %v6632_v48 = vadd.f32 %v6462_v52, %v6460_v1  ;;  %v6464_v12 = vadd.f32 %v6128_v8, %v15897_v50  ;;  %v6466_v57 = vadd.f32 %v6130_v19, %v15898_v43  ;;  %v6767_v24 = vpop.permute.xlu1 %6766  ;;  %v15903_v42 = vld [vmem:[#allocation428_spill] sm:$0xff]  ;;  %v15904_v52 = vld [vmem:[#allocation429_spill] sm:$0xff]  ;;  %v15905_v8 = vld [vmem:[#allocation430_spill] sm:$0xff] }
 0x694   : > { %v13245_v4 = vadd.f32 %v6765_v13, %v12718_v59  ;;  %v6633_v0 = vadd.f32 %v6463_v11, %v6461_v40  ;;  %v6467_v18 = vadd.f32 %v6131_v2, %v15900_v44  ;;  %v3580_v14 = vadd.f32 %v15902_v34, %v12446_v46  ;;  %v5328_v40 = vpop.f32.mrb[56].mxu1  ;;  %v5681_v28 = vpop.f32.mrb[56].mxu0  ;;  %v15906_v11 = vld [vmem:[#allocation431_spill] sm:$0xff] }
 0x695   : > { %v6465_v35 = vadd.f32 %v6129_v56, %v15901_v27  ;;  %v6634_v60 = vadd.f32 %v6466_v57, %v6464_v12  ;;  %v3933_v1 = vadd.f32 %v15903_v42, %v12448_v61  ;;  %v3582_v59 = vadd.f32 %v15904_v52, %v12454_v49  ;;  %v15907_v56 = vld [vmem:[#allocation432_spill] sm:$0xff]  ;;  %v5330_v57 = vpop.f32.mrb[57].mxu1  ;;  %v5683_v44 = vpop.f32.mrb[57].mxu0  ;;  %v15908_v27 = vld [vmem:[#allocation434_spill] sm:$0xff] }
 0x696   : > { %15899 = vst [vmem:[#allocation254_spill] sm:$0xff] %v13245_v4  ;;  %6956 = vrot.lane.b32.xlu0 %v13245_v4, %s8542_s26  ;;  %v3935_v19 = vadd.f32 %v15905_v8, %v12456_v9  ;;  %6822 = vrot.lane.b32.xlu1 %v13232_v58, %s8541_s25  ;;  %v3584_v2 = vadd.f32 %v15906_v11, %v12446_v46  ;;  %v5332_v11 = vpop.f32.mrb[58].mxu1  ;;  %v5685_v58 = vpop.f32.mrb[58].mxu0 }
 0x697   : > { %v6635_v38 = vadd.f32 %v6467_v18, %v6465_v35  ;;  %v3937_v13 = vadd.f32 %v15907_v56, %v12448_v61  ;;  %v13265_v50 = vadd.f32 %v6633_v0, %v6632_v48  ;;  %v6136_v12 = vmul.f32 %v5328_v40, %v3580_v14  ;;  %v15909_v35 = vld [vmem:[#allocation433_spill] sm:$0xff]  ;;  %v15911_v48 = vld [vmem:[#allocation171_spill] sm:$0xff]  ;;  %v15912_v14 = vld [vmem:[#allocation172_spill] sm:$0xff]  ;;  %v5687_v4 = vpop.f32.mrb[59].mxu0 }
 0x698   : > { %v6138_v43 = vmul.f32 %v5681_v28, %v3933_v1  ;;  %v3939_v18 = vadd.f32 %v15908_v27, %v12456_v9  ;;  %v3586_v34 = vadd.f32 %v15909_v35, %v12454_v49  ;;  %v13272_v42 = vadd.f32 %v6767_v24, %v12728_v21  ;;  %v5334_v27 = vpop.f32.mrb[59].mxu1  ;;  %v15913_v35 = vld [vmem:[#allocation173_spill] sm:$0xff]  ;;  %v15914_v24 = vld [vmem:[#allocation174_spill] sm:$0xff] }
 0x699   : > { %v6137_v52 = vmul.f32 %v5330_v57, %v3582_v59  ;;  %v6139_v8 = vmul.f32 %v5683_v44, %v3935_v19  ;;  %v13274_v56 = vadd.f32 %v6635_v38, %v6634_v60  ;;  %v6468_v0 = vadd.f32 %v6136_v12, %v15911_v48  ;;  %v6769_v38 = vpop.permute.xlu0 %6768  ;;  %v15915_v57 = vld [vmem:[#allocation175_spill] sm:$0xff] }
 0x69a   : > { %v6470_v1 = vadd.f32 %v6138_v43, %v15912_v14  ;;  %v6144_v40 = vmul.f32 %v5332_v11, %v3584_v2  ;;  %v6146_v28 = vmul.f32 %v5685_v58, %v3937_v13  ;;  %6824 = vrot.lane.b32.xlu0 %v13265_v50, %s8541_s25  ;;  %v6147_v19 = vmul.f32 %v5687_v4, %v3939_v18  ;;  %v15916_v2 = vld [vmem:[#allocation3_spill] sm:$0xff]  ;;  %v15918_v11 = vld [vmem:[#allocation177_spill] sm:$0xff] }
 0x69b   : > { %15910 = vst [vmem:[#allocation255_spill] sm:$0xff] %v13274_v56  ;;  %v6469_v21 = vadd.f32 %v6137_v52, %v15913_v35  ;;  %v6471_v59 = vadd.f32 %v6139_v8, %v15914_v24  ;;  %6958 = vrot.lane.b32.xlu1 %v13272_v42, %s8542_s26  ;;  %v6145_v60 = vmul.f32 %v5334_v27, %v3586_v34  ;;  %v15919_v52 = vld [vmem:[#allocation176_spill] sm:$0xff]  ;;  %v15920_v4 = vld [vmem:[#allocation435_spill] sm:$0xff]  ;;  %v6771_v35 = vpop.permute.xlu1 %6770 }
 0x69c   : > { %v6636_v12 = vadd.f32 %v6470_v1, %v6468_v0  ;;  %v6472_v43 = vadd.f32 %v6144_v40, %v15915_v57  ;;  %v6474_v58 = vadd.f32 %v6146_v28, %v15916_v2  ;;  %v13287_v13 = vadd.f32 %v6769_v38, %v12750_v25  ;;  %v15921_v34 = vld [vmem:[#allocation436_spill] sm:$0xff]  ;;  %v15922_v1 = vld [vmem:[#allocation437_spill] sm:$0xff]  ;;  %v15923_v40 = vld [vmem:[#allocation438_spill] sm:$0xff]  ;;  %v5691_v24 = vpop.f32.mrb[60].mxu0 }
 0x69d   : > { %v6637_v44 = vadd.f32 %v6471_v59, %v6469_v21  ;;  %v6475_v48 = vadd.f32 %v6147_v19, %v15918_v11  ;;  %v6473_v14 = vadd.f32 %v6145_v60, %v15919_v52  ;;  %v3590_v18 = vadd.f32 %v15920_v4, %v12446_v46  ;;  %v5338_v21 = vpop.f32.mrb[60].mxu1  ;;  %v15924_v59 = vld [vmem:[#allocation439_spill] sm:$0xff]  ;;  %v15925_v60 = vld [vmem:[#allocation440_spill] sm:$0xff]  ;;  %v5693_v11 = vpop.f32.mrb[61].mxu0  ;;  %v15926_v52 = vld [vmem:[#allocation442_spill] sm:$0xff] }
 0x69e   : > { %15917 = vst [vmem:[#allocation13_spill] sm:$0xff] %v13287_v13  ;;  %v6638_v8 = vadd.f32 %v6474_v58, %v6472_v43  ;;  %6960 = vrot.lane.b32.xlu0 %v13287_v13, %s8542_s26  ;;  %v3943_v0 = vadd.f32 %v15921_v34, %v12448_v61  ;;  %v3592_v25 = vadd.f32 %v15922_v1, %v12454_v49  ;;  %v5340_v58 = vpop.f32.mrb[61].mxu1 }
 0x69f   : > { %v3945_v28 = vadd.f32 %v15923_v40, %v12456_v9  ;;  %v6639_v27 = vadd.f32 %v6475_v48, %v6473_v14  ;;  %6826 = vrot.lane.b32.xlu1 %v13274_v56, %s8541_s25  ;;  %v3594_v19 = vadd.f32 %v15924_v59, %v12446_v46  ;;  %v3947_v38 = vadd.f32 %v15925_v60, %v12448_v61  ;;  %v15927_v14 = vld [vmem:[#allocation441_spill] sm:$0xff]  ;;  %v5342_v59 = vpop.f32.mrb[62].mxu1  ;;  %v5695_v56 = vpop.f32.mrb[62].mxu0 }
 0x6a0   : > { %v13307_v57 = vadd.f32 %v6637_v44, %v6636_v12  ;;  %v6152_v43 = vmul.f32 %v5338_v21, %v3590_v18  ;;  %v6154_v2 = vmul.f32 %v5691_v24, %v3943_v0  ;;  %v3949_v48 = vadd.f32 %v15926_v52, %v12456_v9  ;;  %v15929_v12 = vld [vmem:[#allocation178_spill] sm:$0xff]  ;;  %v15930_v18 = vld [vmem:[#allocation179_spill] sm:$0xff]  ;;  %v5697_v13 = vpop.f32.mrb[63].mxu0  ;;  %v5344_v52 = vpop.f32.mrb[63].mxu1 }
 0x6a1   : > { %v3596_v4 = vadd.f32 %v15927_v14, %v12454_v49  ;;  %v13314_v34 = vadd.f32 %v6771_v35, %v12760_v30  ;;  %v6153_v1 = vmul.f32 %v5340_v58, %v3592_v25  ;;  %v6155_v40 = vmul.f32 %v5693_v11, %v3945_v28  ;;  %v15931_v14 = vld [vmem:[#allocation180_spill] sm:$0xff]  ;;  %v15932_v35 = vld [vmem:[#allocation181_spill] sm:$0xff]  ;;  %v15933_v58 = vld [vmem:[#allocation182_spill] sm:$0xff] }
 0x6a2   : > { %v13316_v60 = vadd.f32 %v6639_v27, %v6638_v8  ;;  %v6476_v44 = vadd.f32 %v6152_v43, %v15929_v12  ;;  %v6478_v0 = vadd.f32 %v6154_v2, %v15930_v18  ;;  %v6160_v21 = vmul.f32 %v5342_v59, %v3594_v19  ;;  %6828 = vrot.lane.b32.xlu0 %v13307_v57, %s8541_s25  ;;  %v6773_v27 = vpop.permute.xlu0 %6772  ;;  %v15934_v19 = vld [vmem:[#allocation183_spill] sm:$0xff]  ;;  %v15936_v59 = vld [vmem:[#allocation184_spill] sm:$0xff] }
 0x6a3   : > { %v6162_v24 = vmul.f32 %v5695_v56, %v3947_v38  ;;  %v6477_v30 = vadd.f32 %v6153_v1, %v15931_v14  ;;  %v6479_v25 = vadd.f32 %v6155_v40, %v15932_v35  ;;  %v6163_v28 = vmul.f32 %v5697_v13, %v3949_v48  ;;  %6962 = vrot.lane.b32.xlu1 %v13314_v34, %s8542_s26  ;;  %v15937_v1 = vld [vmem:[#allocation2_spill] sm:$0xff]  ;;  %v15938_v13 = vld [vmem:[#allocation443_spill] sm:$0xff]  ;;  %v6775_v14 = vpop.permute.xlu1 %6774 }
 0x6a4   : > { %15928 = vst [vmem:[#allocation256_spill] sm:$0xff] %v13316_v60  ;;  %v6161_v8 = vmul.f32 %v5344_v52, %v3596_v4  ;;  %v6640_v43 = vadd.f32 %v6478_v0, %v6476_v44  ;;  %v6480_v2 = vadd.f32 %v6160_v21, %v15933_v58  ;;  %v13329_v38 = vadd.f32 %v6773_v27, %v12782_v53  ;;  %v15939_v4 = vld [vmem:[#allocation444_spill] sm:$0xff]  ;;  %v15940_v0 = vld [vmem:[#allocation445_spill] sm:$0xff]  ;;  %v15941_v21 = vld [vmem:[#allocation446_spill] sm:$0xff]  ;;  %v5701_v35 = vpop.f32.mrb[64].mxu0 }
 0x6a5   : > { %v6482_v56 = vadd.f32 %v6162_v24, %v15934_v19  ;;  %v6641_v11 = vadd.f32 %v6479_v25, %v6477_v30  ;;  %v6483_v12 = vadd.f32 %v6163_v28, %v15936_v59  ;;  %v3600_v48 = vadd.f32 %v15938_v13, %v12446_v46  ;;  %v5348_v30 = vpop.f32.mrb[64].mxu1  ;;  %v15942_v25 = vld [vmem:[#allocation447_spill] sm:$0xff]  ;;  %v5703_v59 = vpop.f32.mrb[65].mxu0 }
 0x6a6   : > { %15935 = vst [vmem:[#allocation257_spill] sm:$0xff] %v13329_v38  ;;  %v6481_v18 = vadd.f32 %v6161_v8, %v15937_v1  ;;  %6964 = vrot.lane.b32.xlu0 %v13329_v38, %s8542_s26  ;;  %v3953_v44 = vadd.f32 %v15939_v4, %v12448_v61  ;;  %v3602_v53 = vadd.f32 %v15940_v0, %v12454_v49  ;;  %v15943_v8 = vld [vmem:[#allocation448_spill] sm:$0xff]  ;;  %v15944_v1 = vld [vmem:[#allocation450_spill] sm:$0xff] }
 0x6a7   : > { %v6642_v40 = vadd.f32 %v6482_v56, %v6480_v2  ;;  %v3955_v24 = vadd.f32 %v15941_v21, %v12456_v9  ;;  %6830 = vrot.lane.b32.xlu1 %v13316_v60, %s8541_s25  ;;  %v3604_v28 = vadd.f32 %v15942_v25, %v12446_v46  ;;  %v3957_v27 = vadd.f32 %v15943_v8, %v12448_v61  ;;  %v5350_v56 = vpop.f32.mrb[65].mxu1  ;;  %v5705_v60 = vpop.f32.mrb[66].mxu0 }
 0x6a8   : > { %v6643_v52 = vadd.f32 %v6483_v12, %v6481_v18  ;;  %v13349_v58 = vadd.f32 %v6641_v11, %v6640_v43  ;;  %v6168_v2 = vmul.f32 %v5348_v30, %v3600_v48  ;;  %v6170_v19 = vmul.f32 %v5701_v35, %v3953_v44  ;;  %v15945_v18 = vld [vmem:[#allocation449_spill] sm:$0xff]  ;;  %v5352_v25 = vpop.f32.mrb[66].mxu1  ;;  %v15948_v48 = vld [vmem:[#allocation186_spill] sm:$0xff]  ;;  %v5707_v38 = vpop.f32.mrb[67].mxu0 }
 0x6a9   : > { %v3959_v12 = vadd.f32 %v15944_v1, %v12456_v9  ;;  %v3606_v13 = vadd.f32 %v15945_v18, %v12454_v49  ;;  %v13356_v4 = vadd.f32 %v6775_v14, %v12792_v15  ;;  %v6169_v0 = vmul.f32 %v5350_v56, %v3602_v53  ;;  %v15947_v43 = vld [vmem:[#allocation185_spill] sm:$0xff]  ;;  %v5354_v1 = vpop.f32.mrb[67].mxu1  ;;  %v15949_v18 = vld [vmem:[#allocation187_spill] sm:$0xff]  ;;  %v15950_v14 = vld [vmem:[#allocation188_spill] sm:$0xff] }
 0x6aa   : > { %v6171_v21 = vmul.f32 %v5703_v59, %v3955_v24  ;;  %v13358_v8 = vadd.f32 %v6643_v52, %v6642_v40  ;;  %v6484_v11 = vadd.f32 %v6168_v2, %v15947_v43  ;;  %v6486_v44 = vadd.f32 %v6170_v19, %v15948_v48  ;;  %6832 = vrot.lane.b32.xlu0 %v13349_v58, %s8541_s25  ;;  %v6777_v52 = vpop.permute.xlu0 %6776  ;;  %v15951_v56 = vld [vmem:[#allocation189_spill] sm:$0xff] }
 0x6ab   : > { %v6176_v30 = vmul.f32 %v5352_v25, %v3604_v28  ;;  %v6178_v35 = vmul.f32 %v5705_v60, %v3957_v27  ;;  %v6485_v15 = vadd.f32 %v6169_v0, %v15949_v18  ;;  %v6179_v24 = vmul.f32 %v5707_v38, %v3959_v12  ;;  %6966 = vrot.lane.b32.xlu1 %v13356_v4, %s8542_s26  ;;  %v15952_v28 = vld [vmem:[#allocation190_spill] sm:$0xff]  ;;  %v15954_v25 = vld [vmem:[#allocation5_spill] sm:$0xff]  ;;  %v15955_v0 = vld [vmem:[#allocation191_spill] sm:$0xff]  ;;  %v6779_v18 = vpop.permute.xlu1 %6778 }
 0x6ac   : > { %15946 = vst [vmem:[#allocation258_spill] sm:$0xff] %v13358_v8  ;;  %v6487_v53 = vadd.f32 %v6171_v21, %v15950_v14  ;;  %v6177_v40 = vmul.f32 %v5354_v1, %v3606_v13  ;;  %v6644_v2 = vadd.f32 %v6486_v44, %v6484_v11  ;;  %v13371_v27 = vadd.f32 %v6777_v52, %v12814_v54  ;;  %v15956_v38 = vld [vmem:[#allocation451_spill] sm:$0xff]  ;;  %v15957_v13 = vld [vmem:[#allocation452_spill] sm:$0xff]  ;;  %v15958_v44 = vld [vmem:[#allocation453_spill] sm:$0xff]  ;;  %v5711_v14 = vpop.f32.mrb[68].mxu0 }
 0x6ad   : > { %v6488_v19 = vadd.f32 %v6176_v30, %v15951_v56  ;;  %v6490_v60 = vadd.f32 %v6178_v35, %v15952_v28  ;;  %v6491_v43 = vadd.f32 %v6179_v24, %v15954_v25  ;;  %v3610_v12 = vadd.f32 %v15956_v38, %v12446_v46  ;;  %v15959_v30 = vld [vmem:[#allocation454_spill] sm:$0xff]  ;;  %v5713_v25 = vpop.f32.mrb[69].mxu0 }
 0x6ae   : > { %15953 = vst [vmem:[#allocation259_spill] sm:$0xff] %v13371_v27  ;;  %v6645_v59 = vadd.f32 %v6487_v53, %v6485_v15  ;;  %v6489_v48 = vadd.f32 %v6177_v40, %v15955_v0  ;;  %6968 = vrot.lane.b32.xlu0 %v13371_v27, %s8542_s26  ;;  %v3963_v11 = vadd.f32 %v15957_v13, %v12448_v61  ;;  %v5358_v15 = vpop.f32.mrb[68].mxu1  ;;  %v15960_v53 = vld [vmem:[#allocation455_spill] sm:$0xff]  ;;  %v15961_v40 = vld [vmem:[#allocation456_spill] sm:$0xff]  ;;  %v15962_v0 = vld [vmem:[#allocation458_spill] sm:$0xff] }
 0x6af   : > { %v6646_v21 = vadd.f32 %v6490_v60, %v6488_v19  ;;  %v3612_v54 = vadd.f32 %v15958_v44, %v12454_v49  ;;  %v3965_v35 = vadd.f32 %v15959_v30, %v12456_v9  ;;  %6834 = vrot.lane.b32.xlu1 %v13358_v8, %s8541_s25  ;;  %v3614_v24 = vadd.f32 %v15960_v53, %v12446_v46  ;;  %v5360_v60 = vpop.f32.mrb[69].mxu1  ;;  %v5715_v8 = vpop.f32.mrb[70].mxu0 }
 0x6b0   : > { %v6647_v1 = vadd.f32 %v6491_v43, %v6489_v48  ;;  %v3967_v52 = vadd.f32 %v15961_v40, %v12448_v61  ;;  %v13391_v56 = vadd.f32 %v6645_v59, %v6644_v2  ;;  %v6184_v19 = vmul.f32 %v5358_v15, %v3610_v12  ;;  %v15963_v48 = vld [vmem:[#allocation457_spill] sm:$0xff]  ;;  %v5362_v53 = vpop.f32.mrb[70].mxu1  ;;  %v15965_v2 = vld [vmem:[#allocation192_spill] sm:$0xff]  ;;  %v5717_v27 = vpop.f32.mrb[71].mxu0 }
 0x6b1   : > { %v6186_v28 = vmul.f32 %v5711_v14, %v3963_v11  ;;  %v3969_v43 = vadd.f32 %v15962_v0, %v12456_v9  ;;  %v3616_v38 = vadd.f32 %v15963_v48, %v12454_v49  ;;  %v13398_v13 = vadd.f32 %v6779_v18, %v12824_v29  ;;  %v15966_v12 = vld [vmem:[#allocation193_spill] sm:$0xff]  ;;  %v5364_v0 = vpop.f32.mrb[71].mxu1  ;;  %v15967_v48 = vld [vmem:[#allocation194_spill] sm:$0xff]  ;;  %v15968_v18 = vld [vmem:[#allocation195_spill] sm:$0xff] }
 0x6b2   : > { %v6185_v44 = vmul.f32 %v5360_v60, %v3612_v54  ;;  %v6187_v30 = vmul.f32 %v5713_v25, %v3965_v35  ;;  %v13400_v40 = vadd.f32 %v6647_v1, %v6646_v21  ;;  %v6492_v59 = vadd.f32 %v6184_v19, %v15965_v2  ;;  %6836 = vrot.lane.b32.xlu0 %v13391_v56, %s8541_s25  ;;  %v6781_v1 = vpop.permute.xlu0 %6780  ;;  %v15969_v60 = vld [vmem:[#allocation196_spill] sm:$0xff] }
 0x6b3   : > { %v6494_v11 = vadd.f32 %v6186_v28, %v15966_v12  ;;  %v6192_v15 = vmul.f32 %v5362_v53, %v3614_v24  ;;  %v6194_v14 = vmul.f32 %v5715_v8, %v3967_v52  ;;  %v6195_v35 = vmul.f32 %v5717_v27, %v3969_v43  ;;  %6970 = vrot.lane.b32.xlu1 %v13398_v13, %s8542_s26  ;;  %v15970_v24 = vld [vmem:[#allocation197_spill] sm:$0xff]  ;;  %v15972_v53 = vld [vmem:[#allocation199_spill] sm:$0xff] }
 0x6b4   : > { %15964 = vst [vmem:[#allocation260_spill] sm:$0xff] %v13400_v40  ;;  %v6493_v29 = vadd.f32 %v6185_v44, %v15967_v48  ;;  %v6495_v54 = vadd.f32 %v6187_v30, %v15968_v18  ;;  %v6193_v21 = vmul.f32 %v5364_v0, %v3616_v38  ;;  %v13413_v52 = vadd.f32 %v6781_v1, %v12846_v6  ;;  %v15973_v44 = vld [vmem:[#allocation198_spill] sm:$0xff]  ;;  %v15974_v27 = vld [vmem:[#allocation459_spill] sm:$0xff]  ;;  %v6783_v48 = vpop.permute.xlu1 %6782  ;;  %v15975_v38 = vld [vmem:[#allocation460_spill] sm:$0xff]  ;;  %v5721_v18 = vpop.f32.mrb[72].mxu0 }
 0x6b5   : > { %v6648_v19 = vadd.f32 %v6494_v11, %v6492_v59  ;;  %v6496_v28 = vadd.f32 %v6192_v15, %v15969_v60  ;;  %v6498_v8 = vadd.f32 %v6194_v14, %v15970_v24  ;;  %v6499_v2 = vadd.f32 %v6195_v35, %v15972_v53  ;;  %v15976_v11 = vld [vmem:[#allocation461_spill] sm:$0xff]  ;;  %v15977_v15 = vld [vmem:[#allocation462_spill] sm:$0xff]  ;;  %v5723_v53 = vpop.f32.mrb[73].mxu0 }
 0x6b6   : > { %15971 = vst [vmem:[#allocation261_spill] sm:$0xff] %v13413_v52  ;;  %v6649_v25 = vadd.f32 %v6495_v54, %v6493_v29  ;;  %v6497_v12 = vadd.f32 %v6193_v21, %v15973_v44  ;;  %v3620_v43 = vadd.f32 %v15974_v27, %v12446_v46  ;;  %6972 = vrot.lane.b32.xlu0 %v13413_v52, %s8542_s26  ;;  %v5368_v29 = vpop.f32.mrb[72].mxu1  ;;  %v15978_v54 = vld [vmem:[#allocation463_spill] sm:$0xff]  ;;  %v15979_v21 = vld [vmem:[#allocation464_spill] sm:$0xff]  ;;  %v15980_v44 = vld [vmem:[#allocation466_spill] sm:$0xff] }
 0x6b7   : > { %v6650_v30 = vadd.f32 %v6498_v8, %v6496_v28  ;;  %v3973_v59 = vadd.f32 %v15975_v38, %v12448_v61  ;;  %v3622_v6 = vadd.f32 %v15976_v11, %v12454_v49  ;;  %v3975_v14 = vadd.f32 %v15977_v15, %v12456_v9  ;;  %6838 = vrot.lane.b32.xlu1 %v13400_v40, %s8541_s25  ;;  %v5370_v8 = vpop.f32.mrb[73].mxu1  ;;  %v5725_v40 = vpop.f32.mrb[74].mxu0 }
 0x6b8   : > { %v6651_v0 = vadd.f32 %v6499_v2, %v6497_v12  ;;  %v3624_v35 = vadd.f32 %v15978_v54, %v12446_v46  ;;  %v3977_v1 = vadd.f32 %v15979_v21, %v12448_v61  ;;  %v13433_v60 = vadd.f32 %v6649_v25, %v6648_v19  ;;  %v15981_v12 = vld [vmem:[#allocation465_spill] sm:$0xff]  ;;  %v5372_v54 = vpop.f32.mrb[74].mxu1  ;;  %v15983_v19 = vld [vmem:[#allocation4_spill] sm:$0xff]  ;;  %v5727_v52 = vpop.f32.mrb[75].mxu0 }
 0x6b9   : > { %v6200_v28 = vmul.f32 %v5368_v29, %v3620_v43  ;;  %v6202_v24 = vmul.f32 %v5721_v18, %v3973_v59  ;;  %v3979_v2 = vadd.f32 %v15980_v44, %v12456_v9  ;;  %v3626_v27 = vadd.f32 %v15981_v12, %v12454_v49  ;;  %v15984_v43 = vld [vmem:[#allocation200_spill] sm:$0xff]  ;;  %v5374_v44 = vpop.f32.mrb[75].mxu1  ;;  %v15985_v12 = vld [vmem:[#allocation201_spill] sm:$0xff] }
 0x6ba   : > { %v13440_v38 = vadd.f32 %v6783_v48, %v12856_v47  ;;  %v6201_v11 = vmul.f32 %v5370_v8, %v3622_v6  ;;  %v6203_v15 = vmul.f32 %v5723_v53, %v3975_v14  ;;  %v13442_v21 = vadd.f32 %v6651_v0, %v6650_v30  ;;  %6840 = vrot.lane.b32.xlu0 %v13433_v60, %s8541_s25  ;;  %v15986_v48 = vld [vmem:[#allocation202_spill] sm:$0xff]  ;;  %v6785_v0 = vpop.permute.xlu0 %6784  ;;  %v15987_v8 = vld [vmem:[#allocation203_spill] sm:$0xff] }
 0x6bb   : > { %v6500_v25 = vadd.f32 %v6200_v28, %v15983_v19  ;;  %v6502_v59 = vadd.f32 %v6202_v24, %v15984_v43  ;;  %v6208_v29 = vmul.f32 %v5372_v54, %v3624_v35  ;;  %v6210_v18 = vmul.f32 %v5725_v40, %v3977_v1  ;;  %v15988_v35 = vld [vmem:[#allocation204_spill] sm:$0xff]  ;;  %v15990_v54 = vld [vmem:[#allocation206_spill] sm:$0xff] }
 0x6bc   : > { %15982 = vst [vmem:[#allocation262_spill] sm:$0xff] %v13442_v21  ;;  %v6501_v47 = vadd.f32 %v6201_v11, %v15985_v12  ;;  %v6503_v6 = vadd.f32 %v6203_v15, %v15986_v48  ;;  %v6211_v14 = vmul.f32 %v5727_v52, %v3979_v2  ;;  %6974 = vrot.lane.b32.xlu1 %v13440_v38, %s8542_s26  ;;  %v15991_v11 = vld [vmem:[#allocation205_spill] sm:$0xff]  ;;  %v15992_v52 = vld [vmem:[#allocation467_spill] sm:$0xff]  ;;  %v6787_v12 = vpop.permute.xlu1 %6786  ;;  %v5731_v48 = vpop.f32.mrb[76].mxu0 }
 0x6bd   : > { %v6209_v30 = vmul.f32 %v5374_v44, %v3626_v27  ;;  %v6652_v28 = vadd.f32 %v6502_v59, %v6500_v25  ;;  %v6504_v24 = vadd.f32 %v6208_v29, %v15987_v8  ;;  %v6506_v40 = vadd.f32 %v6210_v18, %v15988_v35  ;;  %v15993_v27 = vld [vmem:[#allocation468_spill] sm:$0xff]  ;;  %v15994_v59 = vld [vmem:[#allocation469_spill] sm:$0xff]  ;;  %v15995_v29 = vld [vmem:[#allocation470_spill] sm:$0xff] }
 0x6be   : > { %v13455_v1 = vadd.f32 %v6785_v0, %v12878_v22  ;;  %v6653_v53 = vadd.f32 %v6503_v6, %v6501_v47  ;;  %v6507_v19 = vadd.f32 %v6211_v14, %v15990_v54  ;;  %v3630_v2 = vadd.f32 %v15992_v52, %v12446_v46  ;;  %v5378_v47 = vpop.f32.mrb[76].mxu1  ;;  %v15996_v6 = vld [vmem:[#allocation471_spill] sm:$0xff]  ;;  %v5733_v54 = vpop.f32.mrb[77].mxu0 }
 0x6bf   : > { %v6505_v43 = vadd.f32 %v6209_v30, %v15991_v11  ;;  %v6654_v15 = vadd.f32 %v6506_v40, %v6504_v24  ;;  %v3983_v25 = vadd.f32 %v15993_v27, %v12448_v61  ;;  %v3632_v22 = vadd.f32 %v15994_v59, %v12454_v49  ;;  %v15997_v30 = vld [vmem:[#allocation472_spill] sm:$0xff]  ;;  %v5380_v40 = vpop.f32.mrb[77].mxu1  ;;  %v15998_v11 = vld [vmem:[#allocation474_spill] sm:$0xff] }
 0x6c0   : > { %15989 = vst [vmem:[#allocation263_spill] sm:$0xff] %v13455_v1  ;;  %6976 = vrot.lane.b32.xlu0 %v13455_v1, %s8542_s26  ;;  %v3985_v18 = vadd.f32 %v15995_v29, %v12456_v9  ;;  %6842 = vrot.lane.b32.xlu1 %v13442_v21, %s8541_s25  ;;  %v3634_v14 = vadd.f32 %v15996_v6, %v12446_v46  ;;  %v5382_v6 = vpop.f32.mrb[78].mxu1  ;;  %v5735_v21 = vpop.f32.mrb[78].mxu0 }
 0x6c1   : > { %v6655_v44 = vadd.f32 %v6507_v19, %v6505_v43  ;;  %v3987_v0 = vadd.f32 %v15997_v30, %v12448_v61  ;;  %v13475_v8 = vadd.f32 %v6653_v53, %v6652_v28  ;;  %v6216_v24 = vmul.f32 %v5378_v47, %v3630_v2  ;;  %v15999_v43 = vld [vmem:[#allocation473_spill] sm:$0xff]  ;;  %v16001_v28 = vld [vmem:[#allocation207_spill] sm:$0xff]  ;;  %v5737_v1 = vpop.f32.mrb[79].mxu0 }
 0x6c2   : > { %v6218_v35 = vmul.f32 %v5731_v48, %v3983_v25  ;;  %v3989_v19 = vadd.f32 %v15998_v11, %v12456_v9  ;;  %v3636_v52 = vadd.f32 %v15999_v43, %v12454_v49  ;;  %v13482_v27 = vadd.f32 %v6787_v12, %v12888_v32  ;;  %v16002_v2 = vld [vmem:[#allocation7_spill] sm:$0xff]  ;;  %v5384_v11 = vpop.f32.mrb[79].mxu1  ;;  %v16003_v43 = vld [vmem:[#allocation208_spill] sm:$0xff]  ;;  %v16004_v12 = vld [vmem:[#allocation209_spill] sm:$0xff] }
 0x6c3   : > { %v6217_v59 = vmul.f32 %v5380_v40, %v3632_v22  ;;  %v6219_v29 = vmul.f32 %v5733_v54, %v3985_v18  ;;  %v13484_v30 = vadd.f32 %v6655_v44, %v6654_v15  ;;  %v6508_v53 = vadd.f32 %v6216_v24, %v16001_v28  ;;  %v6789_v44 = vpop.permute.xlu0 %6788  ;;  %v16005_v40 = vld [vmem:[#allocation210_spill] sm:$0xff] }
 0x6c4   : > { %v6510_v25 = vadd.f32 %v6218_v35, %v16002_v2  ;;  %v6224_v47 = vmul.f32 %v5382_v6, %v3634_v14  ;;  %v6226_v48 = vmul.f32 %v5735_v21, %v3987_v0  ;;  %6844 = vrot.lane.b32.xlu0 %v13475_v8, %s8541_s25  ;;  %v6227_v18 = vmul.f32 %v5737_v1, %v3989_v19  ;;  %v16006_v14 = vld [vmem:[#allocation211_spill] sm:$0xff]  ;;  %v16008_v6 = vld [vmem:[#allocation213_spill] sm:$0xff] }
 0x6c5   : > { %16000 = vst [vmem:[#allocation25_spill] sm:$0xff] %v13484_v30  ;;  %v6509_v32 = vadd.f32 %v6217_v59, %v16003_v43  ;;  %v6511_v22 = vadd.f32 %v6219_v29, %v16004_v12  ;;  %6978 = vrot.lane.b32.xlu1 %v13482_v27, %s8542_s26  ;;  %v6225_v15 = vmul.f32 %v5384_v11, %v3636_v52  ;;  %v16009_v59 = vld [vmem:[#allocation212_spill] sm:$0xff]  ;;  %v16010_v1 = vld [vmem:[#allocation475_spill] sm:$0xff]  ;;  %v6791_v43 = vpop.permute.xlu1 %6790  ;;  %v5741_v12 = vpop.f32.mrb[80].mxu0 }
 0x6c6   : > { %v6656_v24 = vadd.f32 %v6510_v25, %v6508_v53  ;;  %v6512_v35 = vadd.f32 %v6224_v47, %v16005_v40  ;;  %v6514_v21 = vadd.f32 %v6226_v48, %v16006_v14  ;;  %v13497_v0 = vadd.f32 %v6789_v44, %v12910_v41  ;;  %v16011_v52 = vld [vmem:[#allocation476_spill] sm:$0xff]  ;;  %v16012_v25 = vld [vmem:[#allocation477_spill] sm:$0xff]  ;;  %v16013_v47 = vld [vmem:[#allocation478_spill] sm:$0xff] }
 0x6c7   : > { %v6657_v54 = vadd.f32 %v6511_v22, %v6509_v32  ;;  %v6515_v28 = vadd.f32 %v6227_v18, %v16008_v6  ;;  %v6513_v2 = vadd.f32 %v6225_v15, %v16009_v59  ;;  %v3640_v19 = vadd.f32 %v16010_v1, %v12446_v46  ;;  %v5388_v32 = vpop.f32.mrb[80].mxu1  ;;  %v16014_v22 = vld [vmem:[#allocation479_spill] sm:$0xff]  ;;  %v16015_v15 = vld [vmem:[#allocation480_spill] sm:$0xff]  ;;  %v5743_v6 = vpop.f32.mrb[81].mxu0  ;;  %v16016_v59 = vld [vmem:[#allocation482_spill] sm:$0xff] }
 0x6c8   : > { %16007 = vst [vmem:[#allocation26_spill] sm:$0xff] %v13497_v0  ;;  %v6658_v29 = vadd.f32 %v6514_v21, %v6512_v35  ;;  %6980 = vrot.lane.b32.xlu0 %v13497_v0, %s8542_s26  ;;  %v3993_v53 = vadd.f32 %v16011_v52, %v12448_v61  ;;  %v3642_v41 = vadd.f32 %v16012_v25, %v12454_v49  ;;  %v5390_v21 = vpop.f32.mrb[81].mxu1 }
 0x6c9   : > { %v3995_v48 = vadd.f32 %v16013_v47, %v12456_v9  ;;  %v6659_v11 = vadd.f32 %v6515_v28, %v6513_v2  ;;  %6846 = vrot.lane.b32.xlu1 %v13484_v30, %s8541_s25  ;;  %v3644_v18 = vadd.f32 %v16014_v22, %v12446_v46  ;;  %v3997_v44 = vadd.f32 %v16015_v15, %v12448_v61  ;;  %v16017_v2 = vld [vmem:[#allocation481_spill] sm:$0xff]  ;;  %v5392_v22 = vpop.f32.mrb[82].mxu1  ;;  %v5745_v30 = vpop.f32.mrb[82].mxu0 }
 0x6ca   : > { %v13517_v40 = vadd.f32 %v6657_v54, %v6656_v24  ;;  %v6232_v35 = vmul.f32 %v5388_v32, %v3640_v19  ;;  %v6234_v14 = vmul.f32 %v5741_v12, %v3993_v53  ;;  %v3999_v28 = vadd.f32 %v16016_v59, %v12456_v9  ;;  %v16019_v24 = vld [vmem:[#allocation214_spill] sm:$0xff]  ;;  %v16020_v19 = vld [vmem:[#allocation215_spill] sm:$0xff]  ;;  %v5747_v0 = vpop.f32.mrb[83].mxu0  ;;  %v5394_v59 = vpop.f32.mrb[83].mxu1 }
 0x6cb   : > { %v3646_v1 = vadd.f32 %v16017_v2, %v12454_v49  ;;  %v13524_v52 = vadd.f32 %v6791_v43, %v12920_v3  ;;  %v6233_v25 = vmul.f32 %v5390_v21, %v3642_v41  ;;  %v6235_v47 = vmul.f32 %v5743_v6, %v3995_v48  ;;  %v16021_v2 = vld [vmem:[#allocation6_spill] sm:$0xff]  ;;  %v16022_v43 = vld [vmem:[#allocation216_spill] sm:$0xff]  ;;  %v16023_v21 = vld [vmem:[#allocation217_spill] sm:$0xff] }
 0x6cc   : > { %v13526_v15 = vadd.f32 %v6659_v11, %v6658_v29  ;;  %v6516_v54 = vadd.f32 %v6232_v35, %v16019_v24  ;;  %v6518_v53 = vadd.f32 %v6234_v14, %v16020_v19  ;;  %v6240_v32 = vmul.f32 %v5392_v22, %v3644_v18  ;;  %6848 = vrot.lane.b32.xlu0 %v13517_v40, %s8541_s25  ;;  %v6793_v11 = vpop.permute.xlu0 %6792  ;;  %v16024_v18 = vld [vmem:[#allocation218_spill] sm:$0xff]  ;;  %v16026_v22 = vld [vmem:[#allocation220_spill] sm:$0xff] }
 0x6cd   : > { %v6242_v12 = vmul.f32 %v5745_v30, %v3997_v44  ;;  %v6517_v3 = vadd.f32 %v6233_v25, %v16021_v2  ;;  %v6519_v41 = vadd.f32 %v6235_v47, %v16022_v43  ;;  %v6243_v48 = vmul.f32 %v5747_v0, %v3999_v28  ;;  %6982 = vrot.lane.b32.xlu1 %v13524_v52, %s8542_s26  ;;  %v16027_v25 = vld [vmem:[#allocation219_spill] sm:$0xff]  ;;  %v6795_v2 = vpop.permute.xlu1 %6794  ;;  %v5751_v43 = vpop.f32.mrb[84].mxu0 }
 0x6ce   : > { %16018 = vst [vmem:[#allocation27_spill] sm:$0xff] %v13526_v15  ;;  %v6241_v29 = vmul.f32 %v5394_v59, %v3646_v1  ;;  %v6660_v35 = vadd.f32 %v6518_v53, %v6516_v54  ;;  %v6520_v14 = vadd.f32 %v6240_v32, %v16023_v21  ;;  %v13539_v44 = vadd.f32 %v6793_v11, %v12942_v7  ;;  %v16028_v0 = vld [vmem:[#allocation483_spill] sm:$0xff]  ;;  %v16029_v1 = vld [vmem:[#allocation484_spill] sm:$0xff]  ;;  %v16030_v53 = vld [vmem:[#allocation485_spill] sm:$0xff] }
 0x6cf   : > { %v6522_v30 = vadd.f32 %v6242_v12, %v16024_v18  ;;  %v6661_v6 = vadd.f32 %v6519_v41, %v6517_v3  ;;  %v6523_v24 = vadd.f32 %v6243_v48, %v16026_v22  ;;  %v3650_v28 = vadd.f32 %v16028_v0, %v12446_v46  ;;  %v16031_v32 = vld [vmem:[#allocation486_spill] sm:$0xff]  ;;  %v5398_v3 = vpop.f32.mrb[84].mxu1  ;;  %v16032_v41 = vld [vmem:[#allocation487_spill] sm:$0xff]  ;;  %v5753_v22 = vpop.f32.mrb[85].mxu0 }
 0x6d0   : > { %16025 = vst [vmem:[#allocation28_spill] sm:$0xff] %v13539_v44  ;;  %v6521_v19 = vadd.f32 %v6241_v29, %v16027_v25  ;;  %6984 = vrot.lane.b32.xlu0 %v13539_v44, %s8542_s26  ;;  %v4003_v54 = vadd.f32 %v16029_v1, %v12448_v61  ;;  %v3652_v7 = vadd.f32 %v16030_v53, %v12454_v49  ;;  %v16033_v29 = vld [vmem:[#allocation488_spill] sm:$0xff]  ;;  %v16034_v25 = vld [vmem:[#allocation490_spill] sm:$0xff] }
 0x6d1   : > { %v6662_v47 = vadd.f32 %v6522_v30, %v6520_v14  ;;  %v4005_v12 = vadd.f32 %v16031_v32, %v12456_v9  ;;  %6850 = vrot.lane.b32.xlu1 %v13526_v15, %s8541_s25  ;;  %v3654_v48 = vadd.f32 %v16032_v41, %v12446_v46  ;;  %v4007_v11 = vadd.f32 %v16033_v29, %v12448_v61  ;;  %v5400_v30 = vpop.f32.mrb[85].mxu1  ;;  %v5755_v15 = vpop.f32.mrb[86].mxu0 }
 0x6d2   : > { %v6663_v59 = vadd.f32 %v6523_v24, %v6521_v19  ;;  %v13559_v21 = vadd.f32 %v6661_v6, %v6660_v35  ;;  %v6248_v14 = vmul.f32 %v5398_v3, %v3650_v28  ;;  %v6250_v18 = vmul.f32 %v5751_v43, %v4003_v54  ;;  %v16035_v19 = vld [vmem:[#allocation489_spill] sm:$0xff]  ;;  %v5402_v41 = vpop.f32.mrb[86].mxu1  ;;  %v16039_v28 = vld [vmem:[#allocation222_spill] sm:$0xff]  ;;  %v5757_v44 = vpop.f32.mrb[87].mxu0 }
 0x6d3   : > { %v4009_v24 = vadd.f32 %v16034_v25, %v12456_v9  ;;  %v3656_v0 = vadd.f32 %v16035_v19, %v12454_v49  ;;  %v13566_v1 = vadd.f32 %v6795_v2, %v12952_v63  ;;  %v6249_v53 = vmul.f32 %v5400_v30, %v3652_v7  ;;  %v16038_v35 = vld [vmem:[#allocation221_spill] sm:$0xff]  ;;  %v5404_v25 = vpop.f32.mrb[87].mxu1  ;;  %v16040_v19 = vld [vmem:[#allocation223_spill] sm:$0xff]  ;;  %v16042_v30 = vld [vmem:[#allocation224_spill] sm:$0xff] }
 0x6d4   : > { %v6251_v32 = vmul.f32 %v5753_v22, %v4005_v12  ;;  %v13568_v29 = vadd.f32 %v6663_v59, %v6662_v47  ;;  %v6524_v6 = vadd.f32 %v6248_v14, %v16038_v35  ;;  %v6526_v54 = vadd.f32 %v6250_v18, %v16039_v28  ;;  %6852 = vrot.lane.b32.xlu0 %v13559_v21, %s8541_s25  ;;  %v16041_v2 = vld [vmem:[#allocation9_spill] sm:$0xff]  ;;  %v6797_v59 = vpop.permute.xlu0 %6796 }
 0x6d5   : > { %16036 = vst [vmem:[#allocation29_spill] sm:$0xff] %v13566_v1  ;;  %v6256_v3 = vmul.f32 %v5402_v41, %v3654_v48  ;;  %v6258_v43 = vmul.f32 %v5755_v15, %v4007_v11  ;;  %v6525_v63 = vadd.f32 %v6249_v53, %v16040_v19  ;;  %v6259_v12 = vmul.f32 %v5757_v44, %v4009_v24  ;;  %v16043_v48 = vld [vmem:[#allocation225_spill] sm:$0xff]  ;;  %v16045_v41 = vld [vmem:[#allocation227_spill] sm:$0xff]  ;;  %v16046_v53 = vld [vmem:[#allocation226_spill] sm:$0xff]  ;;  %v6799_v44 = vpop.permute.xlu1 %6798  ;;  %v5761_v19 = vpop.f32.mrb[88].mxu0 }
 0x6d6   : > { %16037 = vst [vmem:[#allocation30_spill] sm:$0xff] %v13568_v29  ;;  %v6527_v7 = vadd.f32 %v6251_v32, %v16041_v2  ;;  %6986 = vrot.lane.b32.xlu1 %v13566_v1, %s8542_s26  ;;  %v6257_v47 = vmul.f32 %v5404_v25, %v3656_v0  ;;  %v6664_v14 = vadd.f32 %v6526_v54, %v6524_v6  ;;  %v16047_v24 = vld [vmem:[#allocation491_spill] sm:$0xff]  ;;  %v16048_v6 = vld [vmem:[#allocation492_spill] sm:$0xff]  ;;  %v5408_v25 = vpop.f32.mrb[88].mxu1 }
 0x6d7   : > { %v6528_v18 = vadd.f32 %v6256_v3, %v16042_v30  ;;  %v6530_v15 = vadd.f32 %v6258_v43, %v16043_v48  ;;  %v13581_v11 = vadd.f32 %v6797_v59, %v12976_v20  ;;  %v6531_v35 = vadd.f32 %v6259_v12, %v16045_v41  ;;  %v16049_v3 = vld [vmem:[#allocation494_spill] sm:$0xff] }
 0x6d8   : > { %v6665_v22 = vadd.f32 %v6527_v7, %v6525_v63  ;;  %v6529_v28 = vadd.f32 %v6257_v47, %v16046_v53  ;;  %v3660_v0 = vadd.f32 %v16047_v24, %v12446_v46  ;;  %v4013_v54 = vadd.f32 %v16048_v6, %v12448_v61  ;;  %v16050_v63 = vld [vmem:[#allocation493_spill] sm:$0xff]  ;;  %v16051_v7 = vld [vmem:[#allocation495_spill] sm:$0xff]  ;;  %v6933_v48 = vpop.permute.xlu0 %6932 }
 0x6d9   : > { %16044 = vst [vmem:[#allocation12_spill] sm:$0xff] %v13581_v11  ;;  %v6666_v32 = vadd.f32 %v6530_v15, %v6528_v18  ;;  %6988 = vrot.lane.b32.xlu0 %v13581_v11, %s8542_s26  ;;  %v4015_v20 = vadd.f32 %v16049_v3, %v12456_v9  ;;  %v3662_v2 = vadd.f32 %v16050_v63, %v12454_v49  ;;  %v5763_v18 = vpop.f32.mrb[89].mxu0  ;;  %v16053_v15 = vld [vmem:[#allocation496_spill] sm:$0xff]  ;;  %v5410_v3 = vpop.f32.mrb[89].mxu1 }
 0x6da   : > { %v6667_v43 = vadd.f32 %v6531_v35, %v6529_v28  ;;  %6854 = vrot.lane.b32.xlu1 %v13568_v29, %s8541_s25  ;;  %v3664_v12 = vadd.f32 %v16051_v7, %v12446_v46  ;;  %v13599_v47 = vadd.f32 %v6665_v22, %v6664_v14  ;;  %v6264_v59 = vmul.f32 %v5408_v25, %v3660_v0  ;;  %v16054_v35 = vld [vmem:[#allocation498_spill] sm:$0xff]  ;;  %v5765_v63 = vpop.f32.mrb[90].mxu0  ;;  %v16057_v7 = vld [vmem:[#allocation497_spill] sm:$0xff]  ;;  %v16059_v0 = vld [vmem:[#allocation228_spill] sm:$0xff] }
 0x6db   : > { %v6266_v30 = vmul.f32 %v5761_v19, %v4013_v54  ;;  %v4017_v41 = vadd.f32 %v16053_v15, %v12448_v61  ;;  %v4019_v53 = vadd.f32 %v16054_v35, %v12456_v9  ;;  %v16055_v28 = vld [vmem:[#allocation246_spill] sm:$0xff]  ;;  %v6267_v6 = vmul.f32 %v5763_v18, %v4015_v20  ;;  %v16060_v25 = vld [vmem:[#allocation229_spill] sm:$0xff]  ;;  %v5412_v15 = vpop.f32.mrb[90].mxu1  ;;  %v5767_v1 = vpop.f32.mrb[91].mxu0  ;;  %v16062_v18 = vld [vmem:[#allocation247_spill] sm:$0xff] }
 0x6dc   : > { %16052 = vst [vmem:[#allocation31_spill] sm:$0xff] %v13599_v47  ;;  %v13606_v24 = vadd.f32 %v6799_v44, %v16055_v28  ;;  %v3666_v14 = vadd.f32 %v16057_v7, %v12454_v49  ;;  %v13610_v22 = vadd.f32 %v6667_v43, %v6666_v32  ;;  %v6532_v54 = vadd.f32 %v6264_v59, %v16059_v0  ;;  %v16061_v44 = vld [vmem:[#allocation231_spill] sm:$0xff]  ;;  %v5414_v32 = vpop.f32.mrb[91].mxu1  ;;  %v16064_v59 = vld [vmem:[#allocation230_spill] sm:$0xff]  ;;  %v6801_v0 = vpop.permute.xlu0 %6800 }
 0x6dd   : > { %v6534_v19 = vadd.f32 %v6266_v30, %v16060_v25  ;;  %v6265_v29 = vmul.f32 %v5410_v3, %v3662_v2  ;;  %v6274_v11 = vmul.f32 %v5765_v63, %v4017_v41  ;;  %6856 = vrot.lane.b32.xlu0 %v13599_v47, %s8541_s25  ;;  %v6535_v20 = vadd.f32 %v6267_v6, %v16061_v44  ;;  %v16065_v30 = vld [vmem:[#allocation232_spill] sm:$0xff]  ;;  %v6935_v63 = vpop.permute.xlu1 %6934  ;;  %v16067_v6 = vld [vmem:[#allocation234_spill] sm:$0xff] }
 0x6de   : > { %16056 = vst [vmem:[#allocation32_spill] sm:$0xff] %v13606_v24  ;;  %16058 = vst [vmem:[#allocation264_spill] sm:$0xff] %v13610_v22  ;;  %v13618_v35 = vadd.f32 %v6933_v48, %v16062_v18  ;;  %v6272_v28 = vmul.f32 %v5412_v15, %v3664_v12  ;;  %v6275_v7 = vmul.f32 %v5767_v1, %v4019_v53  ;;  %6990 = vrot.lane.b32.xlu1 %v13606_v24, %s8542_s26  ;;  %v16066_v25 = vld [vmem:[#allocation8_spill] sm:$0xff]  ;;  %v16069_v53 = vld [vmem:[#allocation233_spill] sm:$0xff] }
 0x6df   : > { %v6668_v43 = vadd.f32 %v6534_v19, %v6532_v54  ;;  %v6533_v2 = vadd.f32 %v6265_v29, %v16064_v59  ;;  %v6538_v41 = vadd.f32 %v6274_v11, %v16065_v30  ;;  %v6273_v3 = vmul.f32 %v5414_v32, %v3666_v14  ;;  %v16068_v48 = vld [vmem:[#allocation500_spill] sm:$0xff]  ;;  %v16070_v29 = vld [vmem:[#allocation501_spill] sm:$0xff]  ;;  %v16071_v14 = vld [vmem:[#allocation503_spill] sm:$0xff] }
 0x6e0   : > { %16063 = vst [vmem:[#allocation265_spill] sm:$0xff] %v13618_v35  ;;  %v6536_v47 = vadd.f32 %v6272_v28, %v16066_v25  ;;  %v6539_v44 = vadd.f32 %v6275_v7, %v16067_v6  ;;  %v3670_v12 = vadd.f32 %v16068_v48, %v12446_v46  ;;  %v4023_v11 = vadd.f32 %v16070_v29, %v12448_v61  ;;  %v16072_v18 = vld [vmem:[#allocation10_spill] sm:$0xff]  ;;  %v5771_v7 = vpop.f32.mrb[92].mxu0 }
 0x6e1   : > { %v6669_v1 = vadd.f32 %v6535_v20, %v6533_v2  ;;  %v6537_v15 = vadd.f32 %v6273_v3, %v16069_v53  ;;  %7124 = vrot.lane.b32.xlu0 %v13618_v35, %s8543_s28  ;;  %v4025_v54 = vadd.f32 %v16071_v14, %v12456_v9  ;;  %v13636_v28 = vadd.f32 %v6801_v0, %v16072_v18  ;;  %v5418_v20 = vpop.f32.mrb[92].mxu1  ;;  %v16073_v32 = vld [vmem:[#allocation502_spill] sm:$0xff]  ;;  %v16074_v2 = vld [vmem:[#allocation504_spill] sm:$0xff]  ;;  %v5773_v48 = vpop.f32.mrb[93].mxu0 }
 0x6e2   : > { %v6670_v19 = vadd.f32 %v6538_v41, %v6536_v47  ;;  %6858 = vrot.lane.b32.xlu1 %v13610_v22, %s8541_s25  ;;  %v3672_v59 = vadd.f32 %v16073_v32, %v12454_v49  ;;  %v3674_v30 = vadd.f32 %v16074_v2, %v12446_v46  ;;  %v6280_v25 = vmul.f32 %v5418_v20, %v3670_v12  ;;  %v6937_v53 = vpop.permute.xlu0 %6936  ;;  %v16075_v41 = vld [vmem:[#allocation248_spill] sm:$0xff]  ;;  %v6803_v14 = vpop.permute.xlu1 %6802  ;;  %v16076_v22 = vld [vmem:[#allocation505_spill] sm:$0xff]  ;;  %v16077_v32 = vld [vmem:[#allocation507_spill] sm:$0xff] }
 0x6e3   : > { %v6671_v3 = vadd.f32 %v6539_v44, %v6537_v15  ;;  %v6282_v6 = vmul.f32 %v5771_v7, %v4023_v11  ;;  %v13644_v47 = vadd.f32 %v6669_v1, %v6668_v43  ;;  %v13647_v0 = vadd.f32 %v6935_v63, %v16075_v41  ;;  %v5420_v18 = vpop.f32.mrb[93].mxu1  ;;  %v16078_v46 = vld [vmem:[#allocation235_spill] sm:$0xff]  ;;  %v16079_v12 = vld [vmem:[#allocation236_spill] sm:$0xff]  ;;  %v5775_v43 = vpop.f32.mrb[94].mxu0  ;;  %v16080_v63 = vld [vmem:[#allocation506_spill] sm:$0xff] }
 0x6e4   : > { %v6283_v29 = vmul.f32 %v5773_v48, %v4025_v54  ;;  %v4027_v24 = vadd.f32 %v16076_v22, %v12448_v61  ;;  %v4029_v35 = vadd.f32 %v16077_v32, %v12456_v9  ;;  %v6540_v44 = vadd.f32 %v6280_v25, %v16078_v46  ;;  %v5422_v20 = vpop.f32.mrb[94].mxu1  ;;  %v16081_v54 = vld [vmem:[#allocation238_spill] sm:$0xff]  ;;  %v5777_v22 = vpop.f32.mrb[95].mxu0 }
 0x6e5   : > { %v6542_v15 = vadd.f32 %v6282_v6, %v16079_v12  ;;  %v6281_v11 = vmul.f32 %v5420_v18, %v3672_v59  ;;  %6992 = vrot.lane.b32.xlu0 %v13636_v28, %s8542_s26  ;;  %v3676_v1 = vadd.f32 %v16080_v63, %v12454_v49  ;;  %v6288_v2 = vmul.f32 %v5422_v20, %v3674_v30  ;;  %v5424_v9 = vpop.f32.mrb[95].mxu1  ;;  %v16082_v6 = vld [vmem:[#allocation237_spill] sm:$0xff]  ;;  %v16083_v49 = vld [vmem:[#allocation239_spill] sm:$0xff] }
 0x6e6   : > { %v6543_v7 = vadd.f32 %v6283_v29, %v16081_v54  ;;  %v6290_v61 = vmul.f32 %v5775_v43, %v4027_v24  ;;  %7126 = vrot.lane.b32.xlu1 %v13647_v0, %s8543_s28  ;;  %v13662_v25 = vadd.f32 %v6671_v3, %v6670_v19  ;;  %v6291_v41 = vmul.f32 %v5777_v22, %v4029_v35  ;;  %v6805_v32 = vpop.permute.xlu0 %6804  ;;  %v16084_v30 = vld [vmem:[#allocation11_spill] sm:$0xff]  ;;  %v6939_v12 = vpop.permute.xlu1 %6938  ;;  %v16085_v43 = vld [vmem:[#allocation241_spill] sm:$0xff]  ;;  %v16086_v54 = vld [vmem:[#allocation240_spill] sm:$0xff] }
 0x6e7   : > { %v6672_v59 = vadd.f32 %v6542_v15, %v6540_v44  ;;  %v6541_v48 = vadd.f32 %v6281_v11, %v16082_v6  ;;  %v6289_v18 = vmul.f32 %v5424_v9, %v3676_v1  ;;  %v13666_v46 = vadd.f32 %v6803_v14, %v13028_v36  ;;  %v16087_v1 = vld [vmem:[#allocation499_spill] sm:$0xff] }
 0x6e8   : > { %v6544_v29 = vadd.f32 %v6288_v2, %v16083_v49  ;;  %v6546_v24 = vadd.f32 %v6290_v61, %v16084_v30  ;;  %v6547_v63 = vadd.f32 %v6291_v41, %v16085_v43  ;;  %v13677_v36 = vadd.f32 %v6937_v53, %v13042_v39  ;;  %v16088_v61 = vld [vmem:[#allocation249_spill] sm:$0xff]  ;;  %v16089_v43 = vld [vmem:[#allocation250_spill] sm:$0xff] }
 0x6e9   : > { %v6673_v20 = vadd.f32 %v6543_v7, %v6541_v48  ;;  %v6545_v19 = vadd.f32 %v6289_v18, %v16086_v54  ;;  %6860 = vrot.lane.b32.xlu0 %v13644_v47, %s8541_s25  ;;  %v13688_v7 = vadd.f32 %v6805_v32, %v16087_v1  ;;  %v13691_v39 = vadd.f32 %v6939_v12, %v16088_v61 }
 0x6ea   : > { %v6674_v3 = vadd.f32 %v6546_v24, %v6544_v29  ;;  %6994 = vrot.lane.b32.xlu1 %v13666_v46, %s8542_s26  ;;  %v6941_v44 = vpop.permute.xlu0 %6940  ;;  %v6807_v15 = vpop.permute.xlu1 %6806 }
 0x6eb   : > { %v13679_v35 = vadd.f32 %v6673_v20, %v6672_v59  ;;  %v6675_v14 = vadd.f32 %v6547_v63, %v6545_v19  ;;  %v13698_v9 = vadd.f32 %v6807_v15, %v13084_v62  ;;  %v13705_v6 = vadd.f32 %v6941_v44, %v13080_v17  ;;  %v16091_v15 = vld [vmem:[#allocation251_spill] sm:$0xff] }
 0x6ed   : > { %v13681_v11 = vadd.f32 %v6675_v14, %v6674_v3  ;;  %7128 = vrot.lane.b32.xlu0 %v13677_v36, %s8543_s28  ;;  %v16090_v3 = vld [vmem:[#allocation252_spill] sm:$0xff] }
 0x6ee   : > { %6862 = vrot.lane.b32.xlu1 %v13662_v25, %s8541_s25  ;;  %v6809_v2 = vpop.permute.xlu0 %6808  ;;  %v6943_v53 = vpop.permute.xlu1 %6942 }
 0x6ef   : > { %v13712_v62 = vadd.f32 %v6809_v2, %v13101_v33  ;;  %v13715_v32 = vadd.f32 %v6943_v53, %v13104_v23 }
 0x6f1   : > { %6996 = vrot.lane.b32.xlu0 %v13688_v7, %s8542_s26 }
 0x6f2   : > { %7130 = vrot.lane.b32.xlu1 %v13691_v39, %s8543_s28  ;;  %v6945_v22 = vpop.permute.xlu0 %6944  ;;  %v6811_v59 = vpop.permute.xlu1 %6810 }
 0x6f3   : > { %v13722_v17 = vadd.f32 %v6945_v22, %v13119_v31  ;;  %v13725_v30 = vadd.f32 %v6811_v59, %v13123_v26  ;;  %v16092_v22 = vld [vmem:[#allocation254_spill] sm:$0xff] }
 0x6f5   : > { %6864 = vrot.lane.b32.xlu0 %v13679_v35, %s8541_s25 }
 0x6f6   : > { %6998 = vrot.lane.b32.xlu1 %v13698_v9, %s8542_s26  ;;  %v6813_v48 = vpop.permute.xlu0 %6812  ;;  %v6947_v41 = vpop.permute.xlu1 %6946 }
 0x6f7   : > { %v13732_v23 = vadd.f32 %v6813_v48, %v13139_v5  ;;  %v13735_v12 = vadd.f32 %v6947_v41, %v13146_v45  ;;  %v16093_v41 = vld [vmem:[#allocation253_spill] sm:$0xff] }
 0x6f9   : > { %7132 = vrot.lane.b32.xlu0 %v13705_v6, %s8543_s28 }
 0x6fa   : > { %6866 = vrot.lane.b32.xlu1 %v13681_v11, %s8541_s25  ;;  %v6949_v18 = vpop.permute.xlu0 %6948  ;;  %v6815_v49 = vpop.permute.xlu1 %6814 }
 0x6fb   : > { %v13742_v26 = vadd.f32 %v6949_v18, %v13161_v16  ;;  %v13745_v63 = vadd.f32 %v6815_v49, %v16089_v43  ;;  %v16095_v43 = vld [vmem:[#allocation255_spill] sm:$0xff] }
 0x6fd   : > { %7000 = vrot.lane.b32.xlu0 %v13712_v62, %s8542_s26 }
 0x6fe   : > { %7134 = vrot.lane.b32.xlu1 %v13715_v32, %s8543_s28  ;;  %v6817_v29 = vpop.permute.xlu0 %6816  ;;  %v6951_v33 = vpop.permute.xlu1 %6950 }
 0x6ff   : > { %v13752_v45 = vadd.f32 %v6817_v29, %v13181_v55  ;;  %v13755_v19 = vadd.f32 %v6951_v33, %v13188_v51 }
 0x701   : > { %7136 = vrot.lane.b32.xlu0 %v13722_v17, %s8543_s28 }
 0x702   : > { %7002 = vrot.lane.b32.xlu1 %v13725_v30, %s8542_s26  ;;  %v6953_v24 = vpop.permute.xlu0 %6952  ;;  %v6819_v31 = vpop.permute.xlu1 %6818 }
 0x703   : > { %v13762_v14 = vadd.f32 %v6953_v24, %v16090_v3  ;;  %v13765_v1 = vadd.f32 %v6819_v31, %v16091_v15  ;;  %v16094_v24 = vld [vmem:[#allocation13_spill] sm:$0xff] }
 0x705   : > { %7004 = vrot.lane.b32.xlu0 %v13732_v23, %s8542_s26 }
 0x706   : > { %7138 = vrot.lane.b32.xlu1 %v13735_v12, %s8543_s28  ;;  %v6821_v20 = vpop.permute.xlu0 %6820  ;;  %v6955_v5 = vpop.permute.xlu1 %6954 }
 0x707   : > { %v13772_v51 = vadd.f32 %v6821_v20, %v13223_v37  ;;  %v13775_v61 = vadd.f32 %v6955_v5, %v13230_v10 }
 0x709   : > { %7140 = vrot.lane.b32.xlu0 %v13742_v26, %s8543_s28 }
 0x70a   : > { %7006 = vrot.lane.b32.xlu1 %v13745_v63, %s8542_s26  ;;  %v6957_v54 = vpop.permute.xlu0 %6956  ;;  %v6823_v16 = vpop.permute.xlu1 %6822 }
 0x70b   : > { %v13782_v59 = vadd.f32 %v6957_v54, %v16092_v22  ;;  %v13785_v18 = vadd.f32 %v6823_v16, %v16093_v41 }
 0x70d   : > { %7008 = vrot.lane.b32.xlu0 %v13752_v45, %s8542_s26 }
 0x70e   : > { %7142 = vrot.lane.b32.xlu1 %v13755_v19, %s8543_s28  ;;  %v6825_v44 = vpop.permute.xlu0 %6824  ;;  %v6959_v55 = vpop.permute.xlu1 %6958 }
 0x70f   : > { %v13792_v10 = vadd.f32 %v6825_v44, %v13265_v50  ;;  %v13795_v29 = vadd.f32 %v6959_v55, %v13272_v42  ;;  %v16096_v44 = vld [vmem:[#allocation257_spill] sm:$0xff] }
 0x711   : > { %7144 = vrot.lane.b32.xlu0 %v13762_v14, %s8543_s28 }
 0x712   : > { %7010 = vrot.lane.b32.xlu1 %v13765_v1, %s8542_s26  ;;  %v6961_v2 = vpop.permute.xlu0 %6960  ;;  %v6827_v53 = vpop.permute.xlu1 %6826 }
 0x713   : > { %v13802_v31 = vadd.f32 %v6961_v2, %v16094_v24  ;;  %v13805_v5 = vadd.f32 %v6827_v53, %v16095_v43  ;;  %v16097_v2 = vld [vmem:[#allocation256_spill] sm:$0xff]  ;;  %v16099_v24 = vld [vmem:[#allocation258_spill] sm:$0xff] }
 0x715   : > { %7012 = vrot.lane.b32.xlu0 %v13772_v51, %s8542_s26 }
 0x716   : > { %7146 = vrot.lane.b32.xlu1 %v13775_v61, %s8543_s28  ;;  %v6829_v48 = vpop.permute.xlu0 %6828  ;;  %v6963_v37 = vpop.permute.xlu1 %6962 }
 0x717   : > { %v13812_v42 = vadd.f32 %v6829_v48, %v13307_v57  ;;  %v13815_v16 = vadd.f32 %v6963_v37, %v13314_v34  ;;  %v16098_v37 = vld [vmem:[#allocation259_spill] sm:$0xff] }
 0x719   : > { %7148 = vrot.lane.b32.xlu0 %v13782_v59, %s8543_s28 }
 0x71a   : > { %7014 = vrot.lane.b32.xlu1 %v13785_v18, %s8542_s26  ;;  %v6965_v49 = vpop.permute.xlu0 %6964  ;;  %v6831_v33 = vpop.permute.xlu1 %6830 }
 0x71b   : > { %v13822_v15 = vadd.f32 %v6965_v49, %v16096_v44  ;;  %v13825_v53 = vadd.f32 %v6831_v33, %v16097_v2 }
 0x71d   : > { %7016 = vrot.lane.b32.xlu0 %v13792_v10, %s8542_s26 }
 0x71e   : > { %7150 = vrot.lane.b32.xlu1 %v13795_v29, %s8543_s28  ;;  %v6833_v20 = vpop.permute.xlu0 %6832  ;;  %v6967_v50 = vpop.permute.xlu1 %6966 }
 0x71f   : > { %v13832_v34 = vadd.f32 %v6833_v20, %v13349_v58  ;;  %v13835_v48 = vadd.f32 %v6967_v50, %v13356_v4 }
 0x721   : > { %7152 = vrot.lane.b32.xlu0 %v13802_v31, %s8543_s28 }
 0x722   : > { %7018 = vrot.lane.b32.xlu1 %v13805_v5, %s8542_s26  ;;  %v6969_v54 = vpop.permute.xlu0 %6968  ;;  %v6835_v3 = vpop.permute.xlu1 %6834 }
 0x723   : > { %v13842_v49 = vadd.f32 %v6969_v54, %v16098_v37  ;;  %v13845_v43 = vadd.f32 %v6835_v3, %v16099_v24  ;;  %v16100_v3 = vld [vmem:[#allocation261_spill] sm:$0xff]  ;;  %v16102_v37 = vld [vmem:[#allocation260_spill] sm:$0xff] }
 0x725   : > { %7020 = vrot.lane.b32.xlu0 %v13812_v42, %s8542_s26 }
 0x726   : > { %7154 = vrot.lane.b32.xlu1 %v13815_v16, %s8543_s28  ;;  %v6837_v55 = vpop.permute.xlu0 %6836  ;;  %v6971_v57 = vpop.permute.xlu1 %6970 }
 0x727   : > { %v13852_v4 = vadd.f32 %v6837_v55, %v13391_v56  ;;  %v13855_v50 = vadd.f32 %v6971_v57, %v13398_v13 }
 0x729   : > { %7156 = vrot.lane.b32.xlu0 %v13822_v15, %s8543_s28 }
 0x72a   : > { %7022 = vrot.lane.b32.xlu1 %v13825_v53, %s8542_s26  ;;  %v6973_v22 = vpop.permute.xlu0 %6972  ;;  %v6839_v41 = vpop.permute.xlu1 %6838 }
 0x72b   : > { %v13862_v44 = vadd.f32 %v6973_v22, %v16100_v3  ;;  %v13865_v24 = vadd.f32 %v6839_v41, %v16102_v37  ;;  %v16104_v41 = vld [vmem:[#allocation263_spill] sm:$0xff] }
 0x72d   : > { %7024 = vrot.lane.b32.xlu0 %v13832_v34, %s8542_s26  ;;  %16101 = vst [vmem:[#allocation266_spill] sm:$0xff] %v13862_v44  ;;  %16103 = vst [vmem:[#allocation267_spill] sm:$0xff] %v13865_v24 }
 0x72e   : > { %7158 = vrot.lane.b32.xlu1 %v13835_v48, %s8543_s28  ;;  %v6841_v33 = vpop.permute.xlu0 %6840  ;;  %v6975_v58 = vpop.permute.xlu1 %6974 }
 0x72f   : > { %v13872_v13 = vadd.f32 %v6841_v33, %v13433_v60  ;;  %v13875_v57 = vadd.f32 %v6975_v58, %v13440_v38 }
 0x731   : > { %7160 = vrot.lane.b32.xlu0 %v13842_v49, %s8543_s28 }
 0x732   : > { %7026 = vrot.lane.b32.xlu1 %v13845_v43, %s8542_s26  ;;  %v6977_v20 = vpop.permute.xlu0 %6976  ;;  %v6843_v54 = vpop.permute.xlu1 %6842 }
 0x733   : > { %v13882_v3 = vadd.f32 %v6977_v20, %v16104_v41 }
 0x735   : > { %7028 = vrot.lane.b32.xlu0 %v13852_v4, %s8542_s26  ;;  %16105 = vst [vmem:[#allocation269_spill] sm:$0xff] %v13882_v3 }
 0x736   : > { %7162 = vrot.lane.b32.xlu1 %v13855_v50, %s8543_s28  ;;  %v6845_v2 = vpop.permute.xlu0 %6844 }
 0x737   : > { %v6979_v56 = vpop.permute.xlu1 %6978  ;;  %v13892_v38 = vadd.f32 %v6845_v2, %v13475_v8 }
 0x738   : > { %v13895_v58 = vadd.f32 %v6979_v56, %v13482_v27 }
 0x739   : > { %7164 = vrot.lane.b32.xlu0 %v13862_v44, %s8543_s28  ;;  %v16106_v44 = vld [vmem:[#allocation262_spill] sm:$0xff] }
 0x73a   : > { %7030 = vrot.lane.b32.xlu1 %v13865_v24, %s8542_s26  ;;  %v6981_v55 = vpop.permute.xlu0 %6980  ;;  %v13885_v24 = vadd.f32 %v6843_v54, %v16106_v44  ;;  %v16108_v54 = vld [vmem:[#allocation26_spill] sm:$0xff] }
 0x73b   : > { %v6847_v22 = vpop.permute.xlu1 %6846  ;;  %v13902_v44 = vadd.f32 %v6981_v55, %v16108_v54 }
 0x73c   : > { %16107 = vst [vmem:[#allocation268_spill] sm:$0xff] %v13885_v24 }
 0x73d   : > { %7032 = vrot.lane.b32.xlu0 %v13872_v13, %s8542_s26  ;;  %16109 = vst [vmem:[#allocation270_spill] sm:$0xff] %v13902_v44 }
 0x73e   : > { %7166 = vrot.lane.b32.xlu1 %v13875_v57, %s8543_s28  ;;  %v6849_v37 = vpop.permute.xlu0 %6848 }
 0x73f   : > { %v6983_v60 = vpop.permute.xlu1 %6982  ;;  %v13912_v27 = vadd.f32 %v6849_v37, %v13517_v40  ;;  %v13938_v37 = vld [vmem:[%s14437_s11] ss:$0 sm:$0xff] }
 0x740   : > { %v13915_v56 = vadd.f32 %v6983_v60, %v13524_v52 }
 0x741   : > { %7168 = vrot.lane.b32.xlu0 %v13882_v3, %s8543_s28  ;;  %v16110_v3 = vld [vmem:[#allocation25_spill] sm:$0xff] }
 0x742   : > { %7034 = vrot.lane.b32.xlu1 %v13885_v24, %s8542_s26  ;;  %v6985_v33 = vpop.permute.xlu0 %6984  ;;  %v13905_v24 = vadd.f32 %v6847_v22, %v16110_v3  ;;  %16112 = vst [vmem:[#allocation33_spill] sm:$0xff] %v13915_v56  ;;  %v16113_v22 = vld [vmem:[#allocation28_spill] sm:$0xff] }
 0x743   : > { %v6851_v20 = vpop.permute.xlu1 %6850  ;;  %v13922_v3 = vadd.f32 %v6985_v33, %v16113_v22  ;;  %v16118_v33 = vld [vmem:[#allocation29_spill] sm:$0xff] }
 0x744   : > { %16111 = vst [vmem:[#allocation271_spill] sm:$0xff] %v13905_v24 }
 0x745   : > { %7036 = vrot.lane.b32.xlu0 %v13892_v38, %s8542_s26  ;;  %16114 = vst [vmem:[#allocation34_spill] sm:$0xff] %v13922_v3 }
 0x746   : > { %7170 = vrot.lane.b32.xlu1 %v13895_v58, %s8543_s28  ;;  %v6853_v41 = vpop.permute.xlu0 %6852 }
 0x747   : > { %v13933_v52 = vadd.f32 %v6853_v41, %v13559_v21  ;;  %v16121_v41 = vld [vmem:[#allocation12_spill] sm:$0xff] }
 0x748   : > { %v6987_v8 = vpop.permute.xlu1 %6986 }
 0x749   : > { %7172 = vrot.lane.b32.xlu0 %v13902_v44, %s8543_s28  ;;  %v16115_v44 = vld [vmem:[#allocation27_spill] sm:$0xff]  ;;  %16117 = vst [vmem:[#allocation36_spill] sm:$0xff] %v13933_v52 }
 0x74a   : > { %7038 = vrot.lane.b32.xlu1 %v13905_v24, %s8542_s26  ;;  %v13925_v24 = vadd.f32 %v6851_v20, %v16115_v44  ;;  %v13941_v20 = vadd.f32 %v6987_v8, %v16118_v33  ;;  %v16120_v44 = vld [vmem:[#allocation265_spill] sm:$0xff]  ;;  %v16122_v33 = vld [vmem:[#allocation30_spill] sm:$0xff] }
 0x74b   : > { %v6989_v2 = vpop.permute.xlu0 %6988 }
 0x74c   : > { %v6855_v55 = vpop.permute.xlu1 %6854  ;;  %16116 = vst [vmem:[#allocation35_spill] sm:$0xff] %v13925_v24  ;;  %16119 = vst [vmem:[#allocation38_spill] sm:$0xff] %v13941_v20  ;;  %v13955_v8 = vadd.f32 %v6989_v2, %v16121_v41 }
 0x74d   : > { %7040 = vrot.lane.b32.xlu0 %v13912_v27, %s8542_s26 }
 0x74e   : > { %7174 = vrot.lane.b32.xlu1 %v13915_v56, %s8543_s28 }
 0x74f   : > { %v6857_v54 = vpop.permute.xlu0 %6856 }
 0x750   : > { %v6991_v40 = vpop.permute.xlu1 %6990 }
 0x751   : > { %7176 = vrot.lane.b32.xlu0 %v13922_v3, %s8543_s28 }
 0x752   : > { %7042 = vrot.lane.b32.xlu1 %v13925_v24, %s8542_s26 }
 0x753   : > { %v7125_v60 = vpop.permute.xlu0 %7124 }
 0x754   : > { %v7252_v22 = vadd.f32 %v7125_v60, %v16120_v44  ;;  %v6859_v56 = vpop.permute.xlu1 %6858  ;;  %v13958_v44 = vadd.f32 %v6855_v55, %v16122_v33 }
 0x755   : > { %7044 = vrot.lane.b32.xlu0 %v13933_v52, %s8542_s26  ;;  %v16124_v52 = vld [vmem:[#allocation32_spill] sm:$0xff] }
 0x756   : > { %v7323_v21 = vadd.f32 %v13938_v37, %v7252_v22  ;;  %7178 = vrot.lane.b32.xlu1 %v13941_v20, %s8543_s28  ;;  %v16123_v22 = vld [vmem:[#allocation31_spill] sm:$0xff]  ;;  %v13972_v55 = vadd.f32 %v6991_v40, %v16124_v52 }
 0x757   : > { %v6993_v60 = vpop.permute.xlu0 %6992  ;;  %v13968_v20 = vadd.f32 %v6857_v54, %v16123_v22  ;;  %v16125_v54 = vld [vmem:[#allocation264_spill] sm:$0xff] }
 0x758   : > { %7388 = vst.msk [vmem:[%s13947_s17] sm:$0xff] %vm7387_vm4, %v7323_v21  ;;  %v7127_v24 = vpop.permute.xlu1 %7126 }
 0x759   : > { %v7253_v3 = vadd.f32 %v7127_v24, %v13647_v0  ;;  %7180 = vrot.lane.b32.xlu0 %v13955_v8, %s8543_s28  ;;  %v13981_v0 = vadd.f32 %v6993_v60, %v13636_v28 }
 0x75a   : > { %7046 = vrot.lane.b32.xlu1 %v13958_v44, %s8542_s26 }
 0x75b   : > { %v7324_v2 = vadd.f32 %v13938_v37, %v7253_v3  ;;  %v6861_v41 = vpop.permute.xlu0 %6860  ;;  %v13984_v3 = vadd.f32 %v6859_v56, %v16125_v54 }
 0x75c   : > { %v6995_v21 = vpop.permute.xlu1 %6994  ;;  %v13993_v22 = vadd.f32 %v6861_v41, %v13644_v47 }
 0x75d   : > { %7389 = vst.msk [vmem:[%s13947_s17 + $0x8] sm:$0xff] %vm7387_vm4, %v7324_v2  ;;  %7048 = vrot.lane.b32.xlu0 %v13968_v20, %s8542_s26  ;;  %v13996_v60 = vadd.f32 %v6995_v21, %v13666_v46 }
 0x75e   : > { %7182 = vrot.lane.b32.xlu1 %v13972_v55, %s8543_s28 }
 0x75f   : > { %v7129_v24 = vpop.permute.xlu0 %7128 }
 0x760   : > { %v7254_v40 = vadd.f32 %v7129_v24, %v13677_v36  ;;  %v6863_v52 = vpop.permute.xlu1 %6862 }
 0x761   : > { %7184 = vrot.lane.b32.xlu0 %v13981_v0, %s8543_s28  ;;  %v14010_v46 = vadd.f32 %v6863_v52, %v13662_v25 }
 0x762   : > { %v7325_v33 = vadd.f32 %v13938_v37, %v7254_v40  ;;  %7050 = vrot.lane.b32.xlu1 %v13984_v3, %s8542_s26 }
 0x763   : > { %v6997_v28 = vpop.permute.xlu0 %6996 }
 0x764   : > { %7390 = vst.msk [vmem:[%s13947_s17 + $0x10] sm:$0xff] %vm7387_vm4, %v7325_v33  ;;  %v7131_v36 = vpop.permute.xlu1 %7130  ;;  %v14006_v2 = vadd.f32 %v6997_v28, %v13688_v7 }
 0x765   : > { %v7255_v56 = vadd.f32 %v7131_v36, %v13691_v39  ;;  %7052 = vrot.lane.b32.xlu0 %v13993_v22, %s8542_s26 }
 0x766   : > { %7186 = vrot.lane.b32.xlu1 %v13996_v60, %s8543_s28 }
 0x767   : > { %v7326_v47 = vadd.f32 %v13938_v37, %v7255_v56  ;;  %v6865_v41 = vpop.permute.xlu0 %6864 }
 0x768   : > { %v6999_v21 = vpop.permute.xlu1 %6998  ;;  %v14019_v39 = vadd.f32 %v6865_v41, %v13679_v35 }
 0x769   : > { %7391 = vst.msk [vmem:[%s13947_s17 + $0x18] sm:$0xff] %vm7387_vm4, %v7326_v47  ;;  %7188 = vrot.lane.b32.xlu0 %v14006_v2, %s8543_s28  ;;  %v14022_v24 = vadd.f32 %v6999_v21, %v13698_v9 }
 0x76a   : > { %7054 = vrot.lane.b32.xlu1 %v14010_v46, %s8542_s26 }
 0x76b   : > { %v7133_v7 = vpop.permute.xlu0 %7132 }
 0x76c   : > { %v7256_v54 = vadd.f32 %v7133_v7, %v13705_v6  ;;  %v6867_v25 = vpop.permute.xlu1 %6866 }
 0x76d   : > { %7056 = vrot.lane.b32.xlu0 %v14019_v39, %s8542_s26  ;;  %v14033_v35 = vadd.f32 %v6867_v25, %v13681_v11 }
 0x76e   : > { %v7327_v40 = vadd.f32 %v13938_v37, %v7256_v54  ;;  %7190 = vrot.lane.b32.xlu1 %v14022_v24, %s8543_s28 }
 0x76f   : > { %v7001_v52 = vpop.permute.xlu0 %7000 }
 0x770   : > { %7392 = vst.msk [vmem:[%s13947_s17 + $0x20] sm:$0xff] %vm7387_vm4, %v7327_v40  ;;  %v14036_v9 = vadd.f32 %v7001_v52, %v13712_v62  ;;  %v7135_v6 = vpop.permute.xlu1 %7134 }
 0x771   : > { %v7257_v33 = vadd.f32 %v7135_v6, %v13715_v32 }
 0x772   : > { %7058 = vrot.lane.b32.xlu1 %v14033_v35, %s8542_s26  ;;  %7192 = vrot.lane.b32.xlu0 %v14036_v9, %s8543_s28 }
 0x773   : > { %v7328_v28 = vadd.f32 %v13938_v37, %v7257_v33  ;;  %v7137_v36 = vpop.permute.xlu0 %7136 }
 0x774   : > { %v7258_v56 = vadd.f32 %v7137_v36, %v13722_v17  ;;  %v7003_v11 = vpop.permute.xlu1 %7002 }
 0x775   : > { %7393 = vst.msk [vmem:[%s13947_s17 + $0x28] sm:$0xff] %vm7387_vm4, %v7328_v28  ;;  %v14048_v62 = vadd.f32 %v7003_v11, %v13725_v30 }
 0x776   : > { %v7329_v32 = vadd.f32 %v13938_v37, %v7258_v56 }
 0x777   : > { %7194 = vrot.lane.b32.xlu1 %v14048_v62, %s8543_s28  ;;  %v7005_v47 = vpop.permute.xlu0 %7004 }
 0x778   : > { %7394 = vst.msk [vmem:[%s13947_s17 + $0x30] sm:$0xff] %vm7387_vm4, %v7329_v32  ;;  %v14056_v41 = vadd.f32 %v7005_v47, %v13732_v23  ;;  %v7139_v17 = vpop.permute.xlu1 %7138 }
 0x779   : > { %v7259_v21 = vadd.f32 %v7139_v17, %v13735_v12 }
 0x77a   : > { %7196 = vrot.lane.b32.xlu0 %v14056_v41, %s8543_s28 }
 0x77b   : > { %v7330_v30 = vadd.f32 %v13938_v37, %v7259_v21  ;;  %v7141_v7 = vpop.permute.xlu0 %7140 }
 0x77c   : > { %v7260_v54 = vadd.f32 %v7141_v7, %v13742_v26  ;;  %v7007_v25 = vpop.permute.xlu1 %7006 }
 0x77d   : > { %7395 = vst.msk [vmem:[%s13947_s17 + $0x38] sm:$0xff] %vm7387_vm4, %v7330_v30  ;;  %v14066_v40 = vadd.f32 %v7007_v25, %v13745_v63 }
 0x77e   : > { %v7331_v23 = vadd.f32 %v13938_v37, %v7260_v54 }
 0x77f   : > { %7198 = vrot.lane.b32.xlu1 %v14066_v40, %s8543_s28  ;;  %v7009_v12 = vpop.permute.xlu0 %7008 }
 0x780   : > { %7396 = vst.msk [vmem:[%s13947_s17 + $0x40] sm:$0xff] %vm7387_vm4, %v7331_v23  ;;  %v14074_v52 = vadd.f32 %v7009_v12, %v13752_v45  ;;  %v7143_v26 = vpop.permute.xlu1 %7142 }
 0x781   : > { %v7261_v6 = vadd.f32 %v7143_v26, %v13755_v19 }
 0x782   : > { %7200 = vrot.lane.b32.xlu0 %v14074_v52, %s8543_s28 }
 0x783   : > { %v7332_v63 = vadd.f32 %v13938_v37, %v7261_v6  ;;  %v7145_v33 = vpop.permute.xlu0 %7144 }
 0x784   : > { %v7262_v28 = vadd.f32 %v7145_v33, %v13762_v14  ;;  %v7011_v36 = vpop.permute.xlu1 %7010 }
 0x785   : > { %7397 = vst.msk [vmem:[%s13947_s17 + $0x48] sm:$0xff] %vm7387_vm4, %v7332_v63  ;;  %v14084_v56 = vadd.f32 %v7011_v36, %v13765_v1 }
 0x786   : > { %v7333_v45 = vadd.f32 %v13938_v37, %v7262_v28 }
 0x787   : > { %7202 = vrot.lane.b32.xlu1 %v14084_v56, %s8543_s28  ;;  %v7013_v19 = vpop.permute.xlu0 %7012 }
 0x788   : > { %7398 = vst.msk [vmem:[%s13947_s17 + $0x50] sm:$0xff] %vm7387_vm4, %v7333_v45  ;;  %v14092_v11 = vadd.f32 %v7013_v19, %v13772_v51  ;;  %v7147_v14 = vpop.permute.xlu1 %7146 }
 0x789   : > { %v7263_v32 = vadd.f32 %v7147_v14, %v13775_v61 }
 0x78a   : > { %7204 = vrot.lane.b32.xlu0 %v14092_v11, %s8543_s28 }
 0x78b   : > { %v7334_v1 = vadd.f32 %v13938_v37, %v7263_v32  ;;  %v7149_v47 = vpop.permute.xlu0 %7148 }
 0x78c   : > { %v7264_v17 = vadd.f32 %v7149_v47, %v13782_v59  ;;  %v7015_v21 = vpop.permute.xlu1 %7014 }
 0x78d   : > { %7399 = vst.msk [vmem:[%s13947_s17 + $0x58] sm:$0xff] %vm7387_vm4, %v7334_v1  ;;  %v14102_v30 = vadd.f32 %v7015_v21, %v13785_v18 }
 0x78e   : > { %v7335_v51 = vadd.f32 %v13938_v37, %v7264_v17 }
 0x78f   : > { %7206 = vrot.lane.b32.xlu1 %v14102_v30, %s8543_s28  ;;  %v7017_v61 = vpop.permute.xlu0 %7016 }
 0x790   : > { %7400 = vst.msk [vmem:[%s13947_s17 + $0x60] sm:$0xff] %vm7387_vm4, %v7335_v51  ;;  %v14110_v7 = vadd.f32 %v7017_v61, %v13792_v10  ;;  %v7151_v59 = vpop.permute.xlu1 %7150 }
 0x791   : > { %v7265_v54 = vadd.f32 %v7151_v59, %v13795_v29  ;;  %v16126_v59 = vld [vmem:[#allocation266_spill] sm:$0xff] }
 0x792   : > { %7208 = vrot.lane.b32.xlu0 %v14110_v7, %s8543_s28 }
 0x793   : > { %v7336_v18 = vadd.f32 %v13938_v37, %v7265_v54  ;;  %v7153_v25 = vpop.permute.xlu0 %7152 }
 0x794   : > { %v7266_v23 = vadd.f32 %v7153_v25, %v13802_v31  ;;  %v7019_v12 = vpop.permute.xlu1 %7018  ;;  %v16127_v25 = vld [vmem:[#allocation267_spill] sm:$0xff] }
 0x795   : > { %7401 = vst.msk [vmem:[%s13947_s17 + $0x68] sm:$0xff] %vm7387_vm4, %v7336_v18  ;;  %v14120_v26 = vadd.f32 %v7019_v12, %v13805_v5 }
 0x796   : > { %v7337_v10 = vadd.f32 %v13938_v37, %v7266_v23 }
 0x797   : > { %7210 = vrot.lane.b32.xlu1 %v14120_v26, %s8543_s28  ;;  %v7021_v29 = vpop.permute.xlu0 %7020 }
 0x798   : > { %7402 = vst.msk [vmem:[%s13947_s17 + $0x70] sm:$0xff] %vm7387_vm4, %v7337_v10  ;;  %v14128_v6 = vadd.f32 %v7021_v29, %v13812_v42  ;;  %v7155_v31 = vpop.permute.xlu1 %7154 }
 0x799   : > { %v7267_v63 = vadd.f32 %v7155_v31, %v13815_v16 }
 0x79a   : > { %7212 = vrot.lane.b32.xlu0 %v14128_v6, %s8543_s28 }
 0x79b   : > { %v7338_v5 = vadd.f32 %v13938_v37, %v7267_v63  ;;  %v7157_v33 = vpop.permute.xlu0 %7156 }
 0x79c   : > { %v7268_v28 = vadd.f32 %v7157_v33, %v13822_v15  ;;  %v7023_v36 = vpop.permute.xlu1 %7022 }
 0x79d   : > { %7403 = vst.msk [vmem:[%s13947_s17 + $0x78] sm:$0xff] %vm7387_vm4, %v7338_v5  ;;  %v14138_v45 = vadd.f32 %v7023_v36, %v13825_v53  ;;  %v16128_v5 = vld [vmem:[#allocation269_spill] sm:$0xff]  ;;  %v16129_v36 = vld [vmem:[#allocation268_spill] sm:$0xff] }
 0x79e   : > { %v7339_v42 = vadd.f32 %v13938_v37, %v7268_v28 }
 0x79f   : > { %7214 = vrot.lane.b32.xlu1 %v14138_v45, %s8543_s28  ;;  %v7025_v16 = vpop.permute.xlu0 %7024 }
 0x7a0   : > { %7404 = vst.msk [vmem:[%s13947_s17 + $0x80] sm:$0xff] %vm7387_vm4, %v7339_v42  ;;  %v14146_v19 = vadd.f32 %v7025_v16, %v13832_v34  ;;  %v7159_v15 = vpop.permute.xlu1 %7158 }
 0x7a1   : > { %v7269_v14 = vadd.f32 %v7159_v15, %v13835_v48 }
 0x7a2   : > { %7216 = vrot.lane.b32.xlu0 %v14146_v19, %s8543_s28 }
 0x7a3   : > { %v7340_v53 = vadd.f32 %v13938_v37, %v7269_v14  ;;  %v7161_v32 = vpop.permute.xlu0 %7160 }
 0x7a4   : > { %v7270_v1 = vadd.f32 %v7161_v32, %v13842_v49  ;;  %v7027_v47 = vpop.permute.xlu1 %7026 }
 0x7a5   : > { %7405 = vst.msk [vmem:[%s13947_s17 + $0x88] sm:$0xff] %vm7387_vm4, %v7340_v53  ;;  %v14156_v17 = vadd.f32 %v7027_v47, %v13845_v43 }
 0x7a6   : > { %v7341_v34 = vadd.f32 %v13938_v37, %v7270_v1  ;;  %v16130_v1 = vld [vmem:[#allocation270_spill] sm:$0xff] }
 0x7a7   : > { %7218 = vrot.lane.b32.xlu1 %v14156_v17, %s8543_s28  ;;  %v7029_v48 = vpop.permute.xlu0 %7028 }
 0x7a8   : > { %7406 = vst.msk [vmem:[%s13947_s17 + $0x90] sm:$0xff] %vm7387_vm4, %v7341_v34  ;;  %v14164_v21 = vadd.f32 %v7029_v48, %v13852_v4  ;;  %v7163_v49 = vpop.permute.xlu1 %7162  ;;  %v16131_v48 = vld [vmem:[#allocation271_spill] sm:$0xff] }
 0x7a9   : > { %v7271_v51 = vadd.f32 %v7163_v49, %v13855_v50 }
 0x7aa   : > { %7220 = vrot.lane.b32.xlu0 %v14164_v21, %s8543_s28 }
 0x7ab   : > { %v7342_v43 = vadd.f32 %v13938_v37, %v7271_v51  ;;  %v7165_v61 = vpop.permute.xlu0 %7164 }
 0x7ac   : > { %v7272_v54 = vadd.f32 %v7165_v61, %v16126_v59  ;;  %v7031_v18 = vpop.permute.xlu1 %7030  ;;  %v16132_v61 = vld [vmem:[#allocation33_spill] sm:$0xff] }
 0x7ad   : > { %7407 = vst.msk [vmem:[%s13947_s17 + $0x98] sm:$0xff] %vm7387_vm4, %v7342_v43  ;;  %v14174_v23 = vadd.f32 %v7031_v18, %v16127_v25  ;;  %v16133_v25 = vld [vmem:[#allocation34_spill] sm:$0xff] }
 0x7ae   : > { %v7343_v4 = vadd.f32 %v13938_v37, %v7272_v54 }
 0x7af   : > { %7222 = vrot.lane.b32.xlu1 %v14174_v23, %s8543_s28  ;;  %v7033_v50 = vpop.permute.xlu0 %7032 }
 0x7b0   : > { %7408 = vst.msk [vmem:[%s13947_s17 + $0xa0] sm:$0xff] %vm7387_vm4, %v7343_v4  ;;  %v14182_v12 = vadd.f32 %v7033_v50, %v13872_v13  ;;  %v7167_v10 = vpop.permute.xlu1 %7166 }
 0x7b1   : > { %v7273_v29 = vadd.f32 %v7167_v10, %v13875_v57  ;;  %v16134_v10 = vld [vmem:[#allocation35_spill] sm:$0xff] }
 0x7b2   : > { %7224 = vrot.lane.b32.xlu0 %v14182_v12, %s8543_s28 }
 0x7b3   : > { %v7344_v31 = vadd.f32 %v13938_v37, %v7273_v29  ;;  %v7169_v63 = vpop.permute.xlu0 %7168 }
 0x7b4   : > { %v7274_v33 = vadd.f32 %v7169_v63, %v16128_v5  ;;  %v7035_v28 = vpop.permute.xlu1 %7034  ;;  %v16135_v63 = vld [vmem:[#allocation36_spill] sm:$0xff] }
 0x7b5   : > { %7409 = vst.msk [vmem:[%s13947_s17 + $0xa8] sm:$0xff] %vm7387_vm4, %v7344_v31  ;;  %v14192_v42 = vadd.f32 %v7035_v28, %v16129_v36  ;;  %v16136_v28 = vld [vmem:[#allocation38_spill] sm:$0xff] }
 0x7b6   : > { %v7345_v13 = vadd.f32 %v13938_v37, %v7274_v33 }
 0x7b7   : > { %7226 = vrot.lane.b32.xlu1 %v14192_v42, %s8543_s28  ;;  %v7037_v57 = vpop.permute.xlu0 %7036 }
 0x7b8   : > { %7410 = vst.msk [vmem:[%s13947_s17 + $0xb0] sm:$0xff] %vm7387_vm4, %v7345_v13  ;;  %v14200_v16 = vadd.f32 %v7037_v57, %v13892_v38  ;;  %v7171_v15 = vpop.permute.xlu1 %7170 }
 0x7b9   : > { %v7275_v14 = vadd.f32 %v7171_v15, %v13895_v58 }
 0x7ba   : > { %7228 = vrot.lane.b32.xlu0 %v14200_v16, %s8543_s28 }
 0x7bb   : > { %v7346_v53 = vadd.f32 %v13938_v37, %v7275_v14  ;;  %v7173_v32 = vpop.permute.xlu0 %7172 }
 0x7bc   : > { %v7276_v47 = vadd.f32 %v7173_v32, %v16130_v1  ;;  %v7039_v34 = vpop.permute.xlu1 %7038 }
 0x7bd   : > { %7411 = vst.msk [vmem:[%s13947_s17 + $0xb8] sm:$0xff] %vm7387_vm4, %v7346_v53  ;;  %v14210_v49 = vadd.f32 %v7039_v34, %v16131_v48 }
 0x7be   : > { %v7347_v38 = vadd.f32 %v13938_v37, %v7276_v47 }
 0x7bf   : > { %7230 = vrot.lane.b32.xlu1 %v14210_v49, %s8543_s28  ;;  %v7041_v58 = vpop.permute.xlu0 %7040 }
 0x7c0   : > { %7412 = vst.msk [vmem:[%s13947_s17 + $0xc0] sm:$0xff] %vm7387_vm4, %v7347_v38  ;;  %v14218_v51 = vadd.f32 %v7041_v58, %v13912_v27  ;;  %v7175_v43 = vpop.permute.xlu1 %7174 }
 0x7c1   : > { %v7277_v59 = vadd.f32 %v7175_v43, %v16132_v61 }
 0x7c2   : > { %7232 = vrot.lane.b32.xlu0 %v14218_v51, %s8543_s28 }
 0x7c3   : > { %v7348_v54 = vadd.f32 %v13938_v37, %v7277_v59  ;;  %v7177_v18 = vpop.permute.xlu0 %7176 }
 0x7c4   : > { %v7278_v4 = vadd.f32 %v7177_v18, %v16133_v25  ;;  %v7043_v50 = vpop.permute.xlu1 %7042 }
 0x7c5   : > { %7413 = vst.msk [vmem:[%s13947_s17 + $0xc8] sm:$0xff] %vm7387_vm4, %v7348_v54  ;;  %v14228_v29 = vadd.f32 %v7043_v50, %v16134_v10 }
 0x7c6   : > { %v7349_v27 = vadd.f32 %v13938_v37, %v7278_v4 }
 0x7c7   : > { %7234 = vrot.lane.b32.xlu1 %v14228_v29, %s8543_s28  ;;  %v7045_v31 = vpop.permute.xlu0 %7044 }
 0x7c8   : > { %7414 = vst.msk [vmem:[%s13947_s17 + $0xd0] sm:$0xff] %vm7387_vm4, %v7349_v27  ;;  %v14236_v5 = vadd.f32 %v7045_v31, %v16135_v63  ;;  %v7179_v33 = vpop.permute.xlu1 %7178 }
 0x7c9   : > { %v7279_v36 = vadd.f32 %v7179_v33, %v16136_v28 }
 0x7ca   : > { %7236 = vrot.lane.b32.xlu0 %v14236_v5, %s8543_s28 }
 0x7cb   : > { %v7350_v13 = vadd.f32 %v13938_v37, %v7279_v36  ;;  %v7181_v57 = vpop.permute.xlu0 %7180 }
 0x7cc   : > { %v7280_v15 = vadd.f32 %v7181_v57, %v13955_v8  ;;  %v7047_v14 = vpop.permute.xlu1 %7046 }
 0x7cd   : > { %7415 = vst.msk [vmem:[%s13947_s17 + $0xd8] sm:$0xff] %vm7387_vm4, %v7350_v13  ;;  %v14246_v53 = vadd.f32 %v7047_v14, %v13958_v44 }
 0x7ce   : > { %v7351_v32 = vadd.f32 %v13938_v37, %v7280_v15 }
 0x7cf   : > { %7238 = vrot.lane.b32.xlu1 %v14246_v53, %s8543_s28  ;;  %v7049_v1 = vpop.permute.xlu0 %7048 }
 0x7d0   : > { %7416 = vst.msk [vmem:[%s13947_s17 + $0xe0] sm:$0xff] %vm7387_vm4, %v7351_v32  ;;  %v14254_v47 = vadd.f32 %v7049_v1, %v13968_v20  ;;  %v7183_v8 = vpop.permute.xlu1 %7182 }
 0x7d1   : > { %v7281_v34 = vadd.f32 %v7183_v8, %v13972_v55 }
 0x7d2   : > { %7240 = vrot.lane.b32.xlu0 %v14254_v47, %s8543_s28 }
 0x7d3   : > { %v7352_v44 = vadd.f32 %v13938_v37, %v7281_v34  ;;  %v7185_v48 = vpop.permute.xlu0 %7184 }
 0x7d4   : > { %v7282_v38 = vadd.f32 %v7185_v48, %v13981_v0  ;;  %v7051_v58 = vpop.permute.xlu1 %7050 }
 0x7d5   : > { %7417 = vst.msk [vmem:[%s13947_s17 + $0xe8] sm:$0xff] %vm7387_vm4, %v7352_v44  ;;  %v14264_v43 = vadd.f32 %v7051_v58, %v13984_v3 }
 0x7d6   : > { %v7353_v20 = vadd.f32 %v13938_v37, %v7282_v38 }
 0x7d7   : > { %7242 = vrot.lane.b32.xlu1 %v14264_v43, %s8543_s28  ;;  %v7053_v55 = vpop.permute.xlu0 %7052 }
 0x7d8   : > { %7418 = vst.msk [vmem:[%s13947_s17 + $0xf0] sm:$0xff] %vm7387_vm4, %v7353_v20  ;;  %v14272_v61 = vadd.f32 %v7053_v55, %v13993_v22  ;;  %v7187_v0 = vpop.permute.xlu1 %7186 }
 0x7d9   : > { %v7283_v59 = vadd.f32 %v7187_v0, %v13996_v60 }
 0x7da   : > { %7244 = vrot.lane.b32.xlu0 %v14272_v61, %s8543_s28 }
 0x7db   : > { %v7354_v3 = vadd.f32 %v13938_v37, %v7283_v59  ;;  %v7189_v54 = vpop.permute.xlu0 %7188 }
 0x7dc   : > { %v7284_v18 = vadd.f32 %v7189_v54, %v14006_v2  ;;  %v7055_v25 = vpop.permute.xlu1 %7054 }
 0x7dd   : > { %7419 = vst.msk [vmem:[%s13947_s17 + $0xf8] sm:$0xff] %vm7387_vm4, %v7354_v3  ;;  %v14282_v4 = vadd.f32 %v7055_v25, %v14010_v46 }
 0x7de   : > { %v7355_v22 = vadd.f32 %v13938_v37, %v7284_v18 }
 0x7df   : > { %7246 = vrot.lane.b32.xlu1 %v14282_v4, %s8543_s28  ;;  %v7057_v60 = vpop.permute.xlu0 %7056 }
 0x7e0   : > { %7420 = vst.msk [vmem:[%s13947_s17 + $0x100] sm:$0xff] %vm7387_vm4, %v7355_v22  ;;  %v14290_v50 = vadd.f32 %v7057_v60, %v14019_v39  ;;  %v7191_v10 = vpop.permute.xlu1 %7190 }
 0x7e1   : > { %v7285_v2 = vadd.f32 %v7191_v10, %v14022_v24 }
 0x7e2   : > { %7248 = vrot.lane.b32.xlu0 %v14290_v50, %s8543_s28 }
 0x7e3   : > { %v7356_v46 = vadd.f32 %v13938_v37, %v7285_v2 }
 0x7e4   : > { %v7059_v27 = vpop.permute.xlu1 %7058  ;;  %v7193_v31 = vpop.permute.xlu0 %7192 }
 0x7e5   : > { %7421 = vst.msk [vmem:[%s13947_s17 + $0x108] sm:$0xff] %vm7387_vm4, %v7356_v46  ;;  %v14299_v63 = vadd.f32 %v7059_v27, %v14033_v35  ;;  %v7286_v39 = vadd.f32 %v7193_v31, %v14036_v9 }
 0x7e7   : > { %v7357_v33 = vadd.f32 %v13938_v37, %v7286_v39  ;;  %7250 = vrot.lane.b32.xlu1 %v14299_v63, %s8543_s28 }
 0x7e9   : > { %7422 = vst.msk [vmem:[%s13947_s17 + $0x110] sm:$0xff] %vm7387_vm4, %v7357_v33  ;;  %v7195_v24 = vpop.permute.xlu1 %7194 }
 0x7ea   : > { %v7287_v28 = vadd.f32 %v7195_v24, %v14048_v62 }
 0x7ec   : > { %v7358_v36 = vadd.f32 %v13938_v37, %v7287_v28  ;;  %v7197_v13 = vpop.permute.xlu0 %7196 }
 0x7ed   : > { %v7288_v35 = vadd.f32 %v7197_v13, %v14056_v41 }
 0x7ee   : > { %7423 = vst.msk [vmem:[%s13947_s17 + $0x118] sm:$0xff] %vm7387_vm4, %v7358_v36 }
 0x7ef   : > { %v7359_v9 = vadd.f32 %v13938_v37, %v7288_v35 }
 0x7f1   : > { %7424 = vst.msk [vmem:[%s13947_s17 + $0x120] sm:$0xff] %vm7387_vm4, %v7359_v9  ;;  %v7199_v57 = vpop.permute.xlu1 %7198 }
 0x7f2   : > { %v7289_v15 = vadd.f32 %v7199_v57, %v14066_v40 }
 0x7f4   : > { %v7360_v14 = vadd.f32 %v13938_v37, %v7289_v15  ;;  %v7201_v32 = vpop.permute.xlu0 %7200 }
 0x7f5   : > { %v7290_v62 = vadd.f32 %v7201_v32, %v14074_v52 }
 0x7f6   : > { %7425 = vst.msk [vmem:[%s13947_s17 + $0x128] sm:$0xff] %vm7387_vm4, %v7360_v14 }
 0x7f7   : > { %v7361_v41 = vadd.f32 %v13938_v37, %v7290_v62 }
 0x7f9   : > { %7426 = vst.msk [vmem:[%s13947_s17 + $0x130] sm:$0xff] %vm7387_vm4, %v7361_v41  ;;  %v7203_v1 = vpop.permute.xlu1 %7202 }
 0x7fa   : > { %v7291_v8 = vadd.f32 %v7203_v1, %v14084_v56 }
 0x7fc   : > { %v7362_v34 = vadd.f32 %v13938_v37, %v7291_v8  ;;  %v7205_v44 = vpop.permute.xlu0 %7204 }
 0x7fd   : > { %v7292_v40 = vadd.f32 %v7205_v44, %v14092_v11 }
 0x7fe   : > { %7427 = vst.msk [vmem:[%s13947_s17 + $0x138] sm:$0xff] %vm7387_vm4, %v7362_v34 }
 0x7ff   : > { %v7363_v52 = vadd.f32 %v13938_v37, %v7292_v40 }
 0x801   : > { %7428 = vst.msk [vmem:[%s13947_s17 + $0x140] sm:$0xff] %vm7387_vm4, %v7363_v52  ;;  %v7207_v48 = vpop.permute.xlu1 %7206 }
 0x802   : > { %v7293_v38 = vadd.f32 %v7207_v48, %v14102_v30 }
 0x804   : > { %v7364_v58 = vadd.f32 %v13938_v37, %v7293_v38  ;;  %v7209_v20 = vpop.permute.xlu0 %7208 }
 0x805   : > { %v7294_v56 = vadd.f32 %v7209_v20, %v14110_v7 }
 0x806   : > { %7429 = vst.msk [vmem:[%s13947_s17 + $0x148] sm:$0xff] %vm7387_vm4, %v7364_v58 }
 0x807   : > { %v7365_v11 = vadd.f32 %v13938_v37, %v7294_v56 }
 0x809   : > { %7430 = vst.msk [vmem:[%s13947_s17 + $0x150] sm:$0xff] %vm7387_vm4, %v7365_v11  ;;  %v7211_v55 = vpop.permute.xlu1 %7210 }
 0x80a   : > { %v7295_v0 = vadd.f32 %v7211_v55, %v14120_v26 }
 0x80c   : > { %v7366_v59 = vadd.f32 %v13938_v37, %v7295_v0  ;;  %v7213_v3 = vpop.permute.xlu0 %7212 }
 0x80d   : > { %v7296_v30 = vadd.f32 %v7213_v3, %v14128_v6 }
 0x80e   : > { %7431 = vst.msk [vmem:[%s13947_s17 + $0x158] sm:$0xff] %vm7387_vm4, %v7366_v59 }
 0x80f   : > { %v7367_v7 = vadd.f32 %v13938_v37, %v7296_v30 }
 0x811   : > { %7432 = vst.msk [vmem:[%s13947_s17 + $0x160] sm:$0xff] %vm7387_vm4, %v7367_v7  ;;  %v7215_v54 = vpop.permute.xlu1 %7214 }
 0x812   : > { %v7297_v18 = vadd.f32 %v7215_v54, %v14138_v45 }
 0x814   : > { %v7368_v25 = vadd.f32 %v13938_v37, %v7297_v18  ;;  %v7217_v22 = vpop.permute.xlu0 %7216 }
 0x815   : > { %v7298_v26 = vadd.f32 %v7217_v22, %v14146_v19 }
 0x816   : > { %7433 = vst.msk [vmem:[%s13947_s17 + $0x168] sm:$0xff] %vm7387_vm4, %v7368_v25 }
 0x817   : > { %v7369_v6 = vadd.f32 %v13938_v37, %v7298_v26 }
 0x819   : > { %7434 = vst.msk [vmem:[%s13947_s17 + $0x170] sm:$0xff] %vm7387_vm4, %v7369_v6  ;;  %v7219_v60 = vpop.permute.xlu1 %7218 }
 0x81a   : > { %v7299_v10 = vadd.f32 %v7219_v60, %v14156_v17 }
 0x81c   : > { %v7370_v2 = vadd.f32 %v13938_v37, %v7299_v10  ;;  %v7221_v46 = vpop.permute.xlu0 %7220 }
 0x81d   : > { %v7300_v45 = vadd.f32 %v7221_v46, %v14164_v21 }
 0x81e   : > { %7435 = vst.msk [vmem:[%s13947_s17 + $0x178] sm:$0xff] %vm7387_vm4, %v7370_v2 }
 0x81f   : > { %v7371_v19 = vadd.f32 %v13938_v37, %v7300_v45 }
 0x821   : > { %7436 = vst.msk [vmem:[%s13947_s17 + $0x180] sm:$0xff] %vm7387_vm4, %v7371_v19  ;;  %v7223_v27 = vpop.permute.xlu1 %7222 }
 0x822   : > { %v7301_v31 = vadd.f32 %v7223_v27, %v14174_v23 }
 0x824   : > { %v7372_v39 = vadd.f32 %v13938_v37, %v7301_v31  ;;  %v7225_v33 = vpop.permute.xlu0 %7224 }
 0x825   : > { %v7302_v17 = vadd.f32 %v7225_v33, %v14182_v12 }
 0x826   : > { %7437 = vst.msk [vmem:[%s13947_s17 + $0x188] sm:$0xff] %vm7387_vm4, %v7372_v39 }
 0x827   : > { %v7373_v21 = vadd.f32 %v13938_v37, %v7302_v17 }
 0x829   : > { %7438 = vst.msk [vmem:[%s13947_s17 + $0x190] sm:$0xff] %vm7387_vm4, %v7373_v21  ;;  %v7227_v24 = vpop.permute.xlu1 %7226 }
 0x82a   : > { %v7303_v28 = vadd.f32 %v7227_v24, %v14192_v42 }
 0x82c   : > { %v7374_v36 = vadd.f32 %v13938_v37, %v7303_v28  ;;  %v7229_v13 = vpop.permute.xlu0 %7228 }
 0x82d   : > { %v7304_v23 = vadd.f32 %v7229_v13, %v14200_v16 }
 0x82e   : > { %7439 = vst.msk [vmem:[%s13947_s17 + $0x198] sm:$0xff] %vm7387_vm4, %v7374_v36 }
 0x82f   : > { %v7375_v12 = vadd.f32 %v13938_v37, %v7304_v23 }
 0x831   : > { %7440 = vst.msk [vmem:[%s13947_s17 + $0x1a0] sm:$0xff] %vm7387_vm4, %v7375_v12  ;;  %v7231_v35 = vpop.permute.xlu1 %7230 }
 0x832   : > { %v7305_v9 = vadd.f32 %v7231_v35, %v14210_v49 }
 0x834   : > { %v7376_v57 = vadd.f32 %v13938_v37, %v7305_v9  ;;  %v7233_v15 = vpop.permute.xlu0 %7232 }
 0x835   : > { %v7306_v42 = vadd.f32 %v7233_v15, %v14218_v51 }
 0x836   : > { %7441 = vst.msk [vmem:[%s13947_s17 + $0x1a8] sm:$0xff] %vm7387_vm4, %v7376_v57 }
 0x837   : > { %v7377_v16 = vadd.f32 %v13938_v37, %v7306_v42 }
 0x839   : > { %7442 = vst.msk [vmem:[%s13947_s17 + $0x1b0] sm:$0xff] %vm7387_vm4, %v7377_v16  ;;  %v7235_v14 = vpop.permute.xlu1 %7234 }
 0x83a   : > { %v7307_v32 = vadd.f32 %v7235_v14, %v14228_v29 }
 0x83c   : > { %v7378_v62 = vadd.f32 %v13938_v37, %v7307_v32  ;;  %v7237_v41 = vpop.permute.xlu0 %7236 }
 0x83d   : > { %v7308_v49 = vadd.f32 %v7237_v41, %v14236_v5 }
 0x83e   : > { %7443 = vst.msk [vmem:[%s13947_s17 + $0x1b8] sm:$0xff] %vm7387_vm4, %v7378_v62 }
 0x83f   : > { %v7379_v51 = vadd.f32 %v13938_v37, %v7308_v49 }
 0x841   : > { %7444 = vst.msk [vmem:[%s13947_s17 + $0x1c0] sm:$0xff] %vm7387_vm4, %v7379_v51  ;;  %v7239_v1 = vpop.permute.xlu1 %7238 }
 0x842   : > { %v7309_v8 = vadd.f32 %v7239_v1, %v14246_v53 }
 0x844   : > { %v7380_v34 = vadd.f32 %v13938_v37, %v7309_v8  ;;  %v7241_v44 = vpop.permute.xlu0 %7240 }
 0x845   : > { %v7310_v29 = vadd.f32 %v7241_v44, %v14254_v47 }
 0x846   : > { %7445 = vst.msk [vmem:[%s13947_s17 + $0x1c8] sm:$0xff] %vm7387_vm4, %v7380_v34 }
 0x847   : > { %v7381_v5 = vadd.f32 %v13938_v37, %v7310_v29 }
 0x849   : > { %7446 = vst.msk [vmem:[%s13947_s17 + $0x1d0] sm:$0xff] %vm7387_vm4, %v7381_v5  ;;  %v7243_v40 = vpop.permute.xlu1 %7242 }
 0x84a   : > { %v7311_v52 = vadd.f32 %v7243_v40, %v14264_v43 }
 0x84c   : > { %v7382_v48 = vadd.f32 %v13938_v37, %v7311_v52  ;;  %v7245_v38 = vpop.permute.xlu0 %7244 }
 0x84d   : > { %v7312_v53 = vadd.f32 %v7245_v38, %v14272_v61 }
 0x84e   : > { %7447 = vst.msk [vmem:[%s13947_s17 + $0x1d8] sm:$0xff] %vm7387_vm4, %v7382_v48 }
 0x84f   : > { %v7383_v47 = vadd.f32 %v13938_v37, %v7312_v53 }
 0x851   : > { %7448 = vst.msk [vmem:[%s13947_s17 + $0x1e0] sm:$0xff] %vm7387_vm4, %v7383_v47  ;;  %v7247_v58 = vpop.permute.xlu1 %7246 }
 0x852   : > { %v7313_v20 = vadd.f32 %v7247_v58, %v14282_v4 }
 0x854   : > { %v7384_v56 = vadd.f32 %v13938_v37, %v7313_v20  ;;  %v7249_v11 = vpop.permute.xlu0 %7248 }
 0x855   : > { %v7314_v43 = vadd.f32 %v7249_v11, %v14290_v50 }
 0x856   : > { %7449 = vst.msk [vmem:[%s13947_s17 + $0x1e8] sm:$0xff] %vm7387_vm4, %v7384_v56 }
 0x857   : > { %v7385_v55 = vadd.f32 %v13938_v37, %v7314_v43 }
 0x859   : > { %7450 = vst.msk [vmem:[%s13947_s17 + $0x1f0] sm:$0xff] %vm7387_vm4, %v7385_v55  ;;  %v7251_v61 = vpop.permute.xlu1 %7250 }
 0x85a   : > { %v7315_v0 = vadd.f32 %v7251_v61, %v14299_v63 }
 0x85c   : > { %v7386_v59 = vadd.f32 %v13938_v37, %v7315_v0 }
 0x85e   : > { %7451 = vst.msk [vmem:[%s13947_s17 + $0x1f8] sm:$0xff] %vm7387_vm4, %v7386_v59 }
 0x85f PF: > { %s22_s21 = sadd.s32 1, %s8538_s21  }
 0x860   : > { %p19_p4 = scmp.ge.s32.totalorder %s22_s21, 6  }
 0x862   :  { %21 = sbr.rel (!%p19_p4) target bundleno = 1 (0x1), region = 101 }

</bundles_post_ra>
